<compile_context>
chip_gen: v5e
topology: v5e:2x2
jax: 0.10.0
libtpu: 0.0.40
codegen_flags: <defaults>
</compile_context>

<pallas_src>
import functools

import numpy as np
import jax
import jax.numpy as jnp
from jax.experimental import pallas as pl
from jax.experimental.pallas import tpu as pltpu

HIDDEN = 512          # fixed by the PyTorch module
LANE = 128
MIB = 1 << 20

# Fully-VMEM-resident fused kernel is only used while its (double-buffered)
# footprint fits conservatively inside the smallest physical VMEM (v7x: 64 MiB).
FUSED_VMEM_BUDGET = 48 * MIB


# ------------------------------ small helpers ------------------------------

def _round_up(x, m):
    return ((x + m - 1) // m) * m


def _full_spec(shape):
    ndim = len(shape)
    return pl.BlockSpec(shape, lambda *_: (0,) * ndim)


def _nbytes(*arrays):
    return int(sum(int(a.size) * np.dtype(a.dtype).itemsize for a in arrays))


def _vmem_limit(raw_bytes):
    # Default scoped VMEM is only 16 MiB (v5e) / 32 MiB (v6e, v7x).  Size the
    # limit from the real footprint + headroom, capped at v7x's 64 MiB.
    return int(min(max(raw_bytes + 16 * MIB, 32 * MIB), 64 * MIB))


# --------------------------- fused (resident) path --------------------------

def make_fused_gcn_kernel(num_layers):
    """kernel(a, x, w0, b0, ..., w_{L-1}, b_{L-1}, fc_w, fc_b, out, h_scratch)."""

    def kernel(*refs):
        a_ref, x_ref = refs[0], refs[1]
        conv_refs = refs[2:2 + 2 * num_layers]            # w0, b0, w1, b1, ...
        fcw_ref = refs[2 + 2 * num_layers]
        fcb_ref = refs[3 + 2 * num_layers]
        o_ref = refs[4 + 2 * num_layers]
        h_ref = refs[5 + 2 * num_layers]                  # bf16 VMEM scratch [Np, 512]

        a = a_ref[...]                                    # bf16 [Np, Np]

        # ---- layer 0: relu((A @ X) @ W0 + b0)  (reassociated; din_pad < 512) ----
        ax = jnp.dot(a, x_ref[...], preferred_element_type=jnp.float32)
        h = jnp.dot(ax.astype(jnp.bfloat16), conv_refs[0][...],
                    preferred_element_type=jnp.float32) + conv_refs[1][...]
        h_ref[...] = jnp.maximum(h, 0.0).astype(jnp.bfloat16)

        # ---- layers 1..L-1: relu(A @ (H @ Wi) + bi) ----
        for l in range(1, num_layers):
            w = conv_refs[2 * l][...]                     # bf16 [512, 512]
            b = conv_refs[2 * l + 1][...]                 # f32  [1, 512]
            hw = jnp.dot(h_ref[...], w, preferred_element_type=jnp.float32)
            y = jnp.dot(a, hw.astype(jnp.bfloat16),
                        preferred_element_type=jnp.float32) + b
            # single fused epilogue: bias (above) + relu + bf16 store
            h_ref[...] = jnp.maximum(y, 0.0).astype(jnp.bfloat16)

        # ---- final Linear into a lane-dense (>=128-wide) padded output ----
        o_ref[...] = jnp.dot(h_ref[...], fcw_ref[...],
                             preferred_element_type=jnp.float32) + fcb_ref[...]

    return kernel


def _forward_fused(a_bf, x_bf, conv, fc_w, fc_b, n_pad, f_pad, num_layers):
    in_arrays = [a_bf, x_bf] + conv + [fc_w, fc_b]
    in_specs = [_full_spec(arr.shape) for arr in in_arrays]

    in_bytes = _nbytes(*in_arrays)
    out_bytes = n_pad * f_pad * 4
    scratch_bytes = n_pad * HIDDEN * 2                    # bf16 activation scratch

    flops = 2 * (n_pad * n_pad * f_pad + n_pad * f_pad * HIDDEN)          # layer 0
    flops += 2 * (num_layers - 1) * (n_pad * HIDDEN * HIDDEN
                                     + n_pad * n_pad * HIDDEN)            # layers 1..
    flops += 2 * n_pad * HIDDEN * f_pad                                   # fc

    return pl.pallas_call(
        make_fused_gcn_kernel(num_layers),
        out_shape=jax.ShapeDtypeStruct((n_pad, f_pad), jnp.float32),
        in_specs=in_specs,
        out_specs=_full_spec((n_pad, f_pad)),
        scratch_shapes=[pltpu.VMEM((n_pad, HIDDEN), jnp.bfloat16)],
        compiler_params=pltpu.CompilerParams(
            vmem_limit_bytes=_vmem_limit(2 * (in_bytes + out_bytes) + scratch_bytes)),
        cost_estimate=pl.CostEstimate(flops=flops, transcendentals=0,
                                      bytes_accessed=in_bytes + out_bytes),
    )(*in_arrays)


# ---------------------------- row-tiled fallback ----------------------------

def _mm_kernel(x_ref, w_ref, o_ref):
    o_ref[...] = jnp.dot(x_ref[...], w_ref[...],
                         preferred_element_type=jnp.float32).astype(o_ref.dtype)


def _mm_bias_kernel(x_ref, w_ref, b_ref, o_ref, *, relu):
    y = jnp.dot(x_ref[...], w_ref[...],
                preferred_element_type=jnp.float32) + b_ref[...]
    if relu:
        y = jnp.maximum(y, 0.0)
    o_ref[...] = y.astype(o_ref.dtype)


def _tiled_matmul(x, w, bias=None, *, out_dtype, relu=False, row_tile):
    """Row-tiled y = [relu](x @ w [+ bias]); grid axis marked "parallel"."""
    rows, din = x.shape
    dout = w.shape[1]
    assert rows % row_tile == 0
    grid = (rows // row_tile,)

    in_specs = [pl.BlockSpec((row_tile, din), lambda i: (i, 0)),
                # weights resident across row tiles (constant index_map):
                pl.BlockSpec((din, dout), lambda i: (0, 0))]
    args = [x, w]
    if bias is None:
        kernel = _mm_kernel
    else:
        kernel = functools.partial(_mm_bias_kernel, relu=relu)
        in_specs.append(pl.BlockSpec((1, dout), lambda i: (0, 0)))
        args.append(bias)

    out_itemsize = np.dtype(out_dtype).itemsize
    tile_bytes = (row_tile * din * np.dtype(x.dtype).itemsize
                  + _nbytes(*args[1:])
                  + row_tile * dout * out_itemsize)
    cost = pl.CostEstimate(
        flops=2 * rows * din * dout, transcendentals=0,
        bytes_accessed=_nbytes(*args) + rows * dout * out_itemsize)

    return pl.pallas_call(
        kernel,
        out_shape=jax.ShapeDtypeStruct((rows, dout), out_dtype),
        grid=grid,
        in_specs=in_specs,
        out_specs=pl.BlockSpec((row_tile, dout), lambda i: (i, 0)),
        compiler_params=pltpu.CompilerParams(
            dimension_semantics=("parallel",),
            vmem_limit_bytes=_vmem_limit(2 * tile_bytes)),
        cost_estimate=cost,
    )(*args)


def _forward_tiled(a_bf, x_bf, conv, fc_w, fc_b, num_layers, row_tile):
    # Per layer: row-tiled transform HW = H @ W, then row-tiled aggregation
    # relu(A_rowtile @ HW + b) with HW / weights VMEM-resident.
    # TODO(synk): for real sparse graphs, replace the dense aggregation with a
    # block-sparse PrefetchScalarGridSpec variant that only visits nonzero
    # A tiles.
    h = x_bf
    for l in range(num_layers):
        w, b = conv[2 * l], conv[2 * l + 1]
        hw = _tiled_matmul(h, w, out_dtype=jnp.bfloat16, row_tile=row_tile)
        h = _tiled_matmul(a_bf, hw, bias=b, out_dtype=jnp.bfloat16,
                          relu=True, row_tile=row_tile)
    return _tiled_matmul(h, fc_w, bias=fc_b, out_dtype=jnp.float32,
                         row_tile=row_tile)


# ------------------------------ model wrapper -------------------------------

def init_params(key, input_dim, num_layers):
    """Glorot-style init matching GCNConv/Linear shapes.

    GCNConv(in, out): weight [in, out] (transposed vs torch), bias [out]
    Linear(512, input_dim): weight [512, input_dim], bias [input_dim]
    """
    dims = [input_dim] + [HIDDEN] * num_layers
    params = {"conv_w": [], "conv_b": []}
    for i in range(num_layers):
        din, dout = dims[i], dims[i + 1]
        key, k = jax.random.split(key)
        scale = jnp.sqrt(6.0 / (din + dout))
        params["conv_w"].append(
            jax.random.uniform(k, (din, dout), jnp.float32, -scale, scale))
        params["conv_b"].append(jnp.zeros((1, dout), jnp.float32))
    key, k = jax.random.split(key)
    scale = jnp.sqrt(6.0 / (HIDDEN + input_dim))
    params["fc_w"] = jax.random.uniform(
        k, (HIDDEN, input_dim), jnp.float32, -scale, scale)
    params["fc_b"] = jnp.zeros((1, input_dim), jnp.float32)
    return params


def build_normalized_adjacency(edge_index, num_nodes):
    """Dense A_hat = D^-1/2 (A + I) D^-1/2 (undirected), plain JAX glue."""
    # TODO(synk): edge_index scatter -> dense adjacency has no clean Pallas
    # equivalent at this size; built with jnp .at[] scatter outside the kernel.
    src, dst = edge_index[0], edge_index[1]
    a = jnp.zeros((num_nodes, num_nodes), jnp.float32)
    a = a.at[dst, src].set(1.0)
    a = a.at[src, dst].set(1.0)                    # undirected
    a = a + jnp.eye(num_nodes, dtype=jnp.float32)  # self-loops
    a = jnp.minimum(a, 1.0)                        # clamp duplicates to 0/1
    deg = jnp.sum(a, axis=1)
    d_inv_sqrt = jnp.where(deg > 0, 1.0 / jnp.sqrt(deg), 0.0)
    return d_inv_sqrt[:, None] * a * d_inv_sqrt[None, :]


def _pad2(x, rows, cols):
    return jnp.pad(x, ((0, rows - x.shape[0]), (0, cols - x.shape[1])))


def prepare_padded(x, a_hat, params):
    """Pad N / feature dims to lane multiples; cast matmul operands to bf16.

    Invariant: padded rows/cols of A_hat and padded rows of X are exactly zero,
    so fake-node activations (relu(bias)) never contaminate real rows.
    """
    n, f = x.shape
    n_pad = _round_up(max(n, LANE), LANE)
    f_pad = _round_up(max(f, LANE), LANE)

    a_bf = _pad2(a_hat, n_pad, n_pad).astype(jnp.bfloat16)
    x_bf = _pad2(x, n_pad, f_pad).astype(jnp.bfloat16)

    conv = []
    for i, (w, b) in enumerate(zip(params["conv_w"], params["conv_b"])):
        din = f_pad if i == 0 else HIDDEN
        conv.append(_pad2(w, din, HIDDEN).astype(jnp.bfloat16))  # zero-padded rows
        conv.append(b.astype(jnp.float32))
    fc_w = _pad2(params["fc_w"], HIDDEN, f_pad).astype(jnp.bfloat16)
    fc_b = _pad2(params["fc_b"], 1, f_pad).astype(jnp.float32)
    return a_bf, x_bf, conv, fc_w, fc_b, n_pad, f_pad


@functools.partial(jax.jit, static_argnames=("force_tiled", "row_tile"))
def gcn_forward(x, a_hat, params, force_tiled=False, row_tile=None):
    n, f = x.shape
    num_layers = len(params["conv_w"])
    a_bf, x_bf, conv, fc_w, fc_b, n_pad, f_pad = prepare_padded(x, a_hat, params)

    in_arrays = [a_bf, x_bf] + conv + [fc_w, fc_b]
    fused_footprint = (2 * (_nbytes(*in_arrays) + n_pad * f_pad * 4)
                       + n_pad * HIDDEN * 2)

    if force_tiled or fused_footprint > FUSED_VMEM_BUDGET:
        if row_tile is None:
            # >=256-row tiles fill the 2x256^2 MXU on v6e/v7x; 128 is native v5e.
            row_tile = 256 if n_pad % 256 == 0 else 128
        out = _forward_tiled(a_bf, x_bf, conv, fc_w, fc_b, num_layers, row_tile)
    else:
        out = _forward_fused(a_bf, x_bf, conv, fc_w, fc_b, n_pad, f_pad, num_layers)
    return out[:n, :f]


# -------------------------------- references --------------------------------

def gcn_forward_ref_f32(x, a_hat, params):
    """Pure-f32 reference matching the PyTorch module semantics."""
    h = x
    for w, b in zip(params["conv_w"], params["conv_b"]):
        h = jnp.maximum(a_hat @ (h @ w) + b, 0.0)
    return h @ params["fc_w"] + params["fc_b"]


def gcn_forward_ref_matched(x, a_hat, params):
    """Pure-JAX reference with the fused kernel's padding + bf16/f32 math."""
    n, f = x.shape
    num_layers = len(params["conv_w"])
    a_bf, x_bf, conv, fc_w, fc_b, _, _ = prepare_padded(x, a_hat, params)
    ax = jnp.dot(a_bf, x_bf, preferred_element_type=jnp.float32)
    h = jnp.dot(ax.astype(jnp.bfloat16), conv[0],
                preferred_element_type=jnp.float32) + conv[1]
    h = jnp.maximum(h, 0.0)
    for l in range(1, num_layers):
        w, b = conv[2 * l], conv[2 * l + 1]
        hw = jnp.dot(h.astype(jnp.bfloat16), w, preferred_element_type=jnp.float32)
        h = jnp.maximum(
            jnp.dot(a_bf, hw.astype(jnp.bfloat16),
                    preferred_element_type=jnp.float32) + b, 0.0)
    out = jnp.dot(h.astype(jnp.bfloat16), fc_w,
                  preferred_element_type=jnp.float32) + fc_b
    return out[:n, :f]


def _make_graph(key, num_nodes, input_dim, num_chords):
    """Deterministic node features and ring-plus-chords edge_index."""
    k_x, k_e = jax.random.split(key)
    x = jax.random.normal(k_x, (num_nodes, input_dim), jnp.float32)
    ring_src = jnp.arange(num_nodes)
    ring_dst = (ring_src + 1) % num_nodes
    rand_src = jax.random.randint(k_e, (num_chords,), 0, num_nodes)
    rand_dst = (rand_src + jax.random.randint(
        jax.random.fold_in(k_e, 1), (num_chords,), 1, num_nodes)) % num_nodes
    edge_index = jnp.stack(
        [jnp.concatenate([ring_src, rand_src]),
         jnp.concatenate([ring_dst, rand_dst])], axis=0)
    return x, edge_index


# ----------------------------------- main ------------------------------------

if __name__ == "__main__":
    key = jax.random.PRNGKey(0)
    k_g1, k_g2, k_p = jax.random.split(key, 3)

    input_dim = 8
    num_layers = 3      # convs: [8->512, 512->512, 512->512], fc: 512->8
    params = init_params(k_p, input_dim, num_layers)

    # ---- small graph: fused (fully VMEM-resident) path ----
    num_nodes = 16
    x, edge_index = _make_graph(k_g1, num_nodes, input_dim, num_chords=8)
    a_hat = build_normalized_adjacency(edge_index, num_nodes)

    out = jax.block_until_ready(gcn_forward(x, a_hat, params))
    assert out.shape == (num_nodes, input_dim)

    # tight check against a reference using the exact same bf16/f32 mixed math
    ref_matched = gcn_forward_ref_matched(x, a_hat, params)
    assert jnp.allclose(out, ref_matched, atol=5e-3, rtol=5e-3)

    # loose check against the full-f32 PyTorch-semantics reference
    # (loose tolerance accounts for bf16 MXU operand rounding of A_hat/W/H)
    ref_f32 = gcn_forward_ref_f32(x, a_hat, params)
    assert jnp.allclose(out, ref_f32, atol=5e-2, rtol=5e-2)

    # ---- slightly larger graph: exercise the row-tiled "parallel" fallback ----
    num_nodes2 = 200    # pads to 256 rows; row_tile=128 -> 2-tile parallel grid
    x2, edge_index2 = _make_graph(k_g2, num_nodes2, input_dim, num_chords=32)
    a_hat2 = build_normalized_adjacency(edge_index2, num_nodes2)

    out_tiled = jax.block_until_ready(
        gcn_forward(x2, a_hat2, params, force_tiled=True, row_tile=128))
    assert out_tiled.shape == (num_nodes2, input_dim)
    ref2_f32 = gcn_forward_ref_f32(x2, a_hat2, params)
    assert jnp.allclose(out_tiled, ref2_f32, atol=5e-2, rtol=5e-2)

    print("KERNEL_OK")
</pallas_src>

<mosaic_0001>
module attributes {stable_mosaic.version = 11 : i64} {
  func.func @kernel(%arg0: memref<128x128xbf16, #tpu.memory_space<vmem>>, %arg1: memref<128x128xbf16, #tpu.memory_space<vmem>>, %arg2: memref<128x512xbf16, #tpu.memory_space<vmem>>, %arg3: memref<1x512xf32, #tpu.memory_space<vmem>>, %arg4: memref<512x512xbf16, #tpu.memory_space<vmem>>, %arg5: memref<1x512xf32, #tpu.memory_space<vmem>>, %arg6: memref<512x512xbf16, #tpu.memory_space<vmem>>, %arg7: memref<1x512xf32, #tpu.memory_space<vmem>>, %arg8: memref<512x128xbf16, #tpu.memory_space<vmem>>, %arg9: memref<1x128xf32, #tpu.memory_space<vmem>>, %arg10: memref<128x128xf32, #tpu.memory_space<vmem>>, %arg11: memref<128x512xbf16, #tpu.memory_space<vmem>>) attributes {dimension_semantics = [], scalar_prefetch = 0 : i64, scratch_operands = 1 : i64, tpu.core_type = #tpu.core_type<tc>} {
    %c0 = arith.constant 0 : index
    %c0_0 = arith.constant 0 : index
    %0 = vector.load %arg0[%c0, %c0_0] : memref<128x128xbf16, #tpu.memory_space<vmem>>, vector<128x128xbf16>
    %c0_1 = arith.constant 0 : index
    %c0_2 = arith.constant 0 : index
    %1 = vector.load %arg1[%c0_1, %c0_2] : memref<128x128xbf16, #tpu.memory_space<vmem>>, vector<128x128xbf16>
    %cst = arith.constant dense<0.000000e+00> : vector<128x128xf32>
    %2 = tpu.matmul %0, %1, %cst {dimension_numbers = #tpu.dot_dimension_numbers<[1], [0], [0], [1], [0, 0, 1, 1], [], []>} : vector<128x128xbf16>, vector<128x128xbf16>, vector<128x128xf32> -> vector<128x128xf32>
    %3 = arith.truncf %2 : vector<128x128xf32> to vector<128x128xbf16>
    %c0_3 = arith.constant 0 : index
    %c0_4 = arith.constant 0 : index
    %4 = vector.load %arg2[%c0_3, %c0_4] : memref<128x512xbf16, #tpu.memory_space<vmem>>, vector<128x512xbf16>
    %cst_5 = arith.constant dense<0.000000e+00> : vector<128x512xf32>
    %5 = tpu.matmul %3, %4, %cst_5 {dimension_numbers = #tpu.dot_dimension_numbers<[1], [0], [0], [1], [0, 0, 1, 1], [], []>} : vector<128x128xbf16>, vector<128x512xbf16>, vector<128x512xf32> -> vector<128x512xf32>
    %c0_6 = arith.constant 0 : index
    %c0_7 = arith.constant 0 : index
    %6 = vector.load %arg3[%c0_6, %c0_7] : memref<1x512xf32, #tpu.memory_space<vmem>>, vector<1x512xf32>
    %7 = vector.broadcast %6 : vector<1x512xf32> to vector<128x512xf32>
    %8 = arith.addf %5, %7 : vector<128x512xf32>
    %cst_8 = arith.constant 0.000000e+00 : f32
    %9 = vector.broadcast %cst_8 : f32 to vector<128x512xf32>
    %10 = arith.maximumf %8, %9 : vector<128x512xf32>
    %11 = arith.truncf %10 : vector<128x512xf32> to vector<128x512xbf16>
    %c0_9 = arith.constant 0 : index
    %c0_10 = arith.constant 0 : index
    %12 = vector.load %arg11[%c0_9, %c0_10] : memref<128x512xbf16, #tpu.memory_space<vmem>>, vector<128x512xbf16>
    tpu.vector_store %arg11[%c0_9, %c0_10], %11 {strides = array<i32>} : memref<128x512xbf16, #tpu.memory_space<vmem>>, vector<128x512xbf16>,
    %c0_11 = arith.constant 0 : index
    %c0_12 = arith.constant 0 : index
    %13 = vector.load %arg4[%c0_11, %c0_12] : memref<512x512xbf16, #tpu.memory_space<vmem>>, vector<512x512xbf16>
    %c0_13 = arith.constant 0 : index
    %c0_14 = arith.constant 0 : index
    %14 = vector.load %arg5[%c0_13, %c0_14] : memref<1x512xf32, #tpu.memory_space<vmem>>, vector<1x512xf32>
    %c0_15 = arith.constant 0 : index
    %c0_16 = arith.constant 0 : index
    %15 = vector.load %arg11[%c0_15, %c0_16] : memref<128x512xbf16, #tpu.memory_space<vmem>>, vector<128x512xbf16>
    %cst_17 = arith.constant dense<0.000000e+00> : vector<128x512xf32>
    %16 = tpu.matmul %15, %13, %cst_17 {dimension_numbers = #tpu.dot_dimension_numbers<[1], [0], [0], [1], [0, 0, 1, 1], [], []>} : vector<128x512xbf16>, vector<512x512xbf16>, vector<128x512xf32> -> vector<128x512xf32>
    %17 = arith.truncf %16 : vector<128x512xf32> to vector<128x512xbf16>
    %cst_18 = arith.constant dense<0.000000e+00> : vector<128x512xf32>
    %18 = tpu.matmul %0, %17, %cst_18 {dimension_numbers = #tpu.dot_dimension_numbers<[1], [0], [0], [1], [0, 0, 1, 1], [], []>} : vector<128x128xbf16>, vector<128x512xbf16>, vector<128x512xf32> -> vector<128x512xf32>
    %19 = vector.broadcast %14 : vector<1x512xf32> to vector<128x512xf32>
    %20 = arith.addf %18, %19 : vector<128x512xf32>
    %cst_19 = arith.constant 0.000000e+00 : f32
    %21 = vector.broadcast %cst_19 : f32 to vector<128x512xf32>
    %22 = arith.maximumf %20, %21 : vector<128x512xf32>
    %23 = arith.truncf %22 : vector<128x512xf32> to vector<128x512xbf16>
    %c0_20 = arith.constant 0 : index
    %c0_21 = arith.constant 0 : index
    %24 = vector.load %arg11[%c0_20, %c0_21] : memref<128x512xbf16, #tpu.memory_space<vmem>>, vector<128x512xbf16>
    tpu.vector_store %arg11[%c0_20, %c0_21], %23 {strides = array<i32>} : memref<128x512xbf16, #tpu.memory_space<vmem>>, vector<128x512xbf16>,
    %c0_22 = arith.constant 0 : index
    %c0_23 = arith.constant 0 : index
    %25 = vector.load %arg6[%c0_22, %c0_23] : memref<512x512xbf16, #tpu.memory_space<vmem>>, vector<512x512xbf16>
    %c0_24 = arith.constant 0 : index
    %c0_25 = arith.constant 0 : index
    %26 = vector.load %arg7[%c0_24, %c0_25] : memref<1x512xf32, #tpu.memory_space<vmem>>, vector<1x512xf32>
    %c0_26 = arith.constant 0 : index
    %c0_27 = arith.constant 0 : index
    %27 = vector.load %arg11[%c0_26, %c0_27] : memref<128x512xbf16, #tpu.memory_space<vmem>>, vector<128x512xbf16>
    %cst_28 = arith.constant dense<0.000000e+00> : vector<128x512xf32>
    %28 = tpu.matmul %27, %25, %cst_28 {dimension_numbers = #tpu.dot_dimension_numbers<[1], [0], [0], [1], [0, 0, 1, 1], [], []>} : vector<128x512xbf16>, vector<512x512xbf16>, vector<128x512xf32> -> vector<128x512xf32>
    %29 = arith.truncf %28 : vector<128x512xf32> to vector<128x512xbf16>
    %cst_29 = arith.constant dense<0.000000e+00> : vector<128x512xf32>
    %30 = tpu.matmul %0, %29, %cst_29 {dimension_numbers = #tpu.dot_dimension_numbers<[1], [0], [0], [1], [0, 0, 1, 1], [], []>} : vector<128x128xbf16>, vector<128x512xbf16>, vector<128x512xf32> -> vector<128x512xf32>
    %31 = vector.broadcast %26 : vector<1x512xf32> to vector<128x512xf32>
    %32 = arith.addf %30, %31 : vector<128x512xf32>
    %cst_30 = arith.constant 0.000000e+00 : f32
    %33 = vector.broadcast %cst_30 : f32 to vector<128x512xf32>
    %34 = arith.maximumf %32, %33 : vector<128x512xf32>
    %35 = arith.truncf %34 : vector<128x512xf32> to vector<128x512xbf16>
    %c0_31 = arith.constant 0 : index
    %c0_32 = arith.constant 0 : index
    %36 = vector.load %arg11[%c0_31, %c0_32] : memref<128x512xbf16, #tpu.memory_space<vmem>>, vector<128x512xbf16>
    tpu.vector_store %arg11[%c0_31, %c0_32], %35 {strides = array<i32>} : memref<128x512xbf16, #tpu.memory_space<vmem>>, vector<128x512xbf16>,
    %c0_33 = arith.constant 0 : index
    %c0_34 = arith.constant 0 : index
    %37 = vector.load %arg11[%c0_33, %c0_34] : memref<128x512xbf16, #tpu.memory_space<vmem>>, vector<128x512xbf16>
    %c0_35 = arith.constant 0 : index
    %c0_36 = arith.constant 0 : index
    %38 = vector.load %arg8[%c0_35, %c0_36] : memref<512x128xbf16, #tpu.memory_space<vmem>>, vector<512x128xbf16>
    %cst_37 = arith.constant dense<0.000000e+00> : vector<128x128xf32>
    %39 = tpu.matmul %37, %38, %cst_37 {dimension_numbers = #tpu.dot_dimension_numbers<[1], [0], [0], [1], [0, 0, 1, 1], [], []>} : vector<128x512xbf16>, vector<512x128xbf16>, vector<128x128xf32> -> vector<128x128xf32>
    %c0_38 = arith.constant 0 : index
    %c0_39 = arith.constant 0 : index
    %40 = vector.load %arg9[%c0_38, %c0_39] : memref<1x128xf32, #tpu.memory_space<vmem>>, vector<1x128xf32>
    %41 = vector.broadcast %40 : vector<1x128xf32> to vector<128x128xf32>
    %42 = arith.addf %39, %41 : vector<128x128xf32>
    %c0_40 = arith.constant 0 : index
    %c0_41 = arith.constant 0 : index
    %43 = vector.load %arg10[%c0_40, %c0_41] : memref<128x128xf32, #tpu.memory_space<vmem>>, vector<128x128xf32>
    tpu.vector_store %arg10[%c0_40, %c0_41], %42 {strides = array<i32>} : memref<128x128xf32, #tpu.memory_space<vmem>>, vector<128x128xf32>,
    return
  }
}

</mosaic_0001>

<bundles_post_ra>
// kernel: gcn_forward.1
= control target key start
LH: loop header
LB: loop body
LE: loop exit
PB: predicated region body
PF: predicated region fallthrough
CT: control target
= control target key end

     0   :  { %s11250_s1 = inlined_call_operand.vmem [shape: bf16[128,128], index: 1, kind: input, shape index: {}]   ;;  %s11251_s2 = inlined_call_operand.vmem [shape: bf16[128,512], index: 2, kind: input, shape index: {}]   ;;  %s11252_s0 = inlined_call_operand.vmem [shape: bf16[128,128], index: 0, kind: input, shape index: {}]   ;;  %s11253_s4 = inlined_call_operand.vmem [shape: bf16[512,512], index: 4, kind: input, shape index: {}]   ;;  %s11254_s3 = inlined_call_operand.vmem [shape: f32[1,512], index: 3, kind: input, shape index: {}]   ;;  %s11255_s6 = inlined_call_operand.vmem [shape: bf16[512,512], index: 6, kind: input, shape index: {}]   ;;  %s11256_s5 = inlined_call_operand.vmem [shape: f32[1,512], index: 5, kind: input, shape index: {}]   ;;  %s11257_s8 = inlined_call_operand.vmem [shape: bf16[512,128], index: 8, kind: input, shape index: {}]   ;;  %s11258_s7 = inlined_call_operand.vmem [shape: f32[1,512], index: 7, kind: input, shape index: {}]   ;;  %s11259_s9 = inlined_call_operand.vmem [shape: f32[1,128], index: 9, kind: input, shape index: {}]   ;;  %s11260_s10 = inlined_call_operand.vmem [shape: f32[128,128], index: 10, kind: output, shape index: {}]  }
   0x1   :  { %v7377_v0 = vld [vmem:[%s11250_s1 + $0x38] sm:$0xff]  ;;  %v7376_v1 = vld [vmem:[%s11250_s1 + $0x30] sm:$0xff]  ;;  %v7375_v2 = vld [vmem:[%s11250_s1 + $0x28] sm:$0xff] }
   0x2   :  { %163 = vmatpush.bf16.msra.mxu0 %v7377_v0  ;;  %7794 = vmatpush.bf16.msra.mxu1 %v7377_v0  ;;  %v7374_v3 = vld [vmem:[%s11250_s1 + $0x20] sm:$0xff]  ;;  %v7373_v4 = vld [vmem:[%s11250_s1 + $0x18] sm:$0xff]  ;;  %v7372_v5 = vld [vmem:[%s11250_s1 + $0x10] sm:$0xff] }
   0x3   :  { %7795 = vmatpush.bf16.msra.mxu2 %v7377_v0  ;;  %7796 = vmatpush.bf16.msra.mxu3 %v7377_v0  ;;  %v7371_v6 = vld [vmem:[%s11250_s1 + $0x8] sm:$0xff]  ;;  %v5812_v7 = vld [vmem:[%s11251_s2 + $0xe0] sm:$0xf]  ;;  %v7408_v8 = vld [vmem:[%s11251_s2 + $0xec] sm:$0xf0] }
   0x4   :  { %v7406_v9 = vld [vmem:[%s11251_s2 + $0xe4] sm:$0xf]  ;;  %v5814_v10 = vld [vmem:[%s11251_s2 + $0xf0] sm:$0xf0]  ;;  %v5820_v14 = vld [vmem:[%s11251_s2 + $0xe8] sm:$0xf]  ;;  %v5813_v16 = vor.u32 %v7408_v8, %v5812_v7 }
   0x5   :  { %v7370_v11 = vld [vmem:[%s11250_s1] sm:$0xff]  ;;  %v7364_v13 = vld [vmem:[%s11252_s0 + $0x10] sm:$0xff]  ;;  %v7409_v15 = vld [vmem:[%s11251_s2 + $0xf4] sm:$0xf0]  ;;  %v5817_v17 = vor.u32 %v7406_v9, %v5814_v10 }
   0x6   :  { %164 = vmatpush.bf16.msra.mxu0 %v7376_v1  ;;  %7797 = vmatpush.bf16.msra.mxu1 %v7376_v1  ;;  %v7362_v12 = vld [vmem:[%s11252_s0] sm:$0xff]  ;;  %v7407_v18 = vld [vmem:[%s11251_s2 + $0xec] sm:$0xf]  ;;  %v5822_v19 = vld [vmem:[%s11251_s2 + $0xf8] sm:$0xf0]  ;;  %v5821_v26 = vor.u32 %v7409_v15, %v5820_v14 }
   0x7   :  { %7798 = vmatpush.bf16.msra.mxu2 %v7376_v1  ;;  %7799 = vmatpush.bf16.msra.mxu3 %v7376_v1  ;;  %v5796_v20 = vld [vmem:[%s11251_s2 + $0xc0] sm:$0xf]  ;;  %v7404_v21 = vld [vmem:[%s11251_s2 + $0xcc] sm:$0xf0]  ;;  %v7402_v22 = vld [vmem:[%s11251_s2 + $0xc4] sm:$0xf]  ;;  %v5825_v27 = vor.u32 %v7407_v18, %v5822_v19 }
   0x8   :  { %v5798_v23 = vld [vmem:[%s11251_s2 + $0xd0] sm:$0xf0]  ;;  %v7366_v24 = vld [vmem:[%s11252_s0 + $0x20] sm:$0xff]  ;;  %v5804_v28 = vld [vmem:[%s11251_s2 + $0xc8] sm:$0xf]  ;;  %v5797_v30 = vor.u32 %v7404_v21, %v5796_v20 }
   0x9   :  { %v7368_v25 = vld [vmem:[%s11252_s0 + $0x30] sm:$0xff]  ;;  %v7405_v29 = vld [vmem:[%s11251_s2 + $0xd4] sm:$0xf0]  ;;  %v5801_v31 = vor.u32 %v7402_v22, %v5798_v23  ;;  %v7403_v32 = vld [vmem:[%s11251_s2 + $0xcc] sm:$0xf] }
   0xa   :  { %165 = vmatpush.bf16.msra.mxu0 %v7375_v2  ;;  %7800 = vmatpush.bf16.msra.mxu1 %v7375_v2  ;;  %v5806_v33 = vld [vmem:[%s11251_s2 + $0xd8] sm:$0xf0]  ;;  %v5780_v34 = vld [vmem:[%s11251_s2 + $0xa0] sm:$0xf]  ;;  %v7400_v35 = vld [vmem:[%s11251_s2 + $0xac] sm:$0xf0]  ;;  %v5805_v38 = vor.u32 %v7405_v29, %v5804_v28 }
   0xb   :  { %7801 = vmatpush.bf16.msra.mxu2 %v7375_v2  ;;  %7802 = vmatpush.bf16.msra.mxu3 %v7375_v2  ;;  %v7398_v36 = vld [vmem:[%s11251_s2 + $0xa4] sm:$0xf]  ;;  %v5782_v37 = vld [vmem:[%s11251_s2 + $0xb0] sm:$0xf0]  ;;  %v5809_v39 = vor.u32 %v7403_v32, %v5806_v33  ;;  %v5788_v40 = vld [vmem:[%s11251_s2 + $0xa8] sm:$0xf]  ;;  %v5781_v42 = vor.u32 %v7400_v35, %v5780_v34 }
   0xc   :  { %v7401_v41 = vld [vmem:[%s11251_s2 + $0xb4] sm:$0xf0]  ;;  %v5785_v43 = vor.u32 %v7398_v36, %v5782_v37  ;;  %v7399_v44 = vld [vmem:[%s11251_s2 + $0xac] sm:$0xf]  ;;  %v5790_v45 = vld [vmem:[%s11251_s2 + $0xb8] sm:$0xf0] }
   0xd   :  { %v5764_v46 = vld [vmem:[%s11251_s2 + $0x80] sm:$0xf]  ;;  %v7396_v47 = vld [vmem:[%s11251_s2 + $0x8c] sm:$0xf0]  ;;  %v7394_v48 = vld [vmem:[%s11251_s2 + $0x84] sm:$0xf]  ;;  %v5789_v50 = vor.u32 %v7401_v41, %v5788_v40  ;;  %v5793_v51 = vor.u32 %v7399_v44, %v5790_v45 }
   0xe   :  { %166 = vmatpush.bf16.msra.mxu0 %v7374_v3  ;;  %7803 = vmatpush.bf16.msra.mxu1 %v7374_v3  ;;  %v5766_v49 = vld [vmem:[%s11251_s2 + $0x90] sm:$0xf0]  ;;  %v5772_v52 = vld [vmem:[%s11251_s2 + $0x88] sm:$0xf]  ;;  %v7397_v53 = vld [vmem:[%s11251_s2 + $0x94] sm:$0xf0]  ;;  %v5765_v54 = vor.u32 %v7396_v47, %v5764_v46 }
   0xf   :  { %7804 = vmatpush.bf16.msra.mxu2 %v7374_v3  ;;  %7805 = vmatpush.bf16.msra.mxu3 %v7374_v3  ;;  %v5769_v55 = vor.u32 %v7394_v48, %v5766_v49  ;;  %v7395_v56 = vld [vmem:[%s11251_s2 + $0x8c] sm:$0xf]  ;;  %v5774_v57 = vld [vmem:[%s11251_s2 + $0x98] sm:$0xf0]  ;;  %v5748_v58 = vld [vmem:[%s11251_s2 + $0x60] sm:$0xf]  ;;  %v5773_v62 = vor.u32 %v7397_v53, %v5772_v52 }
  0x10   :  { %v7392_v59 = vld [vmem:[%s11251_s2 + $0x6c] sm:$0xf0]  ;;  %v7390_v60 = vld [vmem:[%s11251_s2 + $0x64] sm:$0xf]  ;;  %v5750_v61 = vld [vmem:[%s11251_s2 + $0x70] sm:$0xf0]  ;;  %v5777_v63 = vor.u32 %v7395_v56, %v5774_v57 }
  0x11   :  { %v5756_v0 = vld [vmem:[%s11251_s2 + $0x68] sm:$0xf]  ;;  %v5749_v1 = vor.u32 %v7392_v59, %v5748_v58  ;;  %v5753_v2 = vor.u32 %v7390_v60, %v5750_v61  ;;  %v7393_v3 = vld [vmem:[%s11251_s2 + $0x74] sm:$0xf0]  ;;  %v7386_v14 = vld [vmem:[%s11251_s2 + $0x44] sm:$0xf] }
  0x12   :  { %167 = vmatpush.bf16.msra.mxu0 %v7373_v4  ;;  %7806 = vmatpush.bf16.msra.mxu1 %v7373_v4  ;;  %v7365_v7 = vld [vmem:[%s11252_s0 + $0x18] sm:$0xff]  ;;  %v7367_v8 = vld [vmem:[%s11252_s0 + $0x28] sm:$0xff]  ;;  %v5757_v10 = vor.u32 %v7393_v3, %v5756_v0  ;;  %v5718_v28 = vld [vmem:[%s11251_s2 + $0x30] sm:$0xf0] }
  0x13   :  { %7807 = vmatpush.bf16.msra.mxu2 %v7373_v4  ;;  %7808 = vmatpush.bf16.msra.mxu3 %v7373_v4  ;;  %v7391_v4 = vld [vmem:[%s11251_s2 + $0x6c] sm:$0xf]  ;;  %v7369_v9 = vld [vmem:[%s11252_s0 + $0x38] sm:$0xff]  ;;  %v5724_v29 = vld [vmem:[%s11251_s2 + $0x28] sm:$0xf] }
  0x14   :  { %v7389_v18 = vld [vmem:[%s11251_s2 + $0x54] sm:$0xf0]  ;;  %v7387_v21 = vld [vmem:[%s11251_s2 + $0x4c] sm:$0xf]  ;;  %v5742_v22 = vld [vmem:[%s11251_s2 + $0x58] sm:$0xf0] }
  0x15   :  { %v5745_v23 = vor.u32 %v7387_v21, %v5742_v22  ;;  %v7383_v33 = vld [vmem:[%s11251_s2 + $0x2c] sm:$0xf]  ;;  %v5726_v34 = vld [vmem:[%s11251_s2 + $0x38] sm:$0xf0]  ;;  %v5700_v36 = vld [vmem:[%s11251_s2] sm:$0xf] }
  0x16   :  { %168 = vmatpush.bf16.msra.mxu0 %v7372_v5  ;;  %7809 = vmatpush.bf16.msra.mxu1 %v7372_v5  ;;  %v5729_v35 = vor.u32 %v7383_v33, %v5726_v34  ;;  %v7380_v37 = vld [vmem:[%s11251_s2 + $0xc] sm:$0xf0]  ;;  %v5702_v40 = vld [vmem:[%s11251_s2 + $0x10] sm:$0xf0]  ;;  %v5708_v41 = vld [vmem:[%s11251_s2 + $0x8] sm:$0xf] }
  0x17   :  { %7810 = vmatpush.bf16.msra.mxu2 %v7372_v5  ;;  %7811 = vmatpush.bf16.msra.mxu3 %v7372_v5  ;;  %v5758_v5 = vld [vmem:[%s11251_s2 + $0x78] sm:$0xf0]  ;;  %v7379_v45 = vld [vmem:[%s11251_s2 + $0xc] sm:$0xf]  ;;  %v7468_v21 = vld [vmem:[%s11253_s4 + $0x1cc] sm:$0xf0] }
  0x18   :  { %v5710_v46 = vld [vmem:[%s11251_s2 + $0x18] sm:$0xf0]  ;;  %v6308_v22 = vld [vmem:[%s11253_s4 + $0x2c0] sm:$0xf]  ;;  %v7464_v34 = vld [vmem:[%s11253_s4 + $0x1ac] sm:$0xf0] }
  0x19   :  { %v5713_v47 = vor.u32 %v7379_v45, %v5710_v46  ;;  %v6164_v33 = vld [vmem:[%s11253_s4 + $0x1a0] sm:$0xf]  ;;  %v7460_v46 = vld [vmem:[%s11253_s4 + $0x18c] sm:$0xf0] }
  0x1a   :  { %169 = vmatpush.bf16.msra.mxu0 %v7371_v6  ;;  %7812 = vmatpush.bf16.msra.mxu1 %v7371_v6 }
  0x1b   :  { %7813 = vmatpush.bf16.msra.mxu2 %v7371_v6  ;;  %7814 = vmatpush.bf16.msra.mxu3 %v7371_v6  ;;  %v7363_v6 = vld [vmem:[%s11252_s0 + $0x8] sm:$0xff] }
  0x1e   :  { %170 = vmatpush.bf16.msra.mxu0 %v7370_v11  ;;  %7815 = vmatpush.bf16.msra.mxu1 %v7370_v11 }
  0x1f   :  { %7816 = vmatpush.bf16.msra.mxu2 %v7370_v11  ;;  %7817 = vmatpush.bf16.msra.mxu3 %v7370_v11  ;;  %v5761_v11 = vor.u32 %v7391_v4, %v5758_v5  ;;  %v6068_v4 = vld [vmem:[%s11253_s4 + $0xe0] sm:$0xf]  ;;  %v7440_v5 = vld [vmem:[%s11253_s4 + $0xec] sm:$0xf0] }
  0x21   :  { %171 = vmatmul.bf16.vlgmr.msra.gmra.mxu0 %v7362_v12  ;;  %181 = vmatmul.bf16.vlgmr.msra.gmra.mxu1 %v7364_v13  ;;  %v5732_v12 = vld [vmem:[%s11251_s2 + $0x40] sm:$0xf]  ;;  %v7388_v13 = vld [vmem:[%s11251_s2 + $0x4c] sm:$0xf0] }
  0x22   :  { %422 = vmatpush.bf16.msrb.mxu1 %v5813_v16  ;;  %191 = vmatmul.bf16.vlgmr.msra.gmra.mxu2 %v7366_v24  ;;  %v5733_v15 = vor.u32 %v7388_v13, %v5732_v12  ;;  %v5734_v16 = vld [vmem:[%s11251_s2 + $0x50] sm:$0xf0]  ;;  %v5716_v24 = vld [vmem:[%s11251_s2 + $0x20] sm:$0xf] }
  0x23   :  { %471 = vmatpush.bf16.msrb.mxu2 %v5817_v17  ;;  %201 = vmatmul.bf16.vlgmr.msra.gmra.mxu3 %v7368_v25  ;;  %v5740_v17 = vld [vmem:[%s11251_s2 + $0x48] sm:$0xf]  ;;  %v5737_v19 = vor.u32 %v7386_v14, %v5734_v16  ;;  %v7384_v25 = vld [vmem:[%s11251_s2 + $0x2c] sm:$0xf0]  ;;  %v6452_v13 = vld [vmem:[%s11253_s4 + $0x3e0] sm:$0xf] }
  0x24   :  { %520 = vmatpush.bf16.msrb.mxu3 %v5821_v26  ;;  %569 = vmatpush.bf16.msrb.mxu0 %v5825_v27  ;;  %v5741_v20 = vor.u32 %v7389_v18, %v5740_v17  ;;  %v7382_v26 = vld [vmem:[%s11251_s2 + $0x24] sm:$0xf]  ;;  %v5717_v27 = vor.u32 %v7384_v25, %v5716_v24  ;;  %v7536_v14 = vld [vmem:[%s11253_s4 + $0x3ec] sm:$0xf0]  ;;  %v6052_v17 = vld [vmem:[%s11253_s4 + $0xc0] sm:$0xf] }
  0x25   :  { %v6453_v16 = vor.u32 %v7536_v14, %v6452_v13  ;;  %v7436_v18 = vld [vmem:[%s11253_s4 + $0xcc] sm:$0xf0] }
  0x26   :  { %423 = vmatpush.bf16.msrb.mxu1 %v5797_v30  ;;  %v7385_v30 = vld [vmem:[%s11251_s2 + $0x34] sm:$0xf0]  ;;  %v7516_v13 = vld [vmem:[%s11253_s4 + $0x34c] sm:$0xf0] }
  0x27   :  { %472 = vmatpush.bf16.msrb.mxu2 %v5801_v31  ;;  %v5721_v31 = vor.u32 %v7382_v26, %v5718_v28  ;;  %v5725_v32 = vor.u32 %v7385_v30, %v5724_v29  ;;  %v7532_v28 = vld [vmem:[%s11253_s4 + $0x3cc] sm:$0xf0]  ;;  %v6036_v30 = vld [vmem:[%s11253_s4 + $0xa0] sm:$0xf] }
  0x28   :  { %521 = vmatpush.bf16.msrb.mxu3 %v5805_v38  ;;  %570 = vmatpush.bf16.msrb.mxu0 %v5809_v39  ;;  %v7378_v38 = vld [vmem:[%s11251_s2 + $0x4] sm:$0xf]  ;;  %v5701_v39 = vor.u32 %v7380_v37, %v5700_v36  ;;  %v6165_v36 = vor.u32 %v7464_v34, %v6164_v33  ;;  %v7496_v37 = vld [vmem:[%s11253_s4 + $0x2ac] sm:$0xf0]  ;;  %v6212_v33 = vld [vmem:[%s11253_s4 + $0x200] sm:$0xf] }
  0x29   :  { %v7476_v34 = vld [vmem:[%s11253_s4 + $0x20c] sm:$0xf0] }
  0x2a   :  { %424 = vmatpush.bf16.msrb.mxu1 %v5781_v42  ;;  %v7381_v42 = vld [vmem:[%s11251_s2 + $0x14] sm:$0xf0] }
  0x2b   :  { %473 = vmatpush.bf16.msrb.mxu2 %v5785_v43  ;;  %v5705_v43 = vor.u32 %v7378_v38, %v5702_v40  ;;  %v5709_v44 = vor.u32 %v7381_v42, %v5708_v41  ;;  %v6420_v38 = vld [vmem:[%s11253_s4 + $0x3a0] sm:$0xf] }
  0x2c   :  { %522 = vmatpush.bf16.msrb.mxu3 %v5789_v50  ;;  %571 = vmatpush.bf16.msrb.mxu0 %v5793_v51  ;;  %v6020_v42 = vld [vmem:[%s11253_s4 + $0x80] sm:$0xf] }
  0x2e   :  { %425 = vmatpush.bf16.msrb.mxu1 %v5765_v54 }
  0x2f   :  { %474 = vmatpush.bf16.msrb.mxu2 %v5769_v55 }
  0x30   :  { %523 = vmatpush.bf16.msrb.mxu3 %v5773_v62  ;;  %572 = vmatpush.bf16.msrb.mxu0 %v5777_v63 }
  0x31   :  { %176 = vmatmul.bf16.gmra.mxu0 %v7363_v6  ;;  %186 = vmatmul.bf16.gmra.mxu1 %v7365_v7  ;;  %v6196_v6 = vld [vmem:[%s11253_s4 + $0x1e0] sm:$0xf]  ;;  %v6069_v7 = vor.u32 %v7440_v5, %v6068_v4  ;;  %v7420_v5 = vld [vmem:[%s11253_s4 + $0x4c] sm:$0xf0] }
  0x32   :  { %426 = vmatpush.bf16.msrb.mxu1 %v5749_v1  ;;  %196 = vmatmul.bf16.gmra.mxu2 %v7367_v8  ;;  %v7472_v8 = vld [vmem:[%s11253_s4 + $0x1ec] sm:$0xf0]  ;;  %v5988_v4 = vld [vmem:[%s11253_s4 + $0x40] sm:$0xf] }
  0x33   :  { %475 = vmatpush.bf16.msrb.mxu2 %v5753_v2  ;;  %206 = vmatmul.bf16.gmra.mxu3 %v7369_v9  ;;  %v6324_v9 = vld [vmem:[%s11253_s4 + $0x2e0] sm:$0xf] }
  0x34   :  { %524 = vmatpush.bf16.msrb.mxu3 %v5757_v10  ;;  %573 = vmatpush.bf16.msrb.mxu0 %v5761_v11  ;;  %v7504_v10 = vld [vmem:[%s11253_s4 + $0x2ec] sm:$0xf0]  ;;  %v6197_v11 = vor.u32 %v7472_v8, %v6196_v6  ;;  %v6116_v6 = vld [vmem:[%s11253_s4 + $0x140] sm:$0xf] }
  0x35   :  { %v6325_v12 = vor.u32 %v7504_v10, %v6324_v9  ;;  %v7452_v8 = vld [vmem:[%s11253_s4 + $0x14c] sm:$0xf0]  ;;  %v6244_v9 = vld [vmem:[%s11253_s4 + $0x240] sm:$0xf] }
  0x36   :  { %427 = vmatpush.bf16.msrb.mxu1 %v5733_v15  ;;  %v7484_v10 = vld [vmem:[%s11253_s4 + $0x24c] sm:$0xf0] }
  0x37   :  { %476 = vmatpush.bf16.msrb.mxu2 %v5737_v19  ;;  %v6180_v19 = vld [vmem:[%s11253_s4 + $0x1c0] sm:$0xf]  ;;  %v6245_v14 = vor.u32 %v7484_v10, %v6244_v9 }
  0x38   :  { %525 = vmatpush.bf16.msrb.mxu3 %v5741_v20  ;;  %574 = vmatpush.bf16.msrb.mxu0 %v5745_v23  ;;  %v6053_v20 = vor.u32 %v7436_v18, %v6052_v17  ;;  %v7500_v23 = vld [vmem:[%s11253_s4 + $0x2cc] sm:$0xf0]  ;;  %v6181_v25 = vor.u32 %v7468_v21, %v6180_v19  ;;  %v6100_v18 = vld [vmem:[%s11253_s4 + $0x120] sm:$0xf] }
  0x39   :  { %v6309_v26 = vor.u32 %v7500_v23, %v6308_v22  ;;  %v7416_v17 = vld [vmem:[%s11253_s4 + $0x2c] sm:$0xf0]  ;;  %v6228_v21 = vld [vmem:[%s11253_s4 + $0x220] sm:$0xf] }
  0x3a   :  { %428 = vmatpush.bf16.msrb.mxu1 %v5717_v27  ;;  %v6436_v27 = vld [vmem:[%s11253_s4 + $0x3c0] sm:$0xf]  ;;  %v7480_v22 = vld [vmem:[%s11253_s4 + $0x22c] sm:$0xf0] }
  0x3b   :  { %477 = vmatpush.bf16.msrb.mxu2 %v5721_v31  ;;  %v6437_v29 = vor.u32 %v7532_v28, %v6436_v27  ;;  %v7432_v31 = vld [vmem:[%s11253_s4 + $0xac] sm:$0xf0]  ;;  %v5956_v28 = vld [vmem:[%s11253_s4] sm:$0xf] }
  0x3c   :  { %526 = vmatpush.bf16.msrb.mxu3 %v5725_v32  ;;  %575 = vmatpush.bf16.msrb.mxu0 %v5729_v35  ;;  %v6037_v32 = vor.u32 %v7432_v31, %v6036_v30  ;;  %v6292_v35 = vld [vmem:[%s11253_s4 + $0x2a0] sm:$0xf] }
  0x3d   :  { %v6293_v40 = vor.u32 %v7496_v37, %v6292_v35  ;;  %v6084_v30 = vld [vmem:[%s11253_s4 + $0x100] sm:$0xf]  ;;  %v7508_v37 = vld [vmem:[%s11253_s4 + $0x30c] sm:$0xf0] }
  0x3e   :  { %429 = vmatpush.bf16.msrb.mxu1 %v5701_v39  ;;  %v7528_v39 = vld [vmem:[%s11253_s4 + $0x3ac] sm:$0xf0] }
  0x3f   :  { %478 = vmatpush.bf16.msrb.mxu2 %v5705_v43  ;;  %v6421_v41 = vor.u32 %v7528_v39, %v6420_v38  ;;  %v7428_v43 = vld [vmem:[%s11253_s4 + $0x8c] sm:$0xf0]  ;;  %v6213_v38 = vor.u32 %v7476_v34, %v6212_v33 }
  0x40   :  { %527 = vmatpush.bf16.msrb.mxu3 %v5709_v44  ;;  %576 = vmatpush.bf16.msrb.mxu0 %v5713_v47  ;;  %v6148_v44 = vld [vmem:[%s11253_s4 + $0x180] sm:$0xf]  ;;  %v6021_v45 = vor.u32 %v7428_v43, %v6020_v42 }
  0x41   :  { %v6276_v47 = vld [vmem:[%s11253_s4 + $0x280] sm:$0xf] }
  0x42   :  { %1707 = vmatpush.bf16.msra.mxu1 %v6069_v7  ;;  %v5989_v7 = vor.u32 %v7420_v5, %v5988_v4 }
  0x43   :  { %1756 = vmatpush.bf16.msra.mxu2 %v6197_v11  ;;  %v6117_v11 = vor.u32 %v7452_v8, %v6116_v6 }
  0x44   :  { %1805 = vmatpush.bf16.msra.mxu3 %v6325_v12  ;;  %1854 = vmatpush.bf16.msra.mxu0 %v6453_v16  ;;  %v6372_v12 = vld [vmem:[%s11253_s4 + $0x340] sm:$0xf] }
  0x45   :  { %v5972_v16 = vld [vmem:[%s11253_s4 + $0x20] sm:$0xf] }
  0x46   :  { %1708 = vmatpush.bf16.msra.mxu1 %v6053_v20  ;;  %v5973_v19 = vor.u32 %v7416_v17, %v5972_v16  ;;  %v7448_v20 = vld [vmem:[%s11253_s4 + $0x12c] sm:$0xf0] }
  0x47   :  { %1757 = vmatpush.bf16.msra.mxu2 %v6181_v25  ;;  %v6101_v23 = vor.u32 %v7448_v20, %v6100_v18  ;;  %v7512_v25 = vld [vmem:[%s11253_s4 + $0x32c] sm:$0xf0] }
  0x48   :  { %1806 = vmatpush.bf16.msra.mxu3 %v6309_v26  ;;  %1855 = vmatpush.bf16.msra.mxu0 %v6437_v29  ;;  %v6229_v26 = vor.u32 %v7480_v22, %v6228_v21  ;;  %v7412_v29 = vld [vmem:[%s11253_s4 + $0xc] sm:$0xf0] }
  0x49   :  { %v5957_v31 = vor.u32 %v7412_v29, %v5956_v28 }
  0x4a   :  { %1709 = vmatpush.bf16.msra.mxu1 %v6037_v32  ;;  %v7444_v32 = vld [vmem:[%s11253_s4 + $0x10c] sm:$0xf0] }
  0x4b   :  { %1758 = vmatpush.bf16.msra.mxu2 %v6165_v36  ;;  %v6085_v35 = vor.u32 %v7444_v32, %v6084_v30  ;;  %v6340_v36 = vld [vmem:[%s11253_s4 + $0x300] sm:$0xf] }
  0x4c   :  { %1807 = vmatpush.bf16.msra.mxu3 %v6293_v40  ;;  %1856 = vmatpush.bf16.msra.mxu0 %v6421_v41  ;;  %v6341_v39 = vor.u32 %v7508_v37, %v6340_v36  ;;  %v252_v40 = vld [vmem:[%s11254_s3] sm:$0xf] }
  0x4d   :  { %v8325_v42 = vperm.slane %v252_v40, 0 }
  0x4e   :  { %1710 = vmatpush.bf16.msra.mxu1 %v6021_v45  ;;  %v8329_v45 = vperm.slane %v252_v40, 1 }
  0x9e   :  { %v172_v48 = vpop.f32.mrf.mxu0  ;;  %v182_v53 = vpop.f32.mrf.mxu1 }
  0xa5   :  { %v192_v59 = vpop.f32.mrf.mxu2 }
  0xa6   :  { %v174_v49 = vpop.f32.mrf.mxu0  ;;  %v184_v55 = vpop.f32.mrf.mxu1 }
  0xa7   :  { %v212_v50 = vpack.c.bf16 %v174_v49, %v172_v48  ;;  %v214_v56 = vpack.c.bf16 %v184_v55, %v182_v53  ;;  %v202_v1 = vpop.f32.mrf.mxu3  ;;  %v7492_v48 = vld [vmem:[%s11253_s4 + $0x28c] sm:$0xf0]  ;;  %v6149_v49 = vor.u32 %v7460_v46, %v6148_v44  ;;  %v6004_v55 = vld [vmem:[%s11253_s4 + $0x60] sm:$0xf]  ;;  %v8327_v44 = vperm.slane %v252_v40, 3 }
  0xa8   :  { %v8331_v46 = vperm.slane %v252_v40, 2 }
  0xa9   :  { %430 = vmatmul.bf16.vlgmr.msrb.gmra.mxu1 %v212_v50  ;;  %479 = vmatmul.bf16.vlgmr.msrb.gmra.mxu2 %v212_v50 }
  0xaa   :  { %528 = vmatmul.bf16.vlgmr.msrb.gmra.mxu3 %v212_v50  ;;  %577 = vmatmul.bf16.vlgmr.msrb.gmra.mxu0 %v212_v50  ;;  %v6277_v50 = vor.u32 %v7492_v48, %v6276_v47 }
  0xab   :  { %1759 = vmatpush.bf16.msra.mxu2 %v6149_v49 }
  0xac   :  { %1808 = vmatpush.bf16.msra.mxu3 %v6277_v50 }
  0xad   :  { %v194_v61 = vpop.f32.mrf.mxu2 }
  0xae   :  { %v177_v51 = vpop.f32.mrf.mxu0  ;;  %v187_v57 = vpop.f32.mrf.mxu1  ;;  %v216_v62 = vpack.c.bf16 %v194_v61, %v192_v59  ;;  %v7456_v59 = vld [vmem:[%s11253_s4 + $0x16c] sm:$0xf0] }
  0xaf   :  { %v204_v3 = vpop.f32.mrf.mxu3  ;;  %v7488_v61 = vld [vmem:[%s11253_s4 + $0x26c] sm:$0xf0] }
  0xb0   :  { %v218_v15 = vpack.c.bf16 %v204_v3, %v202_v1 }
  0xb5   :  { %v197_v63 = vpop.f32.mrf.mxu2 }
  0xb6   :  { %v179_v52 = vpop.f32.mrf.mxu0  ;;  %v189_v58 = vpop.f32.mrf.mxu1 }
  0xb7   :  { %v213_v54 = vpack.c.bf16 %v179_v52, %v177_v51  ;;  %v215_v60 = vpack.c.bf16 %v189_v58, %v187_v57  ;;  %v207_v24 = vpop.f32.mrf.mxu3  ;;  %v6404_v51 = vld [vmem:[%s11253_s4 + $0x380] sm:$0xf]  ;;  %v7524_v52 = vld [vmem:[%s11253_s4 + $0x38c] sm:$0xf0] }
  0xb8   :  { %v6405_v53 = vor.u32 %v7524_v52, %v6404_v51  ;;  %v6132_v57 = vld [vmem:[%s11253_s4 + $0x160] sm:$0xf] }
  0xb9   :  { %435 = vmatmul.bf16.gmra.mxu1 %v213_v54  ;;  %484 = vmatmul.bf16.gmra.mxu2 %v213_v54 }
  0xba   :  { %533 = vmatmul.bf16.gmra.mxu3 %v213_v54  ;;  %582 = vmatmul.bf16.gmra.mxu0 %v213_v54 }
  0xbb   :  { %1857 = vmatpush.bf16.msra.mxu0 %v6405_v53 }
  0xbd   :  { %v199_v0 = vpop.f32.mrf.mxu2 }
  0xbe   :  { %v217_v2 = vpack.c.bf16 %v199_v0, %v197_v63  ;;  %v6388_v63 = vld [vmem:[%s11253_s4 + $0x360] sm:$0xf]  ;;  %v7520_v0 = vld [vmem:[%s11253_s4 + $0x36c] sm:$0xf0] }
  0xbf   :  { %v209_v54 = vpop.f32.mrf.mxu3  ;;  %v6389_v3 = vor.u32 %v7520_v0, %v6388_v63 }
  0xc0   :  { %v219_v1 = vpack.c.bf16 %v209_v54, %v207_v24  ;;  %v6356_v24 = vld [vmem:[%s11253_s4 + $0x320] sm:$0xf] }
  0xc1   :  { %1858 = vmatpush.bf16.msra.mxu0 %v6389_v3  ;;  %v6357_v27 = vor.u32 %v7512_v25, %v6356_v24 }
  0xc9   :  { %440 = vmatmul.bf16.gmra.mxu1 %v214_v56  ;;  %489 = vmatmul.bf16.gmra.mxu2 %v214_v56 }
  0xca   :  { %538 = vmatmul.bf16.gmra.mxu3 %v214_v56  ;;  %587 = vmatmul.bf16.gmra.mxu0 %v214_v56  ;;  %v7424_v56 = vld [vmem:[%s11253_s4 + $0x6c] sm:$0xf0] }
  0xcb   :  { %v6005_v58 = vor.u32 %v7424_v56, %v6004_v55 }
  0xcd   :  { %1711 = vmatpush.bf16.msra.mxu1 %v6005_v58 }
  0xd1   :  { %1712 = vmatpush.bf16.msra.mxu1 %v5989_v7 }
  0xd5   :  { %1713 = vmatpush.bf16.msra.mxu1 %v5973_v19 }
  0xd9   :  { %445 = vmatmul.bf16.gmra.mxu1 %v215_v60  ;;  %494 = vmatmul.bf16.gmra.mxu2 %v215_v60 }
  0xda   :  { %543 = vmatmul.bf16.gmra.mxu3 %v215_v60  ;;  %592 = vmatmul.bf16.gmra.mxu0 %v215_v60  ;;  %v6260_v60 = vld [vmem:[%s11253_s4 + $0x260] sm:$0xf] }
  0xdb   :  { %1714 = vmatpush.bf16.msra.mxu1 %v5957_v31 }
  0xe9   :  { %450 = vmatmul.bf16.gmra.mxu1 %v216_v62  ;;  %499 = vmatmul.bf16.gmra.mxu2 %v216_v62 }
  0xea   :  { %548 = vmatmul.bf16.gmra.mxu3 %v216_v62  ;;  %597 = vmatmul.bf16.gmra.mxu0 %v216_v62  ;;  %v6133_v62 = vor.u32 %v7456_v59, %v6132_v57 }
  0xec   :  { %1760 = vmatpush.bf16.msra.mxu2 %v6133_v62 }
  0xf0   :  { %1761 = vmatpush.bf16.msra.mxu2 %v6117_v11 }
  0xf4   :  { %1762 = vmatpush.bf16.msra.mxu2 %v6101_v23 }
  0xf8   :  { %1763 = vmatpush.bf16.msra.mxu2 %v6085_v35 }
  0xf9   :  { %455 = vmatmul.bf16.gmra.mxu1 %v217_v2  ;;  %504 = vmatmul.bf16.gmra.mxu2 %v217_v2 }
  0xfa   :  { %553 = vmatmul.bf16.gmra.mxu3 %v217_v2  ;;  %602 = vmatmul.bf16.gmra.mxu0 %v217_v2  ;;  %v6261_v2 = vor.u32 %v7488_v61, %v6260_v60 }
  0xfc   :  { %1809 = vmatpush.bf16.msra.mxu3 %v6261_v2 }
 0x100   :  { %1810 = vmatpush.bf16.msra.mxu3 %v6245_v14 }
 0x104   :  { %1811 = vmatpush.bf16.msra.mxu3 %v6229_v26 }
 0x108   :  { %1812 = vmatpush.bf16.msra.mxu3 %v6213_v38 }
 0x109   :  { %460 = vmatmul.bf16.gmra.mxu1 %v218_v15  ;;  %509 = vmatmul.bf16.gmra.mxu2 %v218_v15 }
 0x10a   :  { %558 = vmatmul.bf16.gmra.mxu3 %v218_v15  ;;  %607 = vmatmul.bf16.gmra.mxu0 %v218_v15  ;;  %v6373_v15 = vor.u32 %v7516_v13, %v6372_v12 }
 0x10c   :  { %1859 = vmatpush.bf16.msra.mxu0 %v6373_v15 }
 0x110   :  { %1860 = vmatpush.bf16.msra.mxu0 %v6357_v27 }
 0x114   :  { %1861 = vmatpush.bf16.msra.mxu0 %v6341_v39 }
 0x119   :  { %465 = vmatmul.bf16.gmra.mxu1 %v219_v1  ;;  %514 = vmatmul.bf16.gmra.mxu2 %v219_v1 }
 0x11a   :  { %563 = vmatmul.bf16.gmra.mxu3 %v219_v1  ;;  %612 = vmatmul.bf16.gmra.mxu0 %v219_v1 }
 0x126   :  { %v431_v41 = vpop.f32.mrf.mxu1 }
 0x127   :  { %v578_v43 = vpop.f32.mrf.mxu0  ;;  %v432_v47 = vadd.f32 %v431_v41, %v8325_v42 }
 0x128   :  { %v579_v48 = vadd.f32 %v578_v43, %v8327_v44 }
 0x129   :  { %v618_v54 = vmax.f32 %v432_v47, 0.0 }
 0x12a   :  { %v621_v57 = vmax.f32 %v579_v48, 0.0 }
 0x12c   :  { %v480_v49 = vpop.f32.mrf.mxu2 }
 0x12d   :  { %v481_v50 = vadd.f32 %v480_v49, %v8329_v45  ;;  %v529_v51 = vpop.f32.mrf.mxu3 }
 0x12e   :  { %v530_v52 = vadd.f32 %v529_v51, %v8331_v46  ;;  %v433_v53 = vpop.f32.mrf.mxu1 }
 0x12f   :  { %v619_v55 = vmax.f32 %v481_v50, 0.0  ;;  %v580_v56 = vpop.f32.mrf.mxu0  ;;  %v434_v61 = vadd.f32 %v433_v53, %v8325_v42 }
 0x130   :  { %v620_v58 = vmax.f32 %v530_v52, 0.0  ;;  %v581_v62 = vadd.f32 %v580_v56, %v8327_v44 }
 0x131   :  { %v682_v59 = vpack.c.bf16 %v619_v55, %v618_v54  ;;  %v622_v4 = vmax.f32 %v434_v61, 0.0 }
 0x132   :  { %v683_v60 = vpack.c.bf16 %v621_v57, %v620_v58  ;;  %v625_v7 = vmax.f32 %v581_v62, 0.0 }
 0x133   :  { %714 = vst [vmem:[#allocation2] sm:$0xff] %v682_v59 }
 0x134   :  { %715 = vst [vmem:[#allocation2 + $0x8] sm:$0xff] %v683_v60  ;;  %v482_v63 = vpop.f32.mrf.mxu2 }
 0x135   :  { %v483_v0 = vadd.f32 %v482_v63, %v8329_v45  ;;  %v531_v1 = vpop.f32.mrf.mxu3 }
 0x136   :  { %v532_v2 = vadd.f32 %v531_v1, %v8331_v46  ;;  %v436_v3 = vpop.f32.mrf.mxu1 }
 0x137   :  { %v623_v5 = vmax.f32 %v483_v0, 0.0  ;;  %v583_v6 = vpop.f32.mrf.mxu0  ;;  %v437_v11 = vadd.f32 %v436_v3, %v8325_v42 }
 0x138   :  { %v624_v8 = vmax.f32 %v532_v2, 0.0  ;;  %v584_v12 = vadd.f32 %v583_v6, %v8327_v44 }
 0x139   :  { %v684_v9 = vpack.c.bf16 %v623_v5, %v622_v4  ;;  %v626_v18 = vmax.f32 %v437_v11, 0.0 }
 0x13a   :  { %v685_v10 = vpack.c.bf16 %v625_v7, %v624_v8  ;;  %v629_v21 = vmax.f32 %v584_v12, 0.0  ;;  %v5828_v24 = vld [vmem:[#allocation2] sm:$0xf]  ;;  %v7538_v25 = vld [vmem:[#allocation2 + $0x4] sm:$0xf] }
 0x13b   :  { %716 = vst [vmem:[#allocation2 + $0x10] sm:$0xff] %v684_v9  ;;  %v5836_v26 = vld [vmem:[#allocation2 + $0x8] sm:$0xf]  ;;  %v7539_v30 = vld [vmem:[#allocation2 + $0xc] sm:$0xf] }
 0x13c   :  { %717 = vst [vmem:[#allocation2 + $0x18] sm:$0xff] %v685_v10  ;;  %v485_v13 = vpop.f32.mrf.mxu2 }
 0x13d   :  { %v486_v14 = vadd.f32 %v485_v13, %v8329_v45  ;;  %v534_v15 = vpop.f32.mrf.mxu3 }
 0x13e   :  { %v535_v16 = vadd.f32 %v534_v15, %v8331_v46  ;;  %v438_v17 = vpop.f32.mrf.mxu1 }
 0x13f   :  { %v627_v19 = vmax.f32 %v486_v14, 0.0  ;;  %v585_v20 = vpop.f32.mrf.mxu0  ;;  %v439_v31 = vadd.f32 %v438_v17, %v8325_v42 }
 0x140   :  { %v628_v22 = vmax.f32 %v535_v16, 0.0  ;;  %v586_v36 = vadd.f32 %v585_v20, %v8327_v44 }
 0x141   :  { %v686_v23 = vpack.c.bf16 %v627_v19, %v626_v18  ;;  %v630_v48 = vmax.f32 %v439_v31, 0.0 }
 0x142   :  { %v687_v27 = vpack.c.bf16 %v629_v21, %v628_v22  ;;  %v7540_v28 = vld [vmem:[#allocation2 + $0xc] sm:$0xf0]  ;;  %v5830_v29 = vld [vmem:[#allocation2 + $0x10] sm:$0xf0]  ;;  %v633_v51 = vmax.f32 %v586_v36, 0.0 }
 0x143   :  { %718 = vst [vmem:[#allocation2 + $0x20] sm:$0xff] %v686_v23  ;;  %v8346_v32 = vor.u32 %v7540_v28, %v5828_v24  ;;  %v8348_v33 = vor.u32 %v7538_v25, %v5830_v29  ;;  %v7541_v34 = vld [vmem:[#allocation2 + $0x14] sm:$0xf0]  ;;  %v5838_v35 = vld [vmem:[#allocation2 + $0x18] sm:$0xf0] }
 0x144   :  { %719 = vst [vmem:[#allocation2 + $0x28] sm:$0xff] %v687_v27  ;;  %v487_v37 = vpop.f32.mrf.mxu2  ;;  %v8351_v38 = vor.u32 %v7541_v34, %v5836_v26  ;;  %v8353_v39 = vor.u32 %v7539_v30, %v5838_v35 }
 0x145   :  { %v488_v40 = vadd.f32 %v487_v37, %v8329_v45  ;;  %v536_v41 = vpop.f32.mrf.mxu3  ;;  %1715 = vmatmul.bf16.vlgmr.msra.gmra.mxu1 %v8346_v32  ;;  %1764 = vmatmul.bf16.vlgmr.msra.gmra.mxu2 %v8348_v33 }
 0x146   :  { %v537_v43 = vadd.f32 %v536_v41, %v8331_v46  ;;  %1813 = vmatmul.bf16.vlgmr.msra.gmra.mxu3 %v8351_v38  ;;  %1862 = vmatmul.bf16.vlgmr.msra.gmra.mxu0 %v8353_v39  ;;  %v441_v47 = vpop.f32.mrf.mxu1 }
 0x147   :  { %v631_v49 = vmax.f32 %v488_v40, 0.0  ;;  %v588_v50 = vpop.f32.mrf.mxu0  ;;  %v442_v55 = vadd.f32 %v441_v47, %v8325_v42 }
 0x148   :  { %v632_v52 = vmax.f32 %v537_v43, 0.0  ;;  %v589_v56 = vadd.f32 %v588_v50, %v8327_v44 }
 0x149   :  { %v688_v53 = vpack.c.bf16 %v631_v49, %v630_v48  ;;  %v634_v62 = vmax.f32 %v442_v55, 0.0 }
 0x14a   :  { %v689_v54 = vpack.c.bf16 %v633_v51, %v632_v52  ;;  %v637_v1 = vmax.f32 %v589_v56, 0.0  ;;  %v5844_v4 = vld [vmem:[#allocation2 + $0x20] sm:$0xf]  ;;  %v7542_v5 = vld [vmem:[#allocation2 + $0x24] sm:$0xf] }
 0x14b   :  { %720 = vst [vmem:[#allocation2 + $0x30] sm:$0xff] %v688_v53  ;;  %v5852_v6 = vld [vmem:[#allocation2 + $0x28] sm:$0xf]  ;;  %v7543_v10 = vld [vmem:[#allocation2 + $0x2c] sm:$0xf] }
 0x14c   :  { %721 = vst [vmem:[#allocation2 + $0x38] sm:$0xff] %v689_v54  ;;  %v490_v57 = vpop.f32.mrf.mxu2 }
 0x14d   :  { %v491_v58 = vadd.f32 %v490_v57, %v8329_v45  ;;  %v539_v59 = vpop.f32.mrf.mxu3 }
 0x14e   :  { %v540_v60 = vadd.f32 %v539_v59, %v8331_v46  ;;  %v443_v61 = vpop.f32.mrf.mxu1 }
 0x14f   :  { %v635_v63 = vmax.f32 %v491_v58, 0.0  ;;  %v590_v0 = vpop.f32.mrf.mxu0  ;;  %v444_v11 = vadd.f32 %v443_v61, %v8325_v42 }
 0x150   :  { %v636_v2 = vmax.f32 %v540_v60, 0.0  ;;  %v591_v16 = vadd.f32 %v590_v0, %v8327_v44 }
 0x151   :  { %v690_v3 = vpack.c.bf16 %v635_v63, %v634_v62  ;;  %v638_v24 = vmax.f32 %v444_v11, 0.0 }
 0x152   :  { %v691_v7 = vpack.c.bf16 %v637_v1, %v636_v2  ;;  %v7544_v8 = vld [vmem:[#allocation2 + $0x2c] sm:$0xf0]  ;;  %v5846_v9 = vld [vmem:[#allocation2 + $0x30] sm:$0xf0]  ;;  %v641_v27 = vmax.f32 %v591_v16, 0.0 }
 0x153   :  { %722 = vst [vmem:[#allocation2 + $0x40] sm:$0xff] %v690_v3  ;;  %v8366_v12 = vor.u32 %v7544_v8, %v5844_v4  ;;  %v8368_v13 = vor.u32 %v7542_v5, %v5846_v9  ;;  %v7545_v14 = vld [vmem:[#allocation2 + $0x34] sm:$0xf0]  ;;  %v5854_v15 = vld [vmem:[#allocation2 + $0x38] sm:$0xf0] }
 0x154   :  { %723 = vst [vmem:[#allocation2 + $0x48] sm:$0xff] %v691_v7  ;;  %v492_v17 = vpop.f32.mrf.mxu2  ;;  %v8371_v18 = vor.u32 %v7545_v14, %v5852_v6  ;;  %v8373_v19 = vor.u32 %v7543_v10, %v5854_v15 }
 0x155   :  { %v493_v20 = vadd.f32 %v492_v17, %v8329_v45  ;;  %v541_v21 = vpop.f32.mrf.mxu3  ;;  %1720 = vmatmul.bf16.gmra.mxu1 %v8366_v12  ;;  %1769 = vmatmul.bf16.gmra.mxu2 %v8368_v13 }
 0x156   :  { %v542_v22 = vadd.f32 %v541_v21, %v8331_v46  ;;  %1818 = vmatmul.bf16.gmra.mxu3 %v8371_v18  ;;  %1867 = vmatmul.bf16.gmra.mxu0 %v8373_v19  ;;  %v446_v23 = vpop.f32.mrf.mxu1 }
 0x157   :  { %v639_v25 = vmax.f32 %v493_v20, 0.0  ;;  %v593_v26 = vpop.f32.mrf.mxu0  ;;  %v447_v31 = vadd.f32 %v446_v23, %v8325_v42 }
 0x158   :  { %v640_v28 = vmax.f32 %v542_v22, 0.0  ;;  %v594_v34 = vadd.f32 %v593_v26, %v8327_v44 }
 0x159   :  { %v692_v29 = vpack.c.bf16 %v639_v25, %v638_v24  ;;  %v642_v43 = vmax.f32 %v447_v31, 0.0 }
 0x15a   :  { %v693_v30 = vpack.c.bf16 %v641_v27, %v640_v28  ;;  %v645_v49 = vmax.f32 %v594_v34, 0.0  ;;  %v5860_v52 = vld [vmem:[#allocation2 + $0x40] sm:$0xf]  ;;  %v7546_v53 = vld [vmem:[#allocation2 + $0x44] sm:$0xf] }
 0x15b   :  { %724 = vst [vmem:[#allocation2 + $0x50] sm:$0xff] %v692_v29  ;;  %v5868_v54 = vld [vmem:[#allocation2 + $0x48] sm:$0xf]  ;;  %v7547_v58 = vld [vmem:[#allocation2 + $0x4c] sm:$0xf] }
 0x15c   :  { %725 = vst [vmem:[#allocation2 + $0x58] sm:$0xff] %v693_v30  ;;  %v495_v35 = vpop.f32.mrf.mxu2 }
 0x15d   :  { %v496_v36 = vadd.f32 %v495_v35, %v8329_v45  ;;  %v544_v37 = vpop.f32.mrf.mxu3 }
 0x15e   :  { %v545_v40 = vadd.f32 %v544_v37, %v8331_v46  ;;  %v448_v41 = vpop.f32.mrf.mxu1 }
 0x15f   :  { %v643_v47 = vmax.f32 %v496_v36, 0.0  ;;  %v595_v48 = vpop.f32.mrf.mxu0  ;;  %v449_v59 = vadd.f32 %v448_v41, %v8325_v42 }
 0x160   :  { %v644_v50 = vmax.f32 %v545_v40, 0.0  ;;  %v596_v0 = vadd.f32 %v595_v48, %v8327_v44 }
 0x161   :  { %v694_v51 = vpack.c.bf16 %v643_v47, %v642_v43  ;;  %v646_v8 = vmax.f32 %v449_v59, 0.0 }
 0x162   :  { %v695_v55 = vpack.c.bf16 %v645_v49, %v644_v50  ;;  %v7548_v56 = vld [vmem:[#allocation2 + $0x4c] sm:$0xf0]  ;;  %v5862_v57 = vld [vmem:[#allocation2 + $0x50] sm:$0xf0]  ;;  %v649_v11 = vmax.f32 %v596_v0, 0.0 }
 0x163   :  { %726 = vst [vmem:[#allocation2 + $0x60] sm:$0xff] %v694_v51  ;;  %v8386_v60 = vor.u32 %v7548_v56, %v5860_v52  ;;  %v8388_v61 = vor.u32 %v7546_v53, %v5862_v57  ;;  %v7549_v62 = vld [vmem:[#allocation2 + $0x54] sm:$0xf0]  ;;  %v5870_v63 = vld [vmem:[#allocation2 + $0x58] sm:$0xf0] }
 0x164   :  { %727 = vst [vmem:[#allocation2 + $0x68] sm:$0xff] %v695_v55  ;;  %v497_v1 = vpop.f32.mrf.mxu2  ;;  %v8391_v2 = vor.u32 %v7549_v62, %v5868_v54  ;;  %v8393_v3 = vor.u32 %v7547_v58, %v5870_v63 }
 0x165   :  { %v498_v4 = vadd.f32 %v497_v1, %v8329_v45  ;;  %v546_v5 = vpop.f32.mrf.mxu3  ;;  %1725 = vmatmul.bf16.gmra.mxu1 %v8386_v60  ;;  %1774 = vmatmul.bf16.gmra.mxu2 %v8388_v61 }
 0x166   :  { %v547_v6 = vadd.f32 %v546_v5, %v8331_v46  ;;  %1823 = vmatmul.bf16.gmra.mxu3 %v8391_v2  ;;  %1872 = vmatmul.bf16.gmra.mxu0 %v8393_v3  ;;  %v451_v7 = vpop.f32.mrf.mxu1 }
 0x167   :  { %v647_v9 = vmax.f32 %v498_v4, 0.0  ;;  %v598_v10 = vpop.f32.mrf.mxu0  ;;  %v452_v17 = vadd.f32 %v451_v7, %v8325_v42 }
 0x168   :  { %v648_v14 = vmax.f32 %v547_v6, 0.0  ;;  %v599_v20 = vadd.f32 %v598_v10, %v8327_v44 }
 0x169   :  { %v696_v15 = vpack.c.bf16 %v647_v9, %v646_v8  ;;  %v650_v26 = vmax.f32 %v452_v17, 0.0 }
 0x16a   :  { %v697_v16 = vpack.c.bf16 %v649_v11, %v648_v14  ;;  %v653_v29 = vmax.f32 %v599_v20, 0.0  ;;  %v5876_v34 = vld [vmem:[#allocation2 + $0x60] sm:$0xf]  ;;  %v7550_v35 = vld [vmem:[#allocation2 + $0x64] sm:$0xf] }
 0x16b   :  { %728 = vst [vmem:[#allocation2 + $0x70] sm:$0xff] %v696_v15  ;;  %v5884_v36 = vld [vmem:[#allocation2 + $0x68] sm:$0xf]  ;;  %v7551_v43 = vld [vmem:[#allocation2 + $0x6c] sm:$0xf] }
 0x16c   :  { %729 = vst [vmem:[#allocation2 + $0x78] sm:$0xff] %v697_v16  ;;  %v500_v21 = vpop.f32.mrf.mxu2 }
 0x16d   :  { %v501_v22 = vadd.f32 %v500_v21, %v8329_v45  ;;  %v549_v23 = vpop.f32.mrf.mxu3 }
 0x16e   :  { %v550_v24 = vadd.f32 %v549_v23, %v8331_v46  ;;  %v453_v25 = vpop.f32.mrf.mxu1 }
 0x16f   :  { %v651_v27 = vmax.f32 %v501_v22, 0.0  ;;  %v600_v28 = vpop.f32.mrf.mxu0  ;;  %v454_v47 = vadd.f32 %v453_v25, %v8325_v42 }
 0x170   :  { %v652_v30 = vmax.f32 %v550_v24, 0.0  ;;  %v601_v52 = vadd.f32 %v600_v28, %v8327_v44 }
 0x171   :  { %v698_v31 = vpack.c.bf16 %v651_v27, %v650_v26  ;;  %v654_v62 = vmax.f32 %v454_v47, 0.0 }
 0x172   :  { %v699_v37 = vpack.c.bf16 %v653_v29, %v652_v30  ;;  %v7552_v40 = vld [vmem:[#allocation2 + $0x6c] sm:$0xf0]  ;;  %v5878_v41 = vld [vmem:[#allocation2 + $0x70] sm:$0xf0]  ;;  %v657_v1 = vmax.f32 %v601_v52, 0.0 }
 0x173   :  { %730 = vst [vmem:[#allocation2 + $0x80] sm:$0xff] %v698_v31  ;;  %v8406_v48 = vor.u32 %v7552_v40, %v5876_v34  ;;  %v8408_v49 = vor.u32 %v7550_v35, %v5878_v41  ;;  %v7553_v50 = vld [vmem:[#allocation2 + $0x74] sm:$0xf0]  ;;  %v5886_v51 = vld [vmem:[#allocation2 + $0x78] sm:$0xf0] }
 0x174   :  { %731 = vst [vmem:[#allocation2 + $0x88] sm:$0xff] %v699_v37  ;;  %v502_v53 = vpop.f32.mrf.mxu2  ;;  %v8411_v54 = vor.u32 %v7553_v50, %v5884_v36  ;;  %v8413_v55 = vor.u32 %v7551_v43, %v5886_v51  ;;  %v7438_v50 = vld [vmem:[%s11253_s4 + $0xe4] sm:$0xf]  ;;  %v6070_v51 = vld [vmem:[%s11253_s4 + $0xf0] sm:$0xf0] }
 0x175   :  { %11306 = vst [vmem:[#allocation3_spill] sm:$0xff] %v8408_v49  ;;  %v503_v56 = vadd.f32 %v502_v53, %v8329_v45  ;;  %v551_v57 = vpop.f32.mrf.mxu3  ;;  %1730 = vmatmul.bf16.gmra.mxu1 %v8406_v48  ;;  %1779 = vmatmul.bf16.gmra.mxu2 %v8408_v49 }
 0x176   :  { %11307 = vst [vmem:[#allocation4_spill] sm:$0xff] %v8411_v54  ;;  %v552_v58 = vadd.f32 %v551_v57, %v8331_v46  ;;  %1828 = vmatmul.bf16.gmra.mxu3 %v8411_v54  ;;  %1877 = vmatmul.bf16.gmra.mxu0 %v8413_v55  ;;  %v456_v59 = vpop.f32.mrf.mxu1  ;;  %v7470_v57 = vld [vmem:[%s11253_s4 + $0x1e4] sm:$0xf] }
 0x177   :  { %11308 = vst [vmem:[#allocation5_spill] sm:$0xff] %v8413_v55  ;;  %v655_v63 = vmax.f32 %v503_v56, 0.0  ;;  %v603_v0 = vpop.f32.mrf.mxu0  ;;  %v457_v7 = vadd.f32 %v456_v59, %v8325_v42  ;;  %v6073_v56 = vor.u32 %v7438_v50, %v6070_v51  ;;  %v7502_v59 = vld [vmem:[%s11253_s4 + $0x2e4] sm:$0xf] }
 0x178   :  { %v656_v4 = vmax.f32 %v552_v58, 0.0  ;;  %v604_v8 = vadd.f32 %v603_v0, %v8327_v44  ;;  %v6198_v58 = vld [vmem:[%s11253_s4 + $0x1f0] sm:$0xf0] }
 0x179   :  { %v700_v5 = vpack.c.bf16 %v655_v63, %v654_v62  ;;  %v658_v16 = vmax.f32 %v457_v7, 0.0  ;;  %v6201_v0 = vor.u32 %v7470_v57, %v6198_v58  ;;  %1903 = vmatpush.bf16.msrb.mxu1 %v6073_v56  ;;  %v7462_v56 = vld [vmem:[%s11253_s4 + $0x1a4] sm:$0xf]  ;;  %v6166_v57 = vld [vmem:[%s11253_s4 + $0x1b0] sm:$0xf0] }
 0x17a   :  { %v701_v6 = vpack.c.bf16 %v657_v1, %v656_v4  ;;  %v661_v21 = vmax.f32 %v604_v8, 0.0  ;;  %v5892_v24 = vld [vmem:[#allocation2 + $0x80] sm:$0xf]  ;;  %v7554_v25 = vld [vmem:[#allocation2 + $0x84] sm:$0xf] }
 0x17b   :  { %732 = vst [vmem:[#allocation2 + $0x90] sm:$0xff] %v700_v5  ;;  %v5900_v26 = vld [vmem:[#allocation2 + $0x88] sm:$0xf]  ;;  %v7555_v30 = vld [vmem:[#allocation2 + $0x8c] sm:$0xf]  ;;  %1952 = vmatpush.bf16.msrb.mxu2 %v6201_v0  ;;  %v6169_v0 = vor.u32 %v7462_v56, %v6166_v57 }
 0x17c   :  { %733 = vst [vmem:[#allocation2 + $0x98] sm:$0xff] %v701_v6  ;;  %v505_v9 = vpop.f32.mrf.mxu2  ;;  %v6326_v1 = vld [vmem:[%s11253_s4 + $0x2f0] sm:$0xf0]  ;;  %v7534_v4 = vld [vmem:[%s11253_s4 + $0x3e4] sm:$0xf] }
 0x17d   :  { %v506_v10 = vadd.f32 %v505_v9, %v8329_v45  ;;  %v554_v11 = vpop.f32.mrf.mxu3  ;;  %v6454_v5 = vld [vmem:[%s11253_s4 + $0x3f0] sm:$0xf0]  ;;  %v6329_v9 = vor.u32 %v7502_v59, %v6326_v1  ;;  %v7494_v1 = vld [vmem:[%s11253_s4 + $0x2a4] sm:$0xf] }
 0x17e   :  { %v555_v14 = vadd.f32 %v554_v11, %v8331_v46  ;;  %v458_v15 = vpop.f32.mrf.mxu1  ;;  %v7490_v56 = vld [vmem:[%s11253_s4 + $0x284] sm:$0xf]  ;;  %v6278_v57 = vld [vmem:[%s11253_s4 + $0x290] sm:$0xf0] }
 0x17f   :  { %v659_v17 = vmax.f32 %v506_v10, 0.0  ;;  %v605_v20 = vpop.f32.mrf.mxu0  ;;  %v459_v31 = vadd.f32 %v458_v15, %v8325_v42  ;;  %v6457_v10 = vor.u32 %v7534_v4, %v6454_v5  ;;  %v7434_v15 = vld [vmem:[%s11253_s4 + $0xc4] sm:$0xf]  ;;  %2001 = vmatpush.bf16.msrb.mxu3 %v6329_v9  ;;  %v6294_v4 = vld [vmem:[%s11253_s4 + $0x2b0] sm:$0xf0] }
 0x180   :  { %v660_v22 = vmax.f32 %v555_v14, 0.0  ;;  %v606_v40 = vadd.f32 %v605_v20, %v8327_v44  ;;  %v6297_v9 = vor.u32 %v7494_v1, %v6294_v4  ;;  %v7422_v1 = vld [vmem:[%s11253_s4 + $0x64] sm:$0xf]  ;;  %v6006_v4 = vld [vmem:[%s11253_s4 + $0x70] sm:$0xf0] }
 0x181   :  { %v702_v23 = vpack.c.bf16 %v659_v17, %v658_v16  ;;  %v662_v6 = vmax.f32 %v459_v31, 0.0  ;;  %v6054_v16 = vld [vmem:[%s11253_s4 + $0xd0] sm:$0xf0]  ;;  %2050 = vmatpush.bf16.msrb.mxu0 %v6457_v10  ;;  %v7526_v10 = vld [vmem:[%s11253_s4 + $0x3a4] sm:$0xf] }
 0x182   :  { %v703_v27 = vpack.c.bf16 %v661_v21, %v660_v22  ;;  %v7556_v28 = vld [vmem:[#allocation2 + $0x8c] sm:$0xf0]  ;;  %v5894_v29 = vld [vmem:[#allocation2 + $0x90] sm:$0xf0]  ;;  %v665_v11 = vmax.f32 %v606_v40, 0.0  ;;  %v6057_v20 = vor.u32 %v7434_v15, %v6054_v16 }
 0x183   :  { %734 = vst [vmem:[#allocation2 + $0xa0] sm:$0xff] %v702_v23  ;;  %v8426_v34 = vor.u32 %v7556_v28, %v5892_v24  ;;  %v8428_v35 = vor.u32 %v7554_v25, %v5894_v29  ;;  %v7557_v36 = vld [vmem:[#allocation2 + $0x94] sm:$0xf0]  ;;  %v5902_v37 = vld [vmem:[#allocation2 + $0x98] sm:$0xf0] }
 0x184   :  { %735 = vst [vmem:[#allocation2 + $0xa8] sm:$0xff] %v703_v27  ;;  %v507_v41 = vpop.f32.mrf.mxu2  ;;  %v8431_v43 = vor.u32 %v7557_v36, %v5900_v26  ;;  %v8433_v47 = vor.u32 %v7555_v30, %v5902_v37  ;;  %v7466_v21 = vld [vmem:[%s11253_s4 + $0x1c4] sm:$0xf]  ;;  %v6182_v22 = vld [vmem:[%s11253_s4 + $0x1d0] sm:$0xf0]  ;;  %1904 = vmatpush.bf16.msrb.mxu1 %v6057_v20 }
 0x185   :  { %11309 = vst [vmem:[#allocation6_spill] sm:$0xff] %v8426_v34  ;;  %v508_v52 = vadd.f32 %v507_v41, %v8329_v45  ;;  %v556_v53 = vpop.f32.mrf.mxu3  ;;  %1735 = vmatmul.bf16.gmra.mxu1 %v8426_v34  ;;  %1784 = vmatmul.bf16.gmra.mxu2 %v8428_v35  ;;  %v6185_v24 = vor.u32 %v7466_v21, %v6182_v22  ;;  %v7498_v28 = vld [vmem:[%s11253_s4 + $0x2c4] sm:$0xf]  ;;  %v6310_v29 = vld [vmem:[%s11253_s4 + $0x2d0] sm:$0xf0] }
 0x186   :  { %11310 = vst [vmem:[#allocation7_spill] sm:$0xff] %v8428_v35  ;;  %v557_v62 = vadd.f32 %v556_v53, %v8331_v46  ;;  %1833 = vmatmul.bf16.gmra.mxu3 %v8431_v43  ;;  %1882 = vmatmul.bf16.gmra.mxu0 %v8433_v47  ;;  %v461_v63 = vpop.f32.mrf.mxu1  ;;  %v6313_v36 = vor.u32 %v7498_v28, %v6310_v29  ;;  %v7530_v37 = vld [vmem:[%s11253_s4 + $0x3c4] sm:$0xf]  ;;  %v6438_v40 = vld [vmem:[%s11253_s4 + $0x3d0] sm:$0xf0] }
 0x187   :  { %11311 = vst [vmem:[#allocation8_spill] sm:$0xff] %v8431_v43  ;;  %v663_v7 = vmax.f32 %v508_v52, 0.0  ;;  %v608_v8 = vpop.f32.mrf.mxu0  ;;  %v462_v25 = vadd.f32 %v461_v63, %v8325_v42  ;;  %1953 = vmatpush.bf16.msrb.mxu2 %v6185_v24  ;;  %v7430_v41 = vld [vmem:[%s11253_s4 + $0xa4] sm:$0xf]  ;;  %v6441_v52 = vor.u32 %v7530_v37, %v6438_v40  ;;  %v6038_v53 = vld [vmem:[%s11253_s4 + $0xb0] sm:$0xf0] }
 0x188   :  { %11312 = vst [vmem:[#allocation9_spill] sm:$0xff] %v8433_v47  ;;  %v664_v14 = vmax.f32 %v557_v62, 0.0  ;;  %v609_v26 = vadd.f32 %v608_v8, %v8327_v44  ;;  %2002 = vmatpush.bf16.msrb.mxu3 %v6313_v36  ;;  %v6041_v63 = vor.u32 %v7430_v41, %v6038_v53  ;;  %v6022_v20 = vld [vmem:[%s11253_s4 + $0x90] sm:$0xf0]  ;;  %v7458_v41 = vld [vmem:[%s11253_s4 + $0x184] sm:$0xf] }
 0x189   :  { %v704_v17 = vpack.c.bf16 %v663_v7, %v662_v6  ;;  %v666_v58 = vmax.f32 %v462_v25, 0.0  ;;  %2051 = vmatpush.bf16.msrb.mxu0 %v6441_v52 }
 0x18a   :  { %v705_v23 = vpack.c.bf16 %v665_v11, %v664_v14  ;;  %v669_v5 = vmax.f32 %v609_v26, 0.0  ;;  %v5908_v7 = vld [vmem:[#allocation2 + $0xa0] sm:$0xf]  ;;  %v7558_v8 = vld [vmem:[#allocation2 + $0xa4] sm:$0xf]  ;;  %1905 = vmatpush.bf16.msrb.mxu1 %v6041_v63  ;;  %v6281_v63 = vor.u32 %v7490_v56, %v6278_v57 }
 0x18b   :  { %736 = vst [vmem:[#allocation2 + $0xb0] sm:$0xff] %v704_v17  ;;  %v6422_v11 = vld [vmem:[%s11253_s4 + $0x3b0] sm:$0xf0]  ;;  %v5916_v15 = vld [vmem:[#allocation2 + $0xa8] sm:$0xf]  ;;  %1954 = vmatpush.bf16.msrb.mxu2 %v6169_v0 }
 0x18c   :  { %737 = vst [vmem:[#allocation2 + $0xb8] sm:$0xff] %v705_v23  ;;  %v510_v27 = vpop.f32.mrf.mxu2  ;;  %v6425_v16 = vor.u32 %v7526_v10, %v6422_v11  ;;  %v7426_v17 = vld [vmem:[%s11253_s4 + $0x84] sm:$0xf]  ;;  %v7559_v25 = vld [vmem:[#allocation2 + $0xac] sm:$0xf]  ;;  %2003 = vmatpush.bf16.msrb.mxu3 %v6297_v9  ;;  %v6009_v9 = vor.u32 %v7422_v1, %v6006_v4 }
 0x18d   :  { %v511_v30 = vadd.f32 %v510_v27, %v8329_v45  ;;  %v559_v31 = vpop.f32.mrf.mxu3  ;;  %v6406_v0 = vld [vmem:[%s11253_s4 + $0x390] sm:$0xf0]  ;;  %v7454_v10 = vld [vmem:[%s11253_s4 + $0x164] sm:$0xf] }
 0x18e   :  { %v560_v50 = vadd.f32 %v559_v31, %v8331_v46  ;;  %v463_v51 = vpop.f32.mrf.mxu1  ;;  %2052 = vmatpush.bf16.msrb.mxu0 %v6425_v16  ;;  %v6134_v11 = vld [vmem:[%s11253_s4 + $0x170] sm:$0xf0]  ;;  %v7482_v57 = vld [vmem:[%s11253_s4 + $0x244] sm:$0xf] }
 0x18f   :  { %v667_v59 = vmax.f32 %v511_v30, 0.0  ;;  %v610_v62 = vpop.f32.mrf.mxu0  ;;  %v464_v22 = vadd.f32 %v463_v51, %v8325_v42  ;;  %v6025_v30 = vor.u32 %v7426_v17, %v6022_v20  ;;  %v6137_v16 = vor.u32 %v7454_v10, %v6134_v11  ;;  %v7486_v17 = vld [vmem:[%s11253_s4 + $0x264] sm:$0xf]  ;;  %v6262_v20 = vld [vmem:[%s11253_s4 + $0x270] sm:$0xf0] }
 0x190   :  { %v668_v6 = vmax.f32 %v560_v50, 0.0  ;;  %v611_v31 = vadd.f32 %v610_v62, %v8327_v44  ;;  %v6150_v50 = vld [vmem:[%s11253_s4 + $0x190] sm:$0xf0]  ;;  %2004 = vmatpush.bf16.msrb.mxu3 %v6281_v63  ;;  %v7514_v63 = vld [vmem:[%s11253_s4 + $0x344] sm:$0xf] }
 0x191   :  { %v706_v14 = vpack.c.bf16 %v667_v59, %v666_v58  ;;  %v6153_v53 = vor.u32 %v7458_v41, %v6150_v50  ;;  %v7522_v58 = vld [vmem:[%s11253_s4 + $0x384] sm:$0xf]  ;;  %1906 = vmatpush.bf16.msrb.mxu1 %v6025_v30  ;;  %v5990_v41 = vld [vmem:[%s11253_s4 + $0x50] sm:$0xf0] }
 0x192   :  { %v707_v21 = vpack.c.bf16 %v669_v5, %v668_v6  ;;  %v7560_v23 = vld [vmem:[#allocation2 + $0xac] sm:$0xf0]  ;;  %v5910_v24 = vld [vmem:[#allocation2 + $0xb0] sm:$0xf0]  ;;  %v670_v5 = vmax.f32 %v464_v22, 0.0  ;;  %v6265_v22 = vor.u32 %v7486_v17, %v6262_v20 }
 0x193   :  { %738 = vst [vmem:[#allocation2 + $0xc0] sm:$0xff] %v706_v14  ;;  %v8524_v26 = vor.u32 %v7560_v23, %v5908_v7  ;;  %v8526_v27 = vor.u32 %v7558_v8, %v5910_v24  ;;  %v7561_v28 = vld [vmem:[#allocation2 + $0xb4] sm:$0xf0]  ;;  %v5918_v29 = vld [vmem:[#allocation2 + $0xb8] sm:$0xf0]  ;;  %1955 = vmatpush.bf16.msrb.mxu2 %v6153_v53  ;;  %v6409_v8 = vor.u32 %v7522_v58, %v6406_v0  ;;  %v673_v14 = vmax.f32 %v611_v31, 0.0 }
 0x194   :  { %739 = vst [vmem:[#allocation2 + $0xc8] sm:$0xff] %v707_v21  ;;  %v512_v36 = vpop.f32.mrf.mxu2  ;;  %v8529_v37 = vor.u32 %v7561_v28, %v5916_v15  ;;  %v8531_v40 = vor.u32 %v7559_v25, %v5918_v29  ;;  %v7518_v23 = vld [vmem:[%s11253_s4 + $0x364] sm:$0xf]  ;;  %v6390_v24 = vld [vmem:[%s11253_s4 + $0x370] sm:$0xf0]  ;;  %2005 = vmatpush.bf16.msrb.mxu3 %v6265_v22 }
 0x195   :  { %11313 = vst [vmem:[#allocation10_spill] sm:$0xff] %v8524_v26  ;;  %v513_v51 = vadd.f32 %v512_v36, %v8329_v45  ;;  %v561_v52 = vpop.f32.mrf.mxu3  ;;  %1740 = vmatmul.bf16.gmra.mxu1 %v8524_v26  ;;  %1789 = vmatmul.bf16.gmra.mxu2 %v8526_v27  ;;  %v6393_v28 = vor.u32 %v7518_v23, %v6390_v24  ;;  %v7418_v36 = vld [vmem:[%s11253_s4 + $0x44] sm:$0xf]  ;;  %v6118_v56 = vld [vmem:[%s11253_s4 + $0x150] sm:$0xf0] }
 0x196   :  { %11314 = vst [vmem:[#allocation11_spill] sm:$0xff] %v8526_v27  ;;  %v562_v59 = vadd.f32 %v561_v52, %v8331_v46  ;;  %1838 = vmatmul.bf16.gmra.mxu3 %v8529_v37  ;;  %1887 = vmatmul.bf16.gmra.mxu0 %v8531_v40  ;;  %v466_v62 = vpop.f32.mrf.mxu1  ;;  %v5993_v52 = vor.u32 %v7418_v36, %v5990_v41  ;;  %v7450_v53 = vld [vmem:[%s11253_s4 + $0x144] sm:$0xf]  ;;  %v6374_v0 = vld [vmem:[%s11253_s4 + $0x350] sm:$0xf0] }
 0x197   :  { %11315 = vst [vmem:[#allocation12_spill] sm:$0xff] %v8529_v37  ;;  %v671_v6 = vmax.f32 %v513_v51, 0.0  ;;  %v613_v7 = vpop.f32.mrf.mxu0  ;;  %2053 = vmatpush.bf16.msrb.mxu0 %v6409_v8  ;;  %v467_v29 = vadd.f32 %v466_v62, %v8325_v42  ;;  %1907 = vmatpush.bf16.msrb.mxu1 %v6009_v9  ;;  %v6246_v62 = vld [vmem:[%s11253_s4 + $0x250] sm:$0xf0]  ;;  %v7414_v8 = vld [vmem:[%s11253_s4 + $0x24] sm:$0xf] }
 0x198   :  { %11316 = vst [vmem:[#allocation13_spill] sm:$0xff] %v8531_v40  ;;  %v672_v15 = vmax.f32 %v562_v59, 0.0  ;;  %1956 = vmatpush.bf16.msrb.mxu2 %v6137_v16  ;;  %v614_v30 = vadd.f32 %v613_v7, %v8327_v44  ;;  %v6121_v59 = vor.u32 %v7450_v53, %v6118_v56  ;;  %v6377_v7 = vor.u32 %v7514_v63, %v6374_v0  ;;  %v5974_v9 = vld [vmem:[%s11253_s4 + $0x30] sm:$0xf0]  ;;  %v7446_v17 = vld [vmem:[%s11253_s4 + $0x124] sm:$0xf] }
 0x199   :  { %v708_v21 = vpack.c.bf16 %v671_v6, %v670_v5  ;;  %v674_v1 = vmax.f32 %v467_v29, 0.0  ;;  %v6249_v6 = vor.u32 %v7482_v57, %v6246_v62  ;;  %v5977_v16 = vor.u32 %v7414_v8, %v5974_v9  ;;  %v6102_v20 = vld [vmem:[%s11253_s4 + $0x130] sm:$0xf0]  ;;  %v7474_v9 = vld [vmem:[%s11253_s4 + $0x204] sm:$0xf] }
 0x19a   :  { %v709_v25 = vpack.c.bf16 %v673_v14, %v672_v15  ;;  %v677_v10 = vmax.f32 %v614_v30, 0.0  ;;  %v5924_v14 = vld [vmem:[#allocation2 + $0xc0] sm:$0xf]  ;;  %v7562_v15 = vld [vmem:[#allocation2 + $0xc4] sm:$0xf]  ;;  %v6105_v24 = vor.u32 %v7446_v17, %v6102_v20 }
 0x19b   :  { %740 = vst [vmem:[#allocation2 + $0xd0] sm:$0xff] %v708_v21  ;;  %2054 = vmatpush.bf16.msrb.mxu0 %v6393_v28  ;;  %1908 = vmatpush.bf16.msrb.mxu1 %v5993_v52  ;;  %v5932_v23 = vld [vmem:[#allocation2 + $0xc8] sm:$0xf]  ;;  %v6230_v28 = vld [vmem:[%s11253_s4 + $0x230] sm:$0xf0] }
 0x19c   :  { %741 = vst [vmem:[#allocation2 + $0xd8] sm:$0xff] %v709_v25  ;;  %v515_v31 = vpop.f32.mrf.mxu2  ;;  %1957 = vmatpush.bf16.msrb.mxu2 %v6121_v59  ;;  %2006 = vmatpush.bf16.msrb.mxu3 %v6249_v6  ;;  %v7478_v25 = vld [vmem:[%s11253_s4 + $0x224] sm:$0xf]  ;;  %v7563_v41 = vld [vmem:[#allocation2 + $0xcc] sm:$0xf] }
 0x19d   :  { %v516_v50 = vadd.f32 %v515_v31, %v8329_v45  ;;  %v564_v51 = vpop.f32.mrf.mxu3  ;;  %v6233_v56 = vor.u32 %v7478_v25, %v6230_v28  ;;  %v6358_v63 = vld [vmem:[%s11253_s4 + $0x330] sm:$0xf0]  ;;  %v7442_v6 = vld [vmem:[%s11253_s4 + $0x104] sm:$0xf] }
 0x19e   :  { %v565_v58 = vadd.f32 %v564_v51, %v8331_v46  ;;  %v468_v5 = vpop.f32.mrf.mxu1  ;;  %v6086_v8 = vld [vmem:[%s11253_s4 + $0x110] sm:$0xf0] }
 0x19f   :  { %v675_v4 = vmax.f32 %v516_v50, 0.0  ;;  %v615_v22 = vpop.f32.mrf.mxu0  ;;  %2055 = vmatpush.bf16.msrb.mxu0 %v6377_v7  ;;  %v469_v30 = vadd.f32 %v468_v5, %v8325_v42  ;;  %1909 = vmatpush.bf16.msrb.mxu1 %v5977_v16  ;;  %v7510_v42 = vld [vmem:[%s11253_s4 + $0x324] sm:$0xf]  ;;  %v5958_v5 = vld [vmem:[%s11253_s4 + $0x10] sm:$0xf0] }
 0x1a0   :  { %v676_v11 = vmax.f32 %v565_v58, 0.0  ;;  %v616_v57 = vadd.f32 %v615_v22, %v8327_v44  ;;  %1958 = vmatpush.bf16.msrb.mxu2 %v6105_v24  ;;  %v6361_v44 = vor.u32 %v7510_v42, %v6358_v63  ;;  %2007 = vmatpush.bf16.msrb.mxu3 %v6233_v56  ;;  %v7506_v16 = vld [vmem:[%s11253_s4 + $0x304] sm:$0xf]  ;;  %v6342_v17 = vld [vmem:[%s11253_s4 + $0x310] sm:$0xf0] }
 0x1a1   :  { %v710_v21 = vpack.c.bf16 %v675_v4, %v674_v1  ;;  %v7410_v4 = vld [vmem:[%s11253_s4 + $0x4] sm:$0xf]  ;;  %v6345_v22 = vor.u32 %v7506_v16, %v6342_v17 }
 0x1a2   :  { %v711_v29 = vpack.c.bf16 %v677_v10, %v676_v11  ;;  %v7564_v31 = vld [vmem:[#allocation2 + $0xcc] sm:$0xf0]  ;;  %v5926_v36 = vld [vmem:[#allocation2 + $0xd0] sm:$0xf0]  ;;  %v5961_v7 = vor.u32 %v7410_v4, %v5958_v5  ;;  %v678_v11 = vmax.f32 %v469_v30, 0.0  ;;  %v681_v20 = vmax.f32 %v616_v57, 0.0 }
 0x1a3   :  { %742 = vst [vmem:[#allocation2 + $0xe0] sm:$0xff] %v710_v21  ;;  %v8628_v50 = vor.u32 %v7564_v31, %v5924_v14  ;;  %v8630_v51 = vor.u32 %v7562_v15, %v5926_v36  ;;  %v7565_v52 = vld [vmem:[#allocation2 + $0xd4] sm:$0xf0]  ;;  %v5934_v53 = vld [vmem:[#allocation2 + $0xd8] sm:$0xf0]  ;;  %2056 = vmatpush.bf16.msrb.mxu0 %v6361_v44 }
 0x1a4   :  { %743 = vst [vmem:[#allocation2 + $0xe8] sm:$0xff] %v711_v29  ;;  %v517_v58 = vpop.f32.mrf.mxu2  ;;  %v8633_v59 = vor.u32 %v7565_v52, %v5932_v23  ;;  %v8635_v62 = vor.u32 %v7563_v41, %v5934_v53  ;;  %v6214_v10 = vld [vmem:[%s11253_s4 + $0x210] sm:$0xf0]  ;;  %1910 = vmatpush.bf16.msrb.mxu1 %v5961_v7 }
 0x1a5   :  { %11317 = vst [vmem:[#allocation14_spill] sm:$0xff] %v8628_v50  ;;  %v518_v0 = vadd.f32 %v517_v58, %v8329_v45  ;;  %v566_v1 = vpop.f32.mrf.mxu3  ;;  %1745 = vmatmul.bf16.gmra.mxu1 %v8628_v50  ;;  %1794 = vmatmul.bf16.gmra.mxu2 %v8630_v51  ;;  %v6217_v15 = vor.u32 %v7474_v9, %v6214_v10 }
 0x1a6   :  { %11318 = vst [vmem:[#allocation15_spill] sm:$0xff] %v8630_v51  ;;  %v567_v45 = vadd.f32 %v566_v1, %v8331_v46  ;;  %1843 = vmatmul.bf16.gmra.mxu3 %v8633_v59  ;;  %1892 = vmatmul.bf16.gmra.mxu0 %v8635_v62  ;;  %v6089_v46 = vor.u32 %v7442_v6, %v6086_v8 }
 0x1a7   :  { %11319 = vst [vmem:[#allocation16_spill] sm:$0xff] %v8633_v59  ;;  %v679_v14 = vmax.f32 %v518_v0, 0.0  ;;  %2008 = vmatpush.bf16.msrb.mxu3 %v6217_v15  ;;  %2057 = vmatpush.bf16.msrb.mxu0 %v6345_v22 }
 0x1a8   :  { %11320 = vst [vmem:[#allocation17_spill] sm:$0xff] %v8635_v62  ;;  %v680_v21 = vmax.f32 %v567_v45, 0.0  ;;  %1959 = vmatpush.bf16.msrb.mxu2 %v6089_v46 }
 0x1a9   :  { %v712_v23 = vpack.c.bf16 %v679_v14, %v678_v11 }
 0x1aa   :  { %v713_v24 = vpack.c.bf16 %v681_v20, %v680_v21  ;;  %v5940_v25 = vld [vmem:[#allocation2 + $0xe0] sm:$0xf]  ;;  %v7566_v28 = vld [vmem:[#allocation2 + $0xe4] sm:$0xf] }
 0x1ab   :  { %744 = vst [vmem:[#allocation2 + $0xf0] sm:$0xff] %v712_v23  ;;  %v5948_v31 = vld [vmem:[#allocation2 + $0xe8] sm:$0xf]  ;;  %v7567_v53 = vld [vmem:[#allocation2 + $0xec] sm:$0xf] }
 0x1ac   :  { %745 = vst [vmem:[#allocation2 + $0xf8] sm:$0xff] %v713_v24 }
 0x1b2   :  { %v7568_v29 = vld [vmem:[#allocation2 + $0xec] sm:$0xf0]  ;;  %v5942_v30 = vld [vmem:[#allocation2 + $0xf0] sm:$0xf0] }
 0x1b3   :  { %v8673_v36 = vor.u32 %v7568_v29, %v5940_v25  ;;  %v8675_v41 = vor.u32 %v7566_v28, %v5942_v30  ;;  %v7569_v52 = vld [vmem:[#allocation2 + $0xf4] sm:$0xf0]  ;;  %v5950_v56 = vld [vmem:[#allocation2 + $0xf8] sm:$0xf0] }
 0x1b4   :  { %v8677_v57 = vor.u32 %v7569_v52, %v5948_v31  ;;  %v8679_v58 = vor.u32 %v7567_v53, %v5950_v56 }
 0x1b5   :  { %11321 = vst [vmem:[#allocation18_spill] sm:$0xff] %v8673_v36  ;;  %1750 = vmatmul.bf16.gmra.mxu1 %v8673_v36  ;;  %1799 = vmatmul.bf16.gmra.mxu2 %v8675_v41 }
 0x1b6   :  { %11322 = vst [vmem:[#allocation19_spill] sm:$0xff] %v8675_v41  ;;  %1848 = vmatmul.bf16.gmra.mxu3 %v8677_v57  ;;  %1897 = vmatmul.bf16.gmra.mxu0 %v8679_v58 }
 0x1b7   :  { %11323 = vst [vmem:[#allocation20_spill] sm:$0xff] %v8677_v57 }
 0x1b8   :  { %11324 = vst [vmem:[#allocation21_spill] sm:$0xff] %v8679_v58 }
 0x1c2   :  { %v1716_v42 = vpop.f32.mrf.mxu1 }
 0x1c3   :  { %v1863_v63 = vpop.f32.mrf.mxu0 }
 0x1c5   :  { %1911 = vmatmul.bf16.vlgmr.msrb.gmra.mxu1 %v8346_v32  ;;  %1960 = vmatmul.bf16.vlgmr.msrb.gmra.mxu2 %v8348_v33 }
 0x1c6   :  { %2009 = vmatmul.bf16.vlgmr.msrb.gmra.mxu3 %v8351_v38  ;;  %2058 = vmatmul.bf16.vlgmr.msrb.gmra.mxu0 %v8353_v39 }
 0x1c8   :  { %v1765_v0 = vpop.f32.mrf.mxu2 }
 0x1c9   :  { %v1766_v1 = vadd.f32 %v1765_v0, %v1716_v42  ;;  %v1814_v44 = vpop.f32.mrf.mxu3 }
 0x1ca   :  { %v1718_v4 = vpop.f32.mrf.mxu1 }
 0x1cb   :  { %v1815_v5 = vadd.f32 %v1814_v44, %v1766_v1  ;;  %v1865_v6 = vpop.f32.mrf.mxu0 }
 0x1cd   :  { %v8689_v45 = vadd.f32 %v1863_v63, %v1815_v5 }
 0x1d0   :  { %v1767_v7 = vpop.f32.mrf.mxu2 }
 0x1d1   :  { %v1768_v8 = vadd.f32 %v1767_v7, %v1718_v4  ;;  %v1816_v9 = vpop.f32.mrf.mxu3  ;;  %v7441_v7 = vld [vmem:[%s11253_s4 + $0xf4] sm:$0xf0] }
 0x1d2   :  { %v1721_v10 = vpop.f32.mrf.mxu1 }
 0x1d3   :  { %v1817_v11 = vadd.f32 %v1816_v9, %v1768_v8  ;;  %v1868_v14 = vpop.f32.mrf.mxu0 }
 0x1d5   :  { %v8691_v46 = vadd.f32 %v1865_v6, %v1817_v11  ;;  %1916 = vmatmul.bf16.gmra.mxu1 %v8366_v12  ;;  %1965 = vmatmul.bf16.gmra.mxu2 %v8368_v13  ;;  %v6076_v6 = vld [vmem:[%s11253_s4 + $0xe8] sm:$0xf] }
 0x1d6   :  { %2014 = vmatmul.bf16.gmra.mxu3 %v8371_v18  ;;  %2063 = vmatmul.bf16.gmra.mxu0 %v8373_v19  ;;  %v6077_v8 = vor.u32 %v7441_v7, %v6076_v6 }
 0x1d8   :  { %v1770_v16 = vpop.f32.mrf.mxu2  ;;  %2099 = vmatpush.bf16.msra.mxu1 %v6077_v8  ;;  %v6012_v8 = vld [vmem:[%s11253_s4 + $0x68] sm:$0xf] }
 0x1d9   :  { %v1771_v17 = vadd.f32 %v1770_v16, %v1721_v10  ;;  %v1819_v20 = vpop.f32.mrf.mxu3  ;;  %v7437_v16 = vld [vmem:[%s11253_s4 + $0xd4] sm:$0xf0] }
 0x1da   :  { %v1723_v21 = vpop.f32.mrf.mxu1 }
 0x1db   :  { %v1820_v22 = vadd.f32 %v1819_v20, %v1771_v17  ;;  %v1870_v23 = vpop.f32.mrf.mxu0 }
 0x1dd   :  { %v8699_v24 = vadd.f32 %v1868_v14, %v1820_v22  ;;  %v6060_v14 = vld [vmem:[%s11253_s4 + $0xc8] sm:$0xf] }
 0x1de   :  { %v6061_v20 = vor.u32 %v7437_v16, %v6060_v14 }
 0x1e0   :  { %v1772_v25 = vpop.f32.mrf.mxu2  ;;  %2100 = vmatpush.bf16.msra.mxu1 %v6061_v20  ;;  %v7421_v20 = vld [vmem:[%s11253_s4 + $0x54] sm:$0xf0] }
 0x1e1   :  { %v1773_v28 = vadd.f32 %v1772_v25, %v1723_v21  ;;  %v1821_v29 = vpop.f32.mrf.mxu3  ;;  %v6044_v25 = vld [vmem:[%s11253_s4 + $0xa8] sm:$0xf] }
 0x1e2   :  { %v1726_v30 = vpop.f32.mrf.mxu1 }
 0x1e3   :  { %v1822_v31 = vadd.f32 %v1821_v29, %v1773_v28  ;;  %v1873_v52 = vpop.f32.mrf.mxu0  ;;  %v7433_v28 = vld [vmem:[%s11253_s4 + $0xb4] sm:$0xf0] }
 0x1e4   :  { %v6045_v29 = vor.u32 %v7433_v28, %v6044_v25 }
 0x1e5   :  { %v8701_v53 = vadd.f32 %v1870_v23, %v1822_v31  ;;  %1921 = vmatmul.bf16.gmra.mxu1 %v8386_v60  ;;  %1970 = vmatmul.bf16.gmra.mxu2 %v8388_v61 }
 0x1e6   :  { %2019 = vmatmul.bf16.gmra.mxu3 %v8391_v2  ;;  %2068 = vmatmul.bf16.gmra.mxu0 %v8393_v3 }
 0x1e7   :  { %2101 = vmatpush.bf16.msra.mxu1 %v6045_v29  ;;  %v6204_v29 = vld [vmem:[%s11253_s4 + $0x1e8] sm:$0xf] }
 0x1e8   :  { %v1775_v42 = vpop.f32.mrf.mxu2 }
 0x1e9   :  { %v1776_v63 = vadd.f32 %v1775_v42, %v1726_v30  ;;  %v1824_v0 = vpop.f32.mrf.mxu3 }
 0x1ea   :  { %v1728_v1 = vpop.f32.mrf.mxu1 }
 0x1eb   :  { %v1825_v44 = vadd.f32 %v1824_v0, %v1776_v63  ;;  %v1875_v4 = vpop.f32.mrf.mxu0  ;;  %v6028_v63 = vld [vmem:[%s11253_s4 + $0x88] sm:$0xf]  ;;  %v7429_v0 = vld [vmem:[%s11253_s4 + $0x94] sm:$0xf0] }
 0x1ed   :  { %v8709_v5 = vadd.f32 %v1873_v52, %v1825_v44  ;;  %v6029_v44 = vor.u32 %v7429_v0, %v6028_v63  ;;  %v7505_v0 = vld [vmem:[%s11253_s4 + $0x2f4] sm:$0xf0] }
 0x1ef   :  { %2102 = vmatpush.bf16.msra.mxu1 %v6029_v44  ;;  %v7537_v44 = vld [vmem:[%s11253_s4 + $0x3f4] sm:$0xf0] }
 0x1f0   :  { %v1777_v9 = vpop.f32.mrf.mxu2 }
 0x1f1   :  { %v1778_v10 = vadd.f32 %v1777_v9, %v1728_v1  ;;  %v1826_v11 = vpop.f32.mrf.mxu3  ;;  %v7425_v9 = vld [vmem:[%s11253_s4 + $0x74] sm:$0xf0] }
 0x1f2   :  { %v1731_v17 = vpop.f32.mrf.mxu1 }
 0x1f3   :  { %v1827_v21 = vadd.f32 %v1826_v11, %v1778_v10  ;;  %v1878_v22 = vpop.f32.mrf.mxu0  ;;  %v6013_v10 = vor.u32 %v7425_v9, %v6012_v8  ;;  %v5980_v8 = vld [vmem:[%s11253_s4 + $0x28] sm:$0xf]  ;;  %v7417_v9 = vld [vmem:[%s11253_s4 + $0x34] sm:$0xf0] }
 0x1f5   :  { %v8723_v23 = vadd.f32 %v1875_v4, %v1827_v21  ;;  %1926 = vmatmul.bf16.gmra.mxu1 %v8406_v48  ;;  %1975 = vmatmul.bf16.gmra.mxu2 %v8408_v49 }
 0x1f6   :  { %2024 = vmatmul.bf16.gmra.mxu3 %v8411_v54  ;;  %2073 = vmatmul.bf16.gmra.mxu0 %v8413_v55 }
 0x1f7   :  { %2103 = vmatpush.bf16.msra.mxu1 %v6013_v10  ;;  %v5981_v10 = vor.u32 %v7417_v9, %v5980_v8 }
 0x1f8   :  { %v1780_v31 = vpop.f32.mrf.mxu2 }
 0x1f9   :  { %v1781_v52 = vadd.f32 %v1780_v31, %v1731_v17  ;;  %v1829_v42 = vpop.f32.mrf.mxu3  ;;  %v5996_v17 = vld [vmem:[%s11253_s4 + $0x48] sm:$0xf]  ;;  %v7473_v31 = vld [vmem:[%s11253_s4 + $0x1f4] sm:$0xf0] }
 0x1fa   :  { %v1733_v1 = vpop.f32.mrf.mxu1  ;;  %v6205_v63 = vor.u32 %v7473_v31, %v6204_v29  ;;  %v7501_v31 = vld [vmem:[%s11253_s4 + $0x2d4] sm:$0xf0] }
 0x1fb   :  { %v1830_v4 = vadd.f32 %v1829_v42, %v1781_v52  ;;  %v1880_v6 = vpop.f32.mrf.mxu0  ;;  %v6332_v52 = vld [vmem:[%s11253_s4 + $0x2e8] sm:$0xf] }
 0x1fc   :  { %2148 = vmatpush.bf16.msra.mxu2 %v6205_v63  ;;  %v7533_v63 = vld [vmem:[%s11253_s4 + $0x3d4] sm:$0xf0] }
 0x1fd   :  { %v8743_v7 = vadd.f32 %v1878_v22, %v1830_v4  ;;  %v5997_v22 = vor.u32 %v7421_v20, %v5996_v17  ;;  %v6333_v4 = vor.u32 %v7505_v0, %v6332_v52  ;;  %v7469_v17 = vld [vmem:[%s11253_s4 + $0x1d4] sm:$0xf0]  ;;  %v6316_v20 = vld [vmem:[%s11253_s4 + $0x2c8] sm:$0xf] }
 0x1fe   :  { %v6444_v52 = vld [vmem:[%s11253_s4 + $0x3c8] sm:$0xf] }
 0x1ff   :  { %2104 = vmatpush.bf16.msra.mxu1 %v5997_v22  ;;  %2197 = vmatpush.bf16.msra.mxu3 %v6333_v4  ;;  %v7413_v4 = vld [vmem:[%s11253_s4 + $0x14] sm:$0xf0] }
 0x200   :  { %v1782_v11 = vpop.f32.mrf.mxu2 }
 0x201   :  { %v1783_v14 = vadd.f32 %v1782_v11, %v1733_v1  ;;  %v1831_v16 = vpop.f32.mrf.mxu3  ;;  %v6460_v1 = vld [vmem:[%s11253_s4 + $0x3e8] sm:$0xf] }
 0x202   :  { %v1736_v21 = vpop.f32.mrf.mxu1  ;;  %v6092_v11 = vld [vmem:[%s11253_s4 + $0x108] sm:$0xf] }
 0x203   :  { %v1832_v25 = vadd.f32 %v1831_v16, %v1783_v14  ;;  %v1883_v28 = vpop.f32.mrf.mxu0  ;;  %v6188_v16 = vld [vmem:[%s11253_s4 + $0x1c8] sm:$0xf]  ;;  %2105 = vmatpush.bf16.msra.mxu1 %v5981_v10 }
 0x204   :  { %v6189_v29 = vor.u32 %v7469_v17, %v6188_v16  ;;  %v6172_v17 = vld [vmem:[%s11253_s4 + $0x1a8] sm:$0xf] }
 0x205   :  { %v8766_v42 = vadd.f32 %v1880_v6, %v1832_v25  ;;  %1931 = vmatmul.bf16.gmra.mxu1 %v8426_v34  ;;  %1980 = vmatmul.bf16.gmra.mxu2 %v8428_v35  ;;  %v6461_v6 = vor.u32 %v7537_v44, %v6460_v1  ;;  %v6317_v1 = vor.u32 %v7501_v31, %v6316_v20  ;;  %v7465_v20 = vld [vmem:[%s11253_s4 + $0x1b4] sm:$0xf0] }
 0x206   :  { %2029 = vmatmul.bf16.gmra.mxu3 %v8431_v43  ;;  %2078 = vmatmul.bf16.gmra.mxu0 %v8433_v47  ;;  %v6445_v44 = vor.u32 %v7533_v63, %v6444_v52  ;;  %v7497_v31 = vld [vmem:[%s11253_s4 + $0x2b4] sm:$0xf0]  ;;  %v6428_v52 = vld [vmem:[%s11253_s4 + $0x3a8] sm:$0xf] }
 0x207   :  { %2246 = vmatpush.bf16.msra.mxu0 %v6461_v6  ;;  %v7439_v6 = vld [vmem:[%s11253_s4 + $0xec] sm:$0xf]  ;;  %2149 = vmatpush.bf16.msra.mxu2 %v6189_v29  ;;  %v6173_v29 = vor.u32 %v7465_v20, %v6172_v17  ;;  %v7529_v63 = vld [vmem:[%s11253_s4 + $0x3b4] sm:$0xf0] }
 0x208   :  { %v1785_v14 = vpop.f32.mrf.mxu2  ;;  %2198 = vmatpush.bf16.msra.mxu3 %v6317_v1  ;;  %v7493_v20 = vld [vmem:[%s11253_s4 + $0x294] sm:$0xf0] }
 0x209   :  { %v1786_v22 = vadd.f32 %v1785_v14, %v1736_v21  ;;  %v1834_v25 = vpop.f32.mrf.mxu3  ;;  %v5964_v21 = vld [vmem:[%s11253_s4 + $0x8] sm:$0xf]  ;;  %v6078_v14 = vld [vmem:[%s11253_s4 + $0xf8] sm:$0xf0] }
 0x20a   :  { %v8807_v0 = vpop.f32.mrf.mxu1  ;;  %v5965_v10 = vor.u32 %v7413_v4, %v5964_v21  ;;  %v6081_v16 = vor.u32 %v7439_v6, %v6078_v14  ;;  %v6062_v21 = vld [vmem:[%s11253_s4 + $0xd8] sm:$0xf0]  ;;  %v6284_v14 = vld [vmem:[%s11253_s4 + $0x288] sm:$0xf] }
 0x20b   :  { %v1835_v8 = vadd.f32 %v1834_v25, %v1786_v22  ;;  %v8818_v9 = vpop.f32.mrf.mxu0  ;;  %2247 = vmatpush.bf16.msra.mxu0 %v6445_v44  ;;  %v6300_v22 = vld [vmem:[%s11253_s4 + $0x2a8] sm:$0xf]  ;;  %v6429_v44 = vor.u32 %v7529_v63, %v6428_v52  ;;  %2150 = vmatpush.bf16.msra.mxu2 %v6173_v29  ;;  %v7525_v29 = vld [vmem:[%s11253_s4 + $0x394] sm:$0xf0]  ;;  %v6285_v52 = vor.u32 %v7493_v20, %v6284_v14 }
 0x20c   :  { %2106 = vmatpush.bf16.msra.mxu1 %v5965_v10  ;;  %v6301_v1 = vor.u32 %v7497_v31, %v6300_v22  ;;  %v7461_v10 = vld [vmem:[%s11253_s4 + $0x194] sm:$0xf0]  ;;  %v6412_v22 = vld [vmem:[%s11253_s4 + $0x388] sm:$0xf] }
 0x20d   :  { %v8832_v25 = vadd.f32 %v1883_v28, %v1835_v8  ;;  %v7435_v28 = vld [vmem:[%s11253_s4 + $0xcc] sm:$0xf]  ;;  %v6156_v8 = vld [vmem:[%s11253_s4 + $0x188] sm:$0xf]  ;;  %v6413_v63 = vor.u32 %v7525_v29, %v6412_v22  ;;  %v7521_v22 = vld [vmem:[%s11253_s4 + $0x374] sm:$0xf0] }
 0x20e   :  { %v6065_v4 = vor.u32 %v7435_v28, %v6062_v21  ;;  %2199 = vmatpush.bf16.msra.mxu3 %v6301_v1  ;;  %v6157_v17 = vor.u32 %v7461_v10, %v6156_v8  ;;  %v7431_v1 = vld [vmem:[%s11253_s4 + $0xac] sm:$0xf]  ;;  %v7457_v8 = vld [vmem:[%s11253_s4 + $0x174] sm:$0xf0]  ;;  %v6268_v10 = vld [vmem:[%s11253_s4 + $0x268] sm:$0xf] }
 0x20f   :  { %2248 = vmatpush.bf16.msra.mxu0 %v6429_v44  ;;  %v6046_v44 = vld [vmem:[%s11253_s4 + $0xb8] sm:$0xf0]  ;;  %v6396_v20 = vld [vmem:[%s11253_s4 + $0x368] sm:$0xf] }
 0x210   :  { %2295 = vmatpush.bf16.msrb.mxu1 %v6081_v16  ;;  %v8849_v6 = vpop.f32.mrf.mxu2  ;;  %2151 = vmatpush.bf16.msra.mxu2 %v6157_v17  ;;  %v6049_v21 = vor.u32 %v7431_v1, %v6046_v44  ;;  %v7489_v17 = vld [vmem:[%s11253_s4 + $0x274] sm:$0xf0]  ;;  %v6030_v1 = vld [vmem:[%s11253_s4 + $0x98] sm:$0xf0] }
 0x211   :  { %v8860_v16 = vpop.f32.mrf.mxu3  ;;  %v6269_v29 = vor.u32 %v7489_v17, %v6268_v10  ;;  %v7453_v10 = vld [vmem:[%s11253_s4 + $0x154] sm:$0xf0]  ;;  %v6252_v17 = vld [vmem:[%s11253_s4 + $0x248] sm:$0xf] }
 0x212   :  { %v8871_v31 = vpop.f32.mrf.mxu1  ;;  %2200 = vmatpush.bf16.msra.mxu3 %v6285_v52  ;;  %v6397_v52 = vor.u32 %v7521_v22, %v6396_v20  ;;  %v6380_v22 = vld [vmem:[%s11253_s4 + $0x348] sm:$0xf] }
 0x213   :  { %v8879_v28 = vpop.f32.mrf.mxu0  ;;  %2249 = vmatpush.bf16.msra.mxu0 %v6413_v63  ;;  %v7427_v63 = vld [vmem:[%s11253_s4 + $0x8c] sm:$0xf] }
 0x214   :  { %2296 = vmatpush.bf16.msrb.mxu1 %v6065_v4  ;;  %v6140_v4 = vld [vmem:[%s11253_s4 + $0x168] sm:$0xf]  ;;  %v6033_v44 = vor.u32 %v7427_v63, %v6030_v1 }
 0x215   :  { %1936 = vmatmul.bf16.gmra.mxu1 %v8524_v26  ;;  %1985 = vmatmul.bf16.gmra.mxu2 %v8526_v27  ;;  %v6141_v14 = vor.u32 %v7457_v8, %v6140_v4  ;;  %v6124_v8 = vld [vmem:[%s11253_s4 + $0x148] sm:$0xf] }
 0x216   :  { %2034 = vmatmul.bf16.gmra.mxu3 %v8529_v37  ;;  %2083 = vmatmul.bf16.gmra.mxu0 %v8531_v40  ;;  %v7415_v40 = vld [vmem:[%s11253_s4 + $0x2c] sm:$0xf] }
 0x217   :  { %2152 = vmatpush.bf16.msra.mxu2 %v6141_v14  ;;  %2201 = vmatpush.bf16.msra.mxu3 %v6269_v29  ;;  %v7485_v14 = vld [vmem:[%s11253_s4 + $0x254] sm:$0xf0] }
 0x218   :  { %2297 = vmatpush.bf16.msrb.mxu1 %v6049_v21  ;;  %v8909_v4 = vpop.f32.mrf.mxu2  ;;  %2250 = vmatpush.bf16.msra.mxu0 %v6397_v52  ;;  %v6125_v21 = vor.u32 %v7453_v10, %v6124_v8  ;;  %v7517_v29 = vld [vmem:[%s11253_s4 + $0x354] sm:$0xf0]  ;;  %v6253_v63 = vor.u32 %v7485_v14, %v6252_v17  ;;  %v7423_v8 = vld [vmem:[%s11253_s4 + $0x6c] sm:$0xf]  ;;  %v6014_v10 = vld [vmem:[%s11253_s4 + $0x78] sm:$0xf0] }
 0x219   :  { %v8920_v20 = vpop.f32.mrf.mxu3  ;;  %v6381_v1 = vor.u32 %v7517_v29, %v6380_v22  ;;  %v6017_v56 = vor.u32 %v7423_v8, %v6014_v10  ;;  %v6108_v17 = vld [vmem:[%s11253_s4 + $0x128] sm:$0xf]  ;;  %v7449_v14 = vld [vmem:[%s11253_s4 + $0x134] sm:$0xf0]  ;;  %v7419_v10 = vld [vmem:[%s11253_s4 + $0x4c] sm:$0xf] }
 0x21a   :  { %v8931_v52 = vpop.f32.mrf.mxu1  ;;  %v6236_v22 = vld [vmem:[%s11253_s4 + $0x228] sm:$0xf]  ;;  %v6109_v29 = vor.u32 %v7449_v14, %v6108_v17  ;;  %v5998_v17 = vld [vmem:[%s11253_s4 + $0x58] sm:$0xf0] }
 0x21b   :  { %v8939_v15 = vpop.f32.mrf.mxu0  ;;  %2153 = vmatpush.bf16.msra.mxu2 %v6125_v21  ;;  %2202 = vmatpush.bf16.msra.mxu3 %v6253_v63  ;;  %v6364_v21 = vld [vmem:[%s11253_s4 + $0x328] sm:$0xf]  ;;  %v7513_v63 = vld [vmem:[%s11253_s4 + $0x334] sm:$0xf0]  ;;  %v6001_v14 = vor.u32 %v7419_v10, %v5998_v17 }
 0x21c   :  { %2298 = vmatpush.bf16.msrb.mxu1 %v6033_v44  ;;  %2251 = vmatpush.bf16.msra.mxu0 %v6381_v1  ;;  %v7481_v44 = vld [vmem:[%s11253_s4 + $0x234] sm:$0xf0]  ;;  %v6365_v8 = vor.u32 %v7513_v63, %v6364_v21 }
 0x21d   :  { %v6237_v1 = vor.u32 %v7481_v44, %v6236_v22  ;;  %v7445_v22 = vld [vmem:[%s11253_s4 + $0x114] sm:$0xf0]  ;;  %v6220_v44 = vld [vmem:[%s11253_s4 + $0x208] sm:$0xf] }
 0x21e   :  { %v6093_v63 = vor.u32 %v7445_v22, %v6092_v11  ;;  %v5982_v11 = vld [vmem:[%s11253_s4 + $0x38] sm:$0xf0] }
 0x21f   :  { %2154 = vmatpush.bf16.msra.mxu2 %v6109_v29  ;;  %2203 = vmatpush.bf16.msra.mxu3 %v6237_v1  ;;  %v6348_v29 = vld [vmem:[%s11253_s4 + $0x308] sm:$0xf]  ;;  %v7509_v1 = vld [vmem:[%s11253_s4 + $0x314] sm:$0xf0]  ;;  %v5985_v37 = vor.u32 %v7415_v40, %v5982_v11 }
 0x220   :  { %2299 = vmatpush.bf16.msrb.mxu1 %v6017_v56  ;;  %v1792_v30 = vpop.f32.mrf.mxu2  ;;  %2252 = vmatpush.bf16.msra.mxu0 %v6365_v8  ;;  %v7477_v56 = vld [vmem:[%s11253_s4 + $0x214] sm:$0xf0]  ;;  %v6349_v17 = vor.u32 %v7509_v1, %v6348_v29 }
 0x221   :  { %v1841_v21 = vpop.f32.mrf.mxu3  ;;  %v6221_v10 = vor.u32 %v7477_v56, %v6220_v44  ;;  %v7411_v44 = vld [vmem:[%s11253_s4 + $0xc] sm:$0xf] }
 0x222   :  { %v1746_v8 = vpop.f32.mrf.mxu1 }
 0x223   :  { %v1893_v22 = vpop.f32.mrf.mxu0  ;;  %2155 = vmatpush.bf16.msra.mxu2 %v6093_v63  ;;  %2204 = vmatpush.bf16.msra.mxu3 %v6221_v10 }
 0x224   :  { %2300 = vmatpush.bf16.msrb.mxu1 %v6001_v14  ;;  %2253 = vmatpush.bf16.msra.mxu0 %v6349_v17  ;;  %v5966_v14 = vld [vmem:[%s11253_s4 + $0x18] sm:$0xf0] }
 0x225   :  { %1941 = vmatmul.bf16.gmra.mxu1 %v8628_v50  ;;  %1990 = vmatmul.bf16.gmra.mxu2 %v8630_v51  ;;  %v5969_v40 = vor.u32 %v7411_v44, %v5966_v14 }
 0x226   :  { %2039 = vmatmul.bf16.gmra.mxu3 %v8633_v59  ;;  %2088 = vmatmul.bf16.gmra.mxu0 %v8635_v62 }
 0x228   :  { %2301 = vmatpush.bf16.msrb.mxu1 %v5985_v37  ;;  %v1795_v63 = vpop.f32.mrf.mxu2 }
 0x229   :  { %v1844_v56 = vpop.f32.mrf.mxu3 }
 0x22a   :  { %v1748_v29 = vpop.f32.mrf.mxu1 }
 0x22b   :  { %v1895_v1 = vpop.f32.mrf.mxu0 }
 0x22c   :  { %2302 = vmatpush.bf16.msrb.mxu1 %v5969_v40  ;;  %v1796_v40 = vadd.f32 %v1795_v63, %v1746_v8 }
 0x230   :  { %v1797_v10 = vpop.f32.mrf.mxu2 }
 0x231   :  { %v1846_v17 = vpop.f32.mrf.mxu3  ;;  %v1798_v50 = vadd.f32 %v1797_v10, %v1748_v29  ;;  %v11325_v29 = vpack.c.bf16 %v8766_v42, %v8743_v7 }
 0x232   :  { %v1751_v11 = vpop.f32.mrf.mxu1 }
 0x233   :  { %v1898_v59 = vpop.f32.mrf.mxu0  ;;  %v1847_v34 = vadd.f32 %v1846_v17, %v1798_v50 }
 0x235   :  { %1946 = vmatmul.bf16.gmra.mxu1 %v8673_v36  ;;  %1995 = vmatmul.bf16.gmra.mxu2 %v8675_v41  ;;  %v1793_v36 = vadd.f32 %v1792_v30, %v8931_v52 }
 0x236   :  { %2044 = vmatmul.bf16.gmra.mxu3 %v8677_v57  ;;  %2093 = vmatmul.bf16.gmra.mxu0 %v8679_v58  ;;  %v1791_v58 = vadd.f32 %v8909_v4, %v8871_v31  ;;  %v1845_v57 = vadd.f32 %v1844_v56, %v1796_v40  ;;  %v11327_v40 = vpack.c.bf16 %v8701_v53, %v8699_v24 }
 0x238   :  { %v1800_v62 = vpop.f32.mrf.mxu2  ;;  %v1894_v30 = vadd.f32 %v1893_v22, %v1845_v57 }
 0x239   :  { %v1849_v37 = vpop.f32.mrf.mxu3  ;;  %v1801_v51 = vadd.f32 %v1800_v62, %v1751_v11 }
 0x23a   :  { %v1753_v44 = vpop.f32.mrf.mxu1 }
 0x23b   :  { %v1900_v14 = vpop.f32.mrf.mxu0  ;;  %v1850_v26 = vadd.f32 %v1849_v37, %v1801_v51  ;;  %v1896_v51 = vadd.f32 %v1895_v1, %v1847_v34 }
 0x23d   :  { %v1899_v54 = vadd.f32 %v1898_v59, %v1850_v26  ;;  %v2515_v8 = vpack.c.bf16 %v1896_v51, %v1894_v30 }
 0x240   :  { %v1802_v27 = vpop.f32.mrf.mxu2 }
 0x241   :  { %v1803_v47 = vadd.f32 %v1802_v27, %v1753_v44  ;;  %v1851_v43 = vpop.f32.mrf.mxu3  ;;  %v1842_v27 = vadd.f32 %v1841_v21, %v1793_v36 }
 0x242   :  { %v1912_v35 = vpop.f32.mrf.mxu1 }
 0x243   :  { %v1852_v41 = vadd.f32 %v1851_v43, %v1803_v47  ;;  %v2059_v55 = vpop.f32.mrf.mxu0  ;;  %v1788_v43 = vadd.f32 %v8849_v6, %v8807_v0  ;;  %v1840_v47 = vadd.f32 %v8920_v20, %v1791_v58  ;;  %v1891_v31 = vadd.f32 %v8939_v15, %v1842_v27 }
 0x245   :  { %v1901_v49 = vadd.f32 %v1900_v14, %v1852_v41  ;;  %2107 = vmatmul.bf16.vlgmr.msra.gmra.mxu1 %v8346_v32  ;;  %2156 = vmatmul.bf16.vlgmr.msra.gmra.mxu2 %v8348_v33  ;;  %v1837_v36 = vadd.f32 %v8860_v16, %v1788_v43 }
 0x246   :  { %2205 = vmatmul.bf16.vlgmr.msra.gmra.mxu3 %v8351_v38  ;;  %2254 = vmatmul.bf16.vlgmr.msra.gmra.mxu0 %v8353_v39 }
 0x247   :  { %v2519_v62 = vpack.c.bf16 %v1901_v49, %v1899_v54  ;;  %v1889_v49 = vadd.f32 %v8879_v28, %v1840_v47  ;;  %v1886_v57 = vadd.f32 %v8818_v9, %v1837_v36 }
 0x248   :  { %v1961_v50 = vpop.f32.mrf.mxu2 }
 0x249   :  { %v1962_v26 = vadd.f32 %v1961_v50, %v1912_v35  ;;  %v2010_v59 = vpop.f32.mrf.mxu3  ;;  %2532 = vmatpush.bf16.msra.mxu1 %v2519_v62  ;;  %v2511_v34 = vpack.c.bf16 %v1891_v31, %v1889_v49 }
 0x24a   :  { %v1914_v41 = vpop.f32.mrf.mxu1 }
 0x24b   :  { %v2011_v4 = vadd.f32 %v2010_v59, %v1962_v26  ;;  %v2061_v52 = vpop.f32.mrf.mxu0 }
 0x24d   :  { %v9016_v54 = vadd.f32 %v2059_v55, %v2011_v4  ;;  %2533 = vmatpush.bf16.msra.mxu1 %v2515_v8  ;;  %v2507_v55 = vpack.c.bf16 %v1886_v57, %v8832_v25  ;;  %v11326_v25 = vpack.c.bf16 %v8723_v23, %v8709_v5  ;;  %v11328_v5 = vpack.c.bf16 %v8691_v46, %v8689_v45  ;;  %v11329_v45 = vld [vmem:[#allocation3_spill] sm:$0xff]  ;;  %v11330_v46 = vld [vmem:[#allocation4_spill] sm:$0xff] }
 0x250   :  { %v1963_v0 = vpop.f32.mrf.mxu2 }
 0x251   :  { %v1964_v35 = vadd.f32 %v1963_v0, %v1914_v41  ;;  %v2012_v58 = vpop.f32.mrf.mxu3  ;;  %2534 = vmatpush.bf16.msra.mxu1 %v2511_v34 }
 0x252   :  { %v1917_v6 = vpop.f32.mrf.mxu1 }
 0x253   :  { %v2013_v20 = vadd.f32 %v2012_v58, %v1964_v35  ;;  %v2064_v15 = vpop.f32.mrf.mxu0 }
 0x255   :  { %v9019_v21 = vadd.f32 %v2061_v52, %v2013_v20  ;;  %2112 = vmatmul.bf16.gmra.mxu1 %v8366_v12  ;;  %2161 = vmatmul.bf16.gmra.mxu2 %v8368_v13  ;;  %v11331_v52 = vld [vmem:[#allocation5_spill] sm:$0xff] }
 0x256   :  { %2210 = vmatmul.bf16.gmra.mxu3 %v8371_v18  ;;  %2259 = vmatmul.bf16.gmra.mxu0 %v8373_v19 }
 0x257   :  { %2535 = vmatpush.bf16.msra.mxu1 %v2507_v55 }
 0x258   :  { %v1966_v16 = vpop.f32.mrf.mxu2 }
 0x259   :  { %v1967_v28 = vadd.f32 %v1966_v16, %v1917_v6  ;;  %v2015_v22 = vpop.f32.mrf.mxu3 }
 0x25a   :  { %v1919_v63 = vpop.f32.mrf.mxu1 }
 0x25b   :  { %v2016_v56 = vadd.f32 %v2015_v22, %v1967_v28  ;;  %2536 = vmatpush.bf16.msra.mxu1 %v11325_v29  ;;  %v2066_v1 = vpop.f32.mrf.mxu0  ;;  %v7471_v29 = vld [vmem:[%s11253_s4 + $0x1ec] sm:$0xf] }
 0x25d   :  { %v9031_v10 = vadd.f32 %v2064_v15, %v2016_v56  ;;  %v11333_v56 = vld [vmem:[#allocation7_spill] sm:$0xff] }
 0x25f   :  { %2537 = vmatpush.bf16.msra.mxu1 %v11326_v25  ;;  %v7503_v25 = vld [vmem:[%s11253_s4 + $0x2ec] sm:$0xf] }
 0x260   :  { %v1968_v17 = vpop.f32.mrf.mxu2 }
 0x261   :  { %v1969_v11 = vadd.f32 %v1968_v17, %v1919_v63  ;;  %v2017_v37 = vpop.f32.mrf.mxu3  ;;  %v11332_v63 = vld [vmem:[#allocation6_spill] sm:$0xff]  ;;  %v11334_v17 = vld [vmem:[#allocation8_spill] sm:$0xff] }
 0x262   :  { %v1922_v44 = vpop.f32.mrf.mxu1 }
 0x263   :  { %v2018_v14 = vadd.f32 %v2017_v37, %v1969_v11  ;;  %2538 = vmatpush.bf16.msra.mxu1 %v11327_v40  ;;  %v2069_v27 = vpop.f32.mrf.mxu0  ;;  %v11335_v11 = vld [vmem:[#allocation9_spill] sm:$0xff]  ;;  %v6462_v40 = vld [vmem:[%s11253_s4 + $0x3f8] sm:$0xf0] }
 0x265   :  { %v9039_v51 = vadd.f32 %v2066_v1, %v2018_v14  ;;  %2117 = vmatmul.bf16.gmra.mxu1 %v8386_v60  ;;  %2166 = vmatmul.bf16.gmra.mxu2 %v8388_v61  ;;  %v6206_v1 = vld [vmem:[%s11253_s4 + $0x1f8] sm:$0xf0]  ;;  %v7535_v14 = vld [vmem:[%s11253_s4 + $0x3ec] sm:$0xf] }
 0x266   :  { %2215 = vmatmul.bf16.gmra.mxu3 %v8391_v2  ;;  %2264 = vmatmul.bf16.gmra.mxu0 %v8393_v3  ;;  %v6209_v37 = vor.u32 %v7471_v29, %v6206_v1 }
 0x267   :  { %2539 = vmatpush.bf16.msra.mxu1 %v11328_v5  ;;  %v6465_v5 = vor.u32 %v7535_v14, %v6462_v40  ;;  %v6158_v14 = vld [vmem:[%s11253_s4 + $0x198] sm:$0xf0]  ;;  %v7491_v40 = vld [vmem:[%s11253_s4 + $0x28c] sm:$0xf] }
 0x268   :  { %v1971_v24 = vpop.f32.mrf.mxu2  ;;  %2344 = vmatpush.bf16.msrb.mxu2 %v6209_v37 }
 0x269   :  { %v1972_v53 = vadd.f32 %v1971_v24, %v1922_v44  ;;  %v2020_v7 = vpop.f32.mrf.mxu3  ;;  %v6334_v44 = vld [vmem:[%s11253_s4 + $0x2f8] sm:$0xf0]  ;;  %2442 = vmatpush.bf16.msrb.mxu0 %v6465_v5 }
 0x26a   :  { %v1924_v42 = vpop.f32.mrf.mxu1 }
 0x26b   :  { %v2021_v62 = vadd.f32 %v2020_v7, %v1972_v53  ;;  %v2071_v50 = vpop.f32.mrf.mxu0 }
 0x26d   :  { %v9050_v43 = vadd.f32 %v2069_v27, %v2021_v62  ;;  %v6337_v27 = vor.u32 %v7503_v25, %v6334_v44  ;;  %v7467_v62 = vld [vmem:[%s11253_s4 + $0x1cc] sm:$0xf] }
 0x26e   :  { %v7459_v44 = vld [vmem:[%s11253_s4 + $0x18c] sm:$0xf] }
 0x26f   :  { %2393 = vmatpush.bf16.msrb.mxu3 %v6337_v27  ;;  %v6161_v5 = vor.u32 %v7459_v44, %v6158_v14  ;;  %v6126_v44 = vld [vmem:[%s11253_s4 + $0x158] sm:$0xf0]  ;;  %v7483_v14 = vld [vmem:[%s11253_s4 + $0x24c] sm:$0xf] }
 0x270   :  { %v1973_v47 = vpop.f32.mrf.mxu2 }
 0x271   :  { %v1974_v30 = vadd.f32 %v1973_v47, %v1924_v42  ;;  %v2022_v26 = vpop.f32.mrf.mxu3  ;;  %v7499_v47 = vld [vmem:[%s11253_s4 + $0x2cc] sm:$0xf] }
 0x272   :  { %v1927_v59 = vpop.f32.mrf.mxu1 }
 0x273   :  { %v2023_v41 = vadd.f32 %v2022_v26, %v1974_v30  ;;  %v2074_v31 = vpop.f32.mrf.mxu0 }
 0x275   :  { %v9052_v4 = vadd.f32 %v2071_v50, %v2023_v41  ;;  %2122 = vmatmul.bf16.gmra.mxu1 %v8406_v48  ;;  %2171 = vmatmul.bf16.gmra.mxu2 %v11329_v45  ;;  %v6190_v50 = vld [vmem:[%s11253_s4 + $0x1d8] sm:$0xf0]  ;;  %v7531_v41 = vld [vmem:[%s11253_s4 + $0x3cc] sm:$0xf] }
 0x276   :  { %2220 = vmatmul.bf16.gmra.mxu3 %v11330_v46  ;;  %2269 = vmatmul.bf16.gmra.mxu0 %v11331_v52  ;;  %v6193_v26 = vor.u32 %v7467_v62, %v6190_v50 }
 0x278   :  { %v1976_v36 = vpop.f32.mrf.mxu2  ;;  %2345 = vmatpush.bf16.msrb.mxu2 %v6193_v26  ;;  %v11336_v26 = vld [vmem:[#allocation10_spill] sm:$0xff] }
 0x279   :  { %v1977_v49 = vadd.f32 %v1976_v36, %v1927_v59  ;;  %v2025_v34 = vpop.f32.mrf.mxu3  ;;  %v6318_v59 = vld [vmem:[%s11253_s4 + $0x2d8] sm:$0xf0] }
 0x27a   :  { %v1929_v0 = vpop.f32.mrf.mxu1 }
 0x27b   :  { %v2026_v57 = vadd.f32 %v2025_v34, %v1977_v49  ;;  %v2076_v35 = vpop.f32.mrf.mxu0  ;;  %v6321_v34 = vor.u32 %v7499_v47, %v6318_v59  ;;  %v11337_v59 = vld [vmem:[#allocation11_spill] sm:$0xff] }
 0x27d   :  { %v9060_v58 = vadd.f32 %v2074_v31, %v2026_v57  ;;  %v6446_v31 = vld [vmem:[%s11253_s4 + $0x3d8] sm:$0xf0]  ;;  %2394 = vmatpush.bf16.msrb.mxu3 %v6321_v34  ;;  %v11338_v34 = vld [vmem:[#allocation12_spill] sm:$0xff] }
 0x280   :  { %v1978_v6 = vpop.f32.mrf.mxu2 }
 0x281   :  { %v1979_v20 = vadd.f32 %v1978_v6, %v1929_v0  ;;  %v2027_v15 = vpop.f32.mrf.mxu3  ;;  %v6449_v0 = vor.u32 %v7531_v41, %v6446_v31  ;;  %v6174_v6 = vld [vmem:[%s11253_s4 + $0x1b8] sm:$0xf0]  ;;  %v7455_v41 = vld [vmem:[%s11253_s4 + $0x16c] sm:$0xf] }
 0x282   :  { %v1932_v55 = vpop.f32.mrf.mxu1  ;;  %v6142_v31 = vld [vmem:[%s11253_s4 + $0x178] sm:$0xf0] }
 0x283   :  { %v2028_v16 = vadd.f32 %v2027_v15, %v1979_v20  ;;  %v2079_v28 = vpop.f32.mrf.mxu0  ;;  %2443 = vmatpush.bf16.msrb.mxu0 %v6449_v0  ;;  %v7495_v20 = vld [vmem:[%s11253_s4 + $0x2ac] sm:$0xf]  ;;  %v11339_v0 = vld [vmem:[#allocation13_spill] sm:$0xff] }
 0x285   :  { %v9062_v22 = vadd.f32 %v2076_v35, %v2028_v16  ;;  %2127 = vmatmul.bf16.gmra.mxu1 %v11332_v63  ;;  %2176 = vmatmul.bf16.gmra.mxu2 %v11333_v56  ;;  %v7463_v35 = vld [vmem:[%s11253_s4 + $0x1ac] sm:$0xf] }
 0x286   :  { %2225 = vmatmul.bf16.gmra.mxu3 %v11334_v17  ;;  %2274 = vmatmul.bf16.gmra.mxu0 %v11335_v11  ;;  %v6177_v15 = vor.u32 %v7463_v35, %v6174_v6  ;;  %v7527_v16 = vld [vmem:[%s11253_s4 + $0x3ac] sm:$0xf]  ;;  %v6145_v35 = vor.u32 %v7455_v41, %v6142_v31  ;;  %v6270_v6 = vld [vmem:[%s11253_s4 + $0x278] sm:$0xf0] }
 0x287   :  { %v7447_v31 = vld [vmem:[%s11253_s4 + $0x12c] sm:$0xf] }
 0x288   :  { %v1981_v53 = vpop.f32.mrf.mxu2  ;;  %2346 = vmatpush.bf16.msrb.mxu2 %v6177_v15  ;;  %v6398_v15 = vld [vmem:[%s11253_s4 + $0x378] sm:$0xf0] }
 0x289   :  { %v1982_v7 = vadd.f32 %v1981_v53, %v1932_v55  ;;  %v2030_v42 = vpop.f32.mrf.mxu3  ;;  %v6302_v55 = vld [vmem:[%s11253_s4 + $0x2b8] sm:$0xf0] }
 0x28a   :  { %v9097_v30 = vpop.f32.mrf.mxu1  ;;  %v6305_v29 = vor.u32 %v7495_v20, %v6302_v55  ;;  %v6286_v53 = vld [vmem:[%s11253_s4 + $0x298] sm:$0xf0]  ;;  %v7519_v20 = vld [vmem:[%s11253_s4 + $0x36c] sm:$0xf] }
 0x28b   :  { %v2031_v36 = vadd.f32 %v2030_v42, %v1982_v7  ;;  %v9108_v49 = vpop.f32.mrf.mxu0  ;;  %v7523_v7 = vld [vmem:[%s11253_s4 + $0x38c] sm:$0xf]  ;;  %v6414_v42 = vld [vmem:[%s11253_s4 + $0x398] sm:$0xf0]  ;;  %v6289_v50 = vor.u32 %v7491_v40, %v6286_v53 }
 0x28c   :  { %2395 = vmatpush.bf16.msrb.mxu3 %v6305_v29  ;;  %v6417_v47 = vor.u32 %v7523_v7, %v6414_v42  ;;  %2347 = vmatpush.bf16.msrb.mxu2 %v6161_v5  ;;  %v6254_v53 = vld [vmem:[%s11253_s4 + $0x258] sm:$0xf0]  ;;  %v7515_v7 = vld [vmem:[%s11253_s4 + $0x34c] sm:$0xf] }
 0x28d   :  { %v9110_v57 = vadd.f32 %v2079_v28, %v2031_v36  ;;  %v6430_v28 = vld [vmem:[%s11253_s4 + $0x3b8] sm:$0xf0]  ;;  %v7487_v36 = vld [vmem:[%s11253_s4 + $0x26c] sm:$0xf] }
 0x28e   :  { %v6433_v1 = vor.u32 %v7527_v16, %v6430_v28  ;;  %v6273_v55 = vor.u32 %v7487_v36, %v6270_v6  ;;  %v6401_v16 = vor.u32 %v7519_v20, %v6398_v15  ;;  %v6382_v42 = vld [vmem:[%s11253_s4 + $0x358] sm:$0xf0]  ;;  %v7511_v15 = vld [vmem:[%s11253_s4 + $0x32c] sm:$0xf] }
 0x28f   :  { %v6385_v41 = vor.u32 %v7515_v7, %v6382_v42  ;;  %v6110_v36 = vld [vmem:[%s11253_s4 + $0x138] sm:$0xf0]  ;;  %v7475_v7 = vld [vmem:[%s11253_s4 + $0x20c] sm:$0xf] }
 0x290   :  { %v9130_v25 = vpop.f32.mrf.mxu2  ;;  %2444 = vmatpush.bf16.msrb.mxu0 %v6433_v1  ;;  %2396 = vmatpush.bf16.msrb.mxu3 %v6289_v50  ;;  %v7451_v1 = vld [vmem:[%s11253_s4 + $0x14c] sm:$0xf]  ;;  %v6113_v6 = vor.u32 %v7447_v31, %v6110_v36  ;;  %v6238_v20 = vld [vmem:[%s11253_s4 + $0x238] sm:$0xf0] }
 0x291   :  { %v9132_v37 = vpop.f32.mrf.mxu3  ;;  %2348 = vmatpush.bf16.msrb.mxu2 %v6145_v35  ;;  %v6129_v5 = vor.u32 %v7451_v1, %v6126_v44  ;;  %v7479_v35 = vld [vmem:[%s11253_s4 + $0x22c] sm:$0xf]  ;;  %v6350_v36 = vld [vmem:[%s11253_s4 + $0x318] sm:$0xf0] }
 0x292   :  { %v9143_v27 = vpop.f32.mrf.mxu1  ;;  %v7507_v31 = vld [vmem:[%s11253_s4 + $0x30c] sm:$0xf] }
 0x293   :  { %v9154_v62 = vpop.f32.mrf.mxu0 }
 0x294   :  { %2445 = vmatpush.bf16.msrb.mxu0 %v6417_v47  ;;  %2397 = vmatpush.bf16.msrb.mxu3 %v6273_v55  ;;  %v6257_v47 = vor.u32 %v7483_v14, %v6254_v53  ;;  %v6366_v55 = vld [vmem:[%s11253_s4 + $0x338] sm:$0xf0] }
 0x295   :  { %2132 = vmatmul.bf16.gmra.mxu1 %v11336_v26  ;;  %2181 = vmatmul.bf16.gmra.mxu2 %v11337_v59  ;;  %v6369_v1 = vor.u32 %v7511_v15, %v6366_v55  ;;  %v6094_v53 = vld [vmem:[%s11253_s4 + $0x118] sm:$0xf0]  ;;  %v11341_v55 = vld [vmem:[#allocation15_spill] sm:$0xff] }
 0x296   :  { %2230 = vmatmul.bf16.gmra.mxu3 %v11338_v34  ;;  %2279 = vmatmul.bf16.gmra.mxu0 %v11339_v0  ;;  %v11340_v15 = vld [vmem:[#allocation14_spill] sm:$0xff] }
 0x297   :  { %2349 = vmatpush.bf16.msrb.mxu2 %v6129_v5  ;;  %v7443_v5 = vld [vmem:[%s11253_s4 + $0x10c] sm:$0xf] }
 0x298   :  { %v9178_v28 = vpop.f32.mrf.mxu2  ;;  %2446 = vmatpush.bf16.msrb.mxu0 %v6401_v16  ;;  %2398 = vmatpush.bf16.msrb.mxu3 %v6257_v47  ;;  %v6241_v16 = vor.u32 %v7479_v35, %v6238_v20  ;;  %v6097_v47 = vor.u32 %v7443_v5, %v6094_v53  ;;  %v6353_v20 = vor.u32 %v7507_v31, %v6350_v36  ;;  %v11342_v5 = vld [vmem:[#allocation16_spill] sm:$0xff]  ;;  %v11343_v53 = vld [vmem:[#allocation17_spill] sm:$0xff] }
 0x299   :  { %v9180_v29 = vpop.f32.mrf.mxu3  ;;  %v11346_v31 = vld [vmem:[#allocation20_spill] sm:$0xff]  ;;  %v11347_v36 = vld [vmem:[#allocation21_spill] sm:$0xff] }
 0x29a   :  { %v9191_v40 = vpop.f32.mrf.mxu1 }
 0x29b   :  { %v9202_v50 = vpop.f32.mrf.mxu0  ;;  %2350 = vmatpush.bf16.msrb.mxu2 %v6113_v6 }
 0x29c   :  { %2447 = vmatpush.bf16.msrb.mxu0 %v6385_v41  ;;  %v6222_v41 = vld [vmem:[%s11253_s4 + $0x218] sm:$0xf0]  ;;  %2399 = vmatpush.bf16.msrb.mxu3 %v6241_v16 }
 0x29d   :  { %v6225_v6 = vor.u32 %v7475_v7, %v6222_v41  ;;  %v11344_v41 = vld [vmem:[#allocation18_spill] sm:$0xff] }
 0x29f   :  { %2351 = vmatpush.bf16.msrb.mxu2 %v6097_v47  ;;  %v11345_v47 = vld [vmem:[#allocation19_spill] sm:$0xff] }
 0x2a0   :  { %v1988_v44 = vpop.f32.mrf.mxu2  ;;  %2448 = vmatpush.bf16.msrb.mxu0 %v6369_v1  ;;  %2400 = vmatpush.bf16.msrb.mxu3 %v6225_v6 }
 0x2a1   :  { %v2037_v14 = vpop.f32.mrf.mxu3 }
 0x2a2   :  { %v1942_v42 = vpop.f32.mrf.mxu1 }
 0x2a3   :  { %v2089_v35 = vpop.f32.mrf.mxu0 }
 0x2a4   :  { %2449 = vmatpush.bf16.msrb.mxu0 %v6353_v20 }
 0x2a5   :  { %2137 = vmatmul.bf16.gmra.mxu1 %v11340_v15  ;;  %2186 = vmatmul.bf16.gmra.mxu2 %v11341_v55 }
 0x2a6   :  { %2235 = vmatmul.bf16.gmra.mxu3 %v11342_v5  ;;  %2284 = vmatmul.bf16.gmra.mxu0 %v11343_v53 }
 0x2a8   :  { %v1991_v9 = vpop.f32.mrf.mxu2 }
 0x2a9   :  { %v2040_v23 = vpop.f32.mrf.mxu3  ;;  %v1992_v59 = vadd.f32 %v1991_v9, %v1942_v42 }
 0x2aa   :  { %v1944_v8 = vpop.f32.mrf.mxu1 }
 0x2ab   :  { %v2091_v24 = vpop.f32.mrf.mxu0 }
 0x2b0   :  { %v1993_v0 = vpop.f32.mrf.mxu2 }
 0x2b1   :  { %v2042_v16 = vpop.f32.mrf.mxu3  ;;  %v1994_v15 = vadd.f32 %v1993_v0, %v1944_v8 }
 0x2b2   :  { %v1947_v1 = vpop.f32.mrf.mxu1 }
 0x2b3   :  { %v2094_v7 = vpop.f32.mrf.mxu0  ;;  %v2043_v63 = vadd.f32 %v2042_v16, %v1994_v15  ;;  %v11350_v16 = vpack.c.bf16 %v9039_v51, %v9031_v10 }
 0x2b5   :  { %2142 = vmatmul.bf16.gmra.mxu1 %v11344_v41  ;;  %2191 = vmatmul.bf16.gmra.mxu2 %v11345_v47  ;;  %v1989_v41 = vadd.f32 %v1988_v44, %v9191_v40  ;;  %v2092_v8 = vadd.f32 %v2091_v24, %v2043_v63 }
 0x2b6   :  { %2240 = vmatmul.bf16.gmra.mxu3 %v11346_v31  ;;  %2289 = vmatmul.bf16.gmra.mxu0 %v11347_v36  ;;  %v1987_v36 = vadd.f32 %v9178_v28, %v9143_v27  ;;  %v2041_v31 = vadd.f32 %v2040_v23, %v1992_v59 }
 0x2b7   :  { %v2038_v9 = vadd.f32 %v2037_v14, %v1989_v41 }
 0x2b8   :  { %v1996_v5 = vpop.f32.mrf.mxu2  ;;  %v2090_v23 = vadd.f32 %v2089_v35, %v2041_v31 }
 0x2b9   :  { %v2045_v53 = vpop.f32.mrf.mxu3  ;;  %v1997_v55 = vadd.f32 %v1996_v5, %v1947_v1 }
 0x2ba   :  { %v1949_v6 = vpop.f32.mrf.mxu1  ;;  %v2516_v28 = vpack.c.bf16 %v2092_v8, %v2090_v23 }
 0x2bb   :  { %v2096_v20 = vpop.f32.mrf.mxu0  ;;  %v2046_v26 = vadd.f32 %v2045_v53, %v1997_v55 }
 0x2bd   :  { %v2095_v46 = vadd.f32 %v2094_v7, %v2046_v26 }
 0x2c0   :  { %v1998_v34 = vpop.f32.mrf.mxu2 }
 0x2c1   :  { %v1999_v11 = vadd.f32 %v1998_v34, %v1949_v6  ;;  %v2047_v17 = vpop.f32.mrf.mxu3 }
 0x2c2   :  { %v2108_v56 = vpop.f32.mrf.mxu1 }
 0x2c3   :  { %v2048_v47 = vadd.f32 %v2047_v17, %v1999_v11  ;;  %v2255_v52 = vpop.f32.mrf.mxu0  ;;  %v1984_v17 = vadd.f32 %v9130_v25, %v9097_v30  ;;  %v2036_v11 = vadd.f32 %v9180_v29, %v1987_v36 }
 0x2c5   :  { %v2097_v45 = vadd.f32 %v2096_v20, %v2048_v47  ;;  %2303 = vmatmul.bf16.vlgmr.msrb.gmra.mxu1 %v8346_v32  ;;  %2352 = vmatmul.bf16.vlgmr.msrb.gmra.mxu2 %v8348_v33  ;;  %v2087_v33 = vadd.f32 %v9202_v50, %v2038_v9  ;;  %v11354_v9 = vld [vmem:[#allocation5_spill] sm:$0xff] }
 0x2c6   :  { %2401 = vmatmul.bf16.vlgmr.msrb.gmra.mxu3 %v8351_v38  ;;  %2450 = vmatmul.bf16.vlgmr.msrb.gmra.mxu0 %v8353_v39  ;;  %v2033_v39 = vadd.f32 %v9132_v37, %v1984_v17 }
 0x2c7   :  { %v2520_v34 = vpack.c.bf16 %v2097_v45, %v2095_v46  ;;  %v2085_v45 = vadd.f32 %v9154_v62, %v2036_v11 }
 0x2c8   :  { %v2157_v0 = vpop.f32.mrf.mxu2  ;;  %v2082_v30 = vadd.f32 %v9108_v49, %v2033_v39 }
 0x2c9   :  { %v2158_v27 = vadd.f32 %v2157_v0, %v2108_v56  ;;  %v2206_v26 = vpop.f32.mrf.mxu3  ;;  %2581 = vmatpush.bf16.msra.mxu2 %v2520_v34  ;;  %v2512_v63 = vpack.c.bf16 %v2087_v33, %v2085_v45  ;;  %v11355_v45 = vld [vmem:[#allocation6_spill] sm:$0xff] }
 0x2ca   :  { %v2110_v32 = vpop.f32.mrf.mxu1 }
 0x2cb   :  { %v2207_v59 = vadd.f32 %v2206_v26, %v2158_v27  ;;  %v2257_v38 = vpop.f32.mrf.mxu0 }
 0x2cd   :  { %v9261_v46 = vadd.f32 %v2255_v52, %v2207_v59  ;;  %2582 = vmatpush.bf16.msra.mxu2 %v2516_v28  ;;  %v2508_v52 = vpack.c.bf16 %v2082_v30, %v9110_v57  ;;  %v11358_v30 = vld [vmem:[#allocation9_spill] sm:$0xff] }
 0x2d0   :  { %v2159_v24 = vpop.f32.mrf.mxu2 }
 0x2d1   :  { %v2160_v56 = vadd.f32 %v2159_v24, %v2110_v32  ;;  %v2208_v25 = vpop.f32.mrf.mxu3  ;;  %2583 = vmatpush.bf16.msra.mxu2 %v2512_v63  ;;  %v11356_v63 = vld [vmem:[#allocation7_spill] sm:$0xff]  ;;  %v11357_v24 = vld [vmem:[#allocation8_spill] sm:$0xff] }
 0x2d2   :  { %v2113_v29 = vpop.f32.mrf.mxu1 }
 0x2d3   :  { %v2209_v40 = vadd.f32 %v2208_v25, %v2160_v56  ;;  %v2260_v50 = vpop.f32.mrf.mxu0 }
 0x2d5   :  { %v9264_v44 = vadd.f32 %v2257_v38, %v2209_v40  ;;  %2308 = vmatmul.bf16.gmra.mxu1 %v8366_v12  ;;  %2357 = vmatmul.bf16.gmra.mxu2 %v8368_v13  ;;  %v11348_v12 = vpack.c.bf16 %v9062_v22, %v9060_v58 }
 0x2d6   :  { %2406 = vmatmul.bf16.gmra.mxu3 %v8371_v18  ;;  %2455 = vmatmul.bf16.gmra.mxu0 %v8373_v19  ;;  %v11349_v18 = vpack.c.bf16 %v9052_v4, %v9050_v43  ;;  %v11351_v43 = vpack.c.bf16 %v9019_v21, %v9016_v54  ;;  %v11352_v54 = vld [vmem:[#allocation3_spill] sm:$0xff]  ;;  %v11353_v21 = vld [vmem:[#allocation4_spill] sm:$0xff] }
 0x2d7   :  { %2584 = vmatpush.bf16.msra.mxu2 %v2508_v52  ;;  %v2493_v49 = vpack.c.bf16 %v9264_v44, %v9261_v46 }
 0x2d8   :  { %v2162_v37 = vpop.f32.mrf.mxu2 }
 0x2d9   :  { %v2163_v62 = vadd.f32 %v2162_v37, %v2113_v29  ;;  %v2211_v14 = vpop.f32.mrf.mxu3 }
 0x2da   :  { %v2115_v42 = vpop.f32.mrf.mxu1 }
 0x2db   :  { %v2212_v35 = vadd.f32 %v2211_v14, %v2163_v62  ;;  %2585 = vmatpush.bf16.msra.mxu2 %v11348_v12  ;;  %v2262_v13 = vpop.f32.mrf.mxu0 }
 0x2dd   :  { %v9276_v15 = vadd.f32 %v2260_v50, %v2212_v35 }
 0x2df   :  { %2586 = vmatpush.bf16.msra.mxu2 %v11349_v18  ;;  %v11360_v18 = vld [vmem:[#allocation11_spill] sm:$0xff] }
 0x2e0   :  { %v2164_v19 = vpop.f32.mrf.mxu2 }
 0x2e1   :  { %v2165_v57 = vadd.f32 %v2164_v19, %v2115_v42  ;;  %v2213_v55 = vpop.f32.mrf.mxu3  ;;  %v11361_v19 = vld [vmem:[#allocation12_spill] sm:$0xff] }
 0x2e2   :  { %v2118_v5 = vpop.f32.mrf.mxu1 }
 0x2e3   :  { %v2214_v53 = vadd.f32 %v2213_v55, %v2165_v57  ;;  %2587 = vmatpush.bf16.msra.mxu2 %v11350_v16  ;;  %v2265_v1 = vpop.f32.mrf.mxu0  ;;  %v11362_v57 = vld [vmem:[#allocation13_spill] sm:$0xff] }
 0x2e5   :  { %v9284_v7 = vadd.f32 %v2262_v13, %v2214_v53  ;;  %2313 = vmatmul.bf16.gmra.mxu1 %v8386_v60  ;;  %2362 = vmatmul.bf16.gmra.mxu2 %v8388_v61  ;;  %v11359_v13 = vld [vmem:[#allocation10_spill] sm:$0xff] }
 0x2e6   :  { %2411 = vmatmul.bf16.gmra.mxu3 %v8391_v2  ;;  %2460 = vmatmul.bf16.gmra.mxu0 %v8393_v3 }
 0x2e7   :  { %2588 = vmatpush.bf16.msra.mxu2 %v11351_v43  ;;  %v2497_v4 = vpack.c.bf16 %v9284_v7, %v9276_v15 }
 0x2e8   :  { %v2167_v10 = vpop.f32.mrf.mxu2 }
 0x2e9   :  { %v2168_v51 = vadd.f32 %v2167_v10, %v2118_v5  ;;  %v2216_v58 = vpop.f32.mrf.mxu3 }
 0x2ea   :  { %v2120_v22 = vpop.f32.mrf.mxu1 }
 0x2eb   :  { %v2217_v41 = vadd.f32 %v2216_v58, %v2168_v51  ;;  %v2267_v47 = vpop.f32.mrf.mxu0  ;;  %v11363_v58 = vld [vmem:[#allocation14_spill] sm:$0xff] }
 0x2ed   :  { %v9295_v60 = vadd.f32 %v2265_v1, %v2217_v41  ;;  %v11365_v41 = vld [vmem:[#allocation16_spill] sm:$0xff] }
 0x2f0   :  { %v2169_v61 = vpop.f32.mrf.mxu2 }
 0x2f1   :  { %v2170_v31 = vadd.f32 %v2169_v61, %v2120_v22  ;;  %v2218_v2 = vpop.f32.mrf.mxu3  ;;  %v11364_v22 = vld [vmem:[#allocation15_spill] sm:$0xff] }
 0x2f2   :  { %v2123_v36 = vpop.f32.mrf.mxu1 }
 0x2f3   :  { %v2219_v3 = vadd.f32 %v2218_v2, %v2170_v31  ;;  %v2270_v6 = vpop.f32.mrf.mxu0 }
 0x2f5   :  { %v9297_v20 = vadd.f32 %v2267_v47, %v2219_v3  ;;  %2318 = vmatmul.bf16.gmra.mxu1 %v8406_v48  ;;  %2367 = vmatmul.bf16.gmra.mxu2 %v11352_v54  ;;  %v11366_v47 = vld [vmem:[#allocation17_spill] sm:$0xff] }
 0x2f6   :  { %2416 = vmatmul.bf16.gmra.mxu3 %v11353_v21  ;;  %2465 = vmatmul.bf16.gmra.mxu0 %v11354_v9  ;;  %v11367_v9 = vld [vmem:[#allocation18_spill] sm:$0xff] }
 0x2f7   :  { %v2501_v8 = vpack.c.bf16 %v9297_v20, %v9295_v60 }
 0x2f8   :  { %v2172_v34 = vpop.f32.mrf.mxu2 }
 0x2f9   :  { %v2173_v0 = vadd.f32 %v2172_v34, %v2123_v36  ;;  %v2221_v17 = vpop.f32.mrf.mxu3  ;;  %v11368_v34 = vld [vmem:[#allocation19_spill] sm:$0xff] }
 0x2fa   :  { %v2125_v11 = vpop.f32.mrf.mxu1 }
 0x2fb   :  { %v2222_v23 = vadd.f32 %v2221_v17, %v2173_v0  ;;  %v2272_v27 = vpop.f32.mrf.mxu0  ;;  %v11369_v0 = vld [vmem:[#allocation20_spill] sm:$0xff]  ;;  %v11370_v17 = vld [vmem:[#allocation21_spill] sm:$0xff] }
 0x2fd   :  { %v9305_v26 = vadd.f32 %v2270_v6, %v2222_v23 }
 0x300   :  { %v2174_v32 = vpop.f32.mrf.mxu2 }
 0x301   :  { %v2175_v33 = vadd.f32 %v2174_v32, %v2125_v11  ;;  %v2223_v48 = vpop.f32.mrf.mxu3 }
 0x302   :  { %v2128_v59 = vpop.f32.mrf.mxu1 }
 0x303   :  { %v2224_v38 = vadd.f32 %v2223_v48, %v2175_v33  ;;  %v2275_v28 = vpop.f32.mrf.mxu0 }
 0x305   :  { %v9307_v39 = vadd.f32 %v2272_v27, %v2224_v38  ;;  %2323 = vmatmul.bf16.gmra.mxu1 %v11355_v45  ;;  %2372 = vmatmul.bf16.gmra.mxu2 %v11356_v63 }
 0x306   :  { %2421 = vmatmul.bf16.gmra.mxu3 %v11357_v24  ;;  %2470 = vmatmul.bf16.gmra.mxu0 %v11358_v30 }
 0x307   :  { %v2505_v56 = vpack.c.bf16 %v9307_v39, %v9305_v26 }
 0x308   :  { %v2177_v25 = vpop.f32.mrf.mxu2 }
 0x309   :  { %v2178_v29 = vadd.f32 %v2177_v25, %v2128_v59  ;;  %v2226_v40 = vpop.f32.mrf.mxu3 }
 0x30a   :  { %v2130_v50 = vpop.f32.mrf.mxu1 }
 0x30b   :  { %v2227_v52 = vadd.f32 %v2226_v40, %v2178_v29  ;;  %v9315_v37 = vpop.f32.mrf.mxu0 }
 0x30d   :  { %v9317_v62 = vadd.f32 %v2275_v28, %v2227_v52 }
 0x310   :  { %v2179_v14 = vpop.f32.mrf.mxu2 }
 0x311   :  { %v9319_v42 = vpop.f32.mrf.mxu3 }
 0x312   :  { %v2133_v35 = vpop.f32.mrf.mxu1 }
 0x313   :  { %v9321_v12 = vpop.f32.mrf.mxu0 }
 0x315   :  { %2328 = vmatmul.bf16.gmra.mxu1 %v11359_v13  ;;  %2377 = vmatmul.bf16.gmra.mxu2 %v11360_v18 }
 0x316   :  { %2426 = vmatmul.bf16.gmra.mxu3 %v11361_v19  ;;  %2475 = vmatmul.bf16.gmra.mxu0 %v11362_v57  ;;  %v9338_v57 = vld [vmem:[%s11252_s0] sm:$0xff] }
 0x318   :  { %v2182_v55 = vpop.f32.mrf.mxu2 }
 0x319   :  { %v2231_v5 = vpop.f32.mrf.mxu3  ;;  %v2183_v52 = vadd.f32 %v2182_v55, %v2133_v35 }
 0x31a   :  { %v2135_v53 = vpop.f32.mrf.mxu1 }
 0x31b   :  { %v2282_v16 = vpop.f32.mrf.mxu0 }
 0x320   :  { %v2184_v1 = vpop.f32.mrf.mxu2 }
 0x321   :  { %v2233_v43 = vpop.f32.mrf.mxu3  ;;  %v2185_v30 = vadd.f32 %v2184_v1, %v2135_v53 }
 0x322   :  { %v2138_v10 = vpop.f32.mrf.mxu1 }
 0x323   :  { %v2285_v51 = vpop.f32.mrf.mxu0 }
 0x325   :  { %2333 = vmatmul.bf16.gmra.mxu1 %v11363_v58  ;;  %2382 = vmatmul.bf16.gmra.mxu2 %v11364_v22  ;;  %v2234_v58 = vadd.f32 %v2233_v43, %v2185_v30 }
 0x326   :  { %2431 = vmatmul.bf16.gmra.mxu3 %v11365_v41  ;;  %2480 = vmatmul.bf16.gmra.mxu0 %v11366_v47  ;;  %v2232_v41 = vadd.f32 %v2231_v5, %v2183_v52  ;;  %v9392_v52 = vld [vmem:[%s11252_s0 + $0x18] sm:$0xff] }
 0x328   :  { %v2187_v61 = vpop.f32.mrf.mxu2 }
 0x329   :  { %v2236_v31 = vpop.f32.mrf.mxu3  ;;  %v2188_v38 = vadd.f32 %v2187_v61, %v2138_v10  ;;  %v2180_v10 = vadd.f32 %v2179_v14, %v2130_v50 }
 0x32a   :  { %v2140_v2 = vpop.f32.mrf.mxu1 }
 0x32b   :  { %v2287_v36 = vpop.f32.mrf.mxu0  ;;  %v2237_v13 = vadd.f32 %v2236_v31, %v2188_v38  ;;  %v2229_v31 = vadd.f32 %v9319_v42, %v2180_v10 }
 0x32d   :  { %v2286_v47 = vadd.f32 %v2285_v51, %v2237_v13  ;;  %v2278_v50 = vadd.f32 %v9315_v37, %v2229_v31 }
 0x32f   :  { %v2509_v42 = vpack.c.bf16 %v2278_v50, %v9317_v62 }
 0x330   :  { %v2189_v3 = vpop.f32.mrf.mxu2 }
 0x331   :  { %v2238_v6 = vpop.f32.mrf.mxu3  ;;  %v2190_v48 = vadd.f32 %v2189_v3, %v2140_v2  ;;  %v2283_v2 = vadd.f32 %v2282_v16, %v2234_v58 }
 0x332   :  { %v2143_v54 = vpop.f32.mrf.mxu1 }
 0x333   :  { %v2290_v21 = vpop.f32.mrf.mxu0  ;;  %v2239_v25 = vadd.f32 %v2238_v6, %v2190_v48 }
 0x335   :  { %2338 = vmatmul.bf16.gmra.mxu1 %v11367_v9  ;;  %2387 = vmatmul.bf16.gmra.mxu2 %v11368_v34  ;;  %v2288_v22 = vadd.f32 %v2287_v36, %v2239_v25 }
 0x336   :  { %2436 = vmatmul.bf16.gmra.mxu3 %v11369_v0  ;;  %2485 = vmatmul.bf16.gmra.mxu0 %v11370_v17 }
 0x338   :  { %v2192_v11 = vpop.f32.mrf.mxu2 }
 0x339   :  { %v2241_v23 = vpop.f32.mrf.mxu3  ;;  %v2193_v33 = vadd.f32 %v2192_v11, %v2143_v54  ;;  %v2517_v54 = vpack.c.bf16 %v2288_v22, %v2286_v47 }
 0x33a   :  { %v2145_v27 = vpop.f32.mrf.mxu1 }
 0x33b   :  { %v2292_v32 = vpop.f32.mrf.mxu0  ;;  %v2242_v28 = vadd.f32 %v2241_v23, %v2193_v33 }
 0x33d   :  { %v2291_v18 = vadd.f32 %v2290_v21, %v2242_v28  ;;  %v2281_v21 = vadd.f32 %v9321_v12, %v2232_v41  ;;  %v9353_v12 = vld [vmem:[%s11252_s0 + $0x8] sm:$0xff] }
 0x33f   :  { %v2513_v14 = vpack.c.bf16 %v2283_v2, %v2281_v21 }
 0x340   :  { %v2194_v59 = vpop.f32.mrf.mxu2 }
 0x341   :  { %v2195_v45 = vadd.f32 %v2194_v59, %v2145_v27  ;;  %v2243_v63 = vpop.f32.mrf.mxu3 }
 0x342   :  { %v2304_v24 = vpop.f32.mrf.mxu1 }
 0x343   :  { %v2244_v29 = vadd.f32 %v2243_v63, %v2195_v45  ;;  %v2451_v40 = vpop.f32.mrf.mxu0 }
 0x345   :  { %v2293_v19 = vadd.f32 %v2292_v32, %v2244_v29  ;;  %2589 = vmatmul.bf16.vlgmr.msra.gmra.mxu2 %v9338_v57  ;;  %2540 = vmatmul.bf16.vlgmr.msra.gmra.mxu1 %v9338_v57 }
 0x347   :  { %v2521_v53 = vpack.c.bf16 %v2293_v19, %v2291_v18 }
 0x348   :  { %v2353_v1 = vpop.f32.mrf.mxu2 }
 0x349   :  { %v2354_v35 = vadd.f32 %v2353_v1, %v2304_v24  ;;  %v2402_v55 = vpop.f32.mrf.mxu3  ;;  %2630 = vmatpush.bf16.msra.mxu3 %v2521_v53 }
 0x34a   :  { %v2306_v61 = vpop.f32.mrf.mxu1 }
 0x34b   :  { %v2403_v3 = vadd.f32 %v2402_v55, %v2354_v35  ;;  %v2453_v6 = vpop.f32.mrf.mxu0 }
 0x34d   :  { %v9344_v9 = vadd.f32 %v2451_v40, %v2403_v3  ;;  %2631 = vmatpush.bf16.msra.mxu3 %v2517_v54  ;;  %v9406_v3 = vld [vmem:[%s11252_s0 + $0x20] sm:$0xff] }
 0x350   :  { %v2355_v5 = vpop.f32.mrf.mxu2 }
 0x351   :  { %v2356_v43 = vadd.f32 %v2355_v5, %v2306_v61  ;;  %v2404_v51 = vpop.f32.mrf.mxu3  ;;  %2632 = vmatpush.bf16.msra.mxu3 %v2513_v14 }
 0x352   :  { %v2309_v36 = vpop.f32.mrf.mxu1 }
 0x353   :  { %v2405_v34 = vadd.f32 %v2404_v51, %v2356_v43  ;;  %v2456_v0 = vpop.f32.mrf.mxu0 }
 0x355   :  { %v9348_v16 = vadd.f32 %v2453_v6, %v2405_v34  ;;  %2594 = vmatmul.bf16.gmra.mxu2 %v9353_v12  ;;  %2633 = vmatpush.bf16.msra.mxu3 %v2509_v42 }
 0x356   :  { %2545 = vmatmul.bf16.gmra.mxu1 %v9353_v12 }
 0x357   :  { %v2494_v37 = vpack.c.bf16 %v9348_v16, %v9344_v9 }
 0x358   :  { %v2358_v17 = vpop.f32.mrf.mxu2 }
 0x359   :  { %v2359_v11 = vadd.f32 %v2358_v17, %v2309_v36  ;;  %v2407_v23 = vpop.f32.mrf.mxu3  ;;  %2634 = vmatpush.bf16.msra.mxu3 %v2505_v56  ;;  %v9375_v56 = vld [vmem:[%s11252_s0 + $0x10] sm:$0xff]  ;;  %v9430_v17 = vld [vmem:[%s11252_s0 + $0x28] sm:$0xff] }
 0x35a   :  { %v2311_v62 = vpop.f32.mrf.mxu1 }
 0x35b   :  { %v2408_v27 = vadd.f32 %v2407_v23, %v2359_v11  ;;  %v2458_v32 = vpop.f32.mrf.mxu0 }
 0x35d   :  { %v9362_v33 = vadd.f32 %v2456_v0, %v2408_v27  ;;  %2635 = vmatpush.bf16.msra.mxu3 %v2501_v8 }
 0x360   :  { %v2360_v48 = vpop.f32.mrf.mxu2 }
 0x361   :  { %v2361_v59 = vadd.f32 %v2360_v48, %v2311_v62  ;;  %v2409_v38 = vpop.f32.mrf.mxu3  ;;  %2636 = vmatpush.bf16.msra.mxu3 %v2497_v4 }
 0x362   :  { %v2314_v28 = vpop.f32.mrf.mxu1 }
 0x363   :  { %v2410_v45 = vadd.f32 %v2409_v38, %v2361_v59  ;;  %v2461_v26 = vpop.f32.mrf.mxu0  ;;  %v6708_v59 = vld [vmem:[%s11255_s6 + $0xe0] sm:$0xf]  ;;  %v7600_v38 = vld [vmem:[%s11255_s6 + $0xec] sm:$0xf0] }
 0x365   :  { %v9370_v39 = vadd.f32 %v2458_v32, %v2410_v45  ;;  %2599 = vmatmul.bf16.gmra.mxu2 %v9375_v56  ;;  %2637 = vmatpush.bf16.msra.mxu3 %v2493_v49 }
 0x366   :  { %2550 = vmatmul.bf16.gmra.mxu1 %v9375_v56 }
 0x367   :  { %v2498_v15 = vpack.c.bf16 %v9370_v39, %v9362_v33 }
 0x368   :  { %v2363_v7 = vpop.f32.mrf.mxu2  ;;  %2638 = vmatmul.bf16.vlgmr.msra.gmra.mxu3 %v9338_v57 }
 0x369   :  { %v2364_v4 = vadd.f32 %v2363_v7, %v2314_v28  ;;  %v2412_v60 = vpop.f32.mrf.mxu3  ;;  %v6836_v28 = vld [vmem:[%s11255_s6 + $0x1e0] sm:$0xf]  ;;  %v7632_v7 = vld [vmem:[%s11255_s6 + $0x1ec] sm:$0xf0] }
 0x36a   :  { %v2316_v20 = vpop.f32.mrf.mxu1 }
 0x36b   :  { %v2413_v8 = vadd.f32 %v2412_v60, %v2364_v4  ;;  %v2463_v63 = vpop.f32.mrf.mxu0  ;;  %v6837_v4 = vor.u32 %v7632_v7, %v6836_v28  ;;  %v9464_v60 = vld [vmem:[%s11252_s0 + $0x30] sm:$0xff]  ;;  %v6772_v28 = vld [vmem:[%s11255_s6 + $0x160] sm:$0xf] }
 0x36d   :  { %v9385_v24 = vadd.f32 %v2461_v26, %v2413_v8  ;;  %v6709_v26 = vor.u32 %v7600_v38, %v6708_v59  ;;  %v7596_v8 = vld [vmem:[%s11255_s6 + $0xcc] sm:$0xf0]  ;;  %3866 = vmatpush.bf16.msrb.mxu2 %v6837_v4  ;;  %v6644_v59 = vld [vmem:[%s11255_s6 + $0x60] sm:$0xf] }
 0x36e   :  { %v7584_v38 = vld [vmem:[%s11255_s6 + $0x6c] sm:$0xf0] }
 0x36f   :  { %3817 = vmatpush.bf16.msrb.mxu1 %v6709_v26  ;;  %v6645_v7 = vor.u32 %v7584_v38, %v6644_v59  ;;  %v7616_v4 = vld [vmem:[%s11255_s6 + $0x16c] sm:$0xf0]  ;;  %v6596_v38 = vld [vmem:[%s11255_s6] sm:$0xf] }
 0x370   :  { %v2365_v30 = vpop.f32.mrf.mxu2 }
 0x371   :  { %v2366_v25 = vadd.f32 %v2365_v30, %v2316_v20  ;;  %v2414_v29 = vpop.f32.mrf.mxu3  ;;  %v6692_v20 = vld [vmem:[%s11255_s6 + $0xc0] sm:$0xf] }
 0x372   :  { %v2319_v46 = vpop.f32.mrf.mxu1 }
 0x373   :  { %v2415_v44 = vadd.f32 %v2414_v29, %v2366_v25  ;;  %v2466_v49 = vpop.f32.mrf.mxu0  ;;  %v6693_v25 = vor.u32 %v7596_v8, %v6692_v20  ;;  %v7628_v29 = vld [vmem:[%s11255_s6 + $0x1cc] sm:$0xf0]  ;;  %v6773_v20 = vor.u32 %v7616_v4, %v6772_v28  ;;  %v9528_v8 = vld [vmem:[%s11252_s0 + $0x38] sm:$0xff]  ;;  %v9569_v4 = vld [vmem:[%s11256_s5] sm:$0xf] }
 0x374   :  { %v7572_v28 = vld [vmem:[%s11255_s6 + $0xc] sm:$0xf0] }
 0x375   :  { %v9387_v40 = vadd.f32 %v2463_v63, %v2415_v44  ;;  %2604 = vmatmul.bf16.gmra.mxu2 %v9392_v52  ;;  %v6820_v63 = vld [vmem:[%s11255_s6 + $0x1c0] sm:$0xf]  ;;  %3818 = vmatpush.bf16.msrb.mxu1 %v6693_v25  ;;  %v7580_v25 = vld [vmem:[%s11255_s6 + $0x4c] sm:$0xf0] }
 0x376   :  { %2555 = vmatmul.bf16.gmra.mxu1 %v9392_v52 }
 0x377   :  { %v2502_v13 = vpack.c.bf16 %v9387_v40, %v9385_v24 }
 0x378   :  { %v2368_v18 = vpop.f32.mrf.mxu2  ;;  %2643 = vmatmul.bf16.gmra.mxu3 %v9353_v12 }
 0x379   :  { %v2369_v19 = vadd.f32 %v2368_v18, %v2319_v46  ;;  %v2417_v10 = vpop.f32.mrf.mxu3  ;;  %v6821_v46 = vor.u32 %v7628_v29, %v6820_v63  ;;  %v6676_v18 = vld [vmem:[%s11255_s6 + $0xa0] sm:$0xf] }
 0x37a   :  { %v2321_v58 = vpop.f32.mrf.mxu1  ;;  %v6628_v63 = vld [vmem:[%s11255_s6 + $0x40] sm:$0xf] }
 0x37b   :  { %v2418_v22 = vadd.f32 %v2417_v10, %v2369_v19  ;;  %v2468_v53 = vpop.f32.mrf.mxu0  ;;  %v7592_v19 = vld [vmem:[%s11255_s6 + $0xac] sm:$0xf0]  ;;  %v6804_v10 = vld [vmem:[%s11255_s6 + $0x1a0] sm:$0xf]  ;;  %3867 = vmatpush.bf16.msrb.mxu2 %v6821_v46  ;;  %v6629_v46 = vor.u32 %v7580_v25, %v6628_v63 }
 0x37c   :  { %v6756_v29 = vld [vmem:[%s11255_s6 + $0x140] sm:$0xf] }
 0x37d   :  { %v9399_v1 = vadd.f32 %v2466_v49, %v2418_v22  ;;  %v6677_v22 = vor.u32 %v7592_v19, %v6676_v18  ;;  %v7612_v18 = vld [vmem:[%s11255_s6 + $0x14c] sm:$0xf0] }
 0x37e   :  { %v6757_v19 = vor.u32 %v7612_v18, %v6756_v29 }
 0x37f   :  { %3819 = vmatpush.bf16.msrb.mxu1 %v6677_v22 }
 0x380   :  { %v2370_v41 = vpop.f32.mrf.mxu2 }
 0x381   :  { %v2371_v47 = vadd.f32 %v2370_v41, %v2321_v58  ;;  %v2419_v35 = vpop.f32.mrf.mxu3 }
 0x382   :  { %v2324_v55 = vpop.f32.mrf.mxu1 }
 0x383   :  { %v2420_v61 = vadd.f32 %v2419_v35, %v2371_v47  ;;  %v2471_v31 = vpop.f32.mrf.mxu0  ;;  %v6660_v47 = vld [vmem:[%s11255_s6 + $0x80] sm:$0xf]  ;;  %v7588_v35 = vld [vmem:[%s11255_s6 + $0x8c] sm:$0xf0] }
 0x385   :  { %v9401_v2 = vadd.f32 %v2468_v53, %v2420_v61  ;;  %2609 = vmatmul.bf16.gmra.mxu2 %v9406_v3  ;;  %v7624_v53 = vld [vmem:[%s11255_s6 + $0x1ac] sm:$0xf0]  ;;  %v6661_v61 = vor.u32 %v7588_v35, %v6660_v47  ;;  %v6740_v47 = vld [vmem:[%s11255_s6 + $0x120] sm:$0xf] }
 0x386   :  { %2560 = vmatmul.bf16.gmra.mxu1 %v9406_v3  ;;  %v6805_v41 = vor.u32 %v7624_v53, %v6804_v10  ;;  %v6612_v53 = vld [vmem:[%s11255_s6 + $0x20] sm:$0xf] }
 0x387   :  { %v2506_v6 = vpack.c.bf16 %v9401_v2, %v9399_v1  ;;  %3820 = vmatpush.bf16.msrb.mxu1 %v6661_v61 }
 0x388   :  { %v2373_v54 = vpop.f32.mrf.mxu2  ;;  %2648 = vmatmul.bf16.gmra.mxu3 %v9375_v56  ;;  %3868 = vmatpush.bf16.msrb.mxu2 %v6805_v41  ;;  %v7576_v41 = vld [vmem:[%s11255_s6 + $0x2c] sm:$0xf0] }
 0x389   :  { %v2374_v21 = vadd.f32 %v2373_v54, %v2324_v55  ;;  %v2422_v50 = vpop.f32.mrf.mxu3  ;;  %v6788_v55 = vld [vmem:[%s11255_s6 + $0x180] sm:$0xf]  ;;  %v6613_v61 = vor.u32 %v7576_v41, %v6612_v53 }
 0x38a   :  { %v9413_v14 = vpop.f32.mrf.mxu1 }
 0x38b   :  { %v2423_v5 = vadd.f32 %v2422_v50, %v2374_v21  ;;  %v9415_v43 = vpop.f32.mrf.mxu0  ;;  %3821 = vmatpush.bf16.msrb.mxu1 %v6645_v7  ;;  %v6724_v7 = vld [vmem:[%s11255_s6 + $0x100] sm:$0xf] }
 0x38d   :  { %v9417_v51 = vadd.f32 %v2471_v31, %v2423_v5  ;;  %v7620_v31 = vld [vmem:[%s11255_s6 + $0x18c] sm:$0xf0] }
 0x38e   :  { %v6789_v54 = vor.u32 %v7620_v31, %v6788_v55  ;;  %v7608_v31 = vld [vmem:[%s11255_s6 + $0x12c] sm:$0xf0] }
 0x38f   :  { %3822 = vmatpush.bf16.msrb.mxu1 %v6629_v46 }
 0x390   :  { %v9419_v36 = vpop.f32.mrf.mxu2  ;;  %3869 = vmatpush.bf16.msrb.mxu2 %v6789_v54  ;;  %v6741_v54 = vor.u32 %v7608_v31, %v6740_v47 }
 0x391   :  { %v9421_v34 = vpop.f32.mrf.mxu3 }
 0x392   :  { %v9423_v0 = vpop.f32.mrf.mxu1 }
 0x393   :  { %v9425_v42 = vpop.f32.mrf.mxu0  ;;  %3823 = vmatpush.bf16.msrb.mxu1 %v6613_v61 }
 0x394   :  { %3870 = vmatpush.bf16.msrb.mxu2 %v6773_v20  ;;  %v6597_v20 = vor.u32 %v7572_v28, %v6596_v38 }
 0x395   :  { %2614 = vmatmul.bf16.gmra.mxu2 %v9430_v17 }
 0x396   :  { %2565 = vmatmul.bf16.gmra.mxu1 %v9430_v17 }
 0x397   :  { %3824 = vmatpush.bf16.msrb.mxu1 %v6597_v20 }
 0x398   :  { %v9434_v11 = vpop.f32.mrf.mxu2  ;;  %2653 = vmatmul.bf16.gmra.mxu3 %v9392_v52  ;;  %3871 = vmatpush.bf16.msrb.mxu2 %v6757_v19 }
 0x399   :  { %v9437_v23 = vpop.f32.mrf.mxu3 }
 0x39a   :  { %v9439_v62 = vpop.f32.mrf.mxu1 }
 0x39b   :  { %v9441_v27 = vpop.f32.mrf.mxu0 }
 0x39c   :  { %3872 = vmatpush.bf16.msrb.mxu2 %v6741_v54  ;;  %v9584_v54 = vperm.slane %v9569_v4, 1 }
 0x3a0   :  { %v9443_v32 = vpop.f32.mrf.mxu2 }
 0x3a1   :  { %v9445_v48 = vpop.f32.mrf.mxu3  ;;  %v2381_v47 = vadd.f32 %v9443_v32, %v9439_v62 }
 0x3a2   :  { %v9456_v45 = vpop.f32.mrf.mxu1 }
 0x3a3   :  { %v9476_v30 = vpop.f32.mrf.mxu0  ;;  %v2430_v62 = vadd.f32 %v9445_v48, %v2381_v47 }
 0x3a5   :  { %2619 = vmatmul.bf16.gmra.mxu2 %v9464_v60 }
 0x3a6   :  { %2570 = vmatmul.bf16.gmra.mxu1 %v9464_v60 }
 0x3a8   :  { %v9482_v44 = vpop.f32.mrf.mxu2  ;;  %2658 = vmatmul.bf16.gmra.mxu3 %v9406_v3 }
 0x3a9   :  { %v9485_v49 = vpop.f32.mrf.mxu3  ;;  %v2384_v46 = vadd.f32 %v9482_v44, %v9456_v45 }
 0x3aa   :  { %v2336_v58 = vpop.f32.mrf.mxu1 }
 0x3ab   :  { %v9511_v21 = vpop.f32.mrf.mxu0  ;;  %v2433_v45 = vadd.f32 %v9485_v49, %v2384_v46 }
 0x3b0   :  { %v2385_v50 = vpop.f32.mrf.mxu2 }
 0x3b1   :  { %v2434_v5 = vpop.f32.mrf.mxu3  ;;  %v2386_v63 = vadd.f32 %v2385_v50, %v2336_v58  ;;  %v2379_v58 = vadd.f32 %v9434_v11, %v9423_v0  ;;  %v2482_v11 = vadd.f32 %v9476_v30, %v2433_v45 }
 0x3b2   :  { %v2339_v26 = vpop.f32.mrf.mxu1 }
 0x3b3   :  { %v2486_v35 = vpop.f32.mrf.mxu0  ;;  %v2435_v61 = vadd.f32 %v2434_v5, %v2386_v63  ;;  %v2428_v0 = vadd.f32 %v9437_v23, %v2379_v58 }
 0x3b5   :  { %2624 = vmatmul.bf16.gmra.mxu2 %v9528_v8  ;;  %v2484_v32 = vadd.f32 %v9511_v21, %v2435_v61  ;;  %v2477_v21 = vadd.f32 %v9425_v42, %v2428_v0 }
 0x3b6   :  { %2575 = vmatmul.bf16.gmra.mxu1 %v9528_v8 }
 0x3b7   :  { %v2518_v48 = vpack.c.bf16 %v2484_v32, %v2482_v11 }
 0x3b8   :  { %v2388_v10 = vpop.f32.mrf.mxu2  ;;  %2663 = vmatmul.bf16.gmra.mxu3 %v9430_v17 }
 0x3b9   :  { %v2437_v22 = vpop.f32.mrf.mxu3  ;;  %v2389_v59 = vadd.f32 %v2388_v10, %v2339_v26  ;;  %v7604_v26 = vld [vmem:[%s11255_s6 + $0x10c] sm:$0xf0]  ;;  %v9577_v10 = vperm.slane %v9569_v4, 0 }
 0x3ba   :  { %v2341_v55 = vpop.f32.mrf.mxu1  ;;  %v6725_v25 = vor.u32 %v7604_v26, %v6724_v7 }
 0x3bb   :  { %v2438_v18 = vadd.f32 %v2437_v22, %v2389_v59  ;;  %v2488_v50 = vpop.f32.mrf.mxu0  ;;  %v2376_v59 = vadd.f32 %v9419_v36, %v9413_v14  ;;  %v2479_v14 = vadd.f32 %v9441_v27, %v2430_v62 }
 0x3bc   :  { %3873 = vmatpush.bf16.msrb.mxu2 %v6725_v25 }
 0x3bd   :  { %v2487_v44 = vadd.f32 %v2486_v35, %v2438_v18  ;;  %v2425_v7 = vadd.f32 %v9421_v34, %v2376_v59  ;;  %v2514_v30 = vpack.c.bf16 %v2479_v14, %v2477_v21 }
 0x3bf   :  { %v2474_v23 = vadd.f32 %v9415_v43, %v2425_v7 }
 0x3c0   :  { %v2390_v29 = vpop.f32.mrf.mxu2 }
 0x3c1   :  { %v2391_v19 = vadd.f32 %v2390_v29, %v2341_v55  ;;  %v2439_v53 = vpop.f32.mrf.mxu3  ;;  %v2510_v27 = vpack.c.bf16 %v2474_v23, %v9417_v51 }
 0x3c2   :  { %v2541_v41 = vpop.f32.mrf.mxu1 }
 0x3c3   :  { %v2440_v31 = vadd.f32 %v2439_v53, %v2391_v19  ;;  %v2542_v55 = vadd.f32 %v2541_v41, %v9577_v10 }
 0x3c5   :  { %v2489_v22 = vadd.f32 %v2488_v50, %v2440_v31  ;;  %v2728_v49 = vmax.f32 %v2542_v55, 0.0 }
 0x3c7   :  { %v2522_v5 = vpack.c.bf16 %v2489_v22, %v2487_v44 }
 0x3c8   :  { %v2590_v38 = vpop.f32.mrf.mxu2  ;;  %2668 = vmatmul.bf16.gmra.mxu3 %v9464_v60 }
 0x3c9   :  { %v2591_v35 = vadd.f32 %v2590_v38, %v9584_v54  ;;  %2679 = vmatpush.bf16.msra.mxu0 %v2522_v5 }
 0x3ca   :  { %v2543_v28 = vpop.f32.mrf.mxu1 }
 0x3cb   :  { %v2729_v36 = vmax.f32 %v2591_v35, 0.0  ;;  %v2544_v26 = vadd.f32 %v2543_v28, %v9577_v10 }
 0x3cd   :  { %v2792_v20 = vpack.c.bf16 %v2729_v36, %v2728_v49  ;;  %2680 = vmatpush.bf16.msra.mxu0 %v2518_v48  ;;  %v2732_v25 = vmax.f32 %v2544_v26, 0.0 }
 0x3cf   :  { %2824 = vst [vmem:[#allocation2] sm:$0xff] %v2792_v20 }
 0x3d0   :  { %v2592_v63 = vpop.f32.mrf.mxu2 }
 0x3d1   :  { %v2593_v29 = vadd.f32 %v2592_v63, %v9584_v54  ;;  %2681 = vmatpush.bf16.msra.mxu0 %v2514_v30 }
 0x3d3   :  { %v2733_v34 = vmax.f32 %v2593_v29, 0.0  ;;  %v2546_v46 = vpop.f32.mrf.mxu1 }
 0x3d4   :  { %v2547_v42 = vadd.f32 %v2546_v46, %v9577_v10 }
 0x3d5   :  { %v2794_v18 = vpack.c.bf16 %v2733_v34, %v2732_v25  ;;  %2682 = vmatpush.bf16.msra.mxu0 %v2510_v27 }
 0x3d6   :  { %v2736_v43 = vmax.f32 %v2547_v42, 0.0  ;;  %v6468_v61 = vld [vmem:[#allocation2] sm:$0xf]  ;;  %v7698_v51 = vld [vmem:[#allocation2 + $0x4] sm:$0xf] }
 0x3d7   :  { %2826 = vst [vmem:[#allocation2 + $0x10] sm:$0xff] %v2794_v18 }
 0x3d8   :  { %v2595_v19 = vpop.f32.mrf.mxu2  ;;  %2673 = vmatmul.bf16.gmra.mxu3 %v9528_v8 }
 0x3d9   :  { %v2596_v53 = vadd.f32 %v2595_v19, %v9584_v54  ;;  %2683 = vmatpush.bf16.msra.mxu0 %v2506_v6 }
 0x3db   :  { %v2737_v41 = vmax.f32 %v2596_v53, 0.0  ;;  %v2548_v47 = vpop.f32.mrf.mxu1 }
 0x3dc   :  { %v2549_v58 = vadd.f32 %v2548_v47, %v9577_v10 }
 0x3dd   :  { %v2796_v31 = vpack.c.bf16 %v2737_v41, %v2736_v43  ;;  %2684 = vmatpush.bf16.msra.mxu0 %v2502_v13 }
 0x3de   :  { %v7700_v50 = vld [vmem:[#allocation2 + $0xc] sm:$0xf0]  ;;  %v6470_v45 = vld [vmem:[#allocation2 + $0x10] sm:$0xf0]  ;;  %v2740_v2 = vmax.f32 %v2549_v58, 0.0 }
 0x3df   :  { %2828 = vst [vmem:[#allocation2 + $0x20] sm:$0xff] %v2796_v31  ;;  %v9613_v44 = vor.u32 %v7700_v50, %v6468_v61  ;;  %v9615_v22 = vor.u32 %v7698_v51, %v6470_v45 }
 0x3e0   :  { %v2597_v1 = vpop.f32.mrf.mxu2 }
 0x3e1   :  { %v2598_v6 = vadd.f32 %v2597_v1, %v9584_v54  ;;  %2685 = vmatpush.bf16.msra.mxu0 %v2498_v15  ;;  %3825 = vmatmul.bf16.vlgmr.msrb.gmra.mxu1 %v9613_v44 }
 0x3e2   :  { %3874 = vmatmul.bf16.vlgmr.msrb.gmra.mxu2 %v9615_v22 }
 0x3e3   :  { %v2741_v24 = vmax.f32 %v2598_v6, 0.0  ;;  %v2551_v40 = vpop.f32.mrf.mxu1 }
 0x3e4   :  { %v2552_v55 = vadd.f32 %v2551_v40, %v9577_v10 }
 0x3e5   :  { %v2798_v13 = vpack.c.bf16 %v2741_v24, %v2740_v2  ;;  %2686 = vmatpush.bf16.msra.mxu0 %v2494_v37 }
 0x3e6   :  { %v2744_v62 = vmax.f32 %v2552_v55, 0.0  ;;  %v6484_v32 = vld [vmem:[#allocation2 + $0x20] sm:$0xf]  ;;  %v7702_v5 = vld [vmem:[#allocation2 + $0x24] sm:$0xf] }
 0x3e7   :  { %2830 = vst [vmem:[#allocation2 + $0x30] sm:$0xff] %v2798_v13 }
 0x3e8   :  { %v2600_v59 = vpop.f32.mrf.mxu2  ;;  %2687 = vmatmul.bf16.vlgmr.msra.gmra.mxu0 %v9338_v57 }
 0x3e9   :  { %v2601_v33 = vadd.f32 %v2600_v59, %v9584_v54 }
 0x3eb   :  { %v2745_v39 = vmax.f32 %v2601_v33, 0.0  ;;  %v2553_v15 = vpop.f32.mrf.mxu1 }
 0x3ec   :  { %v2554_v0 = vadd.f32 %v2553_v15, %v9577_v10 }
 0x3ed   :  { %v2800_v38 = vpack.c.bf16 %v2745_v39, %v2744_v62 }
 0x3ee   :  { %v7704_v11 = vld [vmem:[#allocation2 + $0x2c] sm:$0xf0]  ;;  %v6486_v49 = vld [vmem:[#allocation2 + $0x30] sm:$0xf0]  ;;  %v2748_v35 = vmax.f32 %v2554_v0, 0.0 }
 0x3ef   :  { %2832 = vst [vmem:[#allocation2 + $0x40] sm:$0xff] %v2800_v38  ;;  %v9630_v9 = vor.u32 %v7704_v11, %v6484_v32  ;;  %v9632_v16 = vor.u32 %v7702_v5, %v6486_v49 }
 0x3f0   :  { %v2602_v37 = vpop.f32.mrf.mxu2 }
 0x3f1   :  { %v2603_v57 = vadd.f32 %v2602_v37, %v9584_v54  ;;  %3830 = vmatmul.bf16.gmra.mxu1 %v9630_v9 }
 0x3f2   :  { %3879 = vmatmul.bf16.gmra.mxu2 %v9632_v16 }
 0x3f3   :  { %v2749_v28 = vmax.f32 %v2603_v57, 0.0  ;;  %v2556_v7 = vpop.f32.mrf.mxu1 }
 0x3f4   :  { %v2557_v36 = vadd.f32 %v2556_v7, %v9577_v10 }
 0x3f5   :  { %v2802_v14 = vpack.c.bf16 %v2749_v28, %v2748_v35 }
 0x3f6   :  { %v2752_v21 = vmax.f32 %v2557_v36, 0.0  ;;  %v6500_v30 = vld [vmem:[#allocation2 + $0x40] sm:$0xf]  ;;  %v7706_v63 = vld [vmem:[#allocation2 + $0x44] sm:$0xf] }
 0x3f7   :  { %2834 = vst [vmem:[#allocation2 + $0x50] sm:$0xff] %v2802_v14 }
 0x3f8   :  { %v2605_v48 = vpop.f32.mrf.mxu2  ;;  %2692 = vmatmul.bf16.gmra.mxu0 %v9353_v12 }
 0x3f9   :  { %v2606_v20 = vadd.f32 %v2605_v48, %v9584_v54 }
 0x3fb   :  { %v2753_v26 = vmax.f32 %v2606_v20, 0.0  ;;  %v2558_v23 = vpop.f32.mrf.mxu1 }
 0x3fc   :  { %v2559_v29 = vadd.f32 %v2558_v23, %v9577_v10  ;;  %v6710_v23 = vld [vmem:[%s11255_s6 + $0xf0] sm:$0xf0] }
 0x3fd   :  { %v2804_v25 = vpack.c.bf16 %v2753_v26, %v2752_v21  ;;  %v7598_v26 = vld [vmem:[%s11255_s6 + $0xe4] sm:$0xf] }
 0x3fe   :  { %v7708_v34 = vld [vmem:[#allocation2 + $0x4c] sm:$0xf0]  ;;  %v6502_v27 = vld [vmem:[#allocation2 + $0x50] sm:$0xf0]  ;;  %v2756_v19 = vmax.f32 %v2559_v29, 0.0 }
 0x3ff   :  { %2836 = vst [vmem:[#allocation2 + $0x60] sm:$0xff] %v2804_v25  ;;  %v9641_v46 = vor.u32 %v7708_v34, %v6500_v30  ;;  %v9643_v18 = vor.u32 %v7706_v63, %v6502_v27  ;;  %v7630_v30 = vld [vmem:[%s11255_s6 + $0x1e4] sm:$0xf]  ;;  %v6713_v63 = vor.u32 %v7598_v26, %v6710_v23  ;;  %v6838_v25 = vld [vmem:[%s11255_s6 + $0x1f0] sm:$0xf0] }
 0x400   :  { %v2607_v42 = vpop.f32.mrf.mxu2  ;;  %v6841_v27 = vor.u32 %v7630_v30, %v6838_v25  ;;  %v6774_v26 = vld [vmem:[%s11255_s6 + $0x170] sm:$0xf0]  ;;  %v7578_v23 = vld [vmem:[%s11255_s6 + $0x44] sm:$0xf] }
 0x401   :  { %v2608_v12 = vadd.f32 %v2607_v42, %v9584_v54  ;;  %3835 = vmatmul.bf16.gmra.mxu1 %v9641_v46  ;;  %v6630_v30 = vld [vmem:[%s11255_s6 + $0x50] sm:$0xf0] }
 0x402   :  { %3884 = vmatmul.bf16.gmra.mxu2 %v9643_v18  ;;  %4013 = vmatpush.bf16.msra.mxu1 %v6713_v63 }
 0x403   :  { %v2757_v43 = vmax.f32 %v2608_v12, 0.0  ;;  %v2561_v53 = vpop.f32.mrf.mxu1  ;;  %4062 = vmatpush.bf16.msra.mxu2 %v6841_v27  ;;  %v7594_v12 = vld [vmem:[%s11255_s6 + $0xc4] sm:$0xf] }
 0x404   :  { %v2562_v47 = vadd.f32 %v2561_v53, %v9577_v10  ;;  %v7626_v53 = vld [vmem:[%s11255_s6 + $0x1c4] sm:$0xf] }
 0x405   :  { %v2806_v41 = vpack.c.bf16 %v2757_v43, %v2756_v19  ;;  %v6694_v43 = vld [vmem:[%s11255_s6 + $0xd0] sm:$0xf0]  ;;  %v7610_v27 = vld [vmem:[%s11255_s6 + $0x144] sm:$0xf] }
 0x406   :  { %v2760_v51 = vmax.f32 %v2562_v47, 0.0  ;;  %v6516_v45 = vld [vmem:[#allocation2 + $0x60] sm:$0xf]  ;;  %v7710_v1 = vld [vmem:[#allocation2 + $0x64] sm:$0xf] }
 0x407   :  { %2838 = vst [vmem:[#allocation2 + $0x70] sm:$0xff] %v2806_v41  ;;  %v6697_v41 = vor.u32 %v7594_v12, %v6694_v43 }
 0x408   :  { %v2610_v61 = vpop.f32.mrf.mxu2  ;;  %2697 = vmatmul.bf16.gmra.mxu0 %v9375_v56 }
 0x409   :  { %v2611_v31 = vadd.f32 %v2610_v61, %v9584_v54  ;;  %v6822_v61 = vld [vmem:[%s11255_s6 + $0x1d0] sm:$0xf0]  ;;  %4014 = vmatpush.bf16.msra.mxu1 %v6697_v41  ;;  %v7574_v41 = vld [vmem:[%s11255_s6 + $0x24] sm:$0xf] }
 0x40b   :  { %v2761_v58 = vmax.f32 %v2611_v31, 0.0  ;;  %v2563_v50 = vpop.f32.mrf.mxu1  ;;  %v6825_v31 = vor.u32 %v7626_v53, %v6822_v61  ;;  %v7606_v61 = vld [vmem:[%s11255_s6 + $0x124] sm:$0xf] }
 0x40c   :  { %v2564_v6 = vadd.f32 %v2563_v50, %v9577_v10  ;;  %v6678_v50 = vld [vmem:[%s11255_s6 + $0xb0] sm:$0xf0] }
 0x40d   :  { %v2808_v2 = vpack.c.bf16 %v2761_v58, %v2760_v51  ;;  %v7590_v58 = vld [vmem:[%s11255_s6 + $0xa4] sm:$0xf]  ;;  %4063 = vmatpush.bf16.msra.mxu2 %v6825_v31 }
 0x40e   :  { %v7712_v24 = vld [vmem:[#allocation2 + $0x6c] sm:$0xf0]  ;;  %v6518_v40 = vld [vmem:[#allocation2 + $0x70] sm:$0xf0]  ;;  %v2764_v62 = vmax.f32 %v2564_v6, 0.0 }
 0x40f   :  { %2840 = vst [vmem:[#allocation2 + $0x80] sm:$0xff] %v2808_v2  ;;  %v9652_v13 = vor.u32 %v7712_v24, %v6516_v45  ;;  %v9654_v55 = vor.u32 %v7710_v1, %v6518_v40  ;;  %v7622_v45 = vld [vmem:[%s11255_s6 + $0x1a4] sm:$0xf]  ;;  %v6681_v2 = vor.u32 %v7590_v58, %v6678_v50  ;;  %v6662_v24 = vld [vmem:[%s11255_s6 + $0x90] sm:$0xf0] }
 0x410   :  { %v2612_v59 = vpop.f32.mrf.mxu2  ;;  %v7586_v6 = vld [vmem:[%s11255_s6 + $0x84] sm:$0xf] }
 0x411   :  { %v2613_v56 = vadd.f32 %v2612_v59, %v9584_v54  ;;  %3840 = vmatmul.bf16.gmra.mxu1 %v9652_v13 }
 0x412   :  { %3889 = vmatmul.bf16.gmra.mxu2 %v9654_v55  ;;  %4015 = vmatpush.bf16.msra.mxu1 %v6681_v2 }
 0x413   :  { %v2765_v33 = vmax.f32 %v2613_v56, 0.0  ;;  %v2566_v39 = vpop.f32.mrf.mxu1 }
 0x414   :  { %v2567_v32 = vadd.f32 %v2566_v39, %v9577_v10 }
 0x415   :  { %v2810_v15 = vpack.c.bf16 %v2765_v33, %v2764_v62 }
 0x416   :  { %v2768_v38 = vmax.f32 %v2567_v32, 0.0  ;;  %v6532_v35 = vld [vmem:[#allocation2 + $0x80] sm:$0xf]  ;;  %v7714_v57 = vld [vmem:[#allocation2 + $0x84] sm:$0xf] }
 0x417   :  { %2842 = vst [vmem:[#allocation2 + $0x90] sm:$0xff] %v2810_v15  ;;  %v6665_v15 = vor.u32 %v7586_v6, %v6662_v24  ;;  %v7618_v32 = vld [vmem:[%s11255_s6 + $0x184] sm:$0xf] }
 0x418   :  { %v2615_v5 = vpop.f32.mrf.mxu2  ;;  %2702 = vmatmul.bf16.gmra.mxu0 %v9392_v52 }
 0x419   :  { %v2616_v0 = vadd.f32 %v2615_v5, %v9584_v54  ;;  %v6790_v5 = vld [vmem:[%s11255_s6 + $0x190] sm:$0xf0]  ;;  %4016 = vmatpush.bf16.msra.mxu1 %v6665_v15 }
 0x41b   :  { %v2769_v11 = vmax.f32 %v2616_v0, 0.0  ;;  %v2568_v49 = vpop.f32.mrf.mxu1 }
 0x41c   :  { %v2569_v37 = vadd.f32 %v2568_v49, %v9577_v10 }
 0x41d   :  { %v2812_v28 = vpack.c.bf16 %v2769_v11, %v2768_v38 }
 0x41e   :  { %v7716_v7 = vld [vmem:[#allocation2 + $0x8c] sm:$0xf0]  ;;  %v6534_v14 = vld [vmem:[#allocation2 + $0x90] sm:$0xf0]  ;;  %v2772_v21 = vmax.f32 %v2569_v37, 0.0 }
 0x41f   :  { %2844 = vst [vmem:[#allocation2 + $0xa0] sm:$0xff] %v2812_v28  ;;  %v9663_v36 = vor.u32 %v7716_v7, %v6532_v35  ;;  %v9665_v48 = vor.u32 %v7714_v57, %v6534_v14  ;;  %v6793_v35 = vor.u32 %v7618_v32, %v6790_v5  ;;  %v7582_v14 = vld [vmem:[%s11255_s6 + $0x64] sm:$0xf]  ;;  %v6726_v32 = vld [vmem:[%s11255_s6 + $0x110] sm:$0xf0] }
 0x420   :  { %v2617_v20 = vpop.f32.mrf.mxu2 }
 0x421   :  { %v2618_v52 = vadd.f32 %v2617_v20, %v9584_v54  ;;  %3845 = vmatmul.bf16.gmra.mxu1 %v9663_v36  ;;  %v7614_v20 = vld [vmem:[%s11255_s6 + $0x164] sm:$0xf] }
 0x422   :  { %3894 = vmatmul.bf16.gmra.mxu2 %v9665_v48 }
 0x423   :  { %v2773_v29 = vmax.f32 %v2618_v52, 0.0  ;;  %v2571_v34 = vpop.f32.mrf.mxu1 }
 0x424   :  { %v2572_v42 = vadd.f32 %v2571_v34, %v9577_v10  ;;  %v6633_v34 = vor.u32 %v7578_v23, %v6630_v30 }
 0x425   :  { %v2814_v19 = vpack.c.bf16 %v2773_v29, %v2772_v21  ;;  %v6646_v21 = vld [vmem:[%s11255_s6 + $0x70] sm:$0xf0]  ;;  %v6777_v29 = vor.u32 %v7614_v20, %v6774_v26  ;;  %v7076_v26 = vld [vmem:[%s11255_s6 + $0x3c0] sm:$0xf] }
 0x426   :  { %v2776_v47 = vmax.f32 %v2572_v42, 0.0  ;;  %v6548_v56 = vld [vmem:[#allocation2 + $0xa0] sm:$0xf]  ;;  %v7718_v39 = vld [vmem:[#allocation2 + $0xa4] sm:$0xf]  ;;  %v6649_v52 = vor.u32 %v7582_v14, %v6646_v21  ;;  %v9800_v21 = vpop.f32.mrf.mxu3 }
 0x427   :  { %2846 = vst [vmem:[#allocation2 + $0xb0] sm:$0xff] %v2814_v19  ;;  %v6758_v42 = vld [vmem:[%s11255_s6 + $0x150] sm:$0xf0]  ;;  %v7696_v14 = vld [vmem:[%s11255_s6 + $0x3ec] sm:$0xf0] }
 0x428   :  { %v2620_v51 = vpop.f32.mrf.mxu2  ;;  %2707 = vmatmul.bf16.gmra.mxu0 %v9406_v3  ;;  %v6806_v3 = vld [vmem:[%s11255_s6 + $0x1b0] sm:$0xf0]  ;;  %4017 = vmatpush.bf16.msra.mxu1 %v6649_v52  ;;  %v6761_v43 = vor.u32 %v7610_v27, %v6758_v42  ;;  %v6948_v52 = vld [vmem:[%s11255_s6 + $0x2c0] sm:$0xf]  ;;  %v7656_v27 = vld [vmem:[%s11255_s6 + $0x2ac] sm:$0xf0] }
 0x429   :  { %v2621_v1 = vadd.f32 %v2620_v51, %v9584_v54  ;;  %v6809_v40 = vor.u32 %v7622_v45, %v6806_v3 }
 0x42b   :  { %v2777_v59 = vmax.f32 %v2621_v1, 0.0  ;;  %v2573_v62 = vpop.f32.mrf.mxu1  ;;  %4064 = vmatpush.bf16.msra.mxu2 %v6809_v40  ;;  %v7570_v40 = vld [vmem:[%s11255_s6 + $0x4] sm:$0xf] }
 0x42c   :  { %v2574_v33 = vadd.f32 %v2573_v62, %v9577_v10  ;;  %4018 = vmatpush.bf16.msra.mxu1 %v6633_v34  ;;  %v6932_v34 = vld [vmem:[%s11255_s6 + $0x2a0] sm:$0xf] }
 0x42d   :  { %v2816_v38 = vpack.c.bf16 %v2777_v59, %v2776_v47  ;;  %v6614_v47 = vld [vmem:[%s11255_s6 + $0x30] sm:$0xf0]  ;;  %v6933_v42 = vor.u32 %v7656_v27, %v6932_v34  ;;  %v9902_v34 = vperm.slane %v9569_v4, 3 }
 0x42e   :  { %v7720_v0 = vld [vmem:[#allocation2 + $0xac] sm:$0xf0]  ;;  %v6550_v11 = vld [vmem:[#allocation2 + $0xb0] sm:$0xf0]  ;;  %v2780_v57 = vmax.f32 %v2574_v33, 0.0  ;;  %v6617_v58 = vor.u32 %v7574_v41, %v6614_v47 }
 0x42f   :  { %2848 = vst [vmem:[#allocation2 + $0xc0] sm:$0xff] %v2816_v38  ;;  %v9722_v49 = vor.u32 %v7720_v0, %v6548_v56  ;;  %v9724_v37 = vor.u32 %v7718_v39, %v6550_v11  ;;  %4065 = vmatpush.bf16.msra.mxu2 %v6793_v35  ;;  %v6598_v59 = vld [vmem:[%s11255_s6 + $0x10] sm:$0xf0]  ;;  %v6964_v0 = vld [vmem:[%s11255_s6 + $0x2e0] sm:$0xf] }
 0x430   :  { %v2622_v28 = vpop.f32.mrf.mxu2  ;;  %4019 = vmatpush.bf16.msra.mxu1 %v6617_v58  ;;  %v6601_v33 = vor.u32 %v7570_v40, %v6598_v59  ;;  %v7664_v11 = vld [vmem:[%s11255_s6 + $0x2ec] sm:$0xf0]  ;;  %v7092_v35 = vld [vmem:[%s11255_s6 + $0x3e0] sm:$0xf]  ;;  %v2641_v58 = vpop.f32.mrf.mxu3 }
 0x431   :  { %v2623_v7 = vadd.f32 %v2622_v28, %v9584_v54  ;;  %3850 = vmatmul.bf16.gmra.mxu1 %v9722_v49  ;;  %v7093_v20 = vor.u32 %v7696_v14, %v7092_v35  ;;  %v7652_v41 = vld [vmem:[%s11255_s6 + $0x28c] sm:$0xf0] }
 0x432   :  { %3899 = vmatmul.bf16.gmra.mxu2 %v9724_v37  ;;  %v7680_v40 = vld [vmem:[%s11255_s6 + $0x36c] sm:$0xf0] }
 0x433   :  { %v2781_v63 = vmax.f32 %v2623_v7, 0.0  ;;  %v2576_v25 = vpop.f32.mrf.mxu1  ;;  %4066 = vmatpush.bf16.msra.mxu2 %v6777_v29  ;;  %v6965_v7 = vor.u32 %v7664_v11, %v6964_v0  ;;  %3964 = vmatpush.bf16.msrb.mxu0 %v7093_v20  ;;  %v6868_v11 = vld [vmem:[%s11255_s6 + $0x220] sm:$0xf]  ;;  %v7640_v35 = vld [vmem:[%s11255_s6 + $0x22c] sm:$0xf0] }
 0x434   :  { %v2577_v12 = vadd.f32 %v2576_v25, %v9577_v10  ;;  %4020 = vmatpush.bf16.msra.mxu1 %v6601_v33  ;;  %v7644_v33 = vld [vmem:[%s11255_s6 + $0x24c] sm:$0xf0]  ;;  %v6852_v20 = vld [vmem:[%s11255_s6 + $0x200] sm:$0xf] }
 0x435   :  { %v2818_v19 = vpack.c.bf16 %v2781_v63, %v2780_v57  ;;  %3915 = vmatpush.bf16.msrb.mxu3 %v6965_v7  ;;  %v7692_v63 = vld [vmem:[%s11255_s6 + $0x3cc] sm:$0xf0] }
 0x436   :  { %v2784_v51 = vmax.f32 %v2577_v12, 0.0  ;;  %v6564_v2 = vld [vmem:[#allocation2 + $0xc0] sm:$0xf]  ;;  %v7722_v3 = vld [vmem:[#allocation2 + $0xc4] sm:$0xf]  ;;  %v7077_v29 = vor.u32 %v7692_v63, %v7076_v26 }
 0x437   :  { %2850 = vst [vmem:[#allocation2 + $0xd0] sm:$0xff] %v2818_v19  ;;  %4067 = vmatpush.bf16.msra.mxu2 %v6761_v43  ;;  %v7060_v19 = vld [vmem:[%s11255_s6 + $0x3a0] sm:$0xf]  ;;  %v7688_v12 = vld [vmem:[%s11255_s6 + $0x3ac] sm:$0xf0] }
 0x438   :  { %v2625_v53 = vpop.f32.mrf.mxu2  ;;  %2712 = vmatmul.bf16.gmra.mxu0 %v9430_v17  ;;  %v6742_v17 = vld [vmem:[%s11255_s6 + $0x130] sm:$0xf0]  ;;  %v7061_v43 = vor.u32 %v7688_v12, %v7060_v19  ;;  %v2644_v0 = vpop.f32.mrf.mxu3  ;;  %v7672_v7 = vld [vmem:[%s11255_s6 + $0x32c] sm:$0xf0] }
 0x439   :  { %v2626_v31 = vadd.f32 %v2625_v53, %v9584_v54  ;;  %v6745_v1 = vor.u32 %v7606_v61, %v6742_v17  ;;  %3965 = vmatpush.bf16.msrb.mxu0 %v7077_v29  ;;  %v6916_v53 = vld [vmem:[%s11255_s6 + $0x280] sm:$0xf]  ;;  %v7684_v61 = vld [vmem:[%s11255_s6 + $0x38c] sm:$0xf0] }
 0x43a   :  { %v6917_v47 = vor.u32 %v7652_v41, %v6916_v53 }
 0x43b   :  { %v2785_v50 = vmax.f32 %v2626_v31, 0.0  ;;  %v2578_v45 = vpop.f32.mrf.mxu1  ;;  %4068 = vmatpush.bf16.msra.mxu2 %v6745_v1  ;;  %v6900_v1 = vld [vmem:[%s11255_s6 + $0x260] sm:$0xf] }
 0x43c   :  { %v2579_v24 = vadd.f32 %v2578_v45, %v9577_v10  ;;  %v7602_v10 = vld [vmem:[%s11255_s6 + $0x104] sm:$0xf] }
 0x43d   :  { %v2820_v6 = vpack.c.bf16 %v2785_v50, %v2784_v51  ;;  %v6729_v38 = vor.u32 %v7602_v10, %v6726_v32  ;;  %3966 = vmatpush.bf16.msrb.mxu0 %v7061_v43  ;;  %v7012_v10 = vld [vmem:[%s11255_s6 + $0x340] sm:$0xf] }
 0x43e   :  { %v7724_v62 = vld [vmem:[#allocation2 + $0xcc] sm:$0xf0]  ;;  %v6566_v56 = vld [vmem:[#allocation2 + $0xd0] sm:$0xf0]  ;;  %v2788_v57 = vmax.f32 %v2579_v24, 0.0 }
 0x43f   :  { %2852 = vst [vmem:[#allocation2 + $0xe0] sm:$0xff] %v2820_v6  ;;  %v9775_v39 = vor.u32 %v7724_v62, %v6564_v2  ;;  %v9777_v15 = vor.u32 %v7722_v3, %v6566_v56  ;;  %4069 = vmatpush.bf16.msra.mxu2 %v6729_v38  ;;  %v7648_v6 = vld [vmem:[%s11255_s6 + $0x26c] sm:$0xf0]  ;;  %v7028_v24 = vld [vmem:[%s11255_s6 + $0x360] sm:$0xf] }
 0x440   :  { %v2627_v5 = vpop.f32.mrf.mxu2  ;;  %v6901_v59 = vor.u32 %v7648_v6, %v6900_v1  ;;  %v7029_v62 = vor.u32 %v7680_v40, %v7028_v24  ;;  %v6884_v56 = vld [vmem:[%s11255_s6 + $0x240] sm:$0xf] }
 0x441   :  { %v2628_v28 = vadd.f32 %v2627_v5, %v9584_v54  ;;  %3855 = vmatmul.bf16.gmra.mxu1 %v9775_v39  ;;  %v7660_v54 = vld [vmem:[%s11255_s6 + $0x2cc] sm:$0xf0]  ;;  %v6885_v32 = vor.u32 %v7644_v33, %v6884_v56 }
 0x442   :  { %3904 = vmatmul.bf16.gmra.mxu2 %v9777_v15  ;;  %v6949_v30 = vor.u32 %v7660_v54, %v6948_v52  ;;  %v7676_v5 = vld [vmem:[%s11255_s6 + $0x34c] sm:$0xf0]  ;;  %v6980_v54 = vld [vmem:[%s11255_s6 + $0x300] sm:$0xf] }
 0x443   :  { %v2789_v23 = vmax.f32 %v2628_v28, 0.0  ;;  %v7013_v38 = vor.u32 %v7676_v5, %v7012_v10  ;;  %v6869_v28 = vor.u32 %v7640_v35, %v6868_v11  ;;  %v7636_v52 = vld [vmem:[%s11255_s6 + $0x20c] sm:$0xf0] }
 0x444   :  { %3916 = vmatpush.bf16.msrb.mxu3 %v6949_v30  ;;  %v6853_v26 = vor.u32 %v7636_v52, %v6852_v20  ;;  %v9895_v30 = vperm.slane %v9569_v4, 2 }
 0x445   :  { %v2822_v25 = vpack.c.bf16 %v2789_v23, %v2788_v57  ;;  %v6996_v57 = vld [vmem:[%s11255_s6 + $0x320] sm:$0xf] }
 0x446   :  { %v6580_v51 = vld [vmem:[#allocation2 + $0xe0] sm:$0xf]  ;;  %v7726_v31 = vld [vmem:[#allocation2 + $0xe4] sm:$0xf]  ;;  %v6997_v14 = vor.u32 %v7672_v7, %v6996_v57  ;;  %v2640_v29 = vadd.f32 %v9800_v21, %v9895_v30  ;;  %v2645_v1 = vadd.f32 %v2644_v0, %v9895_v30 }
 0x447   :  { %2854 = vst [vmem:[#allocation2 + $0xf0] sm:$0xff] %v2822_v25  ;;  %v2646_v25 = vpop.f32.mrf.mxu3 }
 0x448   :  { %2717 = vmatmul.bf16.gmra.mxu0 %v9464_v60  ;;  %v7044_v60 = vld [vmem:[%s11255_s6 + $0x380] sm:$0xf]  ;;  %3917 = vmatpush.bf16.msrb.mxu3 %v6933_v42  ;;  %v2730_v19 = vmax.f32 %v2640_v29, 0.0  ;;  %v2647_v0 = vadd.f32 %v2646_v25, %v9895_v30 }
 0x449   :  { %v7045_v17 = vor.u32 %v7684_v61, %v7044_v60  ;;  %v2642_v61 = vadd.f32 %v2641_v58, %v9895_v30 }
 0x44b   :  { %3967 = vmatpush.bf16.msrb.mxu0 %v7045_v17 }
 0x44c   :  { %3918 = vmatpush.bf16.msrb.mxu3 %v6917_v47 }
 0x44e   :  { %v7728_v50 = vld [vmem:[#allocation2 + $0xec] sm:$0xf0]  ;;  %v6582_v45 = vld [vmem:[#allocation2 + $0xf0] sm:$0xf0] }
 0x44f   :  { %v9842_v2 = vor.u32 %v7728_v50, %v6580_v51  ;;  %v9844_v3 = vor.u32 %v7726_v31, %v6582_v45  ;;  %3968 = vmatpush.bf16.msrb.mxu0 %v7029_v62  ;;  %v2649_v47 = vpop.f32.mrf.mxu3  ;;  %v2734_v50 = vmax.f32 %v2642_v61, 0.0 }
 0x450   :  { %3919 = vmatpush.bf16.msrb.mxu3 %v6901_v59  ;;  %v2738_v59 = vmax.f32 %v2645_v1, 0.0 }
 0x451   :  { %11371 = vst [vmem:[#allocation3_spill] sm:$0xff] %v9842_v2  ;;  %3860 = vmatmul.bf16.gmra.mxu1 %v9842_v2 }
 0x452   :  { %11372 = vst [vmem:[#allocation4_spill] sm:$0xff] %v9844_v3  ;;  %3909 = vmatmul.bf16.gmra.mxu2 %v9844_v3 }
 0x453   :  { %3969 = vmatpush.bf16.msrb.mxu0 %v7013_v38 }
 0x454   :  { %3920 = vmatpush.bf16.msrb.mxu3 %v6885_v32 }
 0x457   :  { %3970 = vmatpush.bf16.msrb.mxu0 %v6997_v14  ;;  %v2651_v24 = vpop.f32.mrf.mxu3 }
 0x458   :  { %2722 = vmatmul.bf16.gmra.mxu0 %v9528_v8  ;;  %3921 = vmatpush.bf16.msrb.mxu3 %v6869_v28  ;;  %v7668_v8 = vld [vmem:[%s11255_s6 + $0x30c] sm:$0xf0] }
 0x459   :  { %v6981_v23 = vor.u32 %v7668_v8, %v6980_v54  ;;  %v2742_v8 = vmax.f32 %v2647_v0, 0.0 }
 0x45b   :  { %3971 = vmatpush.bf16.msrb.mxu0 %v6981_v23 }
 0x45c   :  { %3922 = vmatpush.bf16.msrb.mxu3 %v6853_v26 }
 0x45e   :  { %v3826_v63 = vpop.f32.mrf.mxu1 }
 0x45f   :  { %v2654_v26 = vpop.f32.mrf.mxu3 }
 0x461   :  { %4021 = vmatmul.bf16.vlgmr.msra.gmra.mxu1 %v9613_v44 }
 0x462   :  { %4070 = vmatmul.bf16.vlgmr.msra.gmra.mxu2 %v9615_v22 }
 0x465   :  { %v3875_v27 = vpop.f32.mrf.mxu2  ;;  %v2688_v42 = vpop.f32.mrf.mxu0 }
 0x466   :  { %v9904_v12 = vadd.f32 %v3875_v27, %v3826_v63  ;;  %v2689_v43 = vadd.f32 %v2688_v42, %v9902_v34  ;;  %v3828_v53 = vpop.f32.mrf.mxu1  ;;  %v2650_v63 = vadd.f32 %v2649_v47, %v9895_v30  ;;  %v2652_v47 = vadd.f32 %v2651_v24, %v9895_v30 }
 0x467   :  { %v2655_v24 = vadd.f32 %v2654_v26, %v9895_v30 }
 0x468   :  { %v2731_v41 = vmax.f32 %v2689_v43, 0.0  ;;  %v2746_v42 = vmax.f32 %v2650_v63, 0.0 }
 0x46a   :  { %v2793_v60 = vpack.c.bf16 %v2731_v41, %v2730_v19 }
 0x46c   :  { %2825 = vst [vmem:[#allocation2 + $0x8] sm:$0xff] %v2793_v60  ;;  %v2656_v60 = vpop.f32.mrf.mxu3 }
 0x46d   :  { %v3877_v21 = vpop.f32.mrf.mxu2  ;;  %v2690_v51 = vpop.f32.mrf.mxu0  ;;  %v2657_v26 = vadd.f32 %v2656_v60, %v9895_v30  ;;  %v6716_v60 = vld [vmem:[%s11255_s6 + $0xe8] sm:$0xf] }
 0x46e   :  { %v9908_v31 = vadd.f32 %v3877_v21, %v3828_v53  ;;  %v2691_v4 = vadd.f32 %v2690_v51, %v9902_v34  ;;  %v3831_v17 = vpop.f32.mrf.mxu1 }
 0x470   :  { %v2735_v45 = vmax.f32 %v2691_v4, 0.0 }
 0x471   :  { %4026 = vmatmul.bf16.gmra.mxu1 %v9630_v9 }
 0x472   :  { %v2795_v6 = vpack.c.bf16 %v2735_v45, %v2734_v50  ;;  %4075 = vmatmul.bf16.gmra.mxu2 %v9632_v16 }
 0x473   :  { %v6476_v5 = vld [vmem:[#allocation2 + $0x8] sm:$0xf]  ;;  %v7699_v11 = vld [vmem:[#allocation2 + $0xc] sm:$0xf] }
 0x474   :  { %2827 = vst [vmem:[#allocation2 + $0x18] sm:$0xff] %v2795_v6 }
 0x475   :  { %v3880_v58 = vpop.f32.mrf.mxu2  ;;  %v2693_v40 = vpop.f32.mrf.mxu0 }
 0x476   :  { %v9914_v62 = vadd.f32 %v3880_v58, %v3831_v17  ;;  %v2694_v56 = vadd.f32 %v2693_v40, %v9902_v34  ;;  %v3833_v33 = vpop.f32.mrf.mxu1 }
 0x478   :  { %v2739_v10 = vmax.f32 %v2694_v56, 0.0  ;;  %v2750_v56 = vmax.f32 %v2652_v47, 0.0 }
 0x47a   :  { %v2797_v32 = vpack.c.bf16 %v2739_v10, %v2738_v59 }
 0x47b   :  { %v7701_v38 = vld [vmem:[#allocation2 + $0x14] sm:$0xf0]  ;;  %v6478_v35 = vld [vmem:[#allocation2 + $0x18] sm:$0xf0] }
 0x47c   :  { %2829 = vst [vmem:[#allocation2 + $0x28] sm:$0xff] %v2797_v32  ;;  %v9918_v57 = vor.u32 %v7701_v38, %v6476_v5  ;;  %v9920_v28 = vor.u32 %v7699_v11, %v6478_v35  ;;  %v2659_v32 = vpop.f32.mrf.mxu3  ;;  %v2754_v11 = vmax.f32 %v2655_v24, 0.0  ;;  %v6700_v24 = vld [vmem:[%s11255_s6 + $0xc8] sm:$0xf] }
 0x47d   :  { %v3882_v7 = vpop.f32.mrf.mxu2  ;;  %v2695_v14 = vpop.f32.mrf.mxu0 }
 0x47e   :  { %v9922_v20 = vadd.f32 %v3882_v7, %v3833_v33  ;;  %v2696_v52 = vadd.f32 %v2695_v14, %v9902_v34  ;;  %v3836_v54 = vpop.f32.mrf.mxu1  ;;  %3923 = vmatmul.bf16.vlgmr.msrb.gmra.mxu3 %v9918_v57  ;;  %3972 = vmatmul.bf16.vlgmr.msrb.gmra.mxu0 %v9920_v28 }
 0x480   :  { %v2743_v23 = vmax.f32 %v2696_v52, 0.0 }
 0x481   :  { %4031 = vmatmul.bf16.gmra.mxu1 %v9641_v46 }
 0x482   :  { %v2799_v25 = vpack.c.bf16 %v2743_v23, %v2742_v8  ;;  %4080 = vmatmul.bf16.gmra.mxu2 %v9643_v18 }
 0x483   :  { %v6492_v21 = vld [vmem:[#allocation2 + $0x28] sm:$0xf]  ;;  %v7703_v4 = vld [vmem:[#allocation2 + $0x2c] sm:$0xf] }
 0x484   :  { %2831 = vst [vmem:[#allocation2 + $0x38] sm:$0xff] %v2799_v25 }
 0x485   :  { %v3885_v29 = vpop.f32.mrf.mxu2  ;;  %v2698_v27 = vpop.f32.mrf.mxu0 }
 0x486   :  { %v9930_v19 = vadd.f32 %v3885_v29, %v3836_v54  ;;  %v2699_v43 = vadd.f32 %v2698_v27, %v9902_v34  ;;  %v3838_v53 = vpop.f32.mrf.mxu1  ;;  %v2661_v27 = vpop.f32.mrf.mxu3 }
 0x488   :  { %v2747_v41 = vmax.f32 %v2699_v43, 0.0 }
 0x48a   :  { %v2801_v61 = vpack.c.bf16 %v2747_v41, %v2746_v42 }
 0x48b   :  { %v7705_v51 = vld [vmem:[#allocation2 + $0x34] sm:$0xf0]  ;;  %v6494_v17 = vld [vmem:[#allocation2 + $0x38] sm:$0xf0] }
 0x48c   :  { %2833 = vst [vmem:[#allocation2 + $0x48] sm:$0xff] %v2801_v61  ;;  %v9934_v50 = vor.u32 %v7705_v51, %v6492_v21  ;;  %v9936_v45 = vor.u32 %v7703_v4, %v6494_v17  ;;  %v2758_v21 = vmax.f32 %v2657_v26, 0.0  ;;  %v7601_v4 = vld [vmem:[%s11255_s6 + $0xf4] sm:$0xf0]  ;;  %v2660_v17 = vadd.f32 %v2659_v32, %v9895_v30  ;;  %v6828_v32 = vld [vmem:[%s11255_s6 + $0x1c8] sm:$0xf] }
 0x48d   :  { %v3887_v1 = vpop.f32.mrf.mxu2  ;;  %v2700_v6 = vpop.f32.mrf.mxu0 }
 0x48e   :  { %v9938_v58 = vadd.f32 %v3887_v1, %v3838_v53  ;;  %v2701_v40 = vadd.f32 %v2700_v6, %v9902_v34  ;;  %v3841_v59 = vpop.f32.mrf.mxu1  ;;  %3928 = vmatmul.bf16.gmra.mxu3 %v9934_v50  ;;  %3977 = vmatmul.bf16.gmra.mxu0 %v9936_v45  ;;  %v6717_v1 = vor.u32 %v7601_v4, %v6716_v60  ;;  %v6844_v6 = vld [vmem:[%s11255_s6 + $0x1e8] sm:$0xf] }
 0x490   :  { %v2751_v33 = vmax.f32 %v2701_v40, 0.0  ;;  %v7633_v40 = vld [vmem:[%s11255_s6 + $0x1f4] sm:$0xf0]  ;;  %4209 = vmatpush.bf16.msrb.mxu1 %v6717_v1 }
 0x491   :  { %4036 = vmatmul.bf16.gmra.mxu1 %v9652_v13 }
 0x492   :  { %v2803_v10 = vpack.c.bf16 %v2751_v33, %v2750_v56  ;;  %4085 = vmatmul.bf16.gmra.mxu2 %v9654_v55 }
 0x493   :  { %v6508_v54 = vld [vmem:[#allocation2 + $0x48] sm:$0xf]  ;;  %v7707_v23 = vld [vmem:[#allocation2 + $0x4c] sm:$0xf] }
 0x494   :  { %2835 = vst [vmem:[#allocation2 + $0x58] sm:$0xff] %v2803_v10  ;;  %v7597_v10 = vld [vmem:[%s11255_s6 + $0xd4] sm:$0xf0] }
 0x495   :  { %v3890_v5 = vpop.f32.mrf.mxu2  ;;  %v2703_v38 = vpop.f32.mrf.mxu0 }
 0x496   :  { %v9946_v35 = vadd.f32 %v3890_v5, %v3841_v59  ;;  %v2704_v0 = vadd.f32 %v2703_v38, %v9902_v34  ;;  %v3843_v7 = vpop.f32.mrf.mxu1  ;;  %v6845_v59 = vor.u32 %v7633_v40, %v6844_v6  ;;  %v2762_v5 = vmax.f32 %v2660_v17, 0.0 }
 0x497   :  { %v2662_v17 = vadd.f32 %v2661_v27, %v9895_v30  ;;  %v6796_v27 = vld [vmem:[%s11255_s6 + $0x188] sm:$0xf] }
 0x498   :  { %v2755_v14 = vmax.f32 %v2704_v0, 0.0  ;;  %4258 = vmatpush.bf16.msrb.mxu2 %v6845_v59  ;;  %v6668_v59 = vld [vmem:[%s11255_s6 + $0x88] sm:$0xf] }
 0x49a   :  { %v2805_v52 = vpack.c.bf16 %v2755_v14, %v2754_v11  ;;  %v6701_v14 = vor.u32 %v7597_v10, %v6700_v24 }
 0x49b   :  { %v7709_v8 = vld [vmem:[#allocation2 + $0x54] sm:$0xf0]  ;;  %v6510_v63 = vld [vmem:[#allocation2 + $0x58] sm:$0xf0] }
 0x49c   :  { %2837 = vst [vmem:[#allocation2 + $0x68] sm:$0xff] %v2805_v52  ;;  %v9950_v25 = vor.u32 %v7709_v8, %v6508_v54  ;;  %v9952_v29 = vor.u32 %v7707_v23, %v6510_v63  ;;  %v7629_v52 = vld [vmem:[%s11255_s6 + $0x1d4] sm:$0xf0]  ;;  %4210 = vmatpush.bf16.msrb.mxu1 %v6701_v14  ;;  %v6684_v23 = vld [vmem:[%s11255_s6 + $0xa8] sm:$0xf]  ;;  %v2766_v14 = vmax.f32 %v2662_v17, 0.0 }
 0x49d   :  { %v3892_v42 = vpop.f32.mrf.mxu2  ;;  %v2705_v43 = vpop.f32.mrf.mxu0  ;;  %v6829_v54 = vor.u32 %v7629_v52, %v6828_v32  ;;  %v7593_v63 = vld [vmem:[%s11255_s6 + $0xb4] sm:$0xf0] }
 0x49e   :  { %v9954_v53 = vadd.f32 %v3892_v42, %v3843_v7  ;;  %v2706_v41 = vadd.f32 %v2705_v43, %v9902_v34  ;;  %v3846_v61 = vpop.f32.mrf.mxu1  ;;  %3933 = vmatmul.bf16.gmra.mxu3 %v9950_v25  ;;  %3982 = vmatmul.bf16.gmra.mxu0 %v9952_v29  ;;  %v2664_v7 = vpop.f32.mrf.mxu3  ;;  %v6685_v43 = vor.u32 %v7593_v63, %v6684_v23 }
 0x49f   :  { %4259 = vmatpush.bf16.msrb.mxu2 %v6829_v54  ;;  %v2665_v23 = vadd.f32 %v2664_v7, %v9895_v30  ;;  %v6636_v7 = vld [vmem:[%s11255_s6 + $0x48] sm:$0xf] }
 0x4a0   :  { %v2759_v51 = vmax.f32 %v2706_v41, 0.0  ;;  %v6812_v41 = vld [vmem:[%s11255_s6 + $0x1a8] sm:$0xf]  ;;  %4211 = vmatpush.bf16.msrb.mxu1 %v6685_v43  ;;  %v7617_v43 = vld [vmem:[%s11255_s6 + $0x174] sm:$0xf0] }
 0x4a1   :  { %4041 = vmatmul.bf16.gmra.mxu1 %v9663_v36 }
 0x4a2   :  { %v2807_v47 = vpack.c.bf16 %v2759_v51, %v2758_v21  ;;  %4090 = vmatmul.bf16.gmra.mxu2 %v9665_v48 }
 0x4a3   :  { %v6524_v42 = vld [vmem:[#allocation2 + $0x68] sm:$0xf]  ;;  %v7711_v51 = vld [vmem:[#allocation2 + $0x6c] sm:$0xf] }
 0x4a4   :  { %2839 = vst [vmem:[#allocation2 + $0x78] sm:$0xff] %v2807_v47 }
 0x4a5   :  { %v3895_v56 = vpop.f32.mrf.mxu2  ;;  %v2708_v33 = vpop.f32.mrf.mxu0 }
 0x4a6   :  { %v9983_v38 = vadd.f32 %v3895_v56, %v3846_v61  ;;  %v2709_v11 = vadd.f32 %v2708_v33, %v9902_v34  ;;  %v3848_v0 = vpop.f32.mrf.mxu1  ;;  %v7625_v61 = vld [vmem:[%s11255_s6 + $0x1b4] sm:$0xf0]  ;;  %v2666_v54 = vpop.f32.mrf.mxu3 }
 0x4a7   :  { %v6813_v4 = vor.u32 %v7625_v61, %v6812_v41  ;;  %v7589_v56 = vld [vmem:[%s11255_s6 + $0x94] sm:$0xf0] }
 0x4a8   :  { %v2763_v8 = vmax.f32 %v2709_v11, 0.0  ;;  %v6669_v32 = vor.u32 %v7589_v56, %v6668_v59  ;;  %v7613_v56 = vld [vmem:[%s11255_s6 + $0x154] sm:$0xf0] }
 0x4a9   :  { %4260 = vmatpush.bf16.msrb.mxu2 %v6813_v4  ;;  %v2770_v4 = vmax.f32 %v2665_v23, 0.0 }
 0x4aa   :  { %v2809_v26 = vpack.c.bf16 %v2763_v8, %v2762_v5  ;;  %v7621_v5 = vld [vmem:[%s11255_s6 + $0x194] sm:$0xf0]  ;;  %4212 = vmatpush.bf16.msrb.mxu1 %v6669_v32  ;;  %v6620_v32 = vld [vmem:[%s11255_s6 + $0x28] sm:$0xf] }
 0x4ab   :  { %v7713_v21 = vld [vmem:[#allocation2 + $0x74] sm:$0xf0]  ;;  %v6526_v60 = vld [vmem:[#allocation2 + $0x78] sm:$0xf0]  ;;  %v6797_v11 = vor.u32 %v7621_v5, %v6796_v27 }
 0x4ac   :  { %2841 = vst [vmem:[#allocation2 + $0x88] sm:$0xff] %v2809_v26  ;;  %v10002_v47 = vor.u32 %v7713_v21, %v6524_v42  ;;  %v10004_v1 = vor.u32 %v7711_v51, %v6526_v60  ;;  %v7585_v8 = vld [vmem:[%s11255_s6 + $0x74] sm:$0xf0]  ;;  %v6780_v42 = vld [vmem:[%s11255_s6 + $0x168] sm:$0xf] }
 0x4ad   :  { %v3897_v6 = vpop.f32.mrf.mxu2  ;;  %v2710_v40 = vpop.f32.mrf.mxu0  ;;  %4261 = vmatpush.bf16.msrb.mxu2 %v6797_v11  ;;  %v6781_v41 = vor.u32 %v7617_v43, %v6780_v42  ;;  %v7581_v51 = vld [vmem:[%s11255_s6 + $0x54] sm:$0xf0]  ;;  %v6764_v60 = vld [vmem:[%s11255_s6 + $0x148] sm:$0xf]  ;;  %v2667_v43 = vadd.f32 %v2666_v54, %v9895_v30 }
 0x4ae   :  { %v10015_v33 = vadd.f32 %v3897_v6, %v3848_v0  ;;  %v2711_v24 = vadd.f32 %v2710_v40, %v9902_v34  ;;  %v3851_v10 = vpop.f32.mrf.mxu1  ;;  %3938 = vmatmul.bf16.gmra.mxu3 %v10002_v47  ;;  %3987 = vmatmul.bf16.gmra.mxu0 %v10004_v1  ;;  %v6652_v0 = vld [vmem:[%s11255_s6 + $0x68] sm:$0xf]  ;;  %v6637_v59 = vor.u32 %v7581_v51, %v6636_v7  ;;  %v2669_v11 = vpop.f32.mrf.mxu3 }
 0x4af   :  { %v6653_v26 = vor.u32 %v7585_v8, %v6652_v0  ;;  %v6765_v27 = vor.u32 %v7613_v56, %v6764_v60  ;;  %v6748_v0 = vld [vmem:[%s11255_s6 + $0x128] sm:$0xf]  ;;  %v7609_v8 = vld [vmem:[%s11255_s6 + $0x134] sm:$0xf0] }
 0x4b0   :  { %v2767_v52 = vmax.f32 %v2711_v24, 0.0  ;;  %v6749_v42 = vor.u32 %v7609_v8, %v6748_v0  ;;  %v6604_v51 = vld [vmem:[%s11255_s6 + $0x8] sm:$0xf]  ;;  %v7573_v60 = vld [vmem:[%s11255_s6 + $0x14] sm:$0xf0] }
 0x4b1   :  { %4046 = vmatmul.bf16.gmra.mxu1 %v9722_v49  ;;  %4262 = vmatpush.bf16.msrb.mxu2 %v6781_v41  ;;  %v6732_v54 = vld [vmem:[%s11255_s6 + $0x108] sm:$0xf]  ;;  %v6605_v56 = vor.u32 %v7573_v60, %v6604_v51 }
 0x4b2   :  { %v2811_v63 = vpack.c.bf16 %v2767_v52, %v2766_v14  ;;  %4095 = vmatmul.bf16.gmra.mxu2 %v9724_v37  ;;  %4213 = vmatpush.bf16.msrb.mxu1 %v6653_v26 }
 0x4b3   :  { %v6540_v14 = vld [vmem:[#allocation2 + $0x88] sm:$0xf] }
 0x4b4   :  { %2843 = vst [vmem:[#allocation2 + $0x98] sm:$0xff] %v2811_v63  ;;  %v7715_v63 = vld [vmem:[#allocation2 + $0x8c] sm:$0xf] }
 0x4b5   :  { %v3900_v61 = vpop.f32.mrf.mxu2  ;;  %v2713_v21 = vpop.f32.mrf.mxu0  ;;  %4263 = vmatpush.bf16.msrb.mxu2 %v6765_v27  ;;  %v7605_v27 = vld [vmem:[%s11255_s6 + $0x114] sm:$0xf0] }
 0x4b6   :  { %v10047_v17 = vadd.f32 %v3900_v61, %v3851_v10  ;;  %v2714_v6 = vadd.f32 %v2713_v21, %v9902_v34  ;;  %v3853_v40 = vpop.f32.mrf.mxu1  ;;  %4214 = vmatpush.bf16.msrb.mxu1 %v6637_v59  ;;  %v7577_v10 = vld [vmem:[%s11255_s6 + $0x34] sm:$0xf0] }
 0x4b7   :  { %v6621_v52 = vor.u32 %v7577_v10, %v6620_v32  ;;  %v6733_v32 = vor.u32 %v7605_v27, %v6732_v54 }
 0x4b8   :  { %v2771_v24 = vmax.f32 %v2714_v6, 0.0 }
 0x4b9   :  { %4264 = vmatpush.bf16.msrb.mxu2 %v6749_v42  ;;  %v6950_v42 = vld [vmem:[%s11255_s6 + $0x2d0] sm:$0xf0] }
 0x4ba   :  { %v2813_v5 = vpack.c.bf16 %v2771_v24, %v2770_v4  ;;  %4215 = vmatpush.bf16.msrb.mxu1 %v6621_v52  ;;  %v7662_v24 = vld [vmem:[%s11255_s6 + $0x2e4] sm:$0xf]  ;;  %v2774_v52 = vmax.f32 %v2667_v43, 0.0 }
 0x4bb   :  { %v7717_v23 = vld [vmem:[#allocation2 + $0x94] sm:$0xf0]  ;;  %v6542_v26 = vld [vmem:[#allocation2 + $0x98] sm:$0xf0]  ;;  %v7690_v43 = vld [vmem:[%s11255_s6 + $0x3c4] sm:$0xf] }
 0x4bc   :  { %2845 = vst [vmem:[#allocation2 + $0xa8] sm:$0xff] %v2813_v5  ;;  %v10066_v41 = vor.u32 %v7717_v23, %v6540_v14  ;;  %v10068_v61 = vor.u32 %v7715_v63, %v6542_v26  ;;  %v7694_v5 = vld [vmem:[%s11255_s6 + $0x3e4] sm:$0xf]  ;;  %v7094_v14 = vld [vmem:[%s11255_s6 + $0x3f0] sm:$0xf0]  ;;  %v2670_v23 = vadd.f32 %v2669_v11, %v9895_v30 }
 0x4bd   :  { %v3902_v21 = vpop.f32.mrf.mxu2  ;;  %v2715_v7 = vpop.f32.mrf.mxu0  ;;  %v7097_v8 = vor.u32 %v7694_v5, %v7094_v14  ;;  %4265 = vmatpush.bf16.msrb.mxu2 %v6733_v32  ;;  %v7658_v26 = vld [vmem:[%s11255_s6 + $0x2c4] sm:$0xf]  ;;  %v6934_v32 = vld [vmem:[%s11255_s6 + $0x2b0] sm:$0xf0] }
 0x4be   :  { %11373 = vst [vmem:[#allocation5_spill] sm:$0xff] %v10068_v61  ;;  %v10079_v4 = vadd.f32 %v3902_v21, %v3853_v40  ;;  %v2716_v6 = vadd.f32 %v2715_v7, %v9902_v34  ;;  %v3856_v59 = vpop.f32.mrf.mxu1  ;;  %3943 = vmatmul.bf16.gmra.mxu3 %v10066_v41  ;;  %3992 = vmatmul.bf16.gmra.mxu0 %v10068_v61  ;;  %v6966_v40 = vld [vmem:[%s11255_s6 + $0x2f0] sm:$0xf0]  ;;  %v2671_v7 = vpop.f32.mrf.mxu3  ;;  %v2778_v60 = vmax.f32 %v2670_v23, 0.0  ;;  %v7650_v14 = vld [vmem:[%s11255_s6 + $0x284] sm:$0xf] }
 0x4bf   :  { %v6969_v10 = vor.u32 %v7662_v24, %v6966_v40  ;;  %4216 = vmatpush.bf16.msrb.mxu1 %v6605_v56  ;;  %4160 = vmatpush.bf16.msra.mxu0 %v7097_v8  ;;  %v6953_v11 = vor.u32 %v7658_v26, %v6950_v42  ;;  %v7078_v21 = vld [vmem:[%s11255_s6 + $0x3d0] sm:$0xf0]  ;;  %v7654_v40 = vld [vmem:[%s11255_s6 + $0x2a4] sm:$0xf] }
 0x4c0   :  { %v2775_v0 = vmax.f32 %v2716_v6, 0.0  ;;  %v7081_v51 = vor.u32 %v7690_v43, %v7078_v21  ;;  %v6937_v5 = vor.u32 %v7654_v40, %v6934_v32  ;;  %v7682_v23 = vld [vmem:[%s11255_s6 + $0x384] sm:$0xf] }
 0x4c1   :  { %4051 = vmatmul.bf16.gmra.mxu1 %v9775_v39  ;;  %4111 = vmatpush.bf16.msra.mxu3 %v6969_v10  ;;  %v7686_v10 = vld [vmem:[%s11255_s6 + $0x3a4] sm:$0xf] }
 0x4c2   :  { %v2815_v63 = vpack.c.bf16 %v2775_v0, %v2774_v52  ;;  %4100 = vmatmul.bf16.gmra.mxu2 %v9777_v15  ;;  %v6918_v52 = vld [vmem:[%s11255_s6 + $0x290] sm:$0xf0] }
 0x4c3   :  { %4161 = vmatpush.bf16.msra.mxu0 %v7081_v51  ;;  %v6556_v42 = vld [vmem:[#allocation2 + $0xa8] sm:$0xf]  ;;  %v6921_v51 = vor.u32 %v7650_v14, %v6918_v52  ;;  %v6902_v14 = vld [vmem:[%s11255_s6 + $0x270] sm:$0xf0] }
 0x4c4   :  { %2847 = vst [vmem:[#allocation2 + $0xb8] sm:$0xff] %v2815_v63  ;;  %v7046_v63 = vld [vmem:[%s11255_s6 + $0x390] sm:$0xf0] }
 0x4c5   :  { %v3905_v54 = vpop.f32.mrf.mxu2  ;;  %v2718_v6 = vpop.f32.mrf.mxu0  ;;  %4112 = vmatpush.bf16.msra.mxu3 %v6953_v11  ;;  %v7719_v11 = vld [vmem:[#allocation2 + $0xac] sm:$0xf] }
 0x4c6   :  { %v10114_v56 = vadd.f32 %v3905_v54, %v3856_v59  ;;  %v2719_v27 = vadd.f32 %v2718_v6, %v9902_v34  ;;  %v3858_v24 = vpop.f32.mrf.mxu1  ;;  %v7062_v59 = vld [vmem:[%s11255_s6 + $0x3b0] sm:$0xf0]  ;;  %v7049_v54 = vor.u32 %v7682_v23, %v7046_v63  ;;  %v2672_v6 = vadd.f32 %v2671_v7, %v9895_v30  ;;  %v7646_v7 = vld [vmem:[%s11255_s6 + $0x264] sm:$0xf]  ;;  %v2674_v52 = vpop.f32.mrf.mxu3 }
 0x4c7   :  { %v7065_v8 = vor.u32 %v7686_v10, %v7062_v59 }
 0x4c8   :  { %v2779_v0 = vmax.f32 %v2719_v27, 0.0  ;;  %v2782_v23 = vmax.f32 %v2672_v6, 0.0  ;;  %v7014_v6 = vld [vmem:[%s11255_s6 + $0x350] sm:$0xf0] }
 0x4c9   :  { %4113 = vmatpush.bf16.msra.mxu3 %v6937_v5  ;;  %4162 = vmatpush.bf16.msra.mxu0 %v7065_v8  ;;  %v7030_v8 = vld [vmem:[%s11255_s6 + $0x370] sm:$0xf0] }
 0x4ca   :  { %v2817_v26 = vpack.c.bf16 %v2779_v0, %v2778_v60  ;;  %v6905_v0 = vor.u32 %v7646_v7, %v6902_v14 }
 0x4cb   :  { %v7721_v43 = vld [vmem:[#allocation2 + $0xb4] sm:$0xf0]  ;;  %v6558_v21 = vld [vmem:[#allocation2 + $0xb8] sm:$0xf0] }
 0x4cc   :  { %2849 = vst [vmem:[#allocation2 + $0xc8] sm:$0xff] %v2817_v26  ;;  %v10142_v27 = vor.u32 %v7721_v43, %v6556_v42  ;;  %v10144_v40 = vor.u32 %v7719_v11, %v6558_v21  ;;  %v2675_v42 = vadd.f32 %v2674_v52, %v9895_v30  ;;  %v7642_v11 = vld [vmem:[%s11255_s6 + $0x244] sm:$0xf]  ;;  %v6886_v21 = vld [vmem:[%s11255_s6 + $0x250] sm:$0xf0] }
 0x4cd   :  { %v3907_v32 = vpop.f32.mrf.mxu2  ;;  %v2720_v10 = vpop.f32.mrf.mxu0  ;;  %4114 = vmatpush.bf16.msra.mxu3 %v6921_v51  ;;  %4163 = vmatpush.bf16.msra.mxu0 %v7049_v54  ;;  %v7674_v51 = vld [vmem:[%s11255_s6 + $0x344] sm:$0xf]  ;;  %v6889_v54 = vor.u32 %v7642_v11, %v6886_v21 }
 0x4ce   :  { %11374 = vst [vmem:[#allocation6_spill] sm:$0xff] %v10144_v40  ;;  %v10146_v59 = vadd.f32 %v3907_v32, %v3858_v24  ;;  %v2721_v60 = vadd.f32 %v2720_v10, %v9902_v34  ;;  %v3861_v5 = vpop.f32.mrf.mxu1  ;;  %3948 = vmatmul.bf16.gmra.mxu3 %v10142_v27  ;;  %3997 = vmatmul.bf16.gmra.mxu0 %v10144_v40  ;;  %v7678_v24 = vld [vmem:[%s11255_s6 + $0x364] sm:$0xf]  ;;  %v2786_v10 = vmax.f32 %v2675_v42, 0.0 }
 0x4cf   :  { %v7033_v26 = vor.u32 %v7678_v24, %v7030_v8  ;;  %v7017_v32 = vor.u32 %v7674_v51, %v7014_v6  ;;  %v6870_v8 = vld [vmem:[%s11255_s6 + $0x230] sm:$0xf0]  ;;  %v7634_v6 = vld [vmem:[%s11255_s6 + $0x204] sm:$0xf] }
 0x4d0   :  { %11375 = vst [vmem:[#allocation7_spill] sm:$0xff] %v10146_v59  ;;  %v2783_v63 = vmax.f32 %v2721_v60, 0.0 }
 0x4d1   :  { %4056 = vmatmul.bf16.gmra.mxu1 %v9842_v2  ;;  %4115 = vmatpush.bf16.msra.mxu3 %v6905_v0  ;;  %v7638_v0 = vld [vmem:[%s11255_s6 + $0x224] sm:$0xf] }
 0x4d2   :  { %v2819_v43 = vpack.c.bf16 %v2783_v63, %v2782_v23  ;;  %4105 = vmatmul.bf16.gmra.mxu2 %v9844_v3  ;;  %4164 = vmatpush.bf16.msra.mxu0 %v7033_v26  ;;  %v7670_v23 = vld [vmem:[%s11255_s6 + $0x324] sm:$0xf]  ;;  %v6873_v63 = vor.u32 %v7638_v0, %v6870_v8 }
 0x4d3   :  { %v6572_v11 = vld [vmem:[#allocation2 + $0xc8] sm:$0xf]  ;;  %v7723_v21 = vld [vmem:[#allocation2 + $0xcc] sm:$0xf] }
 0x4d4   :  { %2851 = vst [vmem:[#allocation2 + $0xd8] sm:$0xff] %v2819_v43  ;;  %v2676_v43 = vpop.f32.mrf.mxu3 }
 0x4d5   :  { %v3910_v60 = vpop.f32.mrf.mxu2  ;;  %v2723_v7 = vpop.f32.mrf.mxu0  ;;  %4116 = vmatpush.bf16.msra.mxu3 %v6889_v54  ;;  %v6854_v54 = vld [vmem:[%s11255_s6 + $0x210] sm:$0xf0]  ;;  %v2677_v0 = vadd.f32 %v2676_v43, %v9895_v30 }
 0x4d6   :  { %v10178_v14 = vadd.f32 %v3910_v60, %v3861_v5  ;;  %v2724_v24 = vadd.f32 %v2723_v7, %v9902_v34  ;;  %v3863_v52 = vpop.f32.mrf.mxu1  ;;  %4165 = vmatpush.bf16.msra.mxu0 %v7017_v32  ;;  %v6998_v5 = vld [vmem:[%s11255_s6 + $0x330] sm:$0xf0]  ;;  %v7666_v32 = vld [vmem:[%s11255_s6 + $0x304] sm:$0xf] }
 0x4d7   :  { %v7001_v42 = vor.u32 %v7670_v23, %v6998_v5  ;;  %v2790_v30 = vmax.f32 %v2677_v0, 0.0 }
 0x4d8   :  { %11376 = vst [vmem:[#allocation8_spill] sm:$0xff] %v10178_v14  ;;  %v2787_v26 = vmax.f32 %v2724_v24, 0.0  ;;  %v6857_v24 = vor.u32 %v7634_v6, %v6854_v54 }
 0x4d9   :  { %4117 = vmatpush.bf16.msra.mxu3 %v6873_v63 }
 0x4da   :  { %v2821_v51 = vpack.c.bf16 %v2787_v26, %v2786_v10  ;;  %4166 = vmatpush.bf16.msra.mxu0 %v7001_v42  ;;  %v6982_v10 = vld [vmem:[%s11255_s6 + $0x310] sm:$0xf0] }
 0x4db   :  { %v7725_v60 = vld [vmem:[#allocation2 + $0xd4] sm:$0xf0]  ;;  %v6574_v7 = vld [vmem:[#allocation2 + $0xd8] sm:$0xf0]  ;;  %v6985_v5 = vor.u32 %v7666_v32, %v6982_v10 }
 0x4dc   :  { %2853 = vst [vmem:[#allocation2 + $0xe8] sm:$0xff] %v2821_v51  ;;  %v10206_v8 = vor.u32 %v7725_v60, %v6572_v11  ;;  %v10208_v23 = vor.u32 %v7723_v21, %v6574_v7 }
 0x4dd   :  { %v3912_v26 = vpop.f32.mrf.mxu2  ;;  %v2725_v14 = vpop.f32.mrf.mxu0  ;;  %4118 = vmatpush.bf16.msra.mxu3 %v6857_v24 }
 0x4de   :  { %v10210_v59 = vadd.f32 %v3912_v26, %v3863_v52  ;;  %v2726_v63 = vadd.f32 %v2725_v14, %v9902_v34  ;;  %3953 = vmatmul.bf16.gmra.mxu3 %v10206_v8  ;;  %4002 = vmatmul.bf16.gmra.mxu0 %v10208_v23  ;;  %v4022_v42 = vpop.f32.mrf.mxu1 }
 0x4df   :  { %4167 = vmatpush.bf16.msra.mxu0 %v6985_v5 }
 0x4e0   :  { %v2791_v43 = vmax.f32 %v2726_v63, 0.0 }
 0x4e1   :  { %4217 = vmatmul.bf16.vlgmr.msrb.gmra.mxu1 %v9613_v44 }
 0x4e2   :  { %v2823_v11 = vpack.c.bf16 %v2791_v43, %v2790_v30  ;;  %4266 = vmatmul.bf16.vlgmr.msrb.gmra.mxu2 %v9615_v22 }
 0x4e3   :  { %v6588_v34 = vld [vmem:[#allocation2 + $0xe8] sm:$0xf]  ;;  %v7727_v6 = vld [vmem:[#allocation2 + $0xec] sm:$0xf] }
 0x4e4   :  { %2855 = vst [vmem:[#allocation2 + $0xf8] sm:$0xff] %v2823_v11 }
 0x4e5   :  { %v4071_v21 = vpop.f32.mrf.mxu2 }
 0x4e6   :  { %v10217_v52 = vadd.f32 %v4071_v21, %v4022_v42  ;;  %v4024_v51 = vpop.f32.mrf.mxu1 }
 0x4eb   :  { %v7729_v14 = vld [vmem:[#allocation2 + $0xf4] sm:$0xf0]  ;;  %v6590_v54 = vld [vmem:[#allocation2 + $0xf8] sm:$0xf0] }
 0x4ec   :  { %v10219_v32 = vor.u32 %v7729_v14, %v6588_v34  ;;  %v10221_v60 = vor.u32 %v7727_v6, %v6590_v54 }
 0x4ed   :  { %v4073_v7 = vpop.f32.mrf.mxu2 }
 0x4ee   :  { %11377 = vst [vmem:[#allocation9_spill] sm:$0xff] %v10221_v60  ;;  %v10223_v24 = vadd.f32 %v4073_v7, %v4024_v51  ;;  %3958 = vmatmul.bf16.gmra.mxu3 %v10219_v32  ;;  %4007 = vmatmul.bf16.gmra.mxu0 %v10221_v60  ;;  %v4027_v10 = vpop.f32.mrf.mxu1 }
 0x4f1   :  { %4222 = vmatmul.bf16.gmra.mxu1 %v9630_v9 }
 0x4f2   :  { %4271 = vmatmul.bf16.gmra.mxu2 %v9632_v16 }
 0x4f5   :  { %v4076_v0 = vpop.f32.mrf.mxu2 }
 0x4f6   :  { %v10229_v5 = vadd.f32 %v4076_v0, %v4027_v10  ;;  %v4029_v26 = vpop.f32.mrf.mxu1 }
 0x4f8   :  { %11378 = vst [vmem:[#allocation10_spill] sm:$0xff] %v10229_v5 }
 0x4fb   :  { %v3973_v63 = vpop.f32.mrf.mxu0 }
 0x4fd   :  { %v4078_v42 = vpop.f32.mrf.mxu2 }
 0x4fe   :  { %v10231_v30 = vadd.f32 %v4078_v42, %v4029_v26  ;;  %v4032_v43 = vpop.f32.mrf.mxu1  ;;  %4119 = vmatmul.bf16.vlgmr.msra.gmra.mxu3 %v9918_v57  ;;  %4168 = vmatmul.bf16.vlgmr.msra.gmra.mxu0 %v9920_v28 }
 0x500   :  { %11379 = vst [vmem:[#allocation11_spill] sm:$0xff] %v10231_v30 }
 0x501   :  { %v3924_v11 = vpop.f32.mrf.mxu3  ;;  %4227 = vmatmul.bf16.gmra.mxu1 %v9641_v46 }
 0x502   :  { %v3925_v21 = vadd.f32 %v3924_v11, %v9904_v12  ;;  %4276 = vmatmul.bf16.gmra.mxu2 %v9643_v18 }
 0x503   :  { %v3975_v51 = vpop.f32.mrf.mxu0 }
 0x504   :  { %v10238_v34 = vadd.f32 %v3973_v63, %v3925_v21 }
 0x505   :  { %v4081_v14 = vpop.f32.mrf.mxu2 }
 0x506   :  { %v10240_v6 = vadd.f32 %v4081_v14, %v4032_v43  ;;  %v4034_v54 = vpop.f32.mrf.mxu1 }
 0x508   :  { %11380 = vst [vmem:[#allocation12_spill] sm:$0xff] %v10240_v6 }
 0x509   :  { %v3926_v7 = vpop.f32.mrf.mxu3 }
 0x50a   :  { %v3927_v10 = vadd.f32 %v3926_v7, %v9908_v31 }
 0x50b   :  { %v3978_v0 = vpop.f32.mrf.mxu0 }
 0x50c   :  { %v10243_v26 = vadd.f32 %v3975_v51, %v3927_v10 }
 0x50d   :  { %v4083_v42 = vpop.f32.mrf.mxu2 }
 0x50e   :  { %v10245_v30 = vadd.f32 %v4083_v42, %v4034_v54  ;;  %v4037_v5 = vpop.f32.mrf.mxu1  ;;  %4124 = vmatmul.bf16.gmra.mxu3 %v9934_v50  ;;  %4173 = vmatmul.bf16.gmra.mxu0 %v9936_v45 }
 0x510   :  { %11381 = vst [vmem:[#allocation13_spill] sm:$0xff] %v10245_v30 }
 0x511   :  { %v3929_v63 = vpop.f32.mrf.mxu3  ;;  %4232 = vmatmul.bf16.gmra.mxu1 %v9652_v13 }
 0x512   :  { %v3930_v43 = vadd.f32 %v3929_v63, %v9914_v62  ;;  %4281 = vmatmul.bf16.gmra.mxu2 %v9654_v55  ;;  %v7595_v62 = vld [vmem:[%s11255_s6 + $0xcc] sm:$0xf] }
 0x513   :  { %v3980_v31 = vpop.f32.mrf.mxu0 }
 0x514   :  { %v10254_v11 = vadd.f32 %v3978_v0, %v3930_v43  ;;  %v6718_v0 = vld [vmem:[%s11255_s6 + $0xf8] sm:$0xf0] }
 0x515   :  { %v4086_v21 = vpop.f32.mrf.mxu2 }
 0x516   :  { %v10256_v51 = vadd.f32 %v4086_v21, %v4037_v5  ;;  %v4039_v14 = vpop.f32.mrf.mxu1 }
 0x519   :  { %v3931_v54 = vpop.f32.mrf.mxu3 }
 0x51a   :  { %v3932_v7 = vadd.f32 %v3931_v54, %v9922_v20  ;;  %v7599_v20 = vld [vmem:[%s11255_s6 + $0xec] sm:$0xf] }
 0x51b   :  { %v3983_v10 = vpop.f32.mrf.mxu0  ;;  %v6721_v43 = vor.u32 %v7599_v20, %v6718_v0 }
 0x51c   :  { %v10259_v42 = vadd.f32 %v3980_v31, %v3932_v7  ;;  %v6846_v31 = vld [vmem:[%s11255_s6 + $0x1f8] sm:$0xf0] }
 0x51d   :  { %v4088_v12 = vpop.f32.mrf.mxu2  ;;  %4405 = vmatpush.bf16.msra.mxu1 %v6721_v43 }
 0x51e   :  { %v10261_v30 = vadd.f32 %v4088_v12, %v4039_v14  ;;  %v4042_v6 = vpop.f32.mrf.mxu1  ;;  %4129 = vmatmul.bf16.gmra.mxu3 %v9950_v25  ;;  %4178 = vmatmul.bf16.gmra.mxu0 %v9952_v29  ;;  %v7631_v12 = vld [vmem:[%s11255_s6 + $0x1ec] sm:$0xf] }
 0x51f   :  { %v6849_v14 = vor.u32 %v7631_v12, %v6846_v31  ;;  %v6830_v12 = vld [vmem:[%s11255_s6 + $0x1d8] sm:$0xf0]  ;;  %v7591_v31 = vld [vmem:[%s11255_s6 + $0xac] sm:$0xf] }
 0x521   :  { %v3934_v5 = vpop.f32.mrf.mxu3  ;;  %4237 = vmatmul.bf16.gmra.mxu1 %v9663_v36  ;;  %4454 = vmatpush.bf16.msra.mxu2 %v6849_v14  ;;  %v6686_v14 = vld [vmem:[%s11255_s6 + $0xb8] sm:$0xf0] }
 0x522   :  { %v3935_v63 = vadd.f32 %v3934_v5, %v9930_v19  ;;  %4286 = vmatmul.bf16.gmra.mxu2 %v9665_v48  ;;  %v6702_v19 = vld [vmem:[%s11255_s6 + $0xd8] sm:$0xf0]  ;;  %v7627_v5 = vld [vmem:[%s11255_s6 + $0x1cc] sm:$0xf] }
 0x523   :  { %v3985_v21 = vpop.f32.mrf.mxu0 }
 0x524   :  { %v10282_v54 = vadd.f32 %v3983_v10, %v3935_v63  ;;  %v6705_v10 = vor.u32 %v7595_v62, %v6702_v19  ;;  %v6833_v63 = vor.u32 %v7627_v5, %v6830_v12  ;;  %v6814_v19 = vld [vmem:[%s11255_s6 + $0x1b8] sm:$0xf0] }
 0x525   :  { %v4091_v7 = vpop.f32.mrf.mxu2 }
 0x526   :  { %v10293_v20 = vadd.f32 %v4091_v7, %v4042_v6  ;;  %v4044_v0 = vpop.f32.mrf.mxu1  ;;  %4406 = vmatpush.bf16.msra.mxu1 %v6705_v10  ;;  %4455 = vmatpush.bf16.msra.mxu2 %v6833_v63  ;;  %v7623_v6 = vld [vmem:[%s11255_s6 + $0x1ac] sm:$0xf]  ;;  %v6689_v7 = vor.u32 %v7591_v31, %v6686_v14 }
 0x527   :  { %v6817_v10 = vor.u32 %v7623_v6, %v6814_v19  ;;  %v6798_v6 = vld [vmem:[%s11255_s6 + $0x198] sm:$0xf0] }
 0x528   :  { %11382 = vst [vmem:[#allocation14_spill] sm:$0xff] %v10293_v20  ;;  %v7587_v20 = vld [vmem:[%s11255_s6 + $0x8c] sm:$0xf] }
 0x529   :  { %v3936_v43 = vpop.f32.mrf.mxu3 }
 0x52a   :  { %v3937_v62 = vadd.f32 %v3936_v43, %v9938_v58  ;;  %4407 = vmatpush.bf16.msra.mxu1 %v6689_v7  ;;  %4456 = vmatpush.bf16.msra.mxu2 %v6817_v10  ;;  %v6670_v58 = vld [vmem:[%s11255_s6 + $0x98] sm:$0xf0]  ;;  %v7619_v43 = vld [vmem:[%s11255_s6 + $0x18c] sm:$0xf] }
 0x52b   :  { %v3988_v5 = vpop.f32.mrf.mxu0  ;;  %v6801_v7 = vor.u32 %v7619_v43, %v6798_v6  ;;  %v7615_v10 = vld [vmem:[%s11255_s6 + $0x16c] sm:$0xf]  ;;  %v6782_v43 = vld [vmem:[%s11255_s6 + $0x178] sm:$0xf0] }
 0x52c   :  { %v10311_v12 = vadd.f32 %v3985_v21, %v3937_v62  ;;  %v6673_v21 = vor.u32 %v7587_v20, %v6670_v58  ;;  %v6654_v20 = vld [vmem:[%s11255_s6 + $0x78] sm:$0xf0]  ;;  %v6785_v6 = vor.u32 %v7615_v10, %v6782_v43  ;;  %v7575_v43 = vld [vmem:[%s11255_s6 + $0x2c] sm:$0xf] }
 0x52d   :  { %v4093_v63 = vpop.f32.mrf.mxu2  ;;  %v6766_v10 = vld [vmem:[%s11255_s6 + $0x158] sm:$0xf0] }
 0x52e   :  { %v10322_v31 = vadd.f32 %v4093_v63, %v4044_v0  ;;  %v4047_v14 = vpop.f32.mrf.mxu1  ;;  %4134 = vmatmul.bf16.gmra.mxu3 %v10002_v47  ;;  %4183 = vmatmul.bf16.gmra.mxu0 %v10004_v1  ;;  %v7583_v0 = vld [vmem:[%s11255_s6 + $0x6c] sm:$0xf] }
 0x52f   :  { %4408 = vmatpush.bf16.msra.mxu1 %v6673_v21  ;;  %4457 = vmatpush.bf16.msra.mxu2 %v6801_v7  ;;  %v6657_v58 = vor.u32 %v7583_v0, %v6654_v20 }
 0x530   :  { %11383 = vst [vmem:[#allocation15_spill] sm:$0xff] %v10322_v31  ;;  %v7579_v31 = vld [vmem:[%s11255_s6 + $0x4c] sm:$0xf] }
 0x531   :  { %v3939_v19 = vpop.f32.mrf.mxu3  ;;  %4242 = vmatmul.bf16.gmra.mxu1 %v9722_v49 }
 0x532   :  { %v3940_v63 = vadd.f32 %v3939_v19, %v9946_v35  ;;  %4291 = vmatmul.bf16.gmra.mxu2 %v9724_v37  ;;  %v6638_v35 = vld [vmem:[%s11255_s6 + $0x58] sm:$0xf0]  ;;  %v7611_v19 = vld [vmem:[%s11255_s6 + $0x14c] sm:$0xf] }
 0x533   :  { %v3990_v21 = vpop.f32.mrf.mxu0  ;;  %4409 = vmatpush.bf16.msra.mxu1 %v6657_v58  ;;  %4458 = vmatpush.bf16.msra.mxu2 %v6785_v6  ;;  %v6622_v6 = vld [vmem:[%s11255_s6 + $0x38] sm:$0xf0] }
 0x534   :  { %v10346_v7 = vadd.f32 %v3988_v5, %v3940_v63  ;;  %v6641_v5 = vor.u32 %v7579_v31, %v6638_v35  ;;  %v6769_v63 = vor.u32 %v7611_v19, %v6766_v10  ;;  %v7607_v31 = vld [vmem:[%s11255_s6 + $0x12c] sm:$0xf]  ;;  %v6750_v35 = vld [vmem:[%s11255_s6 + $0x138] sm:$0xf0] }
 0x535   :  { %v4096_v62 = vpop.f32.mrf.mxu2 }
 0x536   :  { %v10357_v0 = vadd.f32 %v4096_v62, %v4047_v14  ;;  %v4049_v20 = vpop.f32.mrf.mxu1  ;;  %v6625_v62 = vor.u32 %v7575_v43, %v6622_v6 }
 0x537   :  { %4410 = vmatpush.bf16.msra.mxu1 %v6641_v5  ;;  %4459 = vmatpush.bf16.msra.mxu2 %v6769_v63  ;;  %v6753_v5 = vor.u32 %v7607_v31, %v6750_v35  ;;  %v6734_v31 = vld [vmem:[%s11255_s6 + $0x118] sm:$0xf0] }
 0x538   :  { %11384 = vst [vmem:[#allocation16_spill] sm:$0xff] %v10357_v0  ;;  %v7571_v0 = vld [vmem:[%s11255_s6 + $0xc] sm:$0xf] }
 0x539   :  { %v3941_v58 = vpop.f32.mrf.mxu3 }
 0x53a   :  { %v3942_v14 = vadd.f32 %v3941_v58, %v9954_v53  ;;  %v6606_v53 = vld [vmem:[%s11255_s6 + $0x18] sm:$0xf0]  ;;  %v7603_v58 = vld [vmem:[%s11255_s6 + $0x10c] sm:$0xf] }
 0x53b   :  { %v3993_v19 = vpop.f32.mrf.mxu0  ;;  %4411 = vmatpush.bf16.msra.mxu1 %v6625_v62  ;;  %4460 = vmatpush.bf16.msra.mxu2 %v6753_v5  ;;  %v7665_v62 = vld [vmem:[%s11255_s6 + $0x2f4] sm:$0xf0]  ;;  %v6737_v35 = vor.u32 %v7603_v58, %v6734_v31  ;;  %v6956_v58 = vld [vmem:[%s11255_s6 + $0x2c8] sm:$0xf] }
 0x53c   :  { %v10375_v10 = vadd.f32 %v3990_v21, %v3942_v14  ;;  %v6609_v21 = vor.u32 %v7571_v0, %v6606_v53  ;;  %v6972_v14 = vld [vmem:[%s11255_s6 + $0x2e8] sm:$0xf]  ;;  %v7661_v31 = vld [vmem:[%s11255_s6 + $0x2d4] sm:$0xf0] }
 0x53d   :  { %v4098_v63 = vpop.f32.mrf.mxu2  ;;  %v6973_v5 = vor.u32 %v7665_v62, %v6972_v14  ;;  %v7100_v0 = vld [vmem:[%s11255_s6 + $0x3e8] sm:$0xf]  ;;  %v6957_v62 = vor.u32 %v7661_v31, %v6956_v58 }
 0x53e   :  { %v10386_v43 = vadd.f32 %v4098_v63, %v4049_v20  ;;  %v4052_v6 = vpop.f32.mrf.mxu1  ;;  %4139 = vmatmul.bf16.gmra.mxu3 %v10066_v41  ;;  %4188 = vmatmul.bf16.gmra.mxu0 %v10068_v61  ;;  %v7697_v63 = vld [vmem:[%s11255_s6 + $0x3f4] sm:$0xf0]  ;;  %v6940_v20 = vld [vmem:[%s11255_s6 + $0x2a8] sm:$0xf] }
 0x53f   :  { %4412 = vmatpush.bf16.msra.mxu1 %v6609_v21  ;;  %v7101_v53 = vor.u32 %v7697_v63, %v7100_v0  ;;  %4461 = vmatpush.bf16.msra.mxu2 %v6737_v35  ;;  %v7084_v21 = vld [vmem:[%s11255_s6 + $0x3c8] sm:$0xf] }
 0x540   :  { %11385 = vst [vmem:[#allocation17_spill] sm:$0xff] %v10386_v43  ;;  %4307 = vmatpush.bf16.msrb.mxu3 %v6973_v5  ;;  %v7068_v58 = vld [vmem:[%s11255_s6 + $0x3a8] sm:$0xf] }
 0x541   :  { %v3944_v43 = vpop.f32.mrf.mxu3  ;;  %4247 = vmatmul.bf16.gmra.mxu1 %v9775_v39  ;;  %4356 = vmatpush.bf16.msrb.mxu0 %v7101_v53  ;;  %v7657_v53 = vld [vmem:[%s11255_s6 + $0x2b4] sm:$0xf0] }
 0x542   :  { %v3945_v61 = vadd.f32 %v3944_v43, %v9983_v38  ;;  %4296 = vmatmul.bf16.gmra.mxu2 %v9777_v15  ;;  %v7693_v38 = vld [vmem:[%s11255_s6 + $0x3d4] sm:$0xf0] }
 0x543   :  { %v3995_v14 = vpop.f32.mrf.mxu0  ;;  %v7085_v35 = vor.u32 %v7693_v38, %v7084_v21  ;;  %v7653_v38 = vld [vmem:[%s11255_s6 + $0x294] sm:$0xf0] }
 0x544   :  { %v10422_v43 = vadd.f32 %v3993_v19, %v3945_v61  ;;  %4308 = vmatpush.bf16.msrb.mxu3 %v6957_v62  ;;  %v6941_v61 = vor.u32 %v7657_v53, %v6940_v20  ;;  %v7689_v19 = vld [vmem:[%s11255_s6 + $0x3b4] sm:$0xf0]  ;;  %v6924_v62 = vld [vmem:[%s11255_s6 + $0x288] sm:$0xf] }
 0x545   :  { %v4101_v5 = vpop.f32.mrf.mxu2  ;;  %4357 = vmatpush.bf16.msrb.mxu0 %v7085_v35  ;;  %v7052_v20 = vld [vmem:[%s11255_s6 + $0x388] sm:$0xf] }
 0x546   :  { %v10424_v0 = vadd.f32 %v4101_v5, %v4052_v6  ;;  %v4054_v63 = vpop.f32.mrf.mxu1  ;;  %v7069_v6 = vor.u32 %v7689_v19, %v7068_v58  ;;  %v6925_v5 = vor.u32 %v7653_v38, %v6924_v62  ;;  %v7649_v62 = vld [vmem:[%s11255_s6 + $0x274] sm:$0xf0] }
 0x547   :  { %v7681_v38 = vld [vmem:[%s11255_s6 + $0x374] sm:$0xf0] }
 0x548   :  { %11386 = vst [vmem:[#allocation18_spill] sm:$0xff] %v10424_v0  ;;  %4309 = vmatpush.bf16.msrb.mxu3 %v6941_v61 }
 0x549   :  { %v3946_v31 = vpop.f32.mrf.mxu3  ;;  %4358 = vmatpush.bf16.msrb.mxu0 %v7069_v6  ;;  %v6908_v6 = vld [vmem:[%s11255_s6 + $0x268] sm:$0xf] }
 0x54a   :  { %v3947_v21 = vadd.f32 %v3946_v31, %v10015_v33  ;;  %v7685_v33 = vld [vmem:[%s11255_s6 + $0x394] sm:$0xf0] }
 0x54b   :  { %v3998_v35 = vpop.f32.mrf.mxu0  ;;  %v7053_v58 = vor.u32 %v7685_v33, %v7052_v20 }
 0x54c   :  { %v10451_v53 = vadd.f32 %v3995_v14, %v3947_v21  ;;  %v7036_v14 = vld [vmem:[%s11255_s6 + $0x368] sm:$0xf]  ;;  %4310 = vmatpush.bf16.msrb.mxu3 %v6925_v5  ;;  %v6909_v21 = vor.u32 %v7649_v62, %v6908_v6  ;;  %v7645_v5 = vld [vmem:[%s11255_s6 + $0x254] sm:$0xf0] }
 0x54d   :  { %v4103_v61 = vpop.f32.mrf.mxu2  ;;  %4359 = vmatpush.bf16.msrb.mxu0 %v7053_v58  ;;  %v7037_v20 = vor.u32 %v7681_v38, %v7036_v14  ;;  %v7020_v58 = vld [vmem:[%s11255_s6 + $0x348] sm:$0xf]  ;;  %v7677_v14 = vld [vmem:[%s11255_s6 + $0x354] sm:$0xf0] }
 0x54e   :  { %v10453_v19 = vadd.f32 %v4103_v61, %v4054_v63  ;;  %v4057_v31 = vpop.f32.mrf.mxu1  ;;  %4144 = vmatmul.bf16.gmra.mxu3 %v10142_v27  ;;  %4193 = vmatmul.bf16.gmra.mxu0 %v10144_v40  ;;  %v6892_v61 = vld [vmem:[%s11255_s6 + $0x248] sm:$0xf]  ;;  %v7021_v38 = vor.u32 %v7677_v14, %v7020_v58 }
 0x54f   :  { %v6893_v62 = vor.u32 %v7645_v5, %v6892_v61  ;;  %v6860_v14 = vld [vmem:[%s11255_s6 + $0x208] sm:$0xf] }
 0x550   :  { %11387 = vst [vmem:[#allocation19_spill] sm:$0xff] %v10453_v19  ;;  %4311 = vmatpush.bf16.msrb.mxu3 %v6909_v21  ;;  %v7004_v21 = vld [vmem:[%s11255_s6 + $0x328] sm:$0xf] }
 0x551   :  { %v3949_v33 = vpop.f32.mrf.mxu3  ;;  %4252 = vmatmul.bf16.gmra.mxu1 %v9842_v2  ;;  %4360 = vmatpush.bf16.msrb.mxu0 %v7037_v20  ;;  %v7641_v2 = vld [vmem:[%s11255_s6 + $0x234] sm:$0xf0] }
 0x552   :  { %4301 = vmatmul.bf16.gmra.mxu2 %v9844_v3  ;;  %v6876_v3 = vld [vmem:[%s11255_s6 + $0x228] sm:$0xf] }
 0x553   :  { %v4000_v6 = vpop.f32.mrf.mxu0  ;;  %v6877_v20 = vor.u32 %v7641_v2, %v6876_v3  ;;  %v6988_v2 = vld [vmem:[%s11255_s6 + $0x308] sm:$0xf] }
 0x554   :  { %4312 = vmatpush.bf16.msrb.mxu3 %v6893_v62  ;;  %v7637_v62 = vld [vmem:[%s11255_s6 + $0x214] sm:$0xf0] }
 0x555   :  { %v4106_v63 = vpop.f32.mrf.mxu2  ;;  %4361 = vmatpush.bf16.msrb.mxu0 %v7021_v38 }
 0x556   :  { %v10485_v19 = vadd.f32 %v4106_v63, %v4057_v31  ;;  %v4059_v0 = vpop.f32.mrf.mxu1  ;;  %v7673_v31 = vld [vmem:[%s11255_s6 + $0x334] sm:$0xf0]  ;;  %v3950_v63 = vadd.f32 %v3949_v33, %v10047_v17  ;;  %v6861_v17 = vor.u32 %v7637_v62, %v6860_v14  ;;  %v11389_v14 = vld [vmem:[#allocation7_spill] sm:$0xff] }
 0x557   :  { %v7005_v61 = vor.u32 %v7673_v31, %v7004_v21 }
 0x558   :  { %11388 = vst [vmem:[#allocation20_spill] sm:$0xff] %v10485_v19  ;;  %4313 = vmatpush.bf16.msrb.mxu3 %v6877_v20  ;;  %v3999_v33 = vadd.f32 %v3998_v35, %v3950_v63 }
 0x559   :  { %v3951_v5 = vpop.f32.mrf.mxu3  ;;  %4362 = vmatpush.bf16.msrb.mxu0 %v7005_v61 }
 0x55a   :  { %v3952_v58 = vadd.f32 %v3951_v5, %v10079_v4  ;;  %v7669_v4 = vld [vmem:[%s11255_s6 + $0x314] sm:$0xf0] }
 0x55b   :  { %v4003_v3 = vpop.f32.mrf.mxu0  ;;  %v6989_v21 = vor.u32 %v7669_v4, %v6988_v2 }
 0x55c   :  { %v4001_v38 = vadd.f32 %v4000_v6, %v3952_v58  ;;  %4314 = vmatpush.bf16.msrb.mxu3 %v6861_v17 }
 0x55d   :  { %v4108_v31 = vpop.f32.mrf.mxu2  ;;  %4363 = vmatpush.bf16.msrb.mxu0 %v6989_v21 }
 0x55e   :  { %v10513_v5 = vadd.f32 %v4108_v31, %v4059_v0  ;;  %4149 = vmatmul.bf16.gmra.mxu3 %v10206_v8  ;;  %4198 = vmatmul.bf16.gmra.mxu0 %v10208_v23  ;;  %v4218_v19 = vpop.f32.mrf.mxu1  ;;  %v4621_v40 = vpack.c.bf16 %v4001_v38, %v3999_v33 }
 0x561   :  { %v3954_v20 = vpop.f32.mrf.mxu3  ;;  %4413 = vmatmul.bf16.vlgmr.msra.gmra.mxu1 %v9613_v44 }
 0x562   :  { %4462 = vmatmul.bf16.vlgmr.msra.gmra.mxu2 %v9615_v22  ;;  %v3955_v0 = vadd.f32 %v3954_v20, %v10114_v56  ;;  %v11390_v20 = vld [vmem:[#allocation8_spill] sm:$0xff] }
 0x563   :  { %v4005_v61 = vpop.f32.mrf.mxu0 }
 0x564   :  { %v4004_v4 = vadd.f32 %v4003_v3, %v3955_v0 }
 0x565   :  { %v4267_v35 = vpop.f32.mrf.mxu2 }
 0x566   :  { %v10519_v6 = vadd.f32 %v4267_v35, %v4218_v19  ;;  %v4220_v63 = vpop.f32.mrf.mxu1 }
 0x569   :  { %v3956_v58 = vpop.f32.mrf.mxu3 }
 0x56a   :  { %v3957_v62 = vadd.f32 %v3956_v58, %v11389_v14 }
 0x56b   :  { %v4008_v2 = vpop.f32.mrf.mxu0 }
 0x56c   :  { %v4006_v33 = vadd.f32 %v4005_v61, %v3957_v62 }
 0x56d   :  { %v4269_v17 = vpop.f32.mrf.mxu2 }
 0x56e   :  { %v10523_v38 = vadd.f32 %v4269_v17, %v4220_v63  ;;  %4154 = vmatmul.bf16.gmra.mxu3 %v10219_v32  ;;  %4203 = vmatmul.bf16.gmra.mxu0 %v10221_v60  ;;  %v4223_v44 = vpop.f32.mrf.mxu1  ;;  %v4625_v22 = vpack.c.bf16 %v4006_v33, %v4004_v4 }
 0x571   :  { %v3959_v19 = vpop.f32.mrf.mxu3  ;;  %4418 = vmatmul.bf16.gmra.mxu1 %v9630_v9 }
 0x572   :  { %4467 = vmatmul.bf16.gmra.mxu2 %v9632_v16  ;;  %v3960_v61 = vadd.f32 %v3959_v19, %v11390_v20 }
 0x573   :  { %v4010_v56 = vpop.f32.mrf.mxu0 }
 0x574   :  { %v4009_v58 = vadd.f32 %v4008_v2, %v3960_v61 }
 0x575   :  { %v4272_v21 = vpop.f32.mrf.mxu2 }
 0x576   :  { %v10529_v31 = vadd.f32 %v4272_v21, %v4223_v44  ;;  %v4225_v3 = vpop.f32.mrf.mxu1 }
 0x579   :  { %v3961_v35 = vpop.f32.mrf.mxu3 }
 0x57a   :  { %v3962_v63 = vadd.f32 %v3961_v35, %v10210_v59 }
 0x57b   :  { %v4169_v0 = vpop.f32.mrf.mxu0 }
 0x57c   :  { %v4011_v14 = vadd.f32 %v4010_v56, %v3962_v63 }
 0x57d   :  { %v4274_v62 = vpop.f32.mrf.mxu2 }
 0x57e   :  { %v4629_v4 = vpack.c.bf16 %v4011_v14, %v4009_v58  ;;  %v10533_v33 = vadd.f32 %v4274_v62, %v4225_v3  ;;  %v4228_v9 = vpop.f32.mrf.mxu1  ;;  %4315 = vmatmul.bf16.vlgmr.msrb.gmra.mxu3 %v9918_v57  ;;  %4364 = vmatmul.bf16.vlgmr.msrb.gmra.mxu0 %v9920_v28  ;;  %v11394_v58 = vpack.c.bf16 %v10311_v12, %v10282_v54 }
 0x580   :  { %4642 = vmatpush.bf16.msrb.mxu1 %v4629_v4 }
 0x581   :  { %v4120_v16 = vpop.f32.mrf.mxu3  ;;  %4423 = vmatmul.bf16.gmra.mxu1 %v9641_v46  ;;  %v11391_v46 = vpack.c.bf16 %v10451_v53, %v10422_v43  ;;  %v11393_v43 = vld [vmem:[#allocation10_spill] sm:$0xff] }
 0x582   :  { %v4121_v17 = vadd.f32 %v4120_v16, %v10217_v52  ;;  %4472 = vmatmul.bf16.gmra.mxu2 %v9643_v18 }
 0x583   :  { %v4171_v59 = vpop.f32.mrf.mxu0 }
 0x584   :  { %v10540_v2 = vadd.f32 %v4169_v0, %v4121_v17  ;;  %4643 = vmatpush.bf16.msrb.mxu1 %v4625_v22  ;;  %v11397_v17 = vpack.c.bf16 %v10243_v26, %v10238_v34 }
 0x585   :  { %v4277_v44 = vpop.f32.mrf.mxu2 }
 0x586   :  { %v10542_v19 = vadd.f32 %v4277_v44, %v4228_v9  ;;  %v4230_v56 = vpop.f32.mrf.mxu1  ;;  %v11398_v44 = vld [vmem:[#allocation12_spill] sm:$0xff] }
 0x588   :  { %4644 = vmatpush.bf16.msrb.mxu1 %v4621_v40 }
 0x589   :  { %v4122_v21 = vpop.f32.mrf.mxu3 }
 0x58a   :  { %v4123_v3 = vadd.f32 %v4122_v21, %v10223_v24  ;;  %v11392_v24 = vpack.c.bf16 %v10375_v10, %v10346_v7  ;;  %v11395_v7 = vpack.c.bf16 %v10259_v42, %v10254_v11  ;;  %v11396_v10 = vld [vmem:[#allocation11_spill] sm:$0xff]  ;;  %v11410_v11 = vld [vmem:[#allocation17_spill] sm:$0xff] }
 0x58b   :  { %v4174_v20 = vpop.f32.mrf.mxu0 }
 0x58c   :  { %v10545_v61 = vadd.f32 %v4171_v59, %v4123_v3  ;;  %4645 = vmatpush.bf16.msrb.mxu1 %v11391_v46 }
 0x58d   :  { %v4279_v18 = vpop.f32.mrf.mxu2 }
 0x58e   :  { %v10550_v52 = vadd.f32 %v4279_v18, %v4230_v56  ;;  %v4233_v35 = vpop.f32.mrf.mxu1  ;;  %4320 = vmatmul.bf16.gmra.mxu3 %v9934_v50  ;;  %4369 = vmatmul.bf16.gmra.mxu0 %v9936_v45  ;;  %v11399_v18 = vld [vmem:[#allocation13_spill] sm:$0xff] }
 0x590   :  { %4646 = vmatpush.bf16.msrb.mxu1 %v11392_v24 }
 0x591   :  { %v4125_v22 = vpop.f32.mrf.mxu3  ;;  %4428 = vmatmul.bf16.gmra.mxu1 %v9652_v13 }
 0x592   :  { %v4126_v53 = vadd.f32 %v4125_v22, %v11393_v43  ;;  %4477 = vmatmul.bf16.gmra.mxu2 %v9654_v55 }
 0x593   :  { %v4176_v63 = vpop.f32.mrf.mxu0 }
 0x594   :  { %v10562_v0 = vadd.f32 %v4174_v20, %v4126_v53  ;;  %4647 = vmatpush.bf16.msrb.mxu1 %v11394_v58 }
 0x595   :  { %v4282_v14 = vpop.f32.mrf.mxu2 }
 0x596   :  { %v10567_v62 = vadd.f32 %v4282_v14, %v4233_v35  ;;  %v4235_v4 = vpop.f32.mrf.mxu1 }
 0x598   :  { %4648 = vmatpush.bf16.msrb.mxu1 %v11395_v7 }
 0x599   :  { %v4127_v13 = vpop.f32.mrf.mxu3 }
 0x59a   :  { %v4128_v9 = vadd.f32 %v4127_v13, %v11396_v10 }
 0x59b   :  { %v4179_v16 = vpop.f32.mrf.mxu0 }
 0x59c   :  { %v10573_v55 = vadd.f32 %v4176_v63, %v4128_v9  ;;  %4649 = vmatpush.bf16.msrb.mxu1 %v11397_v17 }
 0x59d   :  { %v4284_v54 = vpop.f32.mrf.mxu2 }
 0x59e   :  { %v10578_v12 = vadd.f32 %v4284_v54, %v4235_v4  ;;  %v4238_v59 = vpop.f32.mrf.mxu1  ;;  %4325 = vmatmul.bf16.gmra.mxu3 %v9950_v25  ;;  %4374 = vmatmul.bf16.gmra.mxu0 %v9952_v29 }
 0x5a1   :  { %v4130_v42 = vpop.f32.mrf.mxu3  ;;  %4433 = vmatmul.bf16.gmra.mxu1 %v9663_v36 }
 0x5a2   :  { %v4131_v56 = vadd.f32 %v4130_v42, %v11398_v44  ;;  %4482 = vmatmul.bf16.gmra.mxu2 %v9665_v48  ;;  %v7635_v42 = vld [vmem:[%s11255_s6 + $0x20c] sm:$0xf] }
 0x5a3   :  { %v4181_v34 = vpop.f32.mrf.mxu0 }
 0x5a4   :  { %v10587_v26 = vadd.f32 %v4179_v16, %v4131_v56  ;;  %v7102_v56 = vld [vmem:[%s11255_s6 + $0x3f8] sm:$0xf0] }
 0x5a5   :  { %v4287_v21 = vpop.f32.mrf.mxu2 }
 0x5a6   :  { %v10589_v3 = vadd.f32 %v4287_v21, %v4238_v59  ;;  %v10591_v20 = vpop.f32.mrf.mxu1  ;;  %v6974_v59 = vld [vmem:[%s11255_s6 + $0x2f8] sm:$0xf0] }
 0x5a9   :  { %v4132_v46 = vpop.f32.mrf.mxu3 }
 0x5aa   :  { %v4133_v35 = vadd.f32 %v4132_v46, %v11399_v18  ;;  %v11401_v46 = vld [vmem:[#allocation14_spill] sm:$0xff] }
 0x5ab   :  { %v4184_v24 = vpop.f32.mrf.mxu0 }
 0x5ac   :  { %v10594_v22 = vadd.f32 %v4181_v34, %v4133_v35  ;;  %v7659_v35 = vld [vmem:[%s11255_s6 + $0x2cc] sm:$0xf] }
 0x5ad   :  { %v10596_v43 = vpop.f32.mrf.mxu2 }
 0x5ae   :  { %v4243_v36 = vpop.f32.mrf.mxu1  ;;  %4330 = vmatmul.bf16.gmra.mxu3 %v10002_v47  ;;  %4379 = vmatmul.bf16.gmra.mxu0 %v10004_v1 }
 0x5b1   :  { %v4135_v53 = vpop.f32.mrf.mxu3  ;;  %4438 = vmatmul.bf16.gmra.mxu1 %v9722_v49 }
 0x5b2   :  { %v4136_v63 = vadd.f32 %v4135_v53, %v10256_v51  ;;  %4487 = vmatmul.bf16.gmra.mxu2 %v9724_v37  ;;  %v11400_v37 = vld [vmem:[#allocation5_spill] sm:$0xff]  ;;  %v7663_v51 = vld [vmem:[%s11255_s6 + $0x2ec] sm:$0xf] }
 0x5b3   :  { %v4186_v58 = vpop.f32.mrf.mxu0  ;;  %v6977_v44 = vor.u32 %v7663_v51, %v6974_v59  ;;  %v7655_v51 = vld [vmem:[%s11255_s6 + $0x2ac] sm:$0xf]  ;;  %v6942_v59 = vld [vmem:[%s11255_s6 + $0x2b8] sm:$0xf0] }
 0x5b4   :  { %v10605_v14 = vadd.f32 %v4184_v24, %v4136_v63  ;;  %v6958_v24 = vld [vmem:[%s11255_s6 + $0x2d8] sm:$0xf0] }
 0x5b5   :  { %v4292_v4 = vpop.f32.mrf.mxu2  ;;  %4503 = vmatpush.bf16.msra.mxu3 %v6977_v44  ;;  %v7086_v63 = vld [vmem:[%s11255_s6 + $0x3d8] sm:$0xf0] }
 0x5b6   :  { %v10607_v7 = vadd.f32 %v4292_v4, %v4243_v36  ;;  %v10609_v13 = vpop.f32.mrf.mxu1  ;;  %v7691_v36 = vld [vmem:[%s11255_s6 + $0x3cc] sm:$0xf] }
 0x5b9   :  { %v4137_v10 = vpop.f32.mrf.mxu3 }
 0x5ba   :  { %v4138_v9 = vadd.f32 %v4137_v10, %v10261_v30  ;;  %v7695_v30 = vld [vmem:[%s11255_s6 + $0x3ec] sm:$0xf] }
 0x5bb   :  { %v4189_v16 = vpop.f32.mrf.mxu0  ;;  %v7105_v34 = vor.u32 %v7695_v30, %v7102_v56  ;;  %v6945_v30 = vor.u32 %v7655_v51, %v6942_v59  ;;  %v11404_v59 = vld [vmem:[#allocation6_spill] sm:$0xff] }
 0x5bc   :  { %v10612_v17 = vadd.f32 %v4186_v58, %v4138_v9  ;;  %v7089_v58 = vor.u32 %v7691_v36, %v7086_v63 }
 0x5bd   :  { %v10614_v54 = vpop.f32.mrf.mxu2  ;;  %4552 = vmatpush.bf16.msra.mxu0 %v7105_v34  ;;  %v11402_v34 = vld [vmem:[#allocation15_spill] sm:$0xff] }
 0x5be   :  { %v4248_v49 = vpop.f32.mrf.mxu1  ;;  %4335 = vmatmul.bf16.gmra.mxu3 %v10066_v41  ;;  %4384 = vmatmul.bf16.gmra.mxu0 %v11400_v37 }
 0x5c1   :  { %v4140_v21 = vpop.f32.mrf.mxu3  ;;  %4443 = vmatmul.bf16.gmra.mxu1 %v9775_v39  ;;  %v6961_v39 = vor.u32 %v7659_v35, %v6958_v24  ;;  %4553 = vmatpush.bf16.msra.mxu0 %v7089_v58  ;;  %v7683_v35 = vld [vmem:[%s11255_s6 + $0x38c] sm:$0xf] }
 0x5c2   :  { %v4141_v18 = vadd.f32 %v4140_v21, %v11401_v46  ;;  %4492 = vmatmul.bf16.gmra.mxu2 %v9777_v15  ;;  %v7651_v46 = vld [vmem:[%s11255_s6 + $0x28c] sm:$0xf] }
 0x5c3   :  { %v4191_v53 = vpop.f32.mrf.mxu0  ;;  %4504 = vmatpush.bf16.msra.mxu3 %v6961_v39  ;;  %v7054_v39 = vld [vmem:[%s11255_s6 + $0x398] sm:$0xf0] }
 0x5c4   :  { %v10647_v15 = vadd.f32 %v4189_v16, %v4141_v18  ;;  %v7687_v16 = vld [vmem:[%s11255_s6 + $0x3ac] sm:$0xf]  ;;  %v6926_v18 = vld [vmem:[%s11255_s6 + $0x298] sm:$0xf0]  ;;  %v7057_v58 = vor.u32 %v7683_v35, %v7054_v39 }
 0x5c5   :  { %v4297_v4 = vpop.f32.mrf.mxu2  ;;  %v6929_v36 = vor.u32 %v7651_v46, %v6926_v18  ;;  %v11405_v46 = vld [vmem:[#allocation3_spill] sm:$0xff]  ;;  %v11406_v18 = vld [vmem:[#allocation4_spill] sm:$0xff] }
 0x5c6   :  { %v10649_v10 = vadd.f32 %v4297_v4, %v4248_v49  ;;  %v10651_v9 = vpop.f32.mrf.mxu1  ;;  %v7070_v49 = vld [vmem:[%s11255_s6 + $0x3b8] sm:$0xf0]  ;;  %v7643_v35 = vld [vmem:[%s11255_s6 + $0x24c] sm:$0xf] }
 0x5c7   :  { %v7073_v44 = vor.u32 %v7687_v16, %v7070_v49  ;;  %4505 = vmatpush.bf16.msra.mxu3 %v6945_v30  ;;  %v7647_v16 = vld [vmem:[%s11255_s6 + $0x26c] sm:$0xf]  ;;  %v6910_v30 = vld [vmem:[%s11255_s6 + $0x278] sm:$0xf0] }
 0x5c8   :  { %v7675_v39 = vld [vmem:[%s11255_s6 + $0x34c] sm:$0xf] }
 0x5c9   :  { %v4142_v56 = vpop.f32.mrf.mxu3  ;;  %4554 = vmatpush.bf16.msra.mxu0 %v7073_v44  ;;  %v6913_v44 = vor.u32 %v7647_v16, %v6910_v30  ;;  %v7022_v30 = vld [vmem:[%s11255_s6 + $0x358] sm:$0xf0] }
 0x5ca   :  { %v4143_v21 = vadd.f32 %v4142_v56, %v11402_v34  ;;  %v7038_v56 = vld [vmem:[%s11255_s6 + $0x378] sm:$0xf0] }
 0x5cb   :  { %v4194_v24 = vpop.f32.mrf.mxu0  ;;  %4506 = vmatpush.bf16.msra.mxu3 %v6929_v36  ;;  %v6894_v36 = vld [vmem:[%s11255_s6 + $0x258] sm:$0xf0] }
 0x5cc   :  { %v10678_v63 = vadd.f32 %v4191_v53, %v4143_v21  ;;  %v7679_v53 = vld [vmem:[%s11255_s6 + $0x36c] sm:$0xf]  ;;  %v6897_v16 = vor.u32 %v7643_v35, %v6894_v36  ;;  %v7006_v36 = vld [vmem:[%s11255_s6 + $0x338] sm:$0xf0] }
 0x5cd   :  { %v10680_v4 = vpop.f32.mrf.mxu2  ;;  %4555 = vmatpush.bf16.msra.mxu0 %v7057_v58  ;;  %v7041_v34 = vor.u32 %v7679_v53, %v7038_v56  ;;  %v7025_v53 = vor.u32 %v7675_v39, %v7022_v30  ;;  %v11409_v39 = vld [vmem:[#allocation16_spill] sm:$0xff] }
 0x5ce   :  { %v10682_v51 = vpop.f32.mrf.mxu1  ;;  %4340 = vmatmul.bf16.gmra.mxu3 %v10142_v27  ;;  %4389 = vmatmul.bf16.gmra.mxu0 %v11404_v59 }
 0x5cf   :  { %11403 = vst [vmem:[#allocation21_spill] sm:$0xff] %v10682_v51  ;;  %4507 = vmatpush.bf16.msra.mxu3 %v6913_v44 }
 0x5d1   :  { %v4145_v21 = vpop.f32.mrf.mxu3  ;;  %4448 = vmatmul.bf16.gmra.mxu1 %v11405_v46  ;;  %4556 = vmatpush.bf16.msra.mxu0 %v7041_v34  ;;  %v7639_v46 = vld [vmem:[%s11255_s6 + $0x22c] sm:$0xf] }
 0x5d2   :  { %4497 = vmatmul.bf16.gmra.mxu2 %v11406_v18  ;;  %v6878_v18 = vld [vmem:[%s11255_s6 + $0x238] sm:$0xf0]  ;;  %v7671_v34 = vld [vmem:[%s11255_s6 + $0x32c] sm:$0xf] }
 0x5d3   :  { %v4196_v58 = vpop.f32.mrf.mxu0  ;;  %4508 = vmatpush.bf16.msra.mxu3 %v6897_v16  ;;  %v6881_v35 = vor.u32 %v7639_v46, %v6878_v18  ;;  %v4146_v16 = vadd.f32 %v4145_v21, %v11409_v39  ;;  %v7009_v30 = vor.u32 %v7671_v34, %v7006_v36  ;;  %v7667_v46 = vld [vmem:[%s11255_s6 + $0x30c] sm:$0xf]  ;;  %v6990_v34 = vld [vmem:[%s11255_s6 + $0x318] sm:$0xf0] }
 0x5d5   :  { %v10714_v44 = vpop.f32.mrf.mxu2  ;;  %4557 = vmatpush.bf16.msra.mxu0 %v7025_v53  ;;  %v6862_v53 = vld [vmem:[%s11255_s6 + $0x218] sm:$0xf0] }
 0x5d6   :  { %11407 = vst [vmem:[#allocation7_spill] sm:$0xff] %v10714_v44  ;;  %v10716_v56 = vpop.f32.mrf.mxu1  ;;  %v6865_v21 = vor.u32 %v7635_v42, %v6862_v53  ;;  %v10751_v42 = vld [vmem:[%s11252_s0] sm:$0xff] }
 0x5d7   :  { %11408 = vst [vmem:[#allocation8_spill] sm:$0xff] %v10716_v56  ;;  %4509 = vmatpush.bf16.msra.mxu3 %v6881_v35  ;;  %v6993_v35 = vor.u32 %v7667_v46, %v6990_v34 }
 0x5d9   :  { %v4147_v40 = vpop.f32.mrf.mxu3  ;;  %4558 = vmatpush.bf16.msra.mxu0 %v7009_v30  ;;  %v11414_v30 = vld [vmem:[#allocation18_spill] sm:$0xff] }
 0x5da   :  { %v4148_v48 = vadd.f32 %v4147_v40, %v11410_v11  ;;  %v4195_v40 = vadd.f32 %v4194_v24, %v4146_v16 }
 0x5db   :  { %v4199_v18 = vpop.f32.mrf.mxu0  ;;  %4510 = vmatpush.bf16.msra.mxu3 %v6865_v21  ;;  %v11415_v21 = vld [vmem:[#allocation19_spill] sm:$0xff] }
 0x5dc   :  { %v4197_v11 = vadd.f32 %v4196_v58, %v4148_v48 }
 0x5dd   :  { %v10744_v36 = vpop.f32.mrf.mxu2  ;;  %4559 = vmatpush.bf16.msra.mxu0 %v6993_v35 }
 0x5de   :  { %11411 = vst [vmem:[#allocation10_spill] sm:$0xff] %v10744_v36  ;;  %4345 = vmatmul.bf16.gmra.mxu3 %v10206_v8  ;;  %4394 = vmatmul.bf16.gmra.mxu0 %v10208_v23  ;;  %v4414_v39 = vpop.f32.mrf.mxu1  ;;  %v4622_v49 = vpack.c.bf16 %v4197_v11, %v4195_v40 }
 0x5e1   :  { %v4150_v56 = vpop.f32.mrf.mxu3  ;;  %4650 = vmatmul.bf16.vlgmr.msrb.gmra.mxu1 %v10751_v42 }
 0x5e2   :  { %v4151_v53 = vadd.f32 %v4150_v56, %v11414_v30 }
 0x5e3   :  { %v4201_v48 = vpop.f32.mrf.mxu0 }
 0x5e4   :  { %v4200_v11 = vadd.f32 %v4199_v18, %v4151_v53  ;;  %v11417_v53 = vld [vmem:[#allocation20_spill] sm:$0xff] }
 0x5e5   :  { %v4463_v24 = vpop.f32.mrf.mxu2 }
 0x5e6   :  { %v10754_v58 = vadd.f32 %v4463_v24, %v4414_v39  ;;  %v10756_v16 = vpop.f32.mrf.mxu1  ;;  %v10767_v24 = vld [vmem:[%s11252_s0 + $0x8] sm:$0xff] }
 0x5e7   :  { %11413 = vst [vmem:[#allocation12_spill] sm:$0xff] %v10756_v16 }
 0x5e8   :  { %11412 = vst [vmem:[#allocation11_spill] sm:$0xff] %v10754_v58 }
 0x5e9   :  { %v4152_v46 = vpop.f32.mrf.mxu3 }
 0x5ea   :  { %v4153_v34 = vadd.f32 %v4152_v46, %v11415_v21 }
 0x5eb   :  { %v4204_v40 = vpop.f32.mrf.mxu0 }
 0x5ec   :  { %v4202_v35 = vadd.f32 %v4201_v48, %v4153_v34 }
 0x5ed   :  { %v10760_v36 = vpop.f32.mrf.mxu2 }
 0x5ee   :  { %11416 = vst [vmem:[#allocation13_spill] sm:$0xff] %v10760_v36  ;;  %4350 = vmatmul.bf16.gmra.mxu3 %v10219_v32  ;;  %4399 = vmatmul.bf16.gmra.mxu0 %v10221_v60  ;;  %v4419_v44 = vpop.f32.mrf.mxu1  ;;  %v4626_v51 = vpack.c.bf16 %v4202_v35, %v4200_v11 }
 0x5f1   :  { %v4155_v39 = vpop.f32.mrf.mxu3  ;;  %4655 = vmatmul.bf16.gmra.mxu1 %v10767_v24 }
 0x5f2   :  { %v4156_v46 = vadd.f32 %v4155_v39, %v11417_v53  ;;  %v10783_v39 = vld [vmem:[%s11252_s0 + $0x10] sm:$0xff] }
 0x5f3   :  { %v4206_v56 = vpop.f32.mrf.mxu0 }
 0x5f4   :  { %v4205_v35 = vadd.f32 %v4204_v40, %v4156_v46 }
 0x5f5   :  { %v4468_v30 = vpop.f32.mrf.mxu2 }
 0x5f6   :  { %v10770_v18 = vadd.f32 %v4468_v30, %v4419_v44  ;;  %v10772_v48 = vpop.f32.mrf.mxu1 }
 0x5f9   :  { %v4157_v21 = vpop.f32.mrf.mxu3 }
 0x5fa   :  { %v4158_v34 = vadd.f32 %v4157_v21, %v10513_v5  ;;  %v11418_v21 = vpack.c.bf16 %v10678_v63, %v10647_v15  ;;  %v10811_v15 = vld [vmem:[%s11252_s0 + $0x18] sm:$0xff] }
 0x5fb   :  { %v4365_v11 = vpop.f32.mrf.mxu0 }
 0x5fc   :  { %v4207_v36 = vadd.f32 %v4206_v56, %v4158_v34  ;;  %v11420_v34 = vpack.c.bf16 %v10594_v22, %v10587_v26 }
 0x5fd   :  { %v10776_v16 = vpop.f32.mrf.mxu2 }
 0x5fe   :  { %v4630_v58 = vpack.c.bf16 %v4207_v36, %v4205_v35  ;;  %v4424_v60 = vpop.f32.mrf.mxu1  ;;  %4511 = vmatmul.bf16.vlgmr.msra.gmra.mxu3 %v9918_v57  ;;  %4560 = vmatmul.bf16.vlgmr.msra.gmra.mxu0 %v9920_v28 }
 0x600   :  { %4691 = vmatpush.bf16.msrb.mxu2 %v4630_v58 }
 0x601   :  { %v4316_v44 = vpop.f32.mrf.mxu3  ;;  %4660 = vmatmul.bf16.gmra.mxu1 %v10783_v39 }
 0x602   :  { %v4317_v5 = vadd.f32 %v4316_v44, %v10519_v6 }
 0x603   :  { %v4367_v40 = vpop.f32.mrf.mxu0 }
 0x604   :  { %v10787_v56 = vadd.f32 %v4365_v11, %v4317_v5  ;;  %4692 = vmatpush.bf16.msrb.mxu2 %v4626_v51  ;;  %v11419_v51 = vpack.c.bf16 %v10612_v17, %v10605_v14  ;;  %v11421_v11 = vpack.c.bf16 %v10573_v55, %v10562_v0  ;;  %v10843_v55 = vld [vmem:[%s11252_s0 + $0x20] sm:$0xff] }
 0x605   :  { %v4473_v36 = vpop.f32.mrf.mxu2 }
 0x606   :  { %v10789_v30 = vadd.f32 %v4473_v36, %v4424_v60  ;;  %v10791_v57 = vpop.f32.mrf.mxu1  ;;  %v11422_v36 = vpack.c.bf16 %v10545_v61, %v10540_v2 }
 0x608   :  { %4693 = vmatpush.bf16.msrb.mxu2 %v4622_v49 }
 0x609   :  { %v4318_v28 = vpop.f32.mrf.mxu3 }
 0x60a   :  { %v4319_v58 = vadd.f32 %v4318_v28, %v10523_v38 }
 0x60b   :  { %v4370_v53 = vpop.f32.mrf.mxu0 }
 0x60c   :  { %v10794_v46 = vadd.f32 %v4367_v40, %v4319_v58  ;;  %4694 = vmatpush.bf16.msrb.mxu2 %v11418_v21 }
 0x60d   :  { %v10799_v6 = vpop.f32.mrf.mxu2 }
 0x60e   :  { %4516 = vmatmul.bf16.gmra.mxu3 %v9934_v50  ;;  %4565 = vmatmul.bf16.gmra.mxu0 %v9936_v45  ;;  %v4603_v60 = vpack.c.bf16 %v10794_v46, %v10787_v56  ;;  %v4429_v38 = vpop.f32.mrf.mxu1 }
 0x610   :  { %4695 = vmatpush.bf16.msrb.mxu2 %v11419_v51 }
 0x611   :  { %v4321_v49 = vpop.f32.mrf.mxu3  ;;  %4665 = vmatmul.bf16.gmra.mxu1 %v10811_v15 }
 0x612   :  { %v4322_v50 = vadd.f32 %v4321_v49, %v10529_v31  ;;  %v10862_v49 = vld [vmem:[%s11252_s0 + $0x28] sm:$0xff] }
 0x613   :  { %v4372_v63 = vpop.f32.mrf.mxu0 }
 0x614   :  { %v10815_v45 = vadd.f32 %v4370_v53, %v4322_v50  ;;  %4696 = vmatpush.bf16.msrb.mxu2 %v11420_v34 }
 0x615   :  { %v4478_v14 = vpop.f32.mrf.mxu2 }
 0x616   :  { %v10820_v17 = vadd.f32 %v4478_v14, %v4429_v38  ;;  %v10826_v5 = vpop.f32.mrf.mxu1 }
 0x618   :  { %4697 = vmatpush.bf16.msrb.mxu2 %v11421_v11 }
 0x619   :  { %v4323_v35 = vpop.f32.mrf.mxu3 }
 0x61a   :  { %v4324_v44 = vadd.f32 %v4323_v35, %v10533_v33 }
 0x61b   :  { %v4375_v31 = vpop.f32.mrf.mxu0 }
 0x61c   :  { %v10828_v40 = vadd.f32 %v4372_v63, %v4324_v44  ;;  %4698 = vmatpush.bf16.msrb.mxu2 %v11422_v36 }
 0x61d   :  { %v10833_v26 = vpop.f32.mrf.mxu2 }
 0x61e   :  { %4521 = vmatmul.bf16.gmra.mxu3 %v9950_v25  ;;  %4570 = vmatmul.bf16.gmra.mxu0 %v9952_v29  ;;  %v4607_v0 = vpack.c.bf16 %v10828_v40, %v10815_v45  ;;  %v4434_v25 = vpop.f32.mrf.mxu1  ;;  %v4476_v40 = vadd.f32 %v10799_v6, %v10791_v57 }
 0x61f   :  { %4699 = vmatmul.bf16.vlgmr.msrb.gmra.mxu2 %v10751_v42 }
 0x621   :  { %v4326_v33 = vpop.f32.mrf.mxu3  ;;  %4670 = vmatmul.bf16.gmra.mxu1 %v10843_v55 }
 0x622   :  { %v4327_v2 = vadd.f32 %v4326_v33, %v10542_v19 }
 0x623   :  { %v4377_v61 = vpop.f32.mrf.mxu0 }
 0x624   :  { %v10847_v22 = vadd.f32 %v4375_v31, %v4327_v2 }
 0x625   :  { %v4483_v29 = vpop.f32.mrf.mxu2 }
 0x626   :  { %v10849_v28 = vadd.f32 %v4483_v29, %v4434_v25 }
 0x629   :  { %v4328_v58 = vpop.f32.mrf.mxu3 }
 0x62a   :  { %v4329_v53 = vadd.f32 %v4328_v58, %v10550_v52 }
 0x62b   :  { %v4380_v21 = vpop.f32.mrf.mxu0 }
 0x62c   :  { %v10852_v51 = vadd.f32 %v4377_v61, %v4329_v53 }
 0x62d   :  { %v4485_v57 = vpop.f32.mrf.mxu2 }
 0x62e   :  { %4526 = vmatmul.bf16.gmra.mxu3 %v10002_v47  ;;  %4575 = vmatmul.bf16.gmra.mxu0 %v10004_v1  ;;  %v4611_v19 = vpack.c.bf16 %v10852_v51, %v10847_v22 }
 0x62f   :  { %4704 = vmatmul.bf16.gmra.mxu2 %v10767_v24 }
 0x631   :  { %v4331_v38 = vpop.f32.mrf.mxu3  ;;  %4675 = vmatmul.bf16.gmra.mxu1 %v10862_v49 }
 0x632   :  { %v4332_v52 = vadd.f32 %v4331_v38, %v10567_v62  ;;  %v10879_v62 = vld [vmem:[%s11252_s0 + $0x30] sm:$0xff] }
 0x633   :  { %v4382_v50 = vpop.f32.mrf.mxu0 }
 0x634   :  { %v10866_v63 = vadd.f32 %v4380_v21, %v4332_v52 }
 0x639   :  { %v4333_v47 = vpop.f32.mrf.mxu3 }
 0x63a   :  { %v4334_v1 = vadd.f32 %v4333_v47, %v10578_v12  ;;  %v4300_v47 = vadd.f32 %v10680_v4, %v10651_v9  ;;  %v11426_v9 = vld [vmem:[#allocation8_spill] sm:$0xff]  ;;  %v11427_v4 = vld [vmem:[#allocation10_spill] sm:$0xff] }
 0x63b   :  { %v4385_v34 = vpop.f32.mrf.mxu0 }
 0x63c   :  { %v10869_v14 = vadd.f32 %v4382_v50, %v4334_v1 }
 0x63e   :  { %4531 = vmatmul.bf16.gmra.mxu3 %v10066_v41  ;;  %4580 = vmatmul.bf16.gmra.mxu0 %v11400_v37  ;;  %v4615_v11 = vpack.c.bf16 %v10869_v14, %v10866_v63  ;;  %v4290_v41 = vadd.f32 %v10596_v43, %v10591_v20  ;;  %v4295_v43 = vadd.f32 %v10614_v54, %v10609_v13 }
 0x63f   :  { %4709 = vmatmul.bf16.gmra.mxu2 %v10783_v39 }
 0x641   :  { %v4336_v35 = vpop.f32.mrf.mxu3  ;;  %4680 = vmatmul.bf16.gmra.mxu1 %v10879_v62 }
 0x642   :  { %v4337_v12 = vadd.f32 %v4336_v35, %v10589_v3  ;;  %v10891_v3 = vld [vmem:[%s11252_s0 + $0x38] sm:$0xff] }
 0x643   :  { %v4387_v44 = vpop.f32.mrf.mxu0 }
 0x644   :  { %v4386_v31 = vadd.f32 %v4385_v34, %v4337_v12 }
 0x649   :  { %v4338_v37 = vpop.f32.mrf.mxu3 }
 0x64a   :  { %v4339_v36 = vadd.f32 %v4338_v37, %v4290_v41  ;;  %v11425_v41 = vld [vmem:[#allocation7_spill] sm:$0xff] }
 0x64b   :  { %v4390_v33 = vpop.f32.mrf.mxu0 }
 0x64c   :  { %v4388_v2 = vadd.f32 %v4387_v44, %v4339_v36 }
 0x64e   :  { %4536 = vmatmul.bf16.gmra.mxu3 %v10142_v27  ;;  %4585 = vmatmul.bf16.gmra.mxu0 %v11404_v59  ;;  %v4619_v61 = vpack.c.bf16 %v4388_v2, %v4386_v31  ;;  %v11424_v31 = vld [vmem:[#allocation21_spill] sm:$0xff] }
 0x64f   :  { %4714 = vmatmul.bf16.gmra.mxu2 %v10811_v15  ;;  %v4303_v37 = vadd.f32 %v11425_v41, %v11424_v31  ;;  %v4481_v31 = vadd.f32 %v10833_v26, %v10826_v5 }
 0x651   :  { %v4341_v25 = vpop.f32.mrf.mxu3  ;;  %4685 = vmatmul.bf16.gmra.mxu1 %v10891_v3 }
 0x652   :  { %v4342_v29 = vadd.f32 %v4341_v25, %v10607_v7 }
 0x653   :  { %v4392_v20 = vpop.f32.mrf.mxu0 }
 0x654   :  { %v4391_v53 = vadd.f32 %v4390_v33, %v4342_v29 }
 0x659   :  { %v4343_v27 = vpop.f32.mrf.mxu3 }
 0x65a   :  { %v4344_v58 = vadd.f32 %v4343_v27, %v4295_v43  ;;  %v11428_v27 = vld [vmem:[#allocation11_spill] sm:$0xff] }
 0x65b   :  { %v4395_v59 = vpop.f32.mrf.mxu0 }
 0x65c   :  { %v4393_v21 = vadd.f32 %v4392_v20, %v4344_v58 }
 0x65e   :  { %4541 = vmatmul.bf16.gmra.mxu3 %v10206_v8  ;;  %4590 = vmatmul.bf16.gmra.mxu0 %v10208_v23  ;;  %v4623_v38 = vpack.c.bf16 %v4393_v21, %v4391_v53  ;;  %v11423_v8 = vld [vmem:[#allocation9_spill] sm:$0xff]  ;;  %v11429_v21 = vld [vmem:[#allocation12_spill] sm:$0xff] }
 0x65f   :  { %4719 = vmatmul.bf16.gmra.mxu2 %v10843_v55 }
 0x661   :  { %v4346_v52 = vpop.f32.mrf.mxu3 }
 0x662   :  { %v4347_v13 = vadd.f32 %v4346_v52, %v10649_v10  ;;  %v4305_v10 = vadd.f32 %v11427_v4, %v11426_v9  ;;  %v11430_v52 = vld [vmem:[#allocation13_spill] sm:$0xff] }
 0x663   :  { %v4397_v50 = vpop.f32.mrf.mxu0 }
 0x664   :  { %v4396_v34 = vadd.f32 %v4395_v59, %v4347_v13 }
 0x669   :  { %v4348_v7 = vpop.f32.mrf.mxu3 }
 0x66a   :  { %v4349_v54 = vadd.f32 %v4348_v7, %v4300_v47 }
 0x66b   :  { %v4400_v1 = vpop.f32.mrf.mxu0 }
 0x66c   :  { %v4398_v35 = vadd.f32 %v4397_v50, %v4349_v54  ;;  %v4466_v50 = vadd.f32 %v11430_v52, %v11429_v21 }
 0x66e   :  { %4546 = vmatmul.bf16.gmra.mxu3 %v10219_v32  ;;  %4595 = vmatmul.bf16.gmra.mxu0 %v11423_v8  ;;  %v4627_v23 = vpack.c.bf16 %v4398_v35, %v4396_v34 }
 0x66f   :  { %4724 = vmatmul.bf16.gmra.mxu2 %v10862_v49 }
 0x671   :  { %v4351_v12 = vpop.f32.mrf.mxu3 }
 0x672   :  { %v4352_v36 = vadd.f32 %v4351_v12, %v4303_v37  ;;  %v4436_v37 = vpop.f32.mrf.mxu1 }
 0x673   :  { %v4402_v44 = vpop.f32.mrf.mxu0 }
 0x674   :  { %v4401_v20 = vadd.f32 %v4400_v1, %v4352_v36 }
 0x679   :  { %v4353_v33 = vpop.f32.mrf.mxu3 }
 0x67a   :  { %v4354_v2 = vadd.f32 %v4353_v33, %v4305_v10  ;;  %v4488_v33 = vpop.f32.mrf.mxu2 }
 0x67b   :  { %v4561_v25 = vpop.f32.mrf.mxu0 }
 0x67c   :  { %v4403_v43 = vadd.f32 %v4402_v44, %v4354_v2 }
 0x67e   :  { %v4631_v32 = vpack.c.bf16 %v4403_v43, %v4401_v20  ;;  %v4439_v20 = vpop.f32.mrf.mxu1 }
 0x67f   :  { %4729 = vmatmul.bf16.gmra.mxu2 %v10879_v62 }
 0x680   :  { %4740 = vmatpush.bf16.msrb.mxu3 %v4631_v32 }
 0x681   :  { %v4512_v29 = vpop.f32.mrf.mxu3 }
 0x682   :  { %v4513_v58 = vadd.f32 %v4512_v29, %v11428_v27  ;;  %v4490_v43 = vpop.f32.mrf.mxu2 }
 0x683   :  { %v4563_v59 = vpop.f32.mrf.mxu0 }
 0x684   :  { %v10912_v53 = vadd.f32 %v4561_v25, %v4513_v58  ;;  %4741 = vmatpush.bf16.msrb.mxu3 %v4627_v23 }
 0x686   :  { %v4441_v32 = vpop.f32.mrf.mxu1 }
 0x688   :  { %4742 = vmatpush.bf16.msrb.mxu3 %v4623_v38 }
 0x689   :  { %v4514_v47 = vpop.f32.mrf.mxu3 }
 0x68a   :  { %v4515_v13 = vadd.f32 %v4514_v47, %v4466_v50  ;;  %v4493_v58 = vpop.f32.mrf.mxu2 }
 0x68b   :  { %v4566_v7 = vpop.f32.mrf.mxu0 }
 0x68c   :  { %v10916_v54 = vadd.f32 %v4563_v59, %v4515_v13  ;;  %4743 = vmatpush.bf16.msrb.mxu3 %v4619_v61  ;;  %v4471_v61 = vadd.f32 %v10776_v16, %v10772_v48 }
 0x68e   :  { %v4604_v1 = vpack.c.bf16 %v10916_v54, %v10912_v53  ;;  %v4444_v59 = vpop.f32.mrf.mxu1  ;;  %v7776_v53 = vld [vmem:[%s11257_s8 + $0x70] sm:$0xff] }
 0x68f   :  { %4734 = vmatmul.bf16.gmra.mxu2 %v10891_v3  ;;  %v7784_v54 = vld [vmem:[%s11257_s8 + $0xb0] sm:$0xff] }
 0x690   :  { %4744 = vmatpush.bf16.msrb.mxu3 %v4615_v11 }
 0x691   :  { %v4517_v34 = vpop.f32.mrf.mxu3 }
 0x692   :  { %v4518_v35 = vadd.f32 %v4517_v34, %v10770_v18  ;;  %v4495_v50 = vpop.f32.mrf.mxu2 }
 0x693   :  { %v4568_v8 = vpop.f32.mrf.mxu0 }
 0x694   :  { %v10925_v38 = vadd.f32 %v4566_v7, %v4518_v35  ;;  %4745 = vmatpush.bf16.msrb.mxu3 %v4611_v19 }
 0x696   :  { %v4446_v47 = vpop.f32.mrf.mxu1 }
 0x698   :  { %4746 = vmatpush.bf16.msrb.mxu3 %v4607_v0 }
 0x699   :  { %v4519_v23 = vpop.f32.mrf.mxu3 }
 0x69a   :  { %v4520_v63 = vadd.f32 %v4519_v23, %v4471_v61  ;;  %v4498_v34 = vpop.f32.mrf.mxu2 }
 0x69b   :  { %v4571_v14 = vpop.f32.mrf.mxu0 }
 0x69c   :  { %v10935_v11 = vadd.f32 %v4568_v8, %v4520_v63  ;;  %4747 = vmatpush.bf16.msrb.mxu3 %v4603_v60 }
 0x69e   :  { %v4608_v18 = vpack.c.bf16 %v10935_v11, %v10925_v38  ;;  %v4449_v35 = vpop.f32.mrf.mxu1  ;;  %v7769_v38 = vld [vmem:[%s11257_s8 + $0x38] sm:$0xff]  ;;  %v7775_v11 = vld [vmem:[%s11257_s8 + $0x68] sm:$0xff] }
 0x69f   :  { %4748 = vmatmul.bf16.vlgmr.msrb.gmra.mxu3 %v10751_v42  ;;  %v4499_v63 = vadd.f32 %v4498_v34, %v4449_v35  ;;  %v4486_v34 = vadd.f32 %v4485_v57, %v4436_v37  ;;  %v7777_v57 = vld [vmem:[%s11257_s8 + $0x78] sm:$0xff]  ;;  %5418 = vmatpush.bf16.msra.mxu1 %v7769_v38  ;;  %v7790_v37 = vld [vmem:[%s11257_s8 + $0xe0] sm:$0xff] }
 0x6a0   :  { %5467 = vmatpush.bf16.msra.mxu2 %v7777_v57 }
 0x6a1   :  { %v4522_v22 = vpop.f32.mrf.mxu3 }
 0x6a2   :  { %v4523_v16 = vadd.f32 %v4522_v22, %v10789_v30  ;;  %v4500_v23 = vpop.f32.mrf.mxu2  ;;  %v4496_v22 = vadd.f32 %v4495_v50, %v4446_v47 }
 0x6a3   :  { %v4573_v48 = vpop.f32.mrf.mxu0 }
 0x6a4   :  { %v10944_v45 = vadd.f32 %v4571_v14, %v4523_v16  ;;  %5468 = vmatpush.bf16.msra.mxu2 %v7776_v53 }
 0x6a6   :  { %v4451_v14 = vpop.f32.mrf.mxu1 }
 0x6a7   :  { %v4501_v16 = vadd.f32 %v4500_v23, %v4451_v14 }
 0x6a8   :  { %5469 = vmatpush.bf16.msra.mxu2 %v7775_v11  ;;  %v7787_v11 = vld [vmem:[%s11257_s8 + $0xc8] sm:$0xff] }
 0x6a9   :  { %v4524_v0 = vpop.f32.mrf.mxu3 }
 0x6aa   :  { %v4525_v51 = vadd.f32 %v4524_v0, %v4476_v40  ;;  %v4494_v0 = vadd.f32 %v4493_v58, %v4444_v59 }
 0x6ab   :  { %v4576_v19 = vpop.f32.mrf.mxu0 }
 0x6ac   :  { %v10948_v12 = vadd.f32 %v4573_v48, %v4525_v51 }
 0x6ae   :  { %v4612_v56 = vpack.c.bf16 %v10948_v12, %v10944_v45  ;;  %v7791_v45 = vld [vmem:[%s11257_s8 + $0xe8] sm:$0xff]  ;;  %v7774_v12 = vld [vmem:[%s11257_s8 + $0x60] sm:$0xff] }
 0x6af   :  { %4753 = vmatmul.bf16.gmra.mxu3 %v10767_v24  ;;  %5470 = vmatpush.bf16.msra.mxu2 %v7774_v12 }
 0x6b1   :  { %v4527_v46 = vpop.f32.mrf.mxu3 }
 0x6b2   :  { %v4528_v60 = vadd.f32 %v4527_v46, %v10820_v17 }
 0x6b3   :  { %v4578_v30 = vpop.f32.mrf.mxu0 }
 0x6b4   :  { %v10954_v44 = vadd.f32 %v4576_v19, %v4528_v60  ;;  %v4491_v60 = vadd.f32 %v4490_v43, %v4441_v32 }
 0x6b9   :  { %v4529_v6 = vpop.f32.mrf.mxu3 }
 0x6ba   :  { %v4530_v41 = vadd.f32 %v4529_v6, %v4481_v31 }
 0x6bb   :  { %v4581_v9 = vpop.f32.mrf.mxu0 }
 0x6bc   :  { %v10958_v4 = vadd.f32 %v4578_v30, %v4530_v41  ;;  %v4489_v41 = vadd.f32 %v4488_v33, %v4439_v20  ;;  %v4700_v33 = vpop.f32.mrf.mxu2  ;;  %v7789_v20 = vld [vmem:[%s11257_s8 + $0xd8] sm:$0xff] }
 0x6be   :  { %v4616_v10 = vpack.c.bf16 %v10958_v4, %v10954_v44  ;;  %v7785_v44 = vld [vmem:[%s11257_s8 + $0xb8] sm:$0xff] }
 0x6bf   :  { %4758 = vmatmul.bf16.gmra.mxu3 %v10783_v39  ;;  %v7773_v4 = vld [vmem:[%s11257_s8 + $0x58] sm:$0xff] }
 0x6c0   :  { %5516 = vmatpush.bf16.msra.mxu3 %v7785_v44  ;;  %5471 = vmatpush.bf16.msra.mxu2 %v7773_v4 }
 0x6c1   :  { %v4532_v36 = vpop.f32.mrf.mxu3 }
 0x6c2   :  { %v4533_v17 = vadd.f32 %v4532_v36, %v10849_v28 }
 0x6c3   :  { %v4583_v2 = vpop.f32.mrf.mxu0 }
 0x6c4   :  { %v4582_v25 = vadd.f32 %v4581_v9, %v4533_v17  ;;  %5517 = vmatpush.bf16.msra.mxu3 %v7784_v54  ;;  %v7788_v54 = vld [vmem:[%s11257_s8 + $0xd0] sm:$0xff] }
 0x6c9   :  { %v4534_v5 = vpop.f32.mrf.mxu3 }
 0x6ca   :  { %v4535_v47 = vadd.f32 %v4534_v5, %v4486_v34 }
 0x6cb   :  { %v4586_v26 = vpop.f32.mrf.mxu0 }
 0x6cf   :  { %4763 = vmatmul.bf16.gmra.mxu3 %v10811_v15 }
 0x6d1   :  { %v4537_v29 = vpop.f32.mrf.mxu3 }
 0x6d2   :  { %v4538_v35 = vadd.f32 %v4537_v29, %v4489_v41  ;;  %v7772_v29 = vld [vmem:[%s11257_s8 + $0x50] sm:$0xff] }
 0x6d3   :  { %v4588_v27 = vpop.f32.mrf.mxu0  ;;  %5472 = vmatpush.bf16.msra.mxu2 %v7772_v29 }
 0x6d4   :  { %v4587_v59 = vadd.f32 %v4586_v26, %v4538_v35 }
 0x6d9   :  { %v4539_v21 = vpop.f32.mrf.mxu3 }
 0x6da   :  { %v4540_v9 = vadd.f32 %v4539_v21, %v4491_v60  ;;  %v7770_v60 = vld [vmem:[%s11257_s8 + $0x40] sm:$0xff] }
 0x6db   :  { %v4591_v52 = vpop.f32.mrf.mxu0 }
 0x6df   :  { %4768 = vmatmul.bf16.gmra.mxu3 %v10843_v55 }
 0x6e1   :  { %v4542_v28 = vpop.f32.mrf.mxu3 }
 0x6e2   :  { %v4543_v30 = vadd.f32 %v4542_v28, %v4494_v0 }
 0x6e3   :  { %v4593_v13 = vpop.f32.mrf.mxu0 }
 0x6e4   :  { %v4592_v50 = vadd.f32 %v4591_v52, %v4543_v30 }
 0x6e9   :  { %v4544_v7 = vpop.f32.mrf.mxu3 }
 0x6ea   :  { %v4545_v51 = vadd.f32 %v4544_v7, %v4496_v22  ;;  %v4584_v7 = vadd.f32 %v4583_v2, %v4535_v47  ;;  %v11043_v2 = vld [vmem:[%s11258_s7] sm:$0xf] }
 0x6eb   :  { %v4596_v8 = vpop.f32.mrf.mxu0  ;;  %v11053_v5 = vperm.slane %v11043_v2, 0  ;;  %v11056_v26 = vperm.slane %v11043_v2, 1 }
 0x6ec   :  { %v4594_v36 = vadd.f32 %v4593_v13, %v4545_v51  ;;  %v4620_v32 = vpack.c.bf16 %v4584_v7, %v4582_v25  ;;  %v7765_v25 = vld [vmem:[%s11257_s8 + $0x18] sm:$0xff]  ;;  %v7771_v51 = vld [vmem:[%s11257_s8 + $0x48] sm:$0xff] }
 0x6ed   :  { %v4701_v52 = vadd.f32 %v4700_v33, %v11056_v26  ;;  %5473 = vmatpush.bf16.msra.mxu2 %v7771_v51 }
 0x6ee   :  { %v4628_v58 = vpack.c.bf16 %v4594_v36, %v4592_v50  ;;  %v7762_v36 = vld [vmem:[%s11257_s8] sm:$0xff] }
 0x6ef   :  { %4773 = vmatmul.bf16.gmra.mxu3 %v10862_v49  ;;  %v4839_v23 = vmax.f32 %v4701_v52, 0.0  ;;  %v11115_v52 = vperm.slane %v11043_v2, 2 }
 0x6f1   :  { %v4547_v61 = vpop.f32.mrf.mxu3  ;;  %5474 = vmatpush.bf16.msra.mxu2 %v7770_v60 }
 0x6f2   :  { %v4548_v48 = vadd.f32 %v4547_v61, %v4499_v63  ;;  %v4589_v61 = vadd.f32 %v4588_v27, %v4540_v9 }
 0x6f3   :  { %v4598_v46 = vpop.f32.mrf.mxu0 }
 0x6f4   :  { %v4597_v31 = vadd.f32 %v4596_v8, %v4548_v48  ;;  %v4624_v43 = vpack.c.bf16 %v4589_v61, %v4587_v59  ;;  %v7764_v48 = vld [vmem:[%s11257_s8 + $0x10] sm:$0xff] }
 0x6f5   :  { %v7780_v61 = vld [vmem:[%s11257_s8 + $0x90] sm:$0xff] }
 0x6f9   :  { %v4549_v40 = vpop.f32.mrf.mxu3 }
 0x6fa   :  { %v4550_v19 = vadd.f32 %v4549_v40, %v4501_v16 }
 0x6fc   :  { %v4599_v6 = vadd.f32 %v4598_v46, %v4550_v19  ;;  %v7763_v46 = vld [vmem:[%s11257_s8 + $0x8] sm:$0xff] }
 0x6fe   :  { %v4632_v17 = vpack.c.bf16 %v4599_v6, %v4597_v31 }
 0x6ff   :  { %4778 = vmatmul.bf16.gmra.mxu3 %v10879_v62 }
 0x700   :  { %4789 = vmatpush.bf16.msrb.mxu0 %v4632_v17 }
 0x704   :  { %4790 = vmatpush.bf16.msrb.mxu0 %v4628_v58 }
 0x708   :  { %4791 = vmatpush.bf16.msrb.mxu0 %v4624_v43 }
 0x70c   :  { %4792 = vmatpush.bf16.msrb.mxu0 %v4620_v32 }
 0x70f   :  { %4783 = vmatmul.bf16.gmra.mxu3 %v10891_v3 }
 0x710   :  { %4793 = vmatpush.bf16.msrb.mxu0 %v4616_v10  ;;  %v7781_v10 = vld [vmem:[%s11257_s8 + $0x98] sm:$0xff] }
 0x714   :  { %4794 = vmatpush.bf16.msrb.mxu0 %v4612_v56  ;;  %v7782_v56 = vld [vmem:[%s11257_s8 + $0xa0] sm:$0xff] }
 0x718   :  { %4795 = vmatpush.bf16.msrb.mxu0 %v4608_v18  ;;  %v7783_v18 = vld [vmem:[%s11257_s8 + $0xa8] sm:$0xff] }
 0x719   :  { %5518 = vmatpush.bf16.msra.mxu3 %v7783_v18 }
 0x71c   :  { %4796 = vmatpush.bf16.msrb.mxu0 %v4604_v1  ;;  %v7792_v1 = vld [vmem:[%s11257_s8 + $0xf0] sm:$0xff] }
 0x71d   :  { %5519 = vmatpush.bf16.msra.mxu3 %v7782_v56 }
 0x71f   :  { %4797 = vmatmul.bf16.vlgmr.msrb.gmra.mxu0 %v10751_v42  ;;  %v7793_v42 = vld [vmem:[%s11257_s8 + $0xf8] sm:$0xff] }
 0x720   :  { %5565 = vmatpush.bf16.msra.mxu0 %v7793_v42 }
 0x721   :  { %5520 = vmatpush.bf16.msra.mxu3 %v7781_v10  ;;  %v7778_v10 = vld [vmem:[%s11257_s8 + $0x80] sm:$0xff] }
 0x722   :  { %v11071_v19 = vpop.f32.mrf.mxu3 }
 0x724   :  { %5566 = vmatpush.bf16.msra.mxu0 %v7792_v1  ;;  %v7779_v1 = vld [vmem:[%s11257_s8 + $0x88] sm:$0xff] }
 0x725   :  { %5521 = vmatpush.bf16.msra.mxu3 %v7780_v61 }
 0x728   :  { %5567 = vmatpush.bf16.msra.mxu0 %v7791_v45 }
 0x729   :  { %5522 = vmatpush.bf16.msra.mxu3 %v7779_v1 }
 0x72a   :  { %v11090_v58 = vpop.f32.mrf.mxu3 }
 0x72c   :  { %5568 = vmatpush.bf16.msra.mxu0 %v7790_v37 }
 0x72d   :  { %5523 = vmatpush.bf16.msra.mxu3 %v7778_v10 }
 0x72f   :  { %4802 = vmatmul.bf16.gmra.mxu0 %v10767_v24  ;;  %v7768_v24 = vld [vmem:[%s11257_s8 + $0x30] sm:$0xff] }
 0x730   :  { %5419 = vmatpush.bf16.msra.mxu1 %v7768_v24  ;;  %5569 = vmatpush.bf16.msra.mxu0 %v7789_v20 }
 0x732   :  { %v11095_v24 = vpop.f32.mrf.mxu3 }
 0x734   :  { %5570 = vmatpush.bf16.msra.mxu0 %v7788_v54 }
 0x738   :  { %5571 = vmatpush.bf16.msra.mxu0 %v7787_v11 }
 0x73f   :  { %4807 = vmatmul.bf16.gmra.mxu0 %v10783_v39  ;;  %v7767_v39 = vld [vmem:[%s11257_s8 + $0x28] sm:$0xff] }
 0x740   :  { %5420 = vmatpush.bf16.msra.mxu1 %v7767_v39 }
 0x74f   :  { %4812 = vmatmul.bf16.gmra.mxu0 %v10811_v15  ;;  %v7766_v15 = vld [vmem:[%s11257_s8 + $0x20] sm:$0xff] }
 0x750   :  { %5421 = vmatpush.bf16.msra.mxu1 %v7766_v15 }
 0x754   :  { %5422 = vmatpush.bf16.msra.mxu1 %v7765_v25 }
 0x758   :  { %5423 = vmatpush.bf16.msra.mxu1 %v7764_v48 }
 0x75c   :  { %5424 = vmatpush.bf16.msra.mxu1 %v7763_v46 }
 0x75f   :  { %4817 = vmatmul.bf16.gmra.mxu0 %v10843_v55  ;;  %v4651_v55 = vpop.f32.mrf.mxu1 }
 0x760   :  { %v4652_v21 = vadd.f32 %v4651_v55, %v11053_v5  ;;  %5425 = vmatpush.bf16.msra.mxu1 %v7762_v36 }
 0x762   :  { %v4838_v8 = vmax.f32 %v4652_v21, 0.0 }
 0x764   :  { %v4902_v22 = vpack.c.bf16 %v4839_v23, %v4838_v8  ;;  %v4756_v8 = vpop.f32.mrf.mxu3 }
 0x766   :  { %4934 = vst [vmem:[#allocation2] sm:$0xff] %v4902_v22  ;;  %v11120_v22 = vperm.slane %v11043_v2, 3 }
 0x767   :  { %v4653_v27 = vpop.f32.mrf.mxu1 }
 0x768   :  { %v4654_v28 = vadd.f32 %v4653_v27, %v11053_v5 }
 0x76a   :  { %v4842_v63 = vmax.f32 %v4654_v28, 0.0 }
 0x76d   :  { %v7730_v30 = vld [vmem:[#allocation2 + $0x4] sm:$0xf]  ;;  %v7108_v47 = vld [vmem:[#allocation2] sm:$0xf] }
 0x76f   :  { %4822 = vmatmul.bf16.gmra.mxu0 %v10862_v49  ;;  %v4702_v49 = vpop.f32.mrf.mxu2  ;;  %v4656_v40 = vpop.f32.mrf.mxu1 }
 0x770   :  { %v4703_v13 = vadd.f32 %v4702_v49, %v11056_v26  ;;  %v4657_v17 = vadd.f32 %v4656_v40, %v11053_v5 }
 0x772   :  { %v4843_v14 = vmax.f32 %v4703_v13, 0.0  ;;  %v4846_v59 = vmax.f32 %v4657_v17, 0.0 }
 0x774   :  { %v4904_v16 = vpack.c.bf16 %v4843_v14, %v4842_v63  ;;  %v4750_v14 = vadd.f32 %v11071_v19, %v11115_v52 }
 0x776   :  { %4936 = vst [vmem:[#allocation2 + $0x10] sm:$0xff] %v4904_v16  ;;  %v4840_v48 = vmax.f32 %v4750_v14, 0.0 }
 0x777   :  { %v4705_v0 = vpop.f32.mrf.mxu2  ;;  %v4658_v6 = vpop.f32.mrf.mxu1 }
 0x778   :  { %v4706_v34 = vadd.f32 %v4705_v0, %v11056_v26  ;;  %v4659_v35 = vadd.f32 %v4658_v6, %v11053_v5 }
 0x77a   :  { %v4847_v7 = vmax.f32 %v4706_v34, 0.0  ;;  %v4850_v43 = vmax.f32 %v4659_v35, 0.0  ;;  %v4752_v35 = vadd.f32 %v11090_v58, %v11115_v52  ;;  %v4755_v58 = vadd.f32 %v11095_v24, %v11115_v52 }
 0x77c   :  { %v4906_v44 = vpack.c.bf16 %v4847_v7, %v4846_v59 }
 0x77d   :  { %v7110_v31 = vld [vmem:[#allocation2 + $0x10] sm:$0xf0] }
 0x77e   :  { %v7113_v9 = vor.u32 %v7730_v30, %v7110_v31  ;;  %4938 = vst [vmem:[#allocation2 + $0x20] sm:$0xff] %v4906_v44  ;;  %v4844_v44 = vmax.f32 %v4752_v35, 0.0 }
 0x77f   :  { %4827 = vmatmul.bf16.gmra.mxu0 %v10879_v62  ;;  %v4707_v41 = vpop.f32.mrf.mxu2  ;;  %v7732_v62 = vld [vmem:[#allocation2 + $0xc] sm:$0xf0]  ;;  %v4661_v42 = vpop.f32.mrf.mxu1 }
 0x780   :  { %v4708_v50 = vadd.f32 %v4707_v41, %v11056_v26  ;;  %5475 = vmatmul.bf16.vlgmr.msra.gmra.mxu2 %v7113_v9  ;;  %v7109_v32 = vor.u32 %v7732_v62, %v7108_v47  ;;  %v4662_v15 = vadd.f32 %v4661_v42, %v11053_v5  ;;  %v11123_v41 = vpop.f32.mrf.mxu3 }
 0x782   :  { %v4851_v57 = vmax.f32 %v4708_v50, 0.0  ;;  %5426 = vmatmul.bf16.vlgmr.msra.gmra.mxu1 %v7109_v32  ;;  %v4854_v25 = vmax.f32 %v4662_v15, 0.0 }
 0x784   :  { %v4908_v38 = vpack.c.bf16 %v4851_v57, %v4850_v43 }
 0x785   :  { %v7734_v18 = vld [vmem:[#allocation2 + $0x24] sm:$0xf]  ;;  %v7124_v33 = vld [vmem:[#allocation2 + $0x20] sm:$0xf] }
 0x786   :  { %4940 = vst [vmem:[#allocation2 + $0x30] sm:$0xff] %v4908_v38 }
 0x787   :  { %v4710_v53 = vpop.f32.mrf.mxu2  ;;  %v4663_v45 = vpop.f32.mrf.mxu1 }
 0x788   :  { %v4711_v37 = vadd.f32 %v4710_v53, %v11056_v26  ;;  %v4664_v4 = vadd.f32 %v4663_v45, %v11053_v5  ;;  %v11134_v1 = vpop.f32.mrf.mxu3 }
 0x78a   :  { %v4855_v20 = vmax.f32 %v4711_v37, 0.0  ;;  %v4858_v29 = vmax.f32 %v4664_v4, 0.0 }
 0x78c   :  { %v4910_v28 = vpack.c.bf16 %v4855_v20, %v4854_v25  ;;  %v4757_v25 = vadd.f32 %v4756_v8, %v11115_v52 }
 0x78d   :  { %v7126_v39 = vld [vmem:[#allocation2 + $0x30] sm:$0xf0]  ;;  %v7736_v27 = vld [vmem:[#allocation2 + $0x2c] sm:$0xf0] }
 0x78e   :  { %v7129_v56 = vor.u32 %v7734_v18, %v7126_v39  ;;  %v7125_v21 = vor.u32 %v7736_v27, %v7124_v33  ;;  %4942 = vst [vmem:[#allocation2 + $0x40] sm:$0xff] %v4910_v28  ;;  %v4848_v18 = vmax.f32 %v4755_v58, 0.0 }
 0x78f   :  { %4832 = vmatmul.bf16.gmra.mxu0 %v10891_v3  ;;  %v4712_v12 = vpop.f32.mrf.mxu2  ;;  %v7786_v3 = vld [vmem:[%s11257_s8 + $0xc0] sm:$0xff]  ;;  %v4666_v23 = vpop.f32.mrf.mxu1 }
 0x790   :  { %v4713_v55 = vadd.f32 %v4712_v12, %v11056_v26  ;;  %5480 = vmatmul.bf16.gmra.mxu2 %v7129_v56  ;;  %5572 = vmatpush.bf16.msra.mxu0 %v7786_v3  ;;  %v4667_v9 = vadd.f32 %v4666_v23, %v11053_v5 }
 0x792   :  { %v4859_v49 = vmax.f32 %v4713_v55, 0.0  ;;  %5431 = vmatmul.bf16.gmra.mxu1 %v7125_v21  ;;  %v4862_v50 = vmax.f32 %v4667_v9, 0.0 }
 0x794   :  { %v4912_v13 = vpack.c.bf16 %v4859_v49, %v4858_v29 }
 0x795   :  { %v7738_v0 = vld [vmem:[#allocation2 + $0x44] sm:$0xf]  ;;  %v7140_v17 = vld [vmem:[#allocation2 + $0x40] sm:$0xf] }
 0x796   :  { %4944 = vst [vmem:[#allocation2 + $0x50] sm:$0xff] %v4912_v13 }
 0x797   :  { %v4715_v63 = vpop.f32.mrf.mxu2  ;;  %v4668_v60 = vpop.f32.mrf.mxu1 }
 0x798   :  { %v4716_v19 = vadd.f32 %v4715_v63, %v11056_v26  ;;  %v4669_v2 = vadd.f32 %v4668_v60, %v11053_v5 }
 0x79a   :  { %v4863_v47 = vmax.f32 %v4716_v19, 0.0  ;;  %v4866_v59 = vmax.f32 %v4669_v2, 0.0  ;;  %v4760_v2 = vadd.f32 %v11123_v41, %v11115_v52  ;;  %v4762_v41 = vadd.f32 %v11134_v1, %v11115_v52 }
 0x79c   :  { %v4798_v16 = vpop.f32.mrf.mxu0  ;;  %v4914_v32 = vpack.c.bf16 %v4863_v47, %v4862_v50 }
 0x79d   :  { %v4799_v40 = vadd.f32 %v4798_v16, %v11120_v22  ;;  %v7142_v46 = vld [vmem:[#allocation2 + $0x50] sm:$0xf0]  ;;  %v7740_v34 = vld [vmem:[#allocation2 + $0x4c] sm:$0xf0] }
 0x79e   :  { %v7145_v31 = vor.u32 %v7738_v0, %v7142_v46  ;;  %v7141_v62 = vor.u32 %v7740_v34, %v7140_v17  ;;  %4946 = vst [vmem:[#allocation2 + $0x60] sm:$0xff] %v4914_v32  ;;  %v4856_v17 = vmax.f32 %v4760_v2, 0.0 }
 0x79f   :  { %v4841_v51 = vmax.f32 %v4799_v40, 0.0  ;;  %v4717_v30 = vpop.f32.mrf.mxu2  ;;  %v4671_v42 = vpop.f32.mrf.mxu1 }
 0x7a0   :  { %v4718_v36 = vadd.f32 %v4717_v30, %v11056_v26  ;;  %5485 = vmatmul.bf16.gmra.mxu2 %v7145_v31  ;;  %v4672_v33 = vadd.f32 %v4671_v42, %v11053_v5  ;;  %v4852_v30 = vmax.f32 %v4757_v25, 0.0 }
 0x7a1   :  { %v4903_v6 = vpack.c.bf16 %v4841_v51, %v4840_v48  ;;  %v4764_v51 = vpop.f32.mrf.mxu3 }
 0x7a2   :  { %v4867_v7 = vmax.f32 %v4718_v36, 0.0  ;;  %5436 = vmatmul.bf16.gmra.mxu1 %v7141_v62  ;;  %v4870_v23 = vmax.f32 %v4672_v33, 0.0  ;;  %v4860_v33 = vmax.f32 %v4762_v41, 0.0 }
 0x7a3   :  { %4935 = vst [vmem:[#allocation2 + $0x8] sm:$0xff] %v4903_v6 }
 0x7a4   :  { %v4800_v61 = vpop.f32.mrf.mxu0  ;;  %v4916_v57 = vpack.c.bf16 %v4867_v7, %v4866_v59 }
 0x7a5   :  { %v4801_v43 = vadd.f32 %v4800_v61, %v11120_v22  ;;  %v7742_v45 = vld [vmem:[#allocation2 + $0x64] sm:$0xf]  ;;  %v7156_v21 = vld [vmem:[#allocation2 + $0x60] sm:$0xf] }
 0x7a6   :  { %4948 = vst [vmem:[#allocation2 + $0x70] sm:$0xff] %v4916_v57 }
 0x7a7   :  { %v4845_v38 = vmax.f32 %v4801_v43, 0.0  ;;  %v4720_v53 = vpop.f32.mrf.mxu2  ;;  %v4673_v15 = vpop.f32.mrf.mxu1 }
 0x7a8   :  { %v4721_v24 = vadd.f32 %v4720_v53, %v11056_v26  ;;  %v4674_v27 = vadd.f32 %v4673_v15, %v11053_v5 }
 0x7a9   :  { %v4905_v54 = vpack.c.bf16 %v4845_v38, %v4844_v44  ;;  %v4766_v47 = vpop.f32.mrf.mxu3 }
 0x7aa   :  { %v7116_v3 = vld [vmem:[#allocation2 + $0x8] sm:$0xf]  ;;  %v7731_v55 = vld [vmem:[#allocation2 + $0xc] sm:$0xf]  ;;  %v4871_v63 = vmax.f32 %v4721_v24, 0.0  ;;  %v4874_v48 = vmax.f32 %v4674_v27, 0.0  ;;  %v4765_v27 = vadd.f32 %v4764_v51, %v11115_v52  ;;  %v4767_v51 = vadd.f32 %v4766_v47, %v11115_v52 }
 0x7ab   :  { %4937 = vst [vmem:[#allocation2 + $0x18] sm:$0xff] %v4905_v54 }
 0x7ac   :  { %v4803_v11 = vpop.f32.mrf.mxu0  ;;  %v4918_v46 = vpack.c.bf16 %v4871_v63, %v4870_v23 }
 0x7ad   :  { %v4804_v39 = vadd.f32 %v4803_v11, %v11120_v22  ;;  %v7158_v56 = vld [vmem:[#allocation2 + $0x70] sm:$0xf0]  ;;  %v7744_v14 = vld [vmem:[#allocation2 + $0x6c] sm:$0xf0] }
 0x7ae   :  { %v7161_v4 = vor.u32 %v7742_v45, %v7158_v56  ;;  %v7157_v0 = vor.u32 %v7744_v14, %v7156_v21  ;;  %4950 = vst [vmem:[#allocation2 + $0x80] sm:$0xff] %v4918_v46 }
 0x7af   :  { %v4849_v12 = vmax.f32 %v4804_v39, 0.0  ;;  %v4722_v37 = vpop.f32.mrf.mxu2  ;;  %v4676_v6 = vpop.f32.mrf.mxu1 }
 0x7b0   :  { %v4723_v49 = vadd.f32 %v4722_v37, %v11056_v26  ;;  %5490 = vmatmul.bf16.gmra.mxu2 %v7161_v4  ;;  %v4677_v44 = vadd.f32 %v4676_v6, %v11053_v5 }
 0x7b1   :  { %v4907_v10 = vpack.c.bf16 %v4849_v12, %v4848_v18 }
 0x7b2   :  { %v7733_v20 = vld [vmem:[#allocation2 + $0x14] sm:$0xf0]  ;;  %v7118_v29 = vld [vmem:[#allocation2 + $0x18] sm:$0xf0]  ;;  %v4875_v40 = vmax.f32 %v4723_v49, 0.0  ;;  %5441 = vmatmul.bf16.gmra.mxu1 %v7157_v0  ;;  %v4878_v45 = vmax.f32 %v4677_v44, 0.0  ;;  %v4769_v49 = vpop.f32.mrf.mxu3 }
 0x7b3   :  { %4939 = vst [vmem:[#allocation2 + $0x28] sm:$0xff] %v4907_v10  ;;  %v7117_v28 = vor.u32 %v7733_v20, %v7116_v3  ;;  %v7121_v13 = vor.u32 %v7731_v55, %v7118_v29  ;;  %v4868_v44 = vmax.f32 %v4767_v51, 0.0 }
 0x7b4   :  { %v4805_v16 = vpop.f32.mrf.mxu0  ;;  %v4920_v60 = vpack.c.bf16 %v4875_v40, %v4874_v48 }
 0x7b5   :  { %v4806_v8 = vadd.f32 %v4805_v16, %v11120_v22  ;;  %5524 = vmatmul.bf16.vlgmr.msra.gmra.mxu3 %v7117_v28  ;;  %5573 = vmatmul.bf16.vlgmr.msra.gmra.mxu0 %v7121_v13  ;;  %v7746_v35 = vld [vmem:[#allocation2 + $0x84] sm:$0xf]  ;;  %v7172_v11 = vld [vmem:[#allocation2 + $0x80] sm:$0xf]  ;;  %v4864_v28 = vmax.f32 %v4765_v27, 0.0 }
 0x7b6   :  { %4952 = vst [vmem:[#allocation2 + $0x90] sm:$0xff] %v4920_v60 }
 0x7b7   :  { %v4853_v31 = vmax.f32 %v4806_v8, 0.0  ;;  %v4725_v9 = vpop.f32.mrf.mxu2  ;;  %v4678_v61 = vpop.f32.mrf.mxu1 }
 0x7b8   :  { %v4726_v38 = vadd.f32 %v4725_v9, %v11056_v26  ;;  %v4679_v54 = vadd.f32 %v4678_v61, %v11053_v5 }
 0x7b9   :  { %v4909_v19 = vpack.c.bf16 %v4853_v31, %v4852_v30 }
 0x7ba   :  { %v7132_v32 = vld [vmem:[#allocation2 + $0x28] sm:$0xf]  ;;  %v7735_v57 = vld [vmem:[#allocation2 + $0x2c] sm:$0xf]  ;;  %v4879_v12 = vmax.f32 %v4726_v38, 0.0  ;;  %v4882_v37 = vmax.f32 %v4679_v54, 0.0  ;;  %v4771_v61 = vpop.f32.mrf.mxu3  ;;  %v4770_v54 = vadd.f32 %v4769_v49, %v11115_v52 }
 0x7bb   :  { %4941 = vst [vmem:[#allocation2 + $0x38] sm:$0xff] %v4909_v19 }
 0x7bc   :  { %v4808_v36 = vpop.f32.mrf.mxu0  ;;  %v4922_v3 = vpack.c.bf16 %v4879_v12, %v4878_v45 }
 0x7bd   :  { %v4809_v34 = vadd.f32 %v4808_v36, %v11120_v22  ;;  %v7174_v62 = vld [vmem:[#allocation2 + $0x90] sm:$0xf0]  ;;  %v7748_v56 = vld [vmem:[#allocation2 + $0x8c] sm:$0xf0] }
 0x7be   :  { %v7177_v7 = vor.u32 %v7746_v35, %v7174_v62  ;;  %v7173_v10 = vor.u32 %v7748_v56, %v7172_v11  ;;  %4954 = vst [vmem:[#allocation2 + $0xa0] sm:$0xff] %v4922_v3  ;;  %v4872_v11 = vmax.f32 %v4770_v54, 0.0 }
 0x7bf   :  { %v4857_v50 = vmax.f32 %v4809_v34, 0.0  ;;  %v4727_v59 = vpop.f32.mrf.mxu2  ;;  %v4681_v25 = vpop.f32.mrf.mxu1 }
 0x7c0   :  { %v4728_v58 = vadd.f32 %v4727_v59, %v11056_v26  ;;  %5495 = vmatmul.bf16.gmra.mxu2 %v7177_v7  ;;  %v4682_v60 = vadd.f32 %v4681_v25, %v11053_v5 }
 0x7c1   :  { %v4911_v43 = vpack.c.bf16 %v4857_v50, %v4856_v17 }
 0x7c2   :  { %v7737_v42 = vld [vmem:[#allocation2 + $0x34] sm:$0xf0]  ;;  %v7134_v53 = vld [vmem:[#allocation2 + $0x38] sm:$0xf0]  ;;  %v4883_v4 = vmax.f32 %v4728_v58, 0.0  ;;  %5446 = vmatmul.bf16.gmra.mxu1 %v7173_v10  ;;  %v4886_v34 = vmax.f32 %v4682_v60, 0.0 }
 0x7c3   :  { %4943 = vst [vmem:[#allocation2 + $0x48] sm:$0xff] %v4911_v43  ;;  %v7133_v18 = vor.u32 %v7737_v42, %v7132_v32  ;;  %v7137_v39 = vor.u32 %v7735_v57, %v7134_v53 }
 0x7c4   :  { %v4810_v15 = vpop.f32.mrf.mxu0  ;;  %v4924_v55 = vpack.c.bf16 %v4883_v4, %v4882_v37 }
 0x7c5   :  { %v4811_v1 = vadd.f32 %v4810_v15, %v11120_v22  ;;  %5529 = vmatmul.bf16.gmra.mxu3 %v7133_v18  ;;  %5578 = vmatmul.bf16.gmra.mxu0 %v7137_v39  ;;  %v7750_v23 = vld [vmem:[#allocation2 + $0xa4] sm:$0xf]  ;;  %v7188_v2 = vld [vmem:[#allocation2 + $0xa0] sm:$0xf]  ;;  %v4774_v39 = vpop.f32.mrf.mxu3 }
 0x7c6   :  { %4956 = vst [vmem:[#allocation2 + $0xb0] sm:$0xff] %v4924_v55  ;;  %v4775_v51 = vadd.f32 %v4774_v39, %v11115_v52 }
 0x7c7   :  { %v4861_v24 = vmax.f32 %v4811_v1, 0.0  ;;  %v4730_v20 = vpop.f32.mrf.mxu2  ;;  %v4683_v16 = vpop.f32.mrf.mxu1 }
 0x7c8   :  { %v4731_v30 = vadd.f32 %v4730_v20, %v11056_v26  ;;  %v4684_v9 = vadd.f32 %v4683_v16, %v11053_v5 }
 0x7c9   :  { %v4913_v29 = vpack.c.bf16 %v4861_v24, %v4860_v33  ;;  %v4772_v24 = vadd.f32 %v4771_v61, %v11115_v52 }
 0x7ca   :  { %v7148_v8 = vld [vmem:[#allocation2 + $0x48] sm:$0xf]  ;;  %v7739_v46 = vld [vmem:[#allocation2 + $0x4c] sm:$0xf]  ;;  %v4887_v35 = vmax.f32 %v4731_v30, 0.0  ;;  %v4890_v59 = vmax.f32 %v4684_v9, 0.0 }
 0x7cb   :  { %4945 = vst [vmem:[#allocation2 + $0x58] sm:$0xff] %v4913_v29 }
 0x7cc   :  { %v4813_v21 = vpop.f32.mrf.mxu0  ;;  %v4926_v32 = vpack.c.bf16 %v4887_v35, %v4886_v34 }
 0x7cd   :  { %v4814_v13 = vadd.f32 %v4813_v21, %v11120_v22  ;;  %v7190_v14 = vld [vmem:[#allocation2 + $0xb0] sm:$0xf0]  ;;  %v7752_v50 = vld [vmem:[#allocation2 + $0xac] sm:$0xf0]  ;;  %v4776_v60 = vpop.f32.mrf.mxu3 }
 0x7ce   :  { %v7193_v40 = vor.u32 %v7750_v23, %v7190_v14  ;;  %v7189_v43 = vor.u32 %v7752_v50, %v7188_v2  ;;  %4958 = vst [vmem:[#allocation2 + $0xc0] sm:$0xff] %v4926_v32 }
 0x7cf   :  { %v4865_v63 = vmax.f32 %v4814_v13, 0.0  ;;  %v4732_v48 = vpop.f32.mrf.mxu2  ;;  %v4686_v41 = vpop.f32.mrf.mxu1 }
 0x7d0   :  { %v4733_v19 = vadd.f32 %v4732_v48, %v11056_v26  ;;  %5500 = vmatmul.bf16.gmra.mxu2 %v7193_v40  ;;  %v4687_v55 = vadd.f32 %v4686_v41, %v11053_v5 }
 0x7d1   :  { %v4915_v0 = vpack.c.bf16 %v4865_v63, %v4864_v28 }
 0x7d2   :  { %v7741_v31 = vld [vmem:[#allocation2 + $0x54] sm:$0xf0]  ;;  %v7150_v6 = vld [vmem:[#allocation2 + $0x58] sm:$0xf0]  ;;  %v4891_v7 = vmax.f32 %v4733_v19, 0.0  ;;  %5451 = vmatmul.bf16.gmra.mxu1 %v7189_v43  ;;  %v4894_v13 = vmax.f32 %v4687_v55, 0.0  ;;  %v4777_v43 = vadd.f32 %v4776_v60, %v11115_v52 }
 0x7d3   :  { %4947 = vst [vmem:[#allocation2 + $0x68] sm:$0xff] %v4915_v0  ;;  %v7149_v36 = vor.u32 %v7741_v31, %v7148_v8  ;;  %v7153_v17 = vor.u32 %v7739_v46, %v7150_v6  ;;  %v4880_v6 = vmax.f32 %v4775_v51, 0.0 }
 0x7d4   :  { %v4815_v62 = vpop.f32.mrf.mxu0  ;;  %v4928_v57 = vpack.c.bf16 %v4891_v7, %v4890_v59 }
 0x7d5   :  { %v4816_v47 = vadd.f32 %v4815_v62, %v11120_v22  ;;  %5534 = vmatmul.bf16.gmra.mxu3 %v7149_v36  ;;  %5583 = vmatmul.bf16.gmra.mxu0 %v7153_v17  ;;  %v7754_v45 = vld [vmem:[#allocation2 + $0xc4] sm:$0xf]  ;;  %v7204_v49 = vld [vmem:[#allocation2 + $0xc0] sm:$0xf]  ;;  %v4779_v61 = vpop.f32.mrf.mxu3 }
 0x7d6   :  { %4960 = vst [vmem:[#allocation2 + $0xd0] sm:$0xff] %v4928_v57 }
 0x7d7   :  { %v4869_v38 = vmax.f32 %v4816_v47, 0.0  ;;  %v4735_v42 = vpop.f32.mrf.mxu2  ;;  %v4688_v15 = vpop.f32.mrf.mxu1 }
 0x7d8   :  { %v4736_v33 = vadd.f32 %v4735_v42, %v11056_v26  ;;  %v4689_v29 = vadd.f32 %v4688_v15, %v11053_v5  ;;  %v4884_v42 = vmax.f32 %v4777_v43, 0.0 }
 0x7d9   :  { %v4917_v53 = vpack.c.bf16 %v4869_v38, %v4868_v44 }
 0x7da   :  { %v7164_v1 = vld [vmem:[#allocation2 + $0x68] sm:$0xf]  ;;  %v7743_v3 = vld [vmem:[#allocation2 + $0x6c] sm:$0xf]  ;;  %v4895_v23 = vmax.f32 %v4736_v33, 0.0  ;;  %v4898_v16 = vmax.f32 %v4689_v29, 0.0 }
 0x7db   :  { %4949 = vst [vmem:[#allocation2 + $0x78] sm:$0xff] %v4917_v53 }
 0x7dc   :  { %v4818_v58 = vpop.f32.mrf.mxu0  ;;  %v4930_v8 = vpack.c.bf16 %v4895_v23, %v4894_v13 }
 0x7dd   :  { %v4819_v18 = vadd.f32 %v4818_v58, %v11120_v22  ;;  %v7206_v56 = vld [vmem:[#allocation2 + $0xd0] sm:$0xf0]  ;;  %v7756_v63 = vld [vmem:[#allocation2 + $0xcc] sm:$0xf0]  ;;  %v4780_v58 = vadd.f32 %v4779_v61, %v11115_v52 }
 0x7de   :  { %v7209_v4 = vor.u32 %v7754_v45, %v7206_v56  ;;  %v7205_v40 = vor.u32 %v7756_v63, %v7204_v49  ;;  %4962 = vst [vmem:[#allocation2 + $0xe0] sm:$0xff] %v4930_v8 }
 0x7df   :  { %v4873_v12 = vmax.f32 %v4819_v18, 0.0  ;;  %v4737_v37 = vpop.f32.mrf.mxu2  ;;  %v4781_v18 = vpop.f32.mrf.mxu3  ;;  %v4888_v39 = vmax.f32 %v4780_v58, 0.0 }
 0x7e0   :  { %v4738_v27 = vadd.f32 %v4737_v37, %v11056_v26  ;;  %5505 = vmatmul.bf16.gmra.mxu2 %v7209_v4  ;;  %v4876_v26 = vmax.f32 %v4772_v24, 0.0 }
 0x7e1   :  { %v4919_v10 = vpack.c.bf16 %v4873_v12, %v4872_v11 }
 0x7e2   :  { %v7745_v25 = vld [vmem:[#allocation2 + $0x74] sm:$0xf0]  ;;  %v7166_v20 = vld [vmem:[#allocation2 + $0x78] sm:$0xf0]  ;;  %v4899_v48 = vmax.f32 %v4738_v27, 0.0  ;;  %5456 = vmatmul.bf16.gmra.mxu1 %v7205_v40 }
 0x7e3   :  { %4951 = vst [vmem:[#allocation2 + $0x88] sm:$0xff] %v4919_v10  ;;  %v7165_v21 = vor.u32 %v7745_v25, %v7164_v1  ;;  %v7169_v28 = vor.u32 %v7743_v3, %v7166_v20  ;;  %v4782_v1 = vadd.f32 %v4781_v18, %v11115_v52 }
 0x7e4   :  { %v4820_v14 = vpop.f32.mrf.mxu0  ;;  %v4932_v5 = vpack.c.bf16 %v4899_v48, %v4898_v16 }
 0x7e5   :  { %v4821_v0 = vadd.f32 %v4820_v14, %v11120_v22  ;;  %5539 = vmatmul.bf16.gmra.mxu3 %v7165_v21  ;;  %5588 = vmatmul.bf16.gmra.mxu0 %v7169_v28  ;;  %v7758_v19 = vld [vmem:[#allocation2 + $0xe4] sm:$0xf]  ;;  %v7220_v7 = vld [vmem:[#allocation2 + $0xe0] sm:$0xf]  ;;  %v4892_v20 = vmax.f32 %v4782_v1, 0.0 }
 0x7e6   :  { %4964 = vst [vmem:[#allocation2 + $0xf0] sm:$0xff] %v4932_v5 }
 0x7e7   :  { %v4877_v46 = vmax.f32 %v4821_v0, 0.0  ;;  %v4784_v25 = vpop.f32.mrf.mxu3 }
 0x7e8   :  { %v4785_v49 = vadd.f32 %v4784_v25, %v11115_v52 }
 0x7e9   :  { %v4921_v30 = vpack.c.bf16 %v4877_v46, %v4876_v26 }
 0x7ea   :  { %v7180_v35 = vld [vmem:[#allocation2 + $0x88] sm:$0xf]  ;;  %v7747_v50 = vld [vmem:[#allocation2 + $0x8c] sm:$0xf]  ;;  %v4896_v28 = vmax.f32 %v4785_v49, 0.0 }
 0x7eb   :  { %4953 = vst [vmem:[#allocation2 + $0x98] sm:$0xff] %v4921_v30 }
 0x7ec   :  { %v4823_v31 = vpop.f32.mrf.mxu0 }
 0x7ed   :  { %v4824_v9 = vadd.f32 %v4823_v31, %v11120_v22  ;;  %v7222_v36 = vld [vmem:[#allocation2 + $0xf0] sm:$0xf0]  ;;  %v7760_v57 = vld [vmem:[#allocation2 + $0xec] sm:$0xf0] }
 0x7ee   :  { %v7225_v17 = vor.u32 %v7758_v19, %v7222_v36  ;;  %v7221_v38 = vor.u32 %v7760_v57, %v7220_v7 }
 0x7ef   :  { %v4881_v2 = vmax.f32 %v4824_v9, 0.0  ;;  %v4786_v63 = vpop.f32.mrf.mxu3 }
 0x7f0   :  { %5510 = vmatmul.bf16.gmra.mxu2 %v7225_v17  ;;  %v4787_v5 = vadd.f32 %v4786_v63, %v11115_v52 }
 0x7f1   :  { %v4923_v34 = vpack.c.bf16 %v4881_v2, %v4880_v6 }
 0x7f2   :  { %v7749_v62 = vld [vmem:[#allocation2 + $0x94] sm:$0xf0]  ;;  %v7182_v59 = vld [vmem:[#allocation2 + $0x98] sm:$0xf0]  ;;  %5461 = vmatmul.bf16.gmra.mxu1 %v7221_v38  ;;  %v4900_v31 = vmax.f32 %v4787_v5, 0.0 }
 0x7f3   :  { %4955 = vst [vmem:[#allocation2 + $0xa8] sm:$0xff] %v4923_v34  ;;  %v7181_v47 = vor.u32 %v7749_v62, %v7180_v35  ;;  %v7185_v32 = vor.u32 %v7747_v50, %v7182_v59 }
 0x7f4   :  { %v4825_v44 = vpop.f32.mrf.mxu0 }
 0x7f5   :  { %v4826_v41 = vadd.f32 %v4825_v44, %v11120_v22  ;;  %5544 = vmatmul.bf16.gmra.mxu3 %v7181_v47  ;;  %5593 = vmatmul.bf16.gmra.mxu0 %v7185_v32 }
 0x7f7   :  { %v4885_v53 = vmax.f32 %v4826_v41, 0.0 }
 0x7f9   :  { %v4925_v54 = vpack.c.bf16 %v4885_v53, %v4884_v42 }
 0x7fa   :  { %v7196_v15 = vld [vmem:[#allocation2 + $0xa8] sm:$0xf]  ;;  %v7751_v4 = vld [vmem:[#allocation2 + $0xac] sm:$0xf] }
 0x7fb   :  { %4957 = vst [vmem:[#allocation2 + $0xb8] sm:$0xff] %v4925_v54 }
 0x7fc   :  { %v4828_v11 = vpop.f32.mrf.mxu0 }
 0x7fd   :  { %v4829_v45 = vadd.f32 %v4828_v11, %v11120_v22 }
 0x7ff   :  { %v4889_v12 = vmax.f32 %v4829_v45, 0.0  ;;  %v5427_v48 = vpop.f32.mrf.mxu1 }
 0x801   :  { %v4927_v56 = vpack.c.bf16 %v4889_v12, %v4888_v39 }
 0x802   :  { %v7753_v37 = vld [vmem:[#allocation2 + $0xb4] sm:$0xf0]  ;;  %v7198_v10 = vld [vmem:[#allocation2 + $0xb8] sm:$0xf0] }
 0x803   :  { %4959 = vst [vmem:[#allocation2 + $0xc8] sm:$0xff] %v4927_v56  ;;  %v7197_v3 = vor.u32 %v7753_v37, %v7196_v15  ;;  %v7201_v55 = vor.u32 %v7751_v4, %v7198_v10  ;;  %v5476_v51 = vpop.f32.mrf.mxu2 }
 0x804   :  { %v4830_v33 = vpop.f32.mrf.mxu0 }
 0x805   :  { %v4831_v24 = vadd.f32 %v4830_v33, %v11120_v22  ;;  %5549 = vmatmul.bf16.gmra.mxu3 %v7197_v3  ;;  %5598 = vmatmul.bf16.gmra.mxu0 %v7201_v55 }
 0x807   :  { %v4893_v29 = vmax.f32 %v4831_v24, 0.0  ;;  %v5429_v19 = vpop.f32.mrf.mxu1 }
 0x809   :  { %v4929_v27 = vpack.c.bf16 %v4893_v29, %v4892_v20 }
 0x80a   :  { %v7212_v16 = vld [vmem:[#allocation2 + $0xc8] sm:$0xf]  ;;  %v7755_v0 = vld [vmem:[#allocation2 + $0xcc] sm:$0xf] }
 0x80b   :  { %4961 = vst [vmem:[#allocation2 + $0xd8] sm:$0xff] %v4929_v27  ;;  %v5478_v2 = vpop.f32.mrf.mxu2 }
 0x80c   :  { %v4833_v21 = vpop.f32.mrf.mxu0 }
 0x80d   :  { %v4834_v13 = vadd.f32 %v4833_v21, %v11120_v22 }
 0x80f   :  { %v4897_v23 = vmax.f32 %v4834_v13, 0.0  ;;  %v5432_v62 = vpop.f32.mrf.mxu1 }
 0x811   :  { %v4931_v14 = vpack.c.bf16 %v4897_v23, %v4896_v28 }
 0x812   :  { %v7757_v40 = vld [vmem:[#allocation2 + $0xd4] sm:$0xf0]  ;;  %v7214_v8 = vld [vmem:[#allocation2 + $0xd8] sm:$0xf0] }
 0x813   :  { %4963 = vst [vmem:[#allocation2 + $0xe8] sm:$0xff] %v4931_v14  ;;  %v7213_v26 = vor.u32 %v7757_v40, %v7212_v16  ;;  %v7217_v46 = vor.u32 %v7755_v0, %v7214_v8  ;;  %v5481_v61 = vpop.f32.mrf.mxu2 }
 0x814   :  { %v4835_v60 = vpop.f32.mrf.mxu0 }
 0x815   :  { %v4836_v30 = vadd.f32 %v4835_v60, %v11120_v22  ;;  %5554 = vmatmul.bf16.gmra.mxu3 %v7213_v26  ;;  %5603 = vmatmul.bf16.gmra.mxu0 %v7217_v46  ;;  %v11184_v22 = vld [vmem:[%s11259_s9] ss:$0 sm:$0xff] }
 0x816   :  { %v5428_v43 = vadd.f32 %v11184_v22, %v5427_v48  ;;  %v5430_v53 = vadd.f32 %v11184_v22, %v5429_v19  ;;  %v5433_v12 = vadd.f32 %v11184_v22, %v5432_v62 }
 0x817   :  { %v4901_v6 = vmax.f32 %v4836_v30, 0.0  ;;  %v5434_v59 = vpop.f32.mrf.mxu1 }
 0x818   :  { %v5477_v32 = vadd.f32 %v5476_v51, %v5428_v43  ;;  %v5479_v58 = vadd.f32 %v5478_v2, %v5430_v53  ;;  %v5482_v15 = vadd.f32 %v5481_v61, %v5433_v12  ;;  %v5435_v55 = vadd.f32 %v11184_v22, %v5434_v59 }
 0x819   :  { %v4933_v9 = vpack.c.bf16 %v4901_v6, %v4900_v31 }
 0x81a   :  { %v7228_v36 = vld [vmem:[#allocation2 + $0xe8] sm:$0xf]  ;;  %v7759_v34 = vld [vmem:[#allocation2 + $0xec] sm:$0xf] }
 0x81b   :  { %4965 = vst [vmem:[#allocation2 + $0xf8] sm:$0xff] %v4933_v9  ;;  %v5483_v47 = vpop.f32.mrf.mxu2 }
 0x81c   :  { %v5484_v24 = vadd.f32 %v5483_v47, %v5435_v55 }
 0x81f   :  { %v5437_v38 = vpop.f32.mrf.mxu1 }
 0x820   :  { %v5438_v21 = vadd.f32 %v11184_v22, %v5437_v38 }
 0x822   :  { %v7761_v17 = vld [vmem:[#allocation2 + $0xf4] sm:$0xf0]  ;;  %v7230_v35 = vld [vmem:[#allocation2 + $0xf8] sm:$0xf0] }
 0x823   :  { %v7229_v50 = vor.u32 %v7761_v17, %v7228_v36  ;;  %v7233_v52 = vor.u32 %v7759_v34, %v7230_v35  ;;  %v5486_v54 = vpop.f32.mrf.mxu2 }
 0x824   :  { %v5487_v28 = vadd.f32 %v5486_v54, %v5438_v21 }
 0x825   :  { %5559 = vmatmul.bf16.gmra.mxu3 %v7229_v50  ;;  %5608 = vmatmul.bf16.gmra.mxu0 %v7233_v52 }
 0x827   :  { %v5439_v56 = vpop.f32.mrf.mxu1 }
 0x828   :  { %v5440_v48 = vadd.f32 %v11184_v22, %v5439_v56 }
 0x82b   :  { %v5488_v4 = vpop.f32.mrf.mxu2 }
 0x82c   :  { %v5489_v0 = vadd.f32 %v5488_v4, %v5440_v48 }
 0x82f   :  { %v5442_v33 = vpop.f32.mrf.mxu1 }
 0x830   :  { %v5443_v30 = vadd.f32 %v11184_v22, %v5442_v33 }
 0x832   :  { %v5574_v7 = vpop.f32.mrf.mxu0 }
 0x833   :  { %v5491_v27 = vpop.f32.mrf.mxu2 }
 0x834   :  { %v5492_v31 = vadd.f32 %v5491_v27, %v5443_v30 }
 0x837   :  { %v5444_v13 = vpop.f32.mrf.mxu1 }
 0x838   :  { %v5525_v57 = vpop.f32.mrf.mxu3  ;;  %v5445_v36 = vadd.f32 %v11184_v22, %v5444_v13 }
 0x839   :  { %v5526_v44 = vadd.f32 %v5525_v57, %v5477_v32 }
 0x83a   :  { %v5576_v41 = vpop.f32.mrf.mxu0 }
 0x83b   :  { %v5575_v42 = vadd.f32 %v5574_v7, %v5526_v44  ;;  %v5493_v40 = vpop.f32.mrf.mxu2 }
 0x83c   :  { %v5494_v34 = vadd.f32 %v5493_v40, %v5445_v36 }
 0x83d   :  { %5614 = vst [vmem:[%s11260_s10] sm:$0xff] %v5575_v42 }
 0x83f   :  { %v5447_v26 = vpop.f32.mrf.mxu1 }
 0x840   :  { %v5527_v11 = vpop.f32.mrf.mxu3  ;;  %v5448_v59 = vadd.f32 %v11184_v22, %v5447_v26 }
 0x841   :  { %v5528_v18 = vadd.f32 %v5527_v11, %v5479_v58 }
 0x842   :  { %v5579_v39 = vpop.f32.mrf.mxu0 }
 0x843   :  { %v5577_v45 = vadd.f32 %v5576_v41, %v5528_v18  ;;  %v5496_v51 = vpop.f32.mrf.mxu2 }
 0x844   :  { %v5497_v43 = vadd.f32 %v5496_v51, %v5448_v59 }
 0x845   :  { %5615 = vst [vmem:[%s11260_s10 + $0x8] sm:$0xff] %v5577_v45 }
 0x847   :  { %v5449_v17 = vpop.f32.mrf.mxu1 }
 0x848   :  { %v5530_v37 = vpop.f32.mrf.mxu3  ;;  %v5450_v41 = vadd.f32 %v11184_v22, %v5449_v17 }
 0x849   :  { %v5531_v10 = vadd.f32 %v5530_v37, %v5482_v15 }
 0x84a   :  { %v5581_v1 = vpop.f32.mrf.mxu0 }
 0x84b   :  { %v5580_v3 = vadd.f32 %v5579_v39, %v5531_v10  ;;  %v5498_v50 = vpop.f32.mrf.mxu2 }
 0x84c   :  { %v5499_v42 = vadd.f32 %v5498_v50, %v5450_v41 }
 0x84d   :  { %5616 = vst [vmem:[%s11260_s10 + $0x10] sm:$0xff] %v5580_v3 }
 0x84f   :  { %v5452_v7 = vpop.f32.mrf.mxu1 }
 0x850   :  { %v5532_v25 = vpop.f32.mrf.mxu3  ;;  %v5453_v39 = vadd.f32 %v11184_v22, %v5452_v7 }
 0x851   :  { %v5533_v20 = vadd.f32 %v5532_v25, %v5484_v24 }
 0x852   :  { %v5584_v29 = vpop.f32.mrf.mxu0 }
 0x853   :  { %v5582_v49 = vadd.f32 %v5581_v1, %v5533_v20  ;;  %v5501_v44 = vpop.f32.mrf.mxu2 }
 0x854   :  { %v5502_v12 = vadd.f32 %v5501_v44, %v5453_v39 }
 0x855   :  { %5617 = vst [vmem:[%s11260_s10 + $0x18] sm:$0xff] %v5582_v49 }
 0x857   :  { %v5454_v53 = vpop.f32.mrf.mxu1 }
 0x858   :  { %v5535_v23 = vpop.f32.mrf.mxu3  ;;  %v5455_v1 = vadd.f32 %v11184_v22, %v5454_v53 }
 0x859   :  { %v5536_v63 = vadd.f32 %v5535_v23, %v5487_v28 }
 0x85a   :  { %v5586_v14 = vpop.f32.mrf.mxu0 }
 0x85b   :  { %v5585_v16 = vadd.f32 %v5584_v29, %v5536_v63  ;;  %v5503_v45 = vpop.f32.mrf.mxu2 }
 0x85c   :  { %v5504_v55 = vadd.f32 %v5503_v45, %v5455_v1 }
 0x85d   :  { %5618 = vst [vmem:[%s11260_s10 + $0x20] sm:$0xff] %v5585_v16 }
 0x85f   :  { %v5457_v37 = vpop.f32.mrf.mxu1 }
 0x860   :  { %v5537_v8 = vpop.f32.mrf.mxu3  ;;  %v5458_v20 = vadd.f32 %v11184_v22, %v5457_v37 }
 0x861   :  { %v5538_v5 = vadd.f32 %v5537_v8, %v5489_v0 }
 0x862   :  { %v5589_v46 = vpop.f32.mrf.mxu0 }
 0x863   :  { %v5587_v60 = vadd.f32 %v5586_v14, %v5538_v5  ;;  %v5506_v3 = vpop.f32.mrf.mxu2 }
 0x864   :  { %v5507_v49 = vadd.f32 %v5506_v3, %v5458_v20 }
 0x865   :  { %5619 = vst [vmem:[%s11260_s10 + $0x28] sm:$0xff] %v5587_v60 }
 0x867   :  { %v5459_v29 = vpop.f32.mrf.mxu1 }
 0x868   :  { %v5540_v6 = vpop.f32.mrf.mxu3  ;;  %v5460_v63 = vadd.f32 %v11184_v22, %v5459_v29 }
 0x869   :  { %v5541_v9 = vadd.f32 %v5540_v6, %v5492_v31 }
 0x86a   :  { %v5591_v19 = vpop.f32.mrf.mxu0 }
 0x86b   :  { %v5590_v2 = vadd.f32 %v5589_v46, %v5541_v9  ;;  %v5508_v28 = vpop.f32.mrf.mxu2 }
 0x86c   :  { %v5509_v48 = vadd.f32 %v5508_v28, %v5460_v63 }
 0x86d   :  { %5620 = vst [vmem:[%s11260_s10 + $0x30] sm:$0xff] %v5590_v2 }
 0x86f   :  { %v5462_v14 = vpop.f32.mrf.mxu1 }
 0x870   :  { %v5542_v35 = vpop.f32.mrf.mxu3  ;;  %v5463_v26 = vadd.f32 %v11184_v22, %v5462_v14 }
 0x871   :  { %v5543_v52 = vadd.f32 %v5542_v35, %v5494_v34 }
 0x872   :  { %v5594_v62 = vpop.f32.mrf.mxu0 }
 0x873   :  { %v5592_v61 = vadd.f32 %v5591_v19, %v5543_v52  ;;  %v5511_v8 = vpop.f32.mrf.mxu2 }
 0x874   :  { %v5512_v46 = vadd.f32 %v5511_v8, %v5463_v26 }
 0x875   :  { %5621 = vst [vmem:[%s11260_s10 + $0x38] sm:$0xff] %v5592_v61 }
 0x877   :  { %v5464_v60 = vpop.f32.mrf.mxu1 }
 0x878   :  { %v5545_v47 = vpop.f32.mrf.mxu3  ;;  %v5465_v9 = vadd.f32 %v11184_v22, %v5464_v60 }
 0x879   :  { %v5546_v32 = vadd.f32 %v5545_v47, %v5497_v43 }
 0x87a   :  { %v5596_v57 = vpop.f32.mrf.mxu0 }
 0x87b   :  { %v5595_v38 = vadd.f32 %v5594_v62, %v5546_v32  ;;  %v5513_v19 = vpop.f32.mrf.mxu2 }
 0x87c   :  { %v5514_v2 = vadd.f32 %v5513_v19, %v5465_v9 }
 0x87d   :  { %5622 = vst [vmem:[%s11260_s10 + $0x40] sm:$0xff] %v5595_v38 }
 0x880   :  { %v5547_v54 = vpop.f32.mrf.mxu3 }
 0x881   :  { %v5548_v58 = vadd.f32 %v5547_v54, %v5499_v42 }
 0x882   :  { %v5599_v11 = vpop.f32.mrf.mxu0 }
 0x883   :  { %v5597_v18 = vadd.f32 %v5596_v57, %v5548_v58 }
 0x885   :  { %5623 = vst [vmem:[%s11260_s10 + $0x48] sm:$0xff] %v5597_v18 }
 0x888   :  { %v5550_v56 = vpop.f32.mrf.mxu3 }
 0x889   :  { %v5551_v15 = vadd.f32 %v5550_v56, %v5502_v12 }
 0x88a   :  { %v5601_v4 = vpop.f32.mrf.mxu0 }
 0x88b   :  { %v5600_v10 = vadd.f32 %v5599_v11, %v5551_v15 }
 0x88d   :  { %5624 = vst [vmem:[%s11260_s10 + $0x50] sm:$0xff] %v5600_v10 }
 0x890   :  { %v5552_v33 = vpop.f32.mrf.mxu3 }
 0x891   :  { %v5553_v24 = vadd.f32 %v5552_v33, %v5504_v55 }
 0x892   :  { %v5604_v27 = vpop.f32.mrf.mxu0 }
 0x893   :  { %v5602_v25 = vadd.f32 %v5601_v4, %v5553_v24 }
 0x895   :  { %5625 = vst [vmem:[%s11260_s10 + $0x58] sm:$0xff] %v5602_v25 }
 0x898   :  { %v5555_v21 = vpop.f32.mrf.mxu3 }
 0x899   :  { %v5556_v13 = vadd.f32 %v5555_v21, %v5507_v49 }
 0x89a   :  { %v5606_v16 = vpop.f32.mrf.mxu0 }
 0x89b   :  { %v5605_v23 = vadd.f32 %v5604_v27, %v5556_v13 }
 0x89d   :  { %5626 = vst [vmem:[%s11260_s10 + $0x60] sm:$0xff] %v5605_v23 }
 0x8a0   :  { %v5557_v40 = vpop.f32.mrf.mxu3 }
 0x8a1   :  { %v5558_v0 = vadd.f32 %v5557_v40, %v5509_v48 }
 0x8a2   :  { %v5609_v51 = vpop.f32.mrf.mxu0 }
 0x8a3   :  { %v5607_v5 = vadd.f32 %v5606_v16, %v5558_v0 }
 0x8a5   :  { %5627 = vst [vmem:[%s11260_s10 + $0x68] sm:$0xff] %v5607_v5 }
 0x8a8   :  { %v5560_v30 = vpop.f32.mrf.mxu3 }
 0x8a9   :  { %v5561_v31 = vadd.f32 %v5560_v30, %v5512_v46 }
 0x8aa   :  { %v5611_v34 = vpop.f32.mrf.mxu0 }
 0x8ab   :  { %v5610_v6 = vadd.f32 %v5609_v51, %v5561_v31 }
 0x8ad   :  { %5628 = vst [vmem:[%s11260_s10 + $0x70] sm:$0xff] %v5610_v6 }
 0x8b0   :  { %v5562_v36 = vpop.f32.mrf.mxu3 }
 0x8b1   :  { %v5563_v17 = vadd.f32 %v5562_v36, %v5514_v2 }
 0x8b3   :  { %v5612_v35 = vadd.f32 %v5611_v34, %v5563_v17 }
 0x8b5   :  { %5629 = vst [vmem:[%s11260_s10 + $0x78] sm:$0xff] %v5612_v35 }

</bundles_post_ra>
